<compile_context>
chip_gen: v7x
topology: tpu7x:2x2x1
jax: 0.10.0
libtpu: 0.0.40
codegen_flags: <defaults>
</compile_context>

<pallas_src>
import functools

import jax
import jax.numpy as jnp
from jax.experimental import pallas as pl
from jax.experimental.pallas import tpu as pltpu


def _round_up(x, m):
    return (x + m - 1) // m * m


# ----------------------------------------------------------------------------
# Pallas kernel: tiled fused (A @ W) + bias + activation, f32 accumulation.
# ----------------------------------------------------------------------------
def _gemm_bias_act_kernel(a_ref, w_ref, b_ref, o_ref, acc_ref, *, act, nk):
    k = pl.program_id(2)

    @pl.when(k == 0)
    def _():
        acc_ref[...] = jnp.zeros_like(acc_ref)

    acc_ref[...] += jnp.dot(a_ref[...], w_ref[...],
                            preferred_element_type=jnp.float32)

    @pl.when(k == nk - 1)
    def _():
        acc = acc_ref[...] + b_ref[...]          # (1, tn) broadcasts over rows
        if act == "relu":
            acc = jnp.maximum(acc, 0.0)
        elif act == "leaky_relu":                # PyTorch default slope 0.01
            acc = jnp.where(acc >= 0, acc, 0.01 * acc)
        elif act == "sigmoid":
            acc = 1.0 / (1.0 + jnp.exp(-acc))
        # act == "none": linear
        o_ref[...] = acc.astype(o_ref.dtype)


def gemm_bias_act(a, w, b, act, out_dtype=jnp.bfloat16):
    """a: (M, K), w: (K, N), b: (N,) -> (M, N) in out_dtype (f32 accumulate)."""
    M, K = a.shape
    N = w.shape[1]

    # Tile sizes (sized well under a 32 MiB scoped-VMEM budget with BlockSpec
    # double-buffering, so the same kernel is safe on v5e/v6e/v7x).
    tm = 512 if M >= 512 else _round_up(M, 8)
    tn = 256 if N > 128 else 128
    if K > 2560:                 # only dec1 (K = 4608) at the default config
        tk = 512
    else:
        tk = _round_up(K, 8)     # single K block (e.g. enc1: 27 -> 32)
    Mp = _round_up(M, tm)
    Np = _round_up(N, tn)
    Kp = _round_up(K, tk)
    nk = Kp // tk

    # Pad to tile multiples; cast MXU operands to bf16 (halves HBM/DMA bytes).
    a_p = jnp.pad(a, ((0, Mp - M), (0, Kp - K))).astype(jnp.bfloat16)
    w_p = jnp.pad(w, ((0, Kp - K), (0, Np - N))).astype(jnp.bfloat16)
    b_p = jnp.pad(b.astype(jnp.float32), (0, Np - N)).reshape(1, Np)

    cost = pl.CostEstimate(
        flops=2 * Mp * Np * Kp,
        transcendentals=(Mp * Np if act == "sigmoid" else 0),
        bytes_accessed=(a_p.size * 2 + w_p.size * 2 + b_p.size * 4
                        + Mp * Np * jnp.dtype(out_dtype).itemsize),
    )

    out = pl.pallas_call(
        functools.partial(_gemm_bias_act_kernel, act=act, nk=nk),
        out_shape=jax.ShapeDtypeStruct((Mp, Np), out_dtype),
        grid_spec=pltpu.PrefetchScalarGridSpec(
            num_scalar_prefetch=0,
            grid=(Mp // tm, Np // tn, nk),            # reduction axis last
            in_specs=[
                pl.BlockSpec((tm, tk), lambda i, j, k: (i, k)),
                pl.BlockSpec((tk, tn), lambda i, j, k: (k, j)),
                pl.BlockSpec((1, tn), lambda i, j, k: (0, j)),
            ],
            out_specs=pl.BlockSpec((tm, tn), lambda i, j, k: (i, j)),
            scratch_shapes=[pltpu.VMEM((tm, tn), jnp.float32)],
        ),
        compiler_params=pltpu.CompilerParams(
            dimension_semantics=("parallel", "parallel", "arbitrary"),
            vmem_limit_bytes=32 * 1024 * 1024,
        ),
        cost_estimate=cost,
    )(a_p, w_p, b_p)
    return out[:M, :N]


# ----------------------------------------------------------------------------
# Conv2d (3x3, padding=1) on NHWC = im2col glue + Pallas fused GEMM
# ----------------------------------------------------------------------------
def _im2col_3x3_nhwc(x, stride):
    # x: (N, H, W, C) -> (N*Ho*Wo, 9*C), column index ordered as (kh, kw, c)
    n, h, w, c = x.shape
    ho = (h + 2 - 3) // stride + 1
    wo = (w + 2 - 3) // stride + 1
    xp = jnp.pad(x, ((0, 0), (1, 1), (1, 1), (0, 0)))
    cols = []
    for kh in range(3):
        for kw in range(3):
            cols.append(
                xp[:, kh:kh + stride * (ho - 1) + 1:stride,
                       kw:kw + stride * (wo - 1) + 1:stride, :]
            )
    col = jnp.stack(cols, axis=3)                  # (N, Ho, Wo, 9, C)
    col = col.reshape(n * ho * wo, 9 * c)
    return col, ho, wo


def conv2d_3x3(x, w, b, *, stride, act, out_dtype=jnp.bfloat16):
    # x: (N, H, W, C_in);  w: (C_out, C_in, 3, 3) [PyTorch OIHW];  b: (C_out,)
    n = x.shape[0]
    co = w.shape[0]
    a, ho, wo = _im2col_3x3_nhwc(x, stride)
    # weight as (9*C_in, C_out) with row index ordered (kh, kw, c_in)
    wm = jnp.transpose(w, (2, 3, 1, 0)).reshape(9 * w.shape[1], co)
    out = gemm_bias_act(a, wm, b, act, out_dtype=out_dtype)   # (N*Ho*Wo, C_out)
    return out.reshape(n, ho, wo, co)


def upsample2x_nearest_nhwc(x):
    # nn.Upsample(scale_factor=2, mode='nearest') on NHWC
    return jnp.repeat(jnp.repeat(x, 2, axis=1), 2, axis=2)


# ----------------------------------------------------------------------------
# PatchAutoEncoder forward
# ----------------------------------------------------------------------------
def init_params(key):
    # (C_out, C_in) for each 3x3 conv (in_channels=3, out_channels=64)
    specs = {
        "enc1": (64, 3), "enc2": (128, 64), "enc3": (64, 128),      # ConvTower
        "dec1": (256, 512), "dec2": (128, 256), "dec3": (64, 128),  # Decoder
        "dec4": (3, 64),
    }
    params = {}
    for name, (co, ci) in specs.items():
        key, k1, k2 = jax.random.split(key, 3)
        std = (2.0 / (ci * 9)) ** 0.5
        params[name] = (
            jax.random.normal(k1, (co, ci, 3, 3), jnp.float32) * std,
            jax.random.normal(k2, (co,), jnp.float32) * 0.01,
        )
    return params


def patch_autoencoder(params, x):
    # x: (B, 8, C_in, H, W)  — PyTorch layout
    b, p, c, h, w = x.shape
    # Encoder: same ConvTower applied to each of the 8 patches; fold the patch
    # axis into batch and work in NHWC internally.
    xe = x.reshape(b * p, c, h, w).transpose(0, 2, 3, 1)          # NHWC
    t = conv2d_3x3(xe, *params["enc1"], stride=2, act="leaky_relu")
    t = conv2d_3x3(t, *params["enc2"], stride=2, act="leaky_relu")
    t = conv2d_3x3(t, *params["enc3"], stride=2, act="none")
    h8, w8, ce = t.shape[1], t.shape[2], t.shape[3]
    # torch.cat((out1..out8), dim=1): channel index = patch*64 + c.
    enc = (t.reshape(b, p, h8, w8, ce)
             .transpose(0, 2, 3, 1, 4)
             .reshape(b, h8, w8, p * ce))                          # (B,H/8,W/8,512)

    # Decoder
    d = conv2d_3x3(enc, *params["dec1"], stride=1, act="relu")
    d = upsample2x_nearest_nhwc(d)
    d = conv2d_3x3(d, *params["dec2"], stride=1, act="relu")
    d = upsample2x_nearest_nhwc(d)
    d = conv2d_3x3(d, *params["dec3"], stride=1, act="relu")
    d = upsample2x_nearest_nhwc(d)
    d = conv2d_3x3(d, *params["dec4"], stride=1, act="sigmoid",
                   out_dtype=jnp.float32)
    return d.transpose(0, 3, 1, 2)                                 # (B, 3, H, W)


# ----------------------------------------------------------------------------
# Pure-JAX references (correctness sanity checks)
# ----------------------------------------------------------------------------
def _ref_conv(x, w, b, stride, act, matmul_dtype):
    prec = jax.lax.Precision.HIGHEST if matmul_dtype == jnp.float32 else None
    out = jax.lax.conv_general_dilated(
        x.astype(matmul_dtype), w.astype(matmul_dtype),
        window_strides=(stride, stride), padding=((1, 1), (1, 1)),
        dimension_numbers=("NCHW", "OIHW", "NCHW"),
        preferred_element_type=jnp.float32,
        precision=prec,
    ) + b.reshape(1, -1, 1, 1).astype(jnp.float32)
    if act == "relu":
        return jnp.maximum(out, 0.0)
    if act == "leaky_relu":
        return jnp.where(out >= 0, out, 0.01 * out)
    if act == "sigmoid":
        return jax.nn.sigmoid(out)
    return out


def _up_nchw(x):
    return jnp.repeat(jnp.repeat(x, 2, axis=2), 2, axis=3)


def reference_forward(params, x, matmul_dtype=jnp.float32):
    b, p, c, h, w = x.shape
    xe = x.reshape(b * p, c, h, w)
    t = _ref_conv(xe, *params["enc1"], 2, "leaky_relu", matmul_dtype)
    t = _ref_conv(t, *params["enc2"], 2, "leaky_relu", matmul_dtype)
    t = _ref_conv(t, *params["enc3"], 2, "none", matmul_dtype)
    enc = t.reshape(b, p * t.shape[1], t.shape[2], t.shape[3])
    d = _ref_conv(enc, *params["dec1"], 1, "relu", matmul_dtype)
    d = _up_nchw(d)
    d = _ref_conv(d, *params["dec2"], 1, "relu", matmul_dtype)
    d = _up_nchw(d)
    d = _ref_conv(d, *params["dec3"], 1, "relu", matmul_dtype)
    d = _up_nchw(d)
    d = _ref_conv(d, *params["dec4"], 1, "sigmoid", matmul_dtype)
    return d


if __name__ == "__main__":
    key = jax.random.PRNGKey(0)
    pkey, xkey = jax.random.split(key)
    params = init_params(pkey)

    # x: (B=2, patches=8, C_in=3, H=16, W=16); H, W divisible by 8.
    x = jax.random.normal(xkey, (2, 8, 3, 16, 16), jnp.float32)

    fwd = jax.jit(patch_autoencoder)
    out = jax.block_until_ready(fwd(params, x))

    assert out.shape == (2, 3, 16, 16), out.shape
    assert bool(jnp.all(jnp.isfinite(out)))

    # Tight check vs a reference using the SAME precision recipe (bf16 MXU
    # operands, f32 accumulation / element-wise): validates im2col, tiling,
    # padding, patch folding and activations.
    ref_bf16 = jax.block_until_ready(
        jax.jit(functools.partial(reference_forward,
                                  matmul_dtype=jnp.bfloat16))(params, x))
    err_bf16 = float(jnp.max(jnp.abs(out - ref_bf16)))
    assert err_bf16 < 2e-2, f"mismatch vs bf16-matched reference: {err_bf16}"

    # Loose sanity bound vs the full-f32 reference (difference is the
    # deliberate bf16 MXU-input tradeoff).
    ref_f32 = jax.block_until_ready(
        jax.jit(functools.partial(reference_forward,
                                  matmul_dtype=jnp.float32))(params, x))
    err_f32 = float(jnp.max(jnp.abs(out - ref_f32)))
    assert err_f32 < 1e-1, f"mismatch vs f32 reference: {err_f32}"

    print("KERNEL_OK")
</pallas_src>

<mosaic_0001>
module attributes {stable_mosaic.version = 11 : i64} {
  func.func @_gemm_bias_act_kernel(%arg0: i32, %arg1: i32, %arg2: i32, %arg3: memref<512x32xbf16, #tpu.memory_space<vmem>>, %arg4: memref<32x128xbf16, #tpu.memory_space<vmem>>, %arg5: memref<1x128xf32, #tpu.memory_space<vmem>>, %arg6: memref<512x128xbf16, #tpu.memory_space<vmem>>, %arg7: memref<512x128xf32, #tpu.memory_space<vmem>>) attributes {dimension_semantics = [#tpu.dimension_semantics<parallel>, #tpu.dimension_semantics<parallel>, #tpu.dimension_semantics<arbitrary>], iteration_bounds = array<i64: 2, 1, 1>, scalar_prefetch = 0 : i64, scratch_operands = 1 : i64, tpu.core_type = #tpu.core_type<tc>, window_params = [{transform_indices = @transform_0, window_bounds = array<i64: 512, 32>}, {transform_indices = @transform_1, window_bounds = array<i64: 32, 128>}, {transform_indices = @transform_2, window_bounds = array<i64: 1, 128>}, {transform_indices = @transform_3, window_bounds = array<i64: 512, 128>}]} {
    %c0_i32 = arith.constant 0 : i32
    %0 = arith.cmpi eq, %arg2, %c0_i32 : i32
    %1 = arith.extui %0 : i1 to i32
    %c0_i32_0 = arith.constant 0 : i32
    %2 = arith.cmpi ne, %1, %c0_i32_0 : i32
    scf.if %2 {
      %cst_10 = arith.constant 0.000000e+00 : f32
      %12 = vector.broadcast %cst_10 : f32 to vector<512x128xf32>
      %c0_11 = arith.constant 0 : index
      %c0_12 = arith.constant 0 : index
      %13 = vector.load %arg7[%c0_11, %c0_12] : memref<512x128xf32, #tpu.memory_space<vmem>>, vector<512x128xf32>
      tpu.vector_store %arg7[%c0_11, %c0_12], %12 {strides = array<i32>} : memref<512x128xf32, #tpu.memory_space<vmem>>, vector<512x128xf32>,
    } else {
    }
    %c0 = arith.constant 0 : index
    %c0_1 = arith.constant 0 : index
    %3 = vector.load %arg7[%c0, %c0_1] : memref<512x128xf32, #tpu.memory_space<vmem>>, vector<512x128xf32>
    %c0_2 = arith.constant 0 : index
    %c0_3 = arith.constant 0 : index
    %4 = vector.load %arg3[%c0_2, %c0_3] : memref<512x32xbf16, #tpu.memory_space<vmem>>, vector<512x32xbf16>
    %c0_4 = arith.constant 0 : index
    %c0_5 = arith.constant 0 : index
    %5 = vector.load %arg4[%c0_4, %c0_5] : memref<32x128xbf16, #tpu.memory_space<vmem>>, vector<32x128xbf16>
    %cst = arith.constant dense<0.000000e+00> : vector<512x128xf32>
    %6 = tpu.matmul %4, %5, %cst {dimension_numbers = #tpu.dot_dimension_numbers<[1], [0], [0], [1], [0, 0, 1, 1], [], []>} : vector<512x32xbf16>, vector<32x128xbf16>, vector<512x128xf32> -> vector<512x128xf32>
    %7 = arith.addf %3, %6 : vector<512x128xf32>
    %c0_6 = arith.constant 0 : index
    %c0_7 = arith.constant 0 : index
    %8 = vector.load %arg7[%c0_6, %c0_7] : memref<512x128xf32, #tpu.memory_space<vmem>>, vector<512x128xf32>
    tpu.vector_store %arg7[%c0_6, %c0_7], %7 {strides = array<i32>} : memref<512x128xf32, #tpu.memory_space<vmem>>, vector<512x128xf32>,
    %c0_i32_8 = arith.constant 0 : i32
    %9 = arith.cmpi eq, %arg2, %c0_i32_8 : i32
    %10 = arith.extui %9 : i1 to i32
    %c0_i32_9 = arith.constant 0 : i32
    %11 = arith.cmpi ne, %10, %c0_i32_9 : i32
    scf.if %11 {
      %c0_10 = arith.constant 0 : index
      %c0_11 = arith.constant 0 : index
      %12 = vector.load %arg7[%c0_10, %c0_11] : memref<512x128xf32, #tpu.memory_space<vmem>>, vector<512x128xf32>
      %c0_12 = arith.constant 0 : index
      %c0_13 = arith.constant 0 : index
      %13 = vector.load %arg5[%c0_12, %c0_13] : memref<1x128xf32, #tpu.memory_space<vmem>>, vector<1x128xf32>
      %14 = vector.broadcast %13 : vector<1x128xf32> to vector<512x128xf32>
      %15 = arith.addf %12, %14 : vector<512x128xf32>
      %cst_14 = arith.constant 0.000000e+00 : f32
      %16 = vector.broadcast %cst_14 : f32 to vector<512x128xf32>
      %17 = arith.cmpf oge, %15, %16 : vector<512x128xf32>
      %cst_15 = arith.constant 0.00999999977 : f32
      %18 = vector.broadcast %cst_15 : f32 to vector<512x128xf32>
      %19 = arith.mulf %18, %15 : vector<512x128xf32>
      %20 = arith.select %17, %15, %19 : vector<512x128xi1>, vector<512x128xf32>
      %21 = arith.truncf %20 : vector<512x128xf32> to vector<512x128xbf16>
      %c0_16 = arith.constant 0 : index
      %c0_17 = arith.constant 0 : index
      %22 = vector.load %arg6[%c0_16, %c0_17] : memref<512x128xbf16, #tpu.memory_space<vmem>>, vector<512x128xbf16>
      tpu.vector_store %arg6[%c0_16, %c0_17], %21 {strides = array<i32>} : memref<512x128xbf16, #tpu.memory_space<vmem>>, vector<512x128xbf16>,
    } else {
    }
    return
  }
  func.func @transform_0(%arg0: i32, %arg1: i32, %arg2: i32) -> (i32, i32) {
    %c0_i32 = arith.constant 0 : i32
    return %arg0, %arg2 : i32, i32
  }
  func.func @transform_1(%arg0: i32, %arg1: i32, %arg2: i32) -> (i32, i32) {
    %c0_i32 = arith.constant 0 : i32
    return %arg2, %arg1 : i32, i32
  }
  func.func @transform_2(%arg0: i32, %arg1: i32, %arg2: i32) -> (i32, i32) {
    %c0_i32 = arith.constant 0 : i32
    %c0_i32_0 = arith.constant 0 : i32
    return %c0_i32, %arg1 : i32, i32
  }
  func.func @transform_3(%arg0: i32, %arg1: i32, %arg2: i32) -> (i32, i32) {
    %c0_i32 = arith.constant 0 : i32
    return %arg0, %arg1 : i32, i32
  }
}

module attributes {stable_mosaic.version = 11 : i64} {
  func.func @_gemm_bias_act_kernel(%arg0: i32, %arg1: i32, %arg2: i32, %arg3: memref<256x576xbf16, #tpu.memory_space<vmem>>, %arg4: memref<576x128xbf16, #tpu.memory_space<vmem>>, %arg5: memref<1x128xf32, #tpu.memory_space<vmem>>, %arg6: memref<256x128xbf16, #tpu.memory_space<vmem>>, %arg7: memref<256x128xf32, #tpu.memory_space<vmem>>) attributes {dimension_semantics = [#tpu.dimension_semantics<parallel>, #tpu.dimension_semantics<parallel>, #tpu.dimension_semantics<arbitrary>], iteration_bounds = array<i64: 1, 1, 1>, scalar_prefetch = 0 : i64, scratch_operands = 1 : i64, tpu.core_type = #tpu.core_type<tc>, window_params = [{transform_indices = @transform_0, window_bounds = array<i64: 256, 576>}, {transform_indices = @transform_1, window_bounds = array<i64: 576, 128>}, {transform_indices = @transform_2, window_bounds = array<i64: 1, 128>}, {transform_indices = @transform_3, window_bounds = array<i64: 256, 128>}]} {
    %c0_i32 = arith.constant 0 : i32
    %0 = arith.cmpi eq, %arg2, %c0_i32 : i32
    %1 = arith.extui %0 : i1 to i32
    %c0_i32_0 = arith.constant 0 : i32
    %2 = arith.cmpi ne, %1, %c0_i32_0 : i32
    scf.if %2 {
      %cst_10 = arith.constant 0.000000e+00 : f32
      %12 = vector.broadcast %cst_10 : f32 to vector<256x128xf32>
      %c0_11 = arith.constant 0 : index
      %c0_12 = arith.constant 0 : index
      %13 = vector.load %arg7[%c0_11, %c0_12] : memref<256x128xf32, #tpu.memory_space<vmem>>, vector<256x128xf32>
      tpu.vector_store %arg7[%c0_11, %c0_12], %12 {strides = array<i32>} : memref<256x128xf32, #tpu.memory_space<vmem>>, vector<256x128xf32>,
    } else {
    }
    %c0 = arith.constant 0 : index
    %c0_1 = arith.constant 0 : index
    %3 = vector.load %arg7[%c0, %c0_1] : memref<256x128xf32, #tpu.memory_space<vmem>>, vector<256x128xf32>
    %c0_2 = arith.constant 0 : index
    %c0_3 = arith.constant 0 : index
    %4 = vector.load %arg3[%c0_2, %c0_3] : memref<256x576xbf16, #tpu.memory_space<vmem>>, vector<256x576xbf16>
    %c0_4 = arith.constant 0 : index
    %c0_5 = arith.constant 0 : index
    %5 = vector.load %arg4[%c0_4, %c0_5] : memref<576x128xbf16, #tpu.memory_space<vmem>>, vector<576x128xbf16>
    %cst = arith.constant dense<0.000000e+00> : vector<256x128xf32>
    %6 = tpu.matmul %4, %5, %cst {dimension_numbers = #tpu.dot_dimension_numbers<[1], [0], [0], [1], [0, 0, 1, 1], [], []>} : vector<256x576xbf16>, vector<576x128xbf16>, vector<256x128xf32> -> vector<256x128xf32>
    %7 = arith.addf %3, %6 : vector<256x128xf32>
    %c0_6 = arith.constant 0 : index
    %c0_7 = arith.constant 0 : index
    %8 = vector.load %arg7[%c0_6, %c0_7] : memref<256x128xf32, #tpu.memory_space<vmem>>, vector<256x128xf32>
    tpu.vector_store %arg7[%c0_6, %c0_7], %7 {strides = array<i32>} : memref<256x128xf32, #tpu.memory_space<vmem>>, vector<256x128xf32>,
    %c0_i32_8 = arith.constant 0 : i32
    %9 = arith.cmpi eq, %arg2, %c0_i32_8 : i32
    %10 = arith.extui %9 : i1 to i32
    %c0_i32_9 = arith.constant 0 : i32
    %11 = arith.cmpi ne, %10, %c0_i32_9 : i32
    scf.if %11 {
      %c0_10 = arith.constant 0 : index
      %c0_11 = arith.constant 0 : index
      %12 = vector.load %arg7[%c0_10, %c0_11] : memref<256x128xf32, #tpu.memory_space<vmem>>, vector<256x128xf32>
      %c0_12 = arith.constant 0 : index
      %c0_13 = arith.constant 0 : index
      %13 = vector.load %arg5[%c0_12, %c0_13] : memref<1x128xf32, #tpu.memory_space<vmem>>, vector<1x128xf32>
      %14 = vector.broadcast %13 : vector<1x128xf32> to vector<256x128xf32>
      %15 = arith.addf %12, %14 : vector<256x128xf32>
      %cst_14 = arith.constant 0.000000e+00 : f32
      %16 = vector.broadcast %cst_14 : f32 to vector<256x128xf32>
      %17 = arith.cmpf oge, %15, %16 : vector<256x128xf32>
      %cst_15 = arith.constant 0.00999999977 : f32
      %18 = vector.broadcast %cst_15 : f32 to vector<256x128xf32>
      %19 = arith.mulf %18, %15 : vector<256x128xf32>
      %20 = arith.select %17, %15, %19 : vector<256x128xi1>, vector<256x128xf32>
      %21 = arith.truncf %20 : vector<256x128xf32> to vector<256x128xbf16>
      %c0_16 = arith.constant 0 : index
      %c0_17 = arith.constant 0 : index
      %22 = vector.load %arg6[%c0_16, %c0_17] : memref<256x128xbf16, #tpu.memory_space<vmem>>, vector<256x128xbf16>
      tpu.vector_store %arg6[%c0_16, %c0_17], %21 {strides = array<i32>} : memref<256x128xbf16, #tpu.memory_space<vmem>>, vector<256x128xbf16>,
    } else {
    }
    return
  }
  func.func @transform_0(%arg0: i32, %arg1: i32, %arg2: i32) -> (i32, i32) {
    %c0_i32 = arith.constant 0 : i32
    return %arg0, %arg2 : i32, i32
  }
  func.func @transform_1(%arg0: i32, %arg1: i32, %arg2: i32) -> (i32, i32) {
    %c0_i32 = arith.constant 0 : i32
    return %arg2, %arg1 : i32, i32
  }
  func.func @transform_2(%arg0: i32, %arg1: i32, %arg2: i32) -> (i32, i32) {
    %c0_i32 = arith.constant 0 : i32
    %c0_i32_0 = arith.constant 0 : i32
    return %c0_i32, %arg1 : i32, i32
  }
  func.func @transform_3(%arg0: i32, %arg1: i32, %arg2: i32) -> (i32, i32) {
    %c0_i32 = arith.constant 0 : i32
    return %arg0, %arg1 : i32, i32
  }
}

module attributes {stable_mosaic.version = 11 : i64} {
  func.func @_gemm_bias_act_kernel(%arg0: i32, %arg1: i32, %arg2: i32, %arg3: memref<64x1152xbf16, #tpu.memory_space<vmem>>, %arg4: memref<1152x128xbf16, #tpu.memory_space<vmem>>, %arg5: memref<1x128xf32, #tpu.memory_space<vmem>>, %arg6: memref<64x128xbf16, #tpu.memory_space<vmem>>, %arg7: memref<64x128xf32, #tpu.memory_space<vmem>>) attributes {dimension_semantics = [#tpu.dimension_semantics<parallel>, #tpu.dimension_semantics<parallel>, #tpu.dimension_semantics<arbitrary>], iteration_bounds = array<i64: 1, 1, 1>, scalar_prefetch = 0 : i64, scratch_operands = 1 : i64, tpu.core_type = #tpu.core_type<tc>, window_params = [{transform_indices = @transform_0, window_bounds = array<i64: 64, 1152>}, {transform_indices = @transform_1, window_bounds = array<i64: 1152, 128>}, {transform_indices = @transform_2, window_bounds = array<i64: 1, 128>}, {transform_indices = @transform_3, window_bounds = array<i64: 64, 128>}]} {
    %c0_i32 = arith.constant 0 : i32
    %0 = arith.cmpi eq, %arg2, %c0_i32 : i32
    %1 = arith.extui %0 : i1 to i32
    %c0_i32_0 = arith.constant 0 : i32
    %2 = arith.cmpi ne, %1, %c0_i32_0 : i32
    scf.if %2 {
      %cst_10 = arith.constant 0.000000e+00 : f32
      %12 = vector.broadcast %cst_10 : f32 to vector<64x128xf32>
      %c0_11 = arith.constant 0 : index
      %c0_12 = arith.constant 0 : index
      %13 = vector.load %arg7[%c0_11, %c0_12] : memref<64x128xf32, #tpu.memory_space<vmem>>, vector<64x128xf32>
      tpu.vector_store %arg7[%c0_11, %c0_12], %12 {strides = array<i32>} : memref<64x128xf32, #tpu.memory_space<vmem>>, vector<64x128xf32>,
    } else {
    }
    %c0 = arith.constant 0 : index
    %c0_1 = arith.constant 0 : index
    %3 = vector.load %arg7[%c0, %c0_1] : memref<64x128xf32, #tpu.memory_space<vmem>>, vector<64x128xf32>
    %c0_2 = arith.constant 0 : index
    %c0_3 = arith.constant 0 : index
    %4 = vector.load %arg3[%c0_2, %c0_3] : memref<64x1152xbf16, #tpu.memory_space<vmem>>, vector<64x1152xbf16>
    %c0_4 = arith.constant 0 : index
    %c0_5 = arith.constant 0 : index
    %5 = vector.load %arg4[%c0_4, %c0_5] : memref<1152x128xbf16, #tpu.memory_space<vmem>>, vector<1152x128xbf16>
    %cst = arith.constant dense<0.000000e+00> : vector<64x128xf32>
    %6 = tpu.matmul %4, %5, %cst {dimension_numbers = #tpu.dot_dimension_numbers<[1], [0], [0], [1], [0, 0, 1, 1], [], []>} : vector<64x1152xbf16>, vector<1152x128xbf16>, vector<64x128xf32> -> vector<64x128xf32>
    %7 = arith.addf %3, %6 : vector<64x128xf32>
    %c0_6 = arith.constant 0 : index
    %c0_7 = arith.constant 0 : index
    %8 = vector.load %arg7[%c0_6, %c0_7] : memref<64x128xf32, #tpu.memory_space<vmem>>, vector<64x128xf32>
    tpu.vector_store %arg7[%c0_6, %c0_7], %7 {strides = array<i32>} : memref<64x128xf32, #tpu.memory_space<vmem>>, vector<64x128xf32>,
    %c0_i32_8 = arith.constant 0 : i32
    %9 = arith.cmpi eq, %arg2, %c0_i32_8 : i32
    %10 = arith.extui %9 : i1 to i32
    %c0_i32_9 = arith.constant 0 : i32
    %11 = arith.cmpi ne, %10, %c0_i32_9 : i32
    scf.if %11 {
      %c0_10 = arith.constant 0 : index
      %c0_11 = arith.constant 0 : index
      %12 = vector.load %arg7[%c0_10, %c0_11] : memref<64x128xf32, #tpu.memory_space<vmem>>, vector<64x128xf32>
      %c0_12 = arith.constant 0 : index
      %c0_13 = arith.constant 0 : index
      %13 = vector.load %arg5[%c0_12, %c0_13] : memref<1x128xf32, #tpu.memory_space<vmem>>, vector<1x128xf32>
      %14 = vector.broadcast %13 : vector<1x128xf32> to vector<64x128xf32>
      %15 = arith.addf %12, %14 : vector<64x128xf32>
      %16 = arith.truncf %15 : vector<64x128xf32> to vector<64x128xbf16>
      %c0_14 = arith.constant 0 : index
      %c0_15 = arith.constant 0 : index
      %17 = vector.load %arg6[%c0_14, %c0_15] : memref<64x128xbf16, #tpu.memory_space<vmem>>, vector<64x128xbf16>
      tpu.vector_store %arg6[%c0_14, %c0_15], %16 {strides = array<i32>} : memref<64x128xbf16, #tpu.memory_space<vmem>>, vector<64x128xbf16>,
    } else {
    }
    return
  }
  func.func @transform_0(%arg0: i32, %arg1: i32, %arg2: i32) -> (i32, i32) {
    %c0_i32 = arith.constant 0 : i32
    return %arg0, %arg2 : i32, i32
  }
  func.func @transform_1(%arg0: i32, %arg1: i32, %arg2: i32) -> (i32, i32) {
    %c0_i32 = arith.constant 0 : i32
    return %arg2, %arg1 : i32, i32
  }
  func.func @transform_2(%arg0: i32, %arg1: i32, %arg2: i32) -> (i32, i32) {
    %c0_i32 = arith.constant 0 : i32
    %c0_i32_0 = arith.constant 0 : i32
    return %c0_i32, %arg1 : i32, i32
  }
  func.func @transform_3(%arg0: i32, %arg1: i32, %arg2: i32) -> (i32, i32) {
    %c0_i32 = arith.constant 0 : i32
    return %arg0, %arg1 : i32, i32
  }
}

module attributes {stable_mosaic.version = 11 : i64} {
  func.func @_gemm_bias_act_kernel(%arg0: i32, %arg1: i32, %arg2: i32, %arg3: memref<8x512xbf16, #tpu.memory_space<vmem>>, %arg4: memref<512x256xbf16, #tpu.memory_space<vmem>>, %arg5: memref<1x256xf32, #tpu.memory_space<vmem>>, %arg6: memref<8x256xbf16, #tpu.memory_space<vmem>>, %arg7: memref<8x256xf32, #tpu.memory_space<vmem>>) attributes {dimension_semantics = [#tpu.dimension_semantics<parallel>, #tpu.dimension_semantics<parallel>, #tpu.dimension_semantics<arbitrary>], iteration_bounds = array<i64: 1, 1, 9>, scalar_prefetch = 0 : i64, scratch_operands = 1 : i64, tpu.core_type = #tpu.core_type<tc>, window_params = [{transform_indices = @transform_0, window_bounds = array<i64: 8, 512>}, {transform_indices = @transform_1, window_bounds = array<i64: 512, 256>}, {transform_indices = @transform_2, window_bounds = array<i64: 1, 256>}, {transform_indices = @transform_3, window_bounds = array<i64: 8, 256>}]} {
    %c0_i32 = arith.constant 0 : i32
    %0 = arith.cmpi eq, %arg2, %c0_i32 : i32
    %1 = arith.extui %0 : i1 to i32
    %c0_i32_0 = arith.constant 0 : i32
    %2 = arith.cmpi ne, %1, %c0_i32_0 : i32
    scf.if %2 {
      %cst_9 = arith.constant 0.000000e+00 : f32
      %12 = vector.broadcast %cst_9 : f32 to vector<8x256xf32>
      %c0_10 = arith.constant 0 : index
      %c0_11 = arith.constant 0 : index
      %13 = vector.load %arg7[%c0_10, %c0_11] : memref<8x256xf32, #tpu.memory_space<vmem>>, vector<8x256xf32>
      tpu.vector_store %arg7[%c0_10, %c0_11], %12 {strides = array<i32>} : memref<8x256xf32, #tpu.memory_space<vmem>>, vector<8x256xf32>,
    } else {
    }
    %c0 = arith.constant 0 : index
    %c0_1 = arith.constant 0 : index
    %3 = vector.load %arg7[%c0, %c0_1] : memref<8x256xf32, #tpu.memory_space<vmem>>, vector<8x256xf32>
    %c0_2 = arith.constant 0 : index
    %c0_3 = arith.constant 0 : index
    %4 = vector.load %arg3[%c0_2, %c0_3] : memref<8x512xbf16, #tpu.memory_space<vmem>>, vector<8x512xbf16>
    %c0_4 = arith.constant 0 : index
    %c0_5 = arith.constant 0 : index
    %5 = vector.load %arg4[%c0_4, %c0_5] : memref<512x256xbf16, #tpu.memory_space<vmem>>, vector<512x256xbf16>
    %cst = arith.constant dense<0.000000e+00> : vector<8x256xf32>
    %6 = tpu.matmul %4, %5, %cst {dimension_numbers = #tpu.dot_dimension_numbers<[1], [0], [0], [1], [0, 0, 1, 1], [], []>} : vector<8x512xbf16>, vector<512x256xbf16>, vector<8x256xf32> -> vector<8x256xf32>
    %7 = arith.addf %3, %6 : vector<8x256xf32>
    %c0_6 = arith.constant 0 : index
    %c0_7 = arith.constant 0 : index
    %8 = vector.load %arg7[%c0_6, %c0_7] : memref<8x256xf32, #tpu.memory_space<vmem>>, vector<8x256xf32>
    tpu.vector_store %arg7[%c0_6, %c0_7], %7 {strides = array<i32>} : memref<8x256xf32, #tpu.memory_space<vmem>>, vector<8x256xf32>,
    %c8_i32 = arith.constant 8 : i32
    %9 = arith.cmpi eq, %arg2, %c8_i32 : i32
    %10 = arith.extui %9 : i1 to i32
    %c0_i32_8 = arith.constant 0 : i32
    %11 = arith.cmpi ne, %10, %c0_i32_8 : i32
    scf.if %11 {
      %c0_9 = arith.constant 0 : index
      %c0_10 = arith.constant 0 : index
      %12 = vector.load %arg7[%c0_9, %c0_10] : memref<8x256xf32, #tpu.memory_space<vmem>>, vector<8x256xf32>
      %c0_11 = arith.constant 0 : index
      %c0_12 = arith.constant 0 : index
      %13 = vector.load %arg5[%c0_11, %c0_12] : memref<1x256xf32, #tpu.memory_space<vmem>>, vector<1x256xf32>
      %14 = vector.broadcast %13 : vector<1x256xf32> to vector<8x256xf32>
      %15 = arith.addf %12, %14 : vector<8x256xf32>
      %cst_13 = arith.constant 0.000000e+00 : f32
      %16 = vector.broadcast %cst_13 : f32 to vector<8x256xf32>
      %17 = arith.maximumf %15, %16 : vector<8x256xf32>
      %18 = arith.truncf %17 : vector<8x256xf32> to vector<8x256xbf16>
      %c0_14 = arith.constant 0 : index
      %c0_15 = arith.constant 0 : index
      %19 = vector.load %arg6[%c0_14, %c0_15] : memref<8x256xbf16, #tpu.memory_space<vmem>>, vector<8x256xbf16>
      tpu.vector_store %arg6[%c0_14, %c0_15], %18 {strides = array<i32>} : memref<8x256xbf16, #tpu.memory_space<vmem>>, vector<8x256xbf16>,
    } else {
    }
    return
  }
  func.func @transform_0(%arg0: i32, %arg1: i32, %arg2: i32) -> (i32, i32) {
    %c0_i32 = arith.constant 0 : i32
    return %arg0, %arg2 : i32, i32
  }
  func.func @transform_1(%arg0: i32, %arg1: i32, %arg2: i32) -> (i32, i32) {
    %c0_i32 = arith.constant 0 : i32
    return %arg2, %arg1 : i32, i32
  }
  func.func @transform_2(%arg0: i32, %arg1: i32, %arg2: i32) -> (i32, i32) {
    %c0_i32 = arith.constant 0 : i32
    %c0_i32_0 = arith.constant 0 : i32
    return %c0_i32, %arg1 : i32, i32
  }
  func.func @transform_3(%arg0: i32, %arg1: i32, %arg2: i32) -> (i32, i32) {
    %c0_i32 = arith.constant 0 : i32
    return %arg0, %arg1 : i32, i32
  }
}

module attributes {stable_mosaic.version = 11 : i64} {
  func.func @_gemm_bias_act_kernel(%arg0: i32, %arg1: i32, %arg2: i32, %arg3: memref<32x2304xbf16, #tpu.memory_space<vmem>>, %arg4: memref<2304x128xbf16, #tpu.memory_space<vmem>>, %arg5: memref<1x128xf32, #tpu.memory_space<vmem>>, %arg6: memref<32x128xbf16, #tpu.memory_space<vmem>>, %arg7: memref<32x128xf32, #tpu.memory_space<vmem>>) attributes {dimension_semantics = [#tpu.dimension_semantics<parallel>, #tpu.dimension_semantics<parallel>, #tpu.dimension_semantics<arbitrary>], iteration_bounds = array<i64: 1, 1, 1>, scalar_prefetch = 0 : i64, scratch_operands = 1 : i64, tpu.core_type = #tpu.core_type<tc>, window_params = [{transform_indices = @transform_0, window_bounds = array<i64: 32, 2304>}, {transform_indices = @transform_1, window_bounds = array<i64: 2304, 128>}, {transform_indices = @transform_2, window_bounds = array<i64: 1, 128>}, {transform_indices = @transform_3, window_bounds = array<i64: 32, 128>}]} {
    %c0_i32 = arith.constant 0 : i32
    %0 = arith.cmpi eq, %arg2, %c0_i32 : i32
    %1 = arith.extui %0 : i1 to i32
    %c0_i32_0 = arith.constant 0 : i32
    %2 = arith.cmpi ne, %1, %c0_i32_0 : i32
    scf.if %2 {
      %cst_10 = arith.constant 0.000000e+00 : f32
      %12 = vector.broadcast %cst_10 : f32 to vector<32x128xf32>
      %c0_11 = arith.constant 0 : index
      %c0_12 = arith.constant 0 : index
      %13 = vector.load %arg7[%c0_11, %c0_12] : memref<32x128xf32, #tpu.memory_space<vmem>>, vector<32x128xf32>
      tpu.vector_store %arg7[%c0_11, %c0_12], %12 {strides = array<i32>} : memref<32x128xf32, #tpu.memory_space<vmem>>, vector<32x128xf32>,
    } else {
    }
    %c0 = arith.constant 0 : index
    %c0_1 = arith.constant 0 : index
    %3 = vector.load %arg7[%c0, %c0_1] : memref<32x128xf32, #tpu.memory_space<vmem>>, vector<32x128xf32>
    %c0_2 = arith.constant 0 : index
    %c0_3 = arith.constant 0 : index
    %4 = vector.load %arg3[%c0_2, %c0_3] : memref<32x2304xbf16, #tpu.memory_space<vmem>>, vector<32x2304xbf16>
    %c0_4 = arith.constant 0 : index
    %c0_5 = arith.constant 0 : index
    %5 = vector.load %arg4[%c0_4, %c0_5] : memref<2304x128xbf16, #tpu.memory_space<vmem>>, vector<2304x128xbf16>
    %cst = arith.constant dense<0.000000e+00> : vector<32x128xf32>
    %6 = tpu.matmul %4, %5, %cst {dimension_numbers = #tpu.dot_dimension_numbers<[1], [0], [0], [1], [0, 0, 1, 1], [], []>} : vector<32x2304xbf16>, vector<2304x128xbf16>, vector<32x128xf32> -> vector<32x128xf32>
    %7 = arith.addf %3, %6 : vector<32x128xf32>
    %c0_6 = arith.constant 0 : index
    %c0_7 = arith.constant 0 : index
    %8 = vector.load %arg7[%c0_6, %c0_7] : memref<32x128xf32, #tpu.memory_space<vmem>>, vector<32x128xf32>
    tpu.vector_store %arg7[%c0_6, %c0_7], %7 {strides = array<i32>} : memref<32x128xf32, #tpu.memory_space<vmem>>, vector<32x128xf32>,
    %c0_i32_8 = arith.constant 0 : i32
    %9 = arith.cmpi eq, %arg2, %c0_i32_8 : i32
    %10 = arith.extui %9 : i1 to i32
    %c0_i32_9 = arith.constant 0 : i32
    %11 = arith.cmpi ne, %10, %c0_i32_9 : i32
    scf.if %11 {
      %c0_10 = arith.constant 0 : index
      %c0_11 = arith.constant 0 : index
      %12 = vector.load %arg7[%c0_10, %c0_11] : memref<32x128xf32, #tpu.memory_space<vmem>>, vector<32x128xf32>
      %c0_12 = arith.constant 0 : index
      %c0_13 = arith.constant 0 : index
      %13 = vector.load %arg5[%c0_12, %c0_13] : memref<1x128xf32, #tpu.memory_space<vmem>>, vector<1x128xf32>
      %14 = vector.broadcast %13 : vector<1x128xf32> to vector<32x128xf32>
      %15 = arith.addf %12, %14 : vector<32x128xf32>
      %cst_14 = arith.constant 0.000000e+00 : f32
      %16 = vector.broadcast %cst_14 : f32 to vector<32x128xf32>
      %17 = arith.maximumf %15, %16 : vector<32x128xf32>
      %18 = arith.truncf %17 : vector<32x128xf32> to vector<32x128xbf16>
      %c0_15 = arith.constant 0 : index
      %c0_16 = arith.constant 0 : index
      %19 = vector.load %arg6[%c0_15, %c0_16] : memref<32x128xbf16, #tpu.memory_space<vmem>>, vector<32x128xbf16>
      tpu.vector_store %arg6[%c0_15, %c0_16], %18 {strides = array<i32>} : memref<32x128xbf16, #tpu.memory_space<vmem>>, vector<32x128xbf16>,
    } else {
    }
    return
  }
  func.func @transform_0(%arg0: i32, %arg1: i32, %arg2: i32) -> (i32, i32) {
    %c0_i32 = arith.constant 0 : i32
    return %arg0, %arg2 : i32, i32
  }
  func.func @transform_1(%arg0: i32, %arg1: i32, %arg2: i32) -> (i32, i32) {
    %c0_i32 = arith.constant 0 : i32
    return %arg2, %arg1 : i32, i32
  }
  func.func @transform_2(%arg0: i32, %arg1: i32, %arg2: i32) -> (i32, i32) {
    %c0_i32 = arith.constant 0 : i32
    %c0_i32_0 = arith.constant 0 : i32
    return %c0_i32, %arg1 : i32, i32
  }
  func.func @transform_3(%arg0: i32, %arg1: i32, %arg2: i32) -> (i32, i32) {
    %c0_i32 = arith.constant 0 : i32
    return %arg0, %arg1 : i32, i32
  }
}

module attributes {stable_mosaic.version = 11 : i64} {
  func.func @_gemm_bias_act_kernel(%arg0: i32, %arg1: i32, %arg2: i32, %arg3: memref<128x1152xbf16, #tpu.memory_space<vmem>>, %arg4: memref<1152x128xbf16, #tpu.memory_space<vmem>>, %arg5: memref<1x128xf32, #tpu.memory_space<vmem>>, %arg6: memref<128x128xbf16, #tpu.memory_space<vmem>>, %arg7: memref<128x128xf32, #tpu.memory_space<vmem>>) attributes {dimension_semantics = [#tpu.dimension_semantics<parallel>, #tpu.dimension_semantics<parallel>, #tpu.dimension_semantics<arbitrary>], iteration_bounds = array<i64: 1, 1, 1>, scalar_prefetch = 0 : i64, scratch_operands = 1 : i64, tpu.core_type = #tpu.core_type<tc>, window_params = [{transform_indices = @transform_0, window_bounds = array<i64: 128, 1152>}, {transform_indices = @transform_1, window_bounds = array<i64: 1152, 128>}, {transform_indices = @transform_2, window_bounds = array<i64: 1, 128>}, {transform_indices = @transform_3, window_bounds = array<i64: 128, 128>}]} {
    %c0_i32 = arith.constant 0 : i32
    %0 = arith.cmpi eq, %arg2, %c0_i32 : i32
    %1 = arith.extui %0 : i1 to i32
    %c0_i32_0 = arith.constant 0 : i32
    %2 = arith.cmpi ne, %1, %c0_i32_0 : i32
    scf.if %2 {
      %cst_10 = arith.constant 0.000000e+00 : f32
      %12 = vector.broadcast %cst_10 : f32 to vector<128x128xf32>
      %c0_11 = arith.constant 0 : index
      %c0_12 = arith.constant 0 : index
      %13 = vector.load %arg7[%c0_11, %c0_12] : memref<128x128xf32, #tpu.memory_space<vmem>>, vector<128x128xf32>
      tpu.vector_store %arg7[%c0_11, %c0_12], %12 {strides = array<i32>} : memref<128x128xf32, #tpu.memory_space<vmem>>, vector<128x128xf32>,
    } else {
    }
    %c0 = arith.constant 0 : index
    %c0_1 = arith.constant 0 : index
    %3 = vector.load %arg7[%c0, %c0_1] : memref<128x128xf32, #tpu.memory_space<vmem>>, vector<128x128xf32>
    %c0_2 = arith.constant 0 : index
    %c0_3 = arith.constant 0 : index
    %4 = vector.load %arg3[%c0_2, %c0_3] : memref<128x1152xbf16, #tpu.memory_space<vmem>>, vector<128x1152xbf16>
    %c0_4 = arith.constant 0 : index
    %c0_5 = arith.constant 0 : index
    %5 = vector.load %arg4[%c0_4, %c0_5] : memref<1152x128xbf16, #tpu.memory_space<vmem>>, vector<1152x128xbf16>
    %cst = arith.constant dense<0.000000e+00> : vector<128x128xf32>
    %6 = tpu.matmul %4, %5, %cst {dimension_numbers = #tpu.dot_dimension_numbers<[1], [0], [0], [1], [0, 0, 1, 1], [], []>} : vector<128x1152xbf16>, vector<1152x128xbf16>, vector<128x128xf32> -> vector<128x128xf32>
    %7 = arith.addf %3, %6 : vector<128x128xf32>
    %c0_6 = arith.constant 0 : index
    %c0_7 = arith.constant 0 : index
    %8 = vector.load %arg7[%c0_6, %c0_7] : memref<128x128xf32, #tpu.memory_space<vmem>>, vector<128x128xf32>
    tpu.vector_store %arg7[%c0_6, %c0_7], %7 {strides = array<i32>} : memref<128x128xf32, #tpu.memory_space<vmem>>, vector<128x128xf32>,
    %c0_i32_8 = arith.constant 0 : i32
    %9 = arith.cmpi eq, %arg2, %c0_i32_8 : i32
    %10 = arith.extui %9 : i1 to i32
    %c0_i32_9 = arith.constant 0 : i32
    %11 = arith.cmpi ne, %10, %c0_i32_9 : i32
    scf.if %11 {
      %c0_10 = arith.constant 0 : index
      %c0_11 = arith.constant 0 : index
      %12 = vector.load %arg7[%c0_10, %c0_11] : memref<128x128xf32, #tpu.memory_space<vmem>>, vector<128x128xf32>
      %c0_12 = arith.constant 0 : index
      %c0_13 = arith.constant 0 : index
      %13 = vector.load %arg5[%c0_12, %c0_13] : memref<1x128xf32, #tpu.memory_space<vmem>>, vector<1x128xf32>
      %14 = vector.broadcast %13 : vector<1x128xf32> to vector<128x128xf32>
      %15 = arith.addf %12, %14 : vector<128x128xf32>
      %cst_14 = arith.constant 0.000000e+00 : f32
      %16 = vector.broadcast %cst_14 : f32 to vector<128x128xf32>
      %17 = arith.maximumf %15, %16 : vector<128x128xf32>
      %18 = arith.truncf %17 : vector<128x128xf32> to vector<128x128xbf16>
      %c0_15 = arith.constant 0 : index
      %c0_16 = arith.constant 0 : index
      %19 = vector.load %arg6[%c0_15, %c0_16] : memref<128x128xbf16, #tpu.memory_space<vmem>>, vector<128x128xbf16>
      tpu.vector_store %arg6[%c0_15, %c0_16], %18 {strides = array<i32>} : memref<128x128xbf16, #tpu.memory_space<vmem>>, vector<128x128xbf16>,
    } else {
    }
    return
  }
  func.func @transform_0(%arg0: i32, %arg1: i32, %arg2: i32) -> (i32, i32) {
    %c0_i32 = arith.constant 0 : i32
    return %arg0, %arg2 : i32, i32
  }
  func.func @transform_1(%arg0: i32, %arg1: i32, %arg2: i32) -> (i32, i32) {
    %c0_i32 = arith.constant 0 : i32
    return %arg2, %arg1 : i32, i32
  }
  func.func @transform_2(%arg0: i32, %arg1: i32, %arg2: i32) -> (i32, i32) {
    %c0_i32 = arith.constant 0 : i32
    %c0_i32_0 = arith.constant 0 : i32
    return %c0_i32, %arg1 : i32, i32
  }
  func.func @transform_3(%arg0: i32, %arg1: i32, %arg2: i32) -> (i32, i32) {
    %c0_i32 = arith.constant 0 : i32
    return %arg0, %arg1 : i32, i32
  }
}

module attributes {stable_mosaic.version = 11 : i64} {
  func.func @_gemm_bias_act_kernel(%arg0: i32, %arg1: i32, %arg2: i32, %arg3: memref<512x576xbf16, #tpu.memory_space<vmem>>, %arg4: memref<576x128xbf16, #tpu.memory_space<vmem>>, %arg5: memref<1x128xf32, #tpu.memory_space<vmem>>, %arg6: memref<512x128xf32, #tpu.memory_space<vmem>>, %arg7: memref<512x128xf32, #tpu.memory_space<vmem>>) attributes {dimension_semantics = [#tpu.dimension_semantics<parallel>, #tpu.dimension_semantics<parallel>, #tpu.dimension_semantics<arbitrary>], iteration_bounds = array<i64: 1, 1, 1>, scalar_prefetch = 0 : i64, scratch_operands = 1 : i64, tpu.core_type = #tpu.core_type<tc>, window_params = [{transform_indices = @transform_0, window_bounds = array<i64: 512, 576>}, {transform_indices = @transform_1, window_bounds = array<i64: 576, 128>}, {transform_indices = @transform_2, window_bounds = array<i64: 1, 128>}, {transform_indices = @transform_3, window_bounds = array<i64: 512, 128>}]} {
    %c0_i32 = arith.constant 0 : i32
    %0 = arith.cmpi eq, %arg2, %c0_i32 : i32
    %1 = arith.extui %0 : i1 to i32
    %c0_i32_0 = arith.constant 0 : i32
    %2 = arith.cmpi ne, %1, %c0_i32_0 : i32
    scf.if %2 {
      %cst_10 = arith.constant 0.000000e+00 : f32
      %12 = vector.broadcast %cst_10 : f32 to vector<512x128xf32>
      %c0_11 = arith.constant 0 : index
      %c0_12 = arith.constant 0 : index
      %13 = vector.load %arg7[%c0_11, %c0_12] : memref<512x128xf32, #tpu.memory_space<vmem>>, vector<512x128xf32>
      tpu.vector_store %arg7[%c0_11, %c0_12], %12 {strides = array<i32>} : memref<512x128xf32, #tpu.memory_space<vmem>>, vector<512x128xf32>,
    } else {
    }
    %c0 = arith.constant 0 : index
    %c0_1 = arith.constant 0 : index
    %3 = vector.load %arg7[%c0, %c0_1] : memref<512x128xf32, #tpu.memory_space<vmem>>, vector<512x128xf32>
    %c0_2 = arith.constant 0 : index
    %c0_3 = arith.constant 0 : index
    %4 = vector.load %arg3[%c0_2, %c0_3] : memref<512x576xbf16, #tpu.memory_space<vmem>>, vector<512x576xbf16>
    %c0_4 = arith.constant 0 : index
    %c0_5 = arith.constant 0 : index
    %5 = vector.load %arg4[%c0_4, %c0_5] : memref<576x128xbf16, #tpu.memory_space<vmem>>, vector<576x128xbf16>
    %cst = arith.constant dense<0.000000e+00> : vector<512x128xf32>
    %6 = tpu.matmul %4, %5, %cst {dimension_numbers = #tpu.dot_dimension_numbers<[1], [0], [0], [1], [0, 0, 1, 1], [], []>} : vector<512x576xbf16>, vector<576x128xbf16>, vector<512x128xf32> -> vector<512x128xf32>
    %7 = arith.addf %3, %6 : vector<512x128xf32>
    %c0_6 = arith.constant 0 : index
    %c0_7 = arith.constant 0 : index
    %8 = vector.load %arg7[%c0_6, %c0_7] : memref<512x128xf32, #tpu.memory_space<vmem>>, vector<512x128xf32>
    tpu.vector_store %arg7[%c0_6, %c0_7], %7 {strides = array<i32>} : memref<512x128xf32, #tpu.memory_space<vmem>>, vector<512x128xf32>,
    %c0_i32_8 = arith.constant 0 : i32
    %9 = arith.cmpi eq, %arg2, %c0_i32_8 : i32
    %10 = arith.extui %9 : i1 to i32
    %c0_i32_9 = arith.constant 0 : i32
    %11 = arith.cmpi ne, %10, %c0_i32_9 : i32
    scf.if %11 {
      %c0_10 = arith.constant 0 : index
      %c0_11 = arith.constant 0 : index
      %12 = vector.load %arg7[%c0_10, %c0_11] : memref<512x128xf32, #tpu.memory_space<vmem>>, vector<512x128xf32>
      %c0_12 = arith.constant 0 : index
      %c0_13 = arith.constant 0 : index
      %13 = vector.load %arg5[%c0_12, %c0_13] : memref<1x128xf32, #tpu.memory_space<vmem>>, vector<1x128xf32>
      %14 = vector.broadcast %13 : vector<1x128xf32> to vector<512x128xf32>
      %15 = arith.addf %12, %14 : vector<512x128xf32>
      %cst_14 = arith.constant 0.000000e+00 : f32
      %16 = vector.broadcast %cst_14 : f32 to vector<512x128xf32>
      %17 = arith.subf %16, %15 : vector<512x128xf32>
      %18 = math.exp %17 : vector<512x128xf32>
      %cst_15 = arith.constant 1.000000e+00 : f32
      %19 = vector.broadcast %cst_15 : f32 to vector<512x128xf32>
      %20 = arith.addf %19, %18 : vector<512x128xf32>
      %cst_16 = arith.constant 1.000000e+00 : f32
      %21 = vector.broadcast %cst_16 : f32 to vector<512x128xf32>
      %22 = arith.divf %21, %20 : vector<512x128xf32>
      %c0_17 = arith.constant 0 : index
      %c0_18 = arith.constant 0 : index
      %23 = vector.load %arg6[%c0_17, %c0_18] : memref<512x128xf32, #tpu.memory_space<vmem>>, vector<512x128xf32>
      tpu.vector_store %arg6[%c0_17, %c0_18], %22 {strides = array<i32>} : memref<512x128xf32, #tpu.memory_space<vmem>>, vector<512x128xf32>,
    } else {
    }
    return
  }
  func.func @transform_0(%arg0: i32, %arg1: i32, %arg2: i32) -> (i32, i32) {
    %c0_i32 = arith.constant 0 : i32
    return %arg0, %arg2 : i32, i32
  }
  func.func @transform_1(%arg0: i32, %arg1: i32, %arg2: i32) -> (i32, i32) {
    %c0_i32 = arith.constant 0 : i32
    return %arg2, %arg1 : i32, i32
  }
  func.func @transform_2(%arg0: i32, %arg1: i32, %arg2: i32) -> (i32, i32) {
    %c0_i32 = arith.constant 0 : i32
    %c0_i32_0 = arith.constant 0 : i32
    return %c0_i32, %arg1 : i32, i32
  }
  func.func @transform_3(%arg0: i32, %arg1: i32, %arg2: i32) -> (i32, i32) {
    %c0_i32 = arith.constant 0 : i32
    return %arg0, %arg1 : i32, i32
  }
}

</mosaic_0001>

<bundles_post_ra>
// kernel: patch_autoencoder.7
= control target key start
LH: loop header
LB: loop body
LE: loop exit
PB: predicated region body
PF: predicated region fallthrough
CT: control target
= control target key end

     0   :  { %s2514_s12 = smov 0   ;;  %s2516_s13 = smov 0   ;;  %s2732_s0 = inlined_call_operand.vmem [shape: bf16[1024,32], index: 0, kind: input, shape index: {}]   ;;  %s2733_s1 = inlined_call_operand.vmem [shape: bf16[32,128], index: 1, kind: input, shape index: {}]   ;;  %s2734_s2 = inlined_call_operand.vmem [shape: f32[1,128], index: 2, kind: input, shape index: {}]   ;;  %s2735_s3 = inlined_call_operand.vmem [shape: bf16[1024,128], index: 3, kind: output, shape index: {}]  }
   0x1   :  { %s2518_s14 = smov 0  }
   0x2 LB: > { %s32_s15 = sadd.s32 1, %s2488_s13  ;;  %p1913_p0 = scmp.ge.s32.totalorder %s2492_s14, 1  ;;  %s2492_s14 = sphi %s2518_s14, %s13_s14   ;;  %s2488_s13 = sphi %s2516_s13, %s2737_s13   ;;  %s2484_s12 = sphi %s2514_s12, %s2736_s12  }
   0x3   : > { %p34_p1 = scmp.ge.s32.totalorder %s32_s15, 2  ;;  %p188_p2 = scmp.lt.s32.totalorder %s2492_s14, 3 }
   0x5   : > { %s2739_s15 = smov (%p34_p1, %s32_s15), 0  ;;  %p189_p3 = pnand %p1913_p0, %p188_p2 }
   0x6   : > { %v2436_v0 = vld [vmem:[%s2733_s1] sm:$0xff] (!%p189_p3)   ;;  %s1914_s18 = sshll.u32 (!%p189_p3), %s2484_s12, 6  ;;  %v2437_v1 = vld [vmem:[%s2733_s1 + $0x8] sm:$0xff] (!%p189_p3)   ;;  %vm632_vm0 = vcmask (!%p189_p3), 261120  }
   0x7   : > { %192 = sbr.rel (%p189_p3) target bundleno = 308 (0x134), region = 32  ;;  %p230_p4 = scmp.lt.s32.totalorder (!%p189_p3), %s1914_s18, 127  ;;  %2340 = vmatprep.subr.bf16.mxu0 (!%p189_p3), %v2436_v0  ;;  %2408 = vmatprep.subr.bf16.mxu1 (!%p189_p3), %v2436_v0  ;;  %v2615_v34 = vld [vmem:[%s2734_s2] ss:$0 sm:$0xff] (!%p189_p3) }
   0x8   : > { %2341 = vmatpush3.bf16.msra.mxu0 (!%p189_p3), %v2436_v0  ;;  %2410 = vmatpush3.bf16.msra.mxu1 (!%p189_p3), %v2436_v0 }
   0x9   : > { %2342 = vmatprep.subr.bf16.mxu0 (!%p189_p3), %v2437_v1  ;;  %2409 = vmatprep.subr.bf16.mxu1 (!%p189_p3), %v2437_v1 }
   0xc   : > { %2343 = vmatpush3.bf16.msra.mxu0 (!%p189_p3), %v2437_v1  ;;  %2411 = vmatpush3.bf16.msra.mxu1 (!%p189_p3), %v2437_v1 }
   0xe   : > { %s2741_s18 = smov (!%p230_p4, %s1914_s18), 127 }
   0xf   : > { %s1915_s21 = sshll.u32 %s2741_s18, 2 }
  0x10   : > { %s2546_s24 = scalar_lea.vmem %s2732_s0, %s1915_s21  ;;  %s2630_s29 = scalar_lea.vmem %s2735_s3, %s1915_s21 }
  0x11   : > { %v2438_v2 = vld [vmem:[%s2546_s24] sm:$0xff]   ;;  %v2440_v4 = vld [vmem:[%s2546_s24 + $0x8] sm:$0xff]   ;;  %v2442_v6 = vld [vmem:[%s2546_s24 + $0x10] sm:$0xff]  }
  0x12   : > { %v2439_v3 = vld [vmem:[%s2546_s24 + $0x80] sm:$0xff]   ;;  %2344 = vmatprep.mubr.msk.bf16.mxu0 %vm632_vm0, %v2438_v2  ;;  %v2441_v5 = vld [vmem:[%s2546_s24 + $0x88] sm:$0xff]   ;;  %v2443_v7 = vld [vmem:[%s2546_s24 + $0x90] sm:$0xff]  }
  0x13   : > { %2376 = vmatprep.mubr.msk.bf16.mxu1 %vm632_vm0, %v2439_v3  ;;  %2345 = vmatmul.mubr.msk.bf16.vlgmr.msra.gmra.mrb[0].mxu0 %vm632_vm0, %v2440_v4  ;;  %v2444_v8 = vld [vmem:[%s2546_s24 + $0x18] sm:$0xff]   ;;  %v2446_v10 = vld [vmem:[%s2546_s24 + $0x20] sm:$0xff]   ;;  %v2448_v12 = vld [vmem:[%s2546_s24 + $0x28] sm:$0xff]  }
  0x14   : > { %2377 = vmatmul.mubr.msk.bf16.vlgmr.msra.gmra.mrb[0].mxu1 %vm632_vm0, %v2441_v5  ;;  %2348 = vmatprep.mubr.msk.bf16.mxu0 %vm632_vm0, %v2442_v6  ;;  %v2445_v9 = vld [vmem:[%s2546_s24 + $0x98] sm:$0xff]   ;;  %v2447_v11 = vld [vmem:[%s2546_s24 + $0xa0] sm:$0xff]   ;;  %v2449_v13 = vld [vmem:[%s2546_s24 + $0xa8] sm:$0xff]  }
  0x15   : > { %2380 = vmatprep.mubr.msk.bf16.mxu1 %vm632_vm0, %v2443_v7  ;;  %v2450_v14 = vld [vmem:[%s2546_s24 + $0x30] sm:$0xff]   ;;  %v2452_v16 = vld [vmem:[%s2546_s24 + $0x38] sm:$0xff]   ;;  %v2454_v18 = vld [vmem:[%s2546_s24 + $0x40] sm:$0xff]  }
  0x16   : > { %v2451_v15 = vld [vmem:[%s2546_s24 + $0xb0] sm:$0xff]   ;;  %v2453_v17 = vld [vmem:[%s2546_s24 + $0xb8] sm:$0xff]   ;;  %v2455_v19 = vld [vmem:[%s2546_s24 + $0xc0] sm:$0xff]  }
  0x17   : > { %v2456_v20 = vld [vmem:[%s2546_s24 + $0x48] sm:$0xff]   ;;  %v2458_v22 = vld [vmem:[%s2546_s24 + $0x50] sm:$0xff]   ;;  %v2460_v24 = vld [vmem:[%s2546_s24 + $0x58] sm:$0xff]  }
  0x18   : > { %v2457_v21 = vld [vmem:[%s2546_s24 + $0xc8] sm:$0xff]   ;;  %v2459_v23 = vld [vmem:[%s2546_s24 + $0xd0] sm:$0xff]   ;;  %v2461_v25 = vld [vmem:[%s2546_s24 + $0xd8] sm:$0xff]  }
  0x19   : > { %v2462_v26 = vld [vmem:[%s2546_s24 + $0x60] sm:$0xff]   ;;  %v2464_v28 = vld [vmem:[%s2546_s24 + $0x68] sm:$0xff]   ;;  %v2466_v30 = vld [vmem:[%s2546_s24 + $0x70] sm:$0xff]  }
  0x1a   : > { %v2463_v27 = vld [vmem:[%s2546_s24 + $0xe0] sm:$0xff]   ;;  %v2465_v29 = vld [vmem:[%s2546_s24 + $0xe8] sm:$0xff]   ;;  %v2467_v31 = vld [vmem:[%s2546_s24 + $0xf0] sm:$0xff]  }
  0x1b   : > { %2349 = vmatmul.mubr.msk.bf16.gmra.mrb[4].mxu0 %vm632_vm0, %v2444_v8  ;;  %v2468_v32 = vld [vmem:[%s2546_s24 + $0x78] sm:$0xff]  }
  0x1c   : > { %2381 = vmatmul.mubr.msk.bf16.gmra.mrb[4].mxu1 %vm632_vm0, %v2445_v9  ;;  %2352 = vmatprep.mubr.msk.bf16.mxu0 %vm632_vm0, %v2446_v10  ;;  %v2469_v33 = vld [vmem:[%s2546_s24 + $0xf8] sm:$0xff]  }
  0x1d   : > { %2384 = vmatprep.mubr.msk.bf16.mxu1 %vm632_vm0, %v2447_v11 }
  0x23   : > { %2353 = vmatmul.mubr.msk.bf16.gmra.mrb[8].mxu0 %vm632_vm0, %v2448_v12 }
  0x24   : > { %2385 = vmatmul.mubr.msk.bf16.gmra.mrb[8].mxu1 %vm632_vm0, %v2449_v13  ;;  %2356 = vmatprep.mubr.msk.bf16.mxu0 %vm632_vm0, %v2450_v14 }
  0x25   : > { %2388 = vmatprep.mubr.msk.bf16.mxu1 %vm632_vm0, %v2451_v15 }
  0x2b   : > { %2357 = vmatmul.mubr.msk.bf16.gmra.mrb[12].mxu0 %vm632_vm0, %v2452_v16 }
  0x2c   : > { %2389 = vmatmul.mubr.msk.bf16.gmra.mrb[12].mxu1 %vm632_vm0, %v2453_v17  ;;  %2360 = vmatprep.mubr.msk.bf16.mxu0 %vm632_vm0, %v2454_v18 }
  0x2d   : > { %2392 = vmatprep.mubr.msk.bf16.mxu1 %vm632_vm0, %v2455_v19 }
  0x33   : > { %2361 = vmatmul.mubr.msk.bf16.gmra.mrb[16].mxu0 %vm632_vm0, %v2456_v20 }
  0x34   : > { %2393 = vmatmul.mubr.msk.bf16.gmra.mrb[16].mxu1 %vm632_vm0, %v2457_v21  ;;  %2364 = vmatprep.mubr.msk.bf16.mxu0 %vm632_vm0, %v2458_v22 }
  0x35   : > { %2396 = vmatprep.mubr.msk.bf16.mxu1 %vm632_vm0, %v2459_v23 }
  0x3b   : > { %2365 = vmatmul.mubr.msk.bf16.gmra.mrb[20].mxu0 %vm632_vm0, %v2460_v24 }
  0x3c   : > { %2397 = vmatmul.mubr.msk.bf16.gmra.mrb[20].mxu1 %vm632_vm0, %v2461_v25  ;;  %2368 = vmatprep.mubr.msk.bf16.mxu0 %vm632_vm0, %v2462_v26 }
  0x3d   : > { %2400 = vmatprep.mubr.msk.bf16.mxu1 %vm632_vm0, %v2463_v27 }
  0x43   : > { %2369 = vmatmul.mubr.msk.bf16.gmra.mrb[24].mxu0 %vm632_vm0, %v2464_v28 }
  0x44   : > { %2401 = vmatmul.mubr.msk.bf16.gmra.mrb[24].mxu1 %vm632_vm0, %v2465_v29  ;;  %2372 = vmatprep.mubr.msk.bf16.mxu0 %vm632_vm0, %v2466_v30 }
  0x45   : > { %2404 = vmatprep.mubr.msk.bf16.mxu1 %vm632_vm0, %v2467_v31 }
  0x4b   : > { %2373 = vmatmul.mubr.msk.bf16.gmra.mrb[28].mxu0 %vm632_vm0, %v2468_v32 }
  0x4c   : > { %2405 = vmatmul.mubr.msk.bf16.gmra.mrb[28].mxu1 %vm632_vm0, %v2469_v33 }
  0xe6   : > { %v2346_v35 = vpop.f32.mrb[0].mxu0 }
  0xe7   : > { %v1222_v36 = vadd.f32 %v2346_v35, %v2615_v34  ;;  %v2378_v37 = vpop.f32.mrb[0].mxu1  ;;  %v763_v38 = vpop.f32.mrb[1].mxu0 }
  0xe8   : > { %v1254_v39 = vadd.f32 %v2378_v37, %v2615_v34  ;;  %v1220_v40 = vadd.f32 %v2615_v34, %v763_v38  ;;  %v891_v41 = vpop.f32.mrb[1].mxu1  ;;  %v2347_v42 = vpop.f32.mrb[2].mxu0 }
  0xe9   : > { %vm1286_vm1 = vcmp.ge.f32.partialorder %v1222_v36, 0.0  ;;  %v1350_v43 = vmul.f32 0.01, %v1222_v36  ;;  %v1252_v44 = vadd.f32 %v2615_v34, %v891_v41  ;;  %v1223_v45 = vadd.f32 %v2347_v42, %v2615_v34  ;;  %v2379_v46 = vpop.f32.mrb[2].mxu1  ;;  %v766_v47 = vpop.f32.mrb[3].mxu0 }
  0xea   : > { %vm1318_vm2 = vcmp.ge.f32.partialorder %v1254_v39, 0.0  ;;  %v1382_v48 = vmul.f32 0.01, %v1254_v39  ;;  %vm1284_vm3 = vcmp.ge.f32.partialorder %v1220_v40, 0.0  ;;  %v1348_v49 = vmul.f32 0.01, %v1220_v40 }
  0xeb   : > { %vm1316_vm4 = vcmp.ge.f32.partialorder %v1252_v44, 0.0  ;;  %v1380_v50 = vmul.f32 0.01, %v1252_v44  ;;  %vm1287_vm5 = vcmp.ge.f32.partialorder %v1223_v45, 0.0  ;;  %v894_v51 = vpop.f32.mrb[3].mxu1  ;;  %v1414_v52 = vsel %vm1286_vm1, %v1222_v36, %v1350_v43 }
  0xec   : > { %v1351_v53 = vmul.f32 0.01, %v1223_v45  ;;  %v1255_v54 = vadd.f32 %v2379_v46, %v2615_v34  ;;  %v1446_v55 = vsel %vm1318_vm2, %v1254_v39, %v1382_v48  ;;  %v1412_v56 = vsel %vm1284_vm3, %v1220_v40, %v1348_v49 }
  0xed   : > { %v1221_v57 = vadd.f32 %v2615_v34, %v766_v47  ;;  %v1253_v58 = vadd.f32 %v2615_v34, %v894_v51  ;;  %v1444_v59 = vsel %vm1316_vm4, %v1252_v44, %v1380_v50 }
  0xee   : > { %v1415_v60 = vsel %vm1287_vm5, %v1223_v45, %v1351_v53  ;;  %vm1319_vm6 = vcmp.ge.f32.partialorder %v1255_v54, 0.0  ;;  %v1383_v61 = vmul.f32 0.01, %v1255_v54  ;;  %v2350_v62 = vpop.f32.mrb[4].mxu0 }
  0xef   : > { %v2123_v63 = vpack.c.bf16 %v1415_v60, %v1414_v52  ;;  %vm1285_vm7 = vcmp.ge.f32.partialorder %v1221_v57, 0.0  ;;  %v1349_v0 = vmul.f32 0.01, %v1221_v57  ;;  %vm1317_vm8 = vcmp.ge.f32.partialorder %v1253_v58, 0.0  ;;  %v2382_v1 = vpop.f32.mrb[4].mxu1  ;;  %v779_v2 = vpop.f32.mrb[5].mxu0 }
  0xf0   : > { %v1447_v3 = vsel %vm1319_vm6, %v1255_v54, %v1383_v61  ;;  %v1381_v4 = vmul.f32 0.01, %v1253_v58  ;;  %v1226_v5 = vadd.f32 %v2350_v62, %v2615_v34  ;;  %v1258_v6 = vadd.f32 %v2382_v1, %v2615_v34  ;;  %v907_v7 = vpop.f32.mrb[5].mxu1  ;;  %v2351_v8 = vpop.f32.mrb[6].mxu0 }
  0xf1   : > { %2275 = vst [vmem:[%s2630_s29 + $0x8] sm:$0xff] %v2123_v63   ;;  %v2203_v9 = vpack.c.bf16 %v1447_v3, %v1446_v55  ;;  %v1413_v10 = vsel %vm1285_vm7, %v1221_v57, %v1349_v0  ;;  %v1224_v11 = vadd.f32 %v2615_v34, %v779_v2  ;;  %v1256_v12 = vadd.f32 %v2615_v34, %v907_v7  ;;  %v2383_v13 = vpop.f32.mrb[6].mxu1  ;;  %v782_v14 = vpop.f32.mrb[7].mxu0 }
  0xf2   : > { %v2118_v15 = vpack.c.bf16 %v1413_v10, %v1412_v56  ;;  %v1445_v16 = vsel %vm1317_vm8, %v1253_v58, %v1381_v4  ;;  %vm1290_vm9 = vcmp.ge.f32.partialorder %v1226_v5, 0.0  ;;  %v1354_v17 = vmul.f32 0.01, %v1226_v5  ;;  %v910_v18 = vpop.f32.mrb[7].mxu1 }
  0xf3   : > { %2291 = vst [vmem:[%s2630_s29 + $0x88] sm:$0xff] %v2203_v9   ;;  %v2198_v19 = vpack.c.bf16 %v1445_v16, %v1444_v59  ;;  %vm1322_vm10 = vcmp.ge.f32.partialorder %v1258_v6, 0.0  ;;  %v1386_v20 = vmul.f32 0.01, %v1258_v6  ;;  %vm1288_vm11 = vcmp.ge.f32.partialorder %v1224_v11, 0.0 }
  0xf4   : > { %2119 = vst [vmem:[%s2630_s29] sm:$0xff] %v2118_v15   ;;  %v1418_v21 = vsel %vm1290_vm9, %v1226_v5, %v1354_v17  ;;  %v1352_v22 = vmul.f32 0.01, %v1224_v11  ;;  %v1384_v23 = vmul.f32 0.01, %v1256_v12  ;;  %v1227_v24 = vadd.f32 %v2351_v8, %v2615_v34 }
  0xf5   : > { %2290 = vst [vmem:[%s2630_s29 + $0x80] sm:$0xff] %v2198_v19   ;;  %v1259_v25 = vadd.f32 %v2383_v13, %v2615_v34  ;;  %v1225_v26 = vadd.f32 %v2615_v34, %v782_v14  ;;  %v1450_v27 = vsel %vm1322_vm10, %v1258_v6, %v1386_v20  ;;  %vm1320_vm12 = vcmp.ge.f32.partialorder %v1256_v12, 0.0 }
  0xf6   : > { %v1416_v28 = vsel %vm1288_vm11, %v1224_v11, %v1352_v22  ;;  %v1257_v29 = vadd.f32 %v2615_v34, %v910_v18  ;;  %v2354_v30 = vpop.f32.mrb[8].mxu0  ;;  %vm1291_vm13 = vcmp.ge.f32.partialorder %v1227_v24, 0.0  ;;  %v1355_v31 = vmul.f32 0.01, %v1227_v24 }
  0xf7   : > { %vm1323_vm14 = vcmp.ge.f32.partialorder %v1259_v25, 0.0  ;;  %v1387_v32 = vmul.f32 0.01, %v1259_v25  ;;  %vm1289_vm15 = vcmp.ge.f32.partialorder %v1225_v26, 0.0  ;;  %v1353_v33 = vmul.f32 0.01, %v1225_v26 }
  0xf8   : > { %vm1321_vm0 = vcmp.ge.f32.partialorder %v1257_v29, 0.0  ;;  %v1385_v35 = vmul.f32 0.01, %v1257_v29  ;;  %v1448_v36 = vsel %vm1320_vm12, %v1256_v12, %v1384_v23  ;;  %v1419_v37 = vsel %vm1291_vm13, %v1227_v24, %v1355_v31  ;;  %v2386_v40 = vpop.f32.mrb[8].mxu1  ;;  %v795_v41 = vpop.f32.mrb[9].mxu0 }
  0xf9   : > { %v1451_v38 = vsel %vm1323_vm14, %v1259_v25, %v1387_v32  ;;  %v1230_v39 = vadd.f32 %v2354_v30, %v2615_v34  ;;  %v2133_v42 = vpack.c.bf16 %v1419_v37, %v1418_v21  ;;  %v1417_v44 = vsel %vm1289_vm15, %v1225_v26, %v1353_v33  ;;  %v923_v46 = vpop.f32.mrb[9].mxu1  ;;  %v2355_v47 = vpop.f32.mrb[10].mxu0 }
  0xfa   : > { %v2213_v43 = vpack.c.bf16 %v1451_v38, %v1450_v27  ;;  %v1449_v45 = vsel %vm1321_vm0, %v1257_v29, %v1385_v35  ;;  %v2128_v48 = vpack.c.bf16 %v1417_v44, %v1416_v28  ;;  %v2387_v51 = vpop.f32.mrb[10].mxu1  ;;  %v798_v52 = vpop.f32.mrb[11].mxu0  ;;  %v1262_v53 = vadd.f32 %v2386_v40, %v2615_v34 }
  0xfb   : > { %v2208_v49 = vpack.c.bf16 %v1449_v45, %v1448_v36  ;;  %vm1294_vm1 = vcmp.ge.f32.partialorder %v1230_v39, 0.0  ;;  %v1358_v50 = vmul.f32 0.01, %v1230_v39  ;;  %2277 = vst [vmem:[%s2630_s29 + $0x18] sm:$0xff] %v2133_v42   ;;  %v1228_v54 = vadd.f32 %v2615_v34, %v795_v41  ;;  %v926_v57 = vpop.f32.mrb[11].mxu1 }
  0xfc   : > { %2293 = vst [vmem:[%s2630_s29 + $0x98] sm:$0xff] %v2213_v43   ;;  %v1260_v55 = vadd.f32 %v2615_v34, %v923_v46  ;;  %v1231_v56 = vadd.f32 %v2355_v47, %v2615_v34  ;;  %2276 = vst [vmem:[%s2630_s29 + $0x10] sm:$0xff] %v2128_v48   ;;  %v1263_v59 = vadd.f32 %v2387_v51, %v2615_v34  ;;  %vm1326_vm2 = vcmp.ge.f32.partialorder %v1262_v53, 0.0 }
  0xfd   : > { %2292 = vst [vmem:[%s2630_s29 + $0x90] sm:$0xff] %v2208_v49   ;;  %v1422_v58 = vsel %vm1294_vm1, %v1230_v39, %v1358_v50  ;;  %v1229_v60 = vadd.f32 %v2615_v34, %v798_v52  ;;  %v1261_v61 = vadd.f32 %v2615_v34, %v926_v57  ;;  %v1390_v62 = vmul.f32 0.01, %v1262_v53 }
  0xfe   : > { %vm1292_vm3 = vcmp.ge.f32.partialorder %v1228_v54, 0.0  ;;  %v1356_v63 = vmul.f32 0.01, %v1228_v54  ;;  %vm1324_vm4 = vcmp.ge.f32.partialorder %v1260_v55, 0.0  ;;  %v1388_v0 = vmul.f32 0.01, %v1260_v55 }
  0xff   : > { %vm1295_vm5 = vcmp.ge.f32.partialorder %v1231_v56, 0.0  ;;  %v1359_v1 = vmul.f32 0.01, %v1231_v56  ;;  %v1454_v2 = vsel %vm1326_vm2, %v1262_v53, %v1390_v62  ;;  %vm1327_vm6 = vcmp.ge.f32.partialorder %v1263_v59, 0.0  ;;  %v2358_v5 = vpop.f32.mrb[12].mxu0  ;;  %v2390_v6 = vpop.f32.mrb[12].mxu1 }
 0x100   : > { %v1420_v3 = vsel %vm1292_vm3, %v1228_v54, %v1356_v63  ;;  %v1391_v4 = vmul.f32 0.01, %v1263_v59  ;;  %v1452_v7 = vsel %vm1324_vm4, %v1260_v55, %v1388_v0  ;;  %vm1293_vm7 = vcmp.ge.f32.partialorder %v1229_v60, 0.0  ;;  %v811_v10 = vpop.f32.mrb[13].mxu0  ;;  %v939_v11 = vpop.f32.mrb[13].mxu1 }
 0x101   : > { %v1423_v8 = vsel %vm1295_vm5, %v1231_v56, %v1359_v1  ;;  %v1357_v9 = vmul.f32 0.01, %v1229_v60  ;;  %vm1325_vm8 = vcmp.ge.f32.partialorder %v1261_v61, 0.0  ;;  %v1389_v14 = vmul.f32 0.01, %v1261_v61  ;;  %v2359_v15 = vpop.f32.mrb[14].mxu0 }
 0x102   : > { %v2143_v12 = vpack.c.bf16 %v1423_v8, %v1422_v58  ;;  %v1455_v13 = vsel %vm1327_vm6, %v1263_v59, %v1391_v4  ;;  %v2391_v16 = vpop.f32.mrb[14].mxu1  ;;  %v1234_v19 = vadd.f32 %v2358_v5, %v2615_v34  ;;  %v1266_v20 = vadd.f32 %v2390_v6, %v2615_v34  ;;  %v814_v21 = vpop.f32.mrb[15].mxu0 }
 0x103   : > { %v2223_v17 = vpack.c.bf16 %v1455_v13, %v1454_v2  ;;  %v1421_v18 = vsel %vm1293_vm7, %v1229_v60, %v1357_v9  ;;  %v942_v22 = vpop.f32.mrb[15].mxu1  ;;  %v1453_v24 = vsel %vm1325_vm8, %v1261_v61, %v1389_v14  ;;  %v1232_v25 = vadd.f32 %v2615_v34, %v811_v10 }
 0x104   : > { %2279 = vst [vmem:[%s2630_s29 + $0x28] sm:$0xff] %v2143_v12   ;;  %v2138_v23 = vpack.c.bf16 %v1421_v18, %v1420_v3  ;;  %v1264_v26 = vadd.f32 %v2615_v34, %v939_v11  ;;  %v2218_v27 = vpack.c.bf16 %v1453_v24, %v1452_v7  ;;  %vm1298_vm9 = vcmp.ge.f32.partialorder %v1234_v19, 0.0 }
 0x105   : > { %2295 = vst [vmem:[%s2630_s29 + $0xa8] sm:$0xff] %v2223_v17   ;;  %v1362_v28 = vmul.f32 0.01, %v1234_v19  ;;  %vm1330_vm10 = vcmp.ge.f32.partialorder %v1266_v20, 0.0  ;;  %v1394_v29 = vmul.f32 0.01, %v1266_v20  ;;  %v1235_v33 = vadd.f32 %v2359_v15, %v2615_v34 }
 0x106   : > { %2278 = vst [vmem:[%s2630_s29 + $0x20] sm:$0xff] %v2138_v23   ;;  %vm1296_vm11 = vcmp.ge.f32.partialorder %v1232_v25, 0.0  ;;  %v1360_v30 = vmul.f32 0.01, %v1232_v25  ;;  %vm1328_vm12 = vcmp.ge.f32.partialorder %v1264_v26, 0.0  ;;  %2294 = vst [vmem:[%s2630_s29 + $0xa0] sm:$0xff] %v2218_v27   ;;  %v1267_v35 = vadd.f32 %v2391_v16, %v2615_v34 }
 0x107   : > { %v1426_v31 = vsel %vm1298_vm9, %v1234_v19, %v1362_v28  ;;  %v1392_v32 = vmul.f32 0.01, %v1264_v26  ;;  %v2362_v36 = vpop.f32.mrb[16].mxu0  ;;  %v2394_v37 = vpop.f32.mrb[16].mxu1  ;;  %v1458_v38 = vsel %vm1330_vm10, %v1266_v20, %v1394_v29  ;;  %v1233_v40 = vadd.f32 %v2615_v34, %v814_v21 }
 0x108   : > { %v1424_v39 = vsel %vm1296_vm11, %v1232_v25, %v1360_v30  ;;  %v1265_v41 = vadd.f32 %v2615_v34, %v942_v22  ;;  %v827_v42 = vpop.f32.mrb[17].mxu0  ;;  %v955_v43 = vpop.f32.mrb[17].mxu1  ;;  %vm1299_vm13 = vcmp.ge.f32.partialorder %v1235_v33, 0.0  ;;  %v1363_v45 = vmul.f32 0.01, %v1235_v33 }
 0x109   : > { %v1456_v44 = vsel %vm1328_vm12, %v1264_v26, %v1392_v32  ;;  %vm1331_vm14 = vcmp.ge.f32.partialorder %v1267_v35, 0.0  ;;  %v2363_v46 = vpop.f32.mrb[18].mxu0  ;;  %v2395_v47 = vpop.f32.mrb[18].mxu1  ;;  %v1395_v48 = vmul.f32 0.01, %v1267_v35  ;;  %vm1297_vm15 = vcmp.ge.f32.partialorder %v1233_v40, 0.0 }
 0x10a   : > { %v1361_v49 = vmul.f32 0.01, %v1233_v40  ;;  %vm1329_vm0 = vcmp.ge.f32.partialorder %v1265_v41, 0.0  ;;  %v1427_v50 = vsel %vm1299_vm13, %v1235_v33, %v1363_v45  ;;  %v1393_v51 = vmul.f32 0.01, %v1265_v41  ;;  %v830_v54 = vpop.f32.mrb[19].mxu0 }
 0x10b   : > { %v1238_v52 = vadd.f32 %v2362_v36, %v2615_v34  ;;  %v1270_v53 = vadd.f32 %v2394_v37, %v2615_v34  ;;  %v958_v55 = vpop.f32.mrb[19].mxu1  ;;  %v2153_v56 = vpack.c.bf16 %v1427_v50, %v1426_v31  ;;  %v1459_v57 = vsel %vm1331_vm14, %v1267_v35, %v1395_v48 }
 0x10c   : > { %v1425_v58 = vsel %vm1297_vm15, %v1233_v40, %v1361_v49  ;;  %v1236_v59 = vadd.f32 %v2615_v34, %v827_v42  ;;  %v2233_v60 = vpack.c.bf16 %v1459_v57, %v1458_v38  ;;  %v1457_v62 = vsel %vm1329_vm0, %v1265_v41, %v1393_v51 }
 0x10d   : > { %v2148_v61 = vpack.c.bf16 %v1425_v58, %v1424_v39  ;;  %vm1302_vm1 = vcmp.ge.f32.partialorder %v1238_v52, 0.0  ;;  %2281 = vst [vmem:[%s2630_s29 + $0x38] sm:$0xff] %v2153_v56   ;;  %v2228_v63 = vpack.c.bf16 %v1457_v62, %v1456_v44  ;;  %v1366_v0 = vmul.f32 0.01, %v1238_v52 }
 0x10e   : > { %vm1334_vm2 = vcmp.ge.f32.partialorder %v1270_v53, 0.0  ;;  %v1398_v1 = vmul.f32 0.01, %v1270_v53  ;;  %v2366_v2 = vpop.f32.mrb[20].mxu0  ;;  %2297 = vst [vmem:[%s2630_s29 + $0xb8] sm:$0xff] %v2233_v60   ;;  %vm1300_vm3 = vcmp.ge.f32.partialorder %v1236_v59, 0.0  ;;  %v1268_v4 = vadd.f32 %v2615_v34, %v955_v43 }
 0x10f   : > { %2280 = vst [vmem:[%s2630_s29 + $0x30] sm:$0xff] %v2148_v61   ;;  %v1364_v3 = vmul.f32 0.01, %v1236_v59  ;;  %v1239_v5 = vadd.f32 %v2363_v46, %v2615_v34  ;;  %v2398_v6 = vpop.f32.mrb[20].mxu1  ;;  %v843_v7 = vpop.f32.mrb[21].mxu0  ;;  %2296 = vst [vmem:[%s2630_s29 + $0xb0] sm:$0xff] %v2228_v63   ;;  %v1430_v8 = vsel %vm1302_vm1, %v1238_v52, %v1366_v0  ;;  %v1271_v10 = vadd.f32 %v2395_v47, %v2615_v34 }
 0x110   : > { %v1462_v9 = vsel %vm1334_vm2, %v1270_v53, %v1398_v1  ;;  %v1237_v11 = vadd.f32 %v2615_v34, %v830_v54  ;;  %v971_v12 = vpop.f32.mrb[21].mxu1  ;;  %v2367_v13 = vpop.f32.mrb[22].mxu0  ;;  %vm1332_vm4 = vcmp.ge.f32.partialorder %v1268_v4, 0.0  ;;  %v1396_v15 = vmul.f32 0.01, %v1268_v4 }
 0x111   : > { %v1428_v14 = vsel %vm1300_vm3, %v1236_v59, %v1364_v3  ;;  %vm1303_vm5 = vcmp.ge.f32.partialorder %v1239_v5, 0.0  ;;  %v2399_v16 = vpop.f32.mrb[22].mxu1  ;;  %v846_v17 = vpop.f32.mrb[23].mxu0  ;;  %v1367_v18 = vmul.f32 0.01, %v1239_v5  ;;  %vm1335_vm6 = vcmp.ge.f32.partialorder %v1271_v10, 0.0 }
 0x112   : > { %v1399_v19 = vmul.f32 0.01, %v1271_v10  ;;  %vm1301_vm7 = vcmp.ge.f32.partialorder %v1237_v11, 0.0  ;;  %v1460_v20 = vsel %vm1332_vm4, %v1268_v4, %v1396_v15  ;;  %v1365_v21 = vmul.f32 0.01, %v1237_v11  ;;  %v974_v24 = vpop.f32.mrb[23].mxu1 }
 0x113   : > { %v1269_v22 = vadd.f32 %v2615_v34, %v958_v55  ;;  %v1242_v23 = vadd.f32 %v2366_v2, %v2615_v34  ;;  %v1431_v25 = vsel %vm1303_vm5, %v1239_v5, %v1367_v18  ;;  %v1274_v27 = vadd.f32 %v2398_v6, %v2615_v34 }
 0x114   : > { %v1463_v26 = vsel %vm1335_vm6, %v1271_v10, %v1399_v19  ;;  %v1240_v28 = vadd.f32 %v2615_v34, %v843_v7  ;;  %v2163_v29 = vpack.c.bf16 %v1431_v25, %v1430_v8  ;;  %v1429_v31 = vsel %vm1301_vm7, %v1237_v11, %v1365_v21 }
 0x115   : > { %v2243_v30 = vpack.c.bf16 %v1463_v26, %v1462_v9  ;;  %vm1333_vm8 = vcmp.ge.f32.partialorder %v1269_v22, 0.0  ;;  %v2158_v32 = vpack.c.bf16 %v1429_v31, %v1428_v14  ;;  %v1397_v33 = vmul.f32 0.01, %v1269_v22 }
 0x116   : > { %vm1306_vm9 = vcmp.ge.f32.partialorder %v1242_v23, 0.0  ;;  %v1370_v35 = vmul.f32 0.01, %v1242_v23  ;;  %v2370_v36 = vpop.f32.mrb[24].mxu0  ;;  %2283 = vst [vmem:[%s2630_s29 + $0x48] sm:$0xff] %v2163_v29   ;;  %vm1338_vm10 = vcmp.ge.f32.partialorder %v1274_v27, 0.0  ;;  %v1272_v41 = vadd.f32 %v2615_v34, %v971_v12 }
 0x117   : > { %2299 = vst [vmem:[%s2630_s29 + $0xc8] sm:$0xff] %v2243_v30   ;;  %v1402_v37 = vmul.f32 0.01, %v1274_v27  ;;  %vm1304_vm11 = vcmp.ge.f32.partialorder %v1240_v28, 0.0  ;;  %v1368_v38 = vmul.f32 0.01, %v1240_v28  ;;  %v1461_v39 = vsel %vm1333_vm8, %v1269_v22, %v1397_v33 }
 0x118   : > { %2282 = vst [vmem:[%s2630_s29 + $0x40] sm:$0xff] %v2158_v32   ;;  %v1434_v40 = vsel %vm1306_vm9, %v1242_v23, %v1370_v35  ;;  %v1243_v42 = vadd.f32 %v2367_v13, %v2615_v34  ;;  %v2402_v43 = vpop.f32.mrb[24].mxu1  ;;  %v859_v44 = vpop.f32.mrb[25].mxu0  ;;  %v2238_v45 = vpack.c.bf16 %v1461_v39, %v1460_v20  ;;  %v1275_v48 = vadd.f32 %v2399_v16, %v2615_v34 }
 0x119   : > { %v1466_v46 = vsel %vm1338_vm10, %v1274_v27, %v1402_v37  ;;  %v1432_v47 = vsel %vm1304_vm11, %v1240_v28, %v1368_v38  ;;  %v987_v49 = vpop.f32.mrb[25].mxu1  ;;  %v2371_v50 = vpop.f32.mrb[26].mxu0  ;;  %vm1336_vm12 = vcmp.ge.f32.partialorder %v1272_v41, 0.0  ;;  %v1400_v51 = vmul.f32 0.01, %v1272_v41 }
 0x11a   : > { %vm1307_vm13 = vcmp.ge.f32.partialorder %v1243_v42, 0.0  ;;  %v1371_v52 = vmul.f32 0.01, %v1243_v42  ;;  %2298 = vst [vmem:[%s2630_s29 + $0xc0] sm:$0xff] %v2238_v45   ;;  %vm1339_vm14 = vcmp.ge.f32.partialorder %v1275_v48, 0.0  ;;  %v1241_v54 = vadd.f32 %v2615_v34, %v846_v17  ;;  %v2403_v56 = vpop.f32.mrb[26].mxu1 }
 0x11b   : > { %v1403_v53 = vmul.f32 0.01, %v1275_v48  ;;  %v1273_v55 = vadd.f32 %v2615_v34, %v974_v24  ;;  %v862_v57 = vpop.f32.mrb[27].mxu0  ;;  %v1464_v58 = vsel %vm1336_vm12, %v1272_v41, %v1400_v51  ;;  %v1246_v60 = vadd.f32 %v2370_v36, %v2615_v34  ;;  %v990_v62 = vpop.f32.mrb[27].mxu1 }
 0x11c   : > { %v1435_v59 = vsel %vm1307_vm13, %v1243_v42, %v1371_v52  ;;  %v1278_v61 = vadd.f32 %v2402_v43, %v2615_v34  ;;  %vm1305_vm15 = vcmp.ge.f32.partialorder %v1241_v54, 0.0  ;;  %v1369_v1 = vmul.f32 0.01, %v1241_v54 }
 0x11d   : > { %v2173_v63 = vpack.c.bf16 %v1435_v59, %v1434_v40  ;;  %v1467_v0 = vsel %vm1339_vm14, %v1275_v48, %v1403_v53  ;;  %vm1337_vm0 = vcmp.ge.f32.partialorder %v1273_v55, 0.0  ;;  %v1401_v3 = vmul.f32 0.01, %v1273_v55 }
 0x11e   : > { %v2253_v2 = vpack.c.bf16 %v1467_v0, %v1466_v46  ;;  %vm1310_vm1 = vcmp.ge.f32.partialorder %v1246_v60, 0.0  ;;  %v2374_v4 = vpop.f32.mrb[28].mxu0  ;;  %v1433_v5 = vsel %vm1305_vm15, %v1241_v54, %v1369_v1  ;;  %v1374_v6 = vmul.f32 0.01, %v1246_v60 }
 0x11f   : > { %2285 = vst [vmem:[%s2630_s29 + $0x58] sm:$0xff] %v2173_v63   ;;  %vm1342_vm2 = vcmp.ge.f32.partialorder %v1278_v61, 0.0  ;;  %v1406_v7 = vmul.f32 0.01, %v1278_v61  ;;  %v2406_v8 = vpop.f32.mrb[28].mxu1  ;;  %v2168_v9 = vpack.c.bf16 %v1433_v5, %v1432_v47  ;;  %v1465_v10 = vsel %vm1337_vm0, %v1273_v55, %v1401_v3  ;;  %v875_v13 = vpop.f32.mrb[29].mxu0 }
 0x120   : > { %2301 = vst [vmem:[%s2630_s29 + $0xd8] sm:$0xff] %v2253_v2   ;;  %v1244_v11 = vadd.f32 %v2615_v34, %v859_v44  ;;  %v1276_v12 = vadd.f32 %v2615_v34, %v987_v49  ;;  %v1003_v14 = vpop.f32.mrb[29].mxu1  ;;  %v2248_v15 = vpack.c.bf16 %v1465_v10, %v1464_v58  ;;  %v1438_v16 = vsel %vm1310_vm1, %v1246_v60, %v1374_v6  ;;  %v2375_v19 = vpop.f32.mrb[30].mxu0 }
 0x121   : > { %v1470_v17 = vsel %vm1342_vm2, %v1278_v61, %v1406_v7  ;;  %v1247_v18 = vadd.f32 %v2371_v50, %v2615_v34  ;;  %v2407_v20 = vpop.f32.mrb[30].mxu1  ;;  %2284 = vst [vmem:[%s2630_s29 + $0x50] sm:$0xff] %v2168_v9   ;;  %v1279_v24 = vadd.f32 %v2403_v56, %v2615_v34  ;;  %v1245_v25 = vadd.f32 %v2615_v34, %v862_v57  ;;  %v878_v26 = vpop.f32.mrb[31].mxu0 }
 0x122   : > { %vm1308_vm3 = vcmp.ge.f32.partialorder %v1244_v11, 0.0  ;;  %v1372_v21 = vmul.f32 0.01, %v1244_v11  ;;  %vm1340_vm4 = vcmp.ge.f32.partialorder %v1276_v12, 0.0  ;;  %v1404_v22 = vmul.f32 0.01, %v1276_v12 }
 0x123   : > { %2300 = vst [vmem:[%s2630_s29 + $0xd0] sm:$0xff] %v2248_v15   ;;  %vm1311_vm5 = vcmp.ge.f32.partialorder %v1247_v18, 0.0  ;;  %v1375_v23 = vmul.f32 0.01, %v1247_v18  ;;  %v1006_v27 = vpop.f32.mrb[31].mxu1  ;;  %v1277_v30 = vadd.f32 %v2615_v34, %v990_v62  ;;  %v1250_v31 = vadd.f32 %v2374_v4, %v2615_v34 }
 0x124   : > { %v1436_v28 = vsel %vm1308_vm3, %v1244_v11, %v1372_v21  ;;  %v1468_v29 = vsel %vm1340_vm4, %v1276_v12, %v1404_v22  ;;  %vm1343_vm6 = vcmp.ge.f32.partialorder %v1279_v24, 0.0  ;;  %v1407_v33 = vmul.f32 0.01, %v1279_v24 }
 0x125   : > { %v1439_v32 = vsel %vm1311_vm5, %v1247_v18, %v1375_v23  ;;  %vm1309_vm7 = vcmp.ge.f32.partialorder %v1245_v25, 0.0  ;;  %v1373_v36 = vmul.f32 0.01, %v1245_v25  ;;  %vm1341_vm8 = vcmp.ge.f32.partialorder %v1277_v30, 0.0 }
 0x126   : > { %v2183_v35 = vpack.c.bf16 %v1439_v32, %v1438_v16  ;;  %v1405_v37 = vmul.f32 0.01, %v1277_v30  ;;  %v1471_v38 = vsel %vm1343_vm6, %v1279_v24, %v1407_v33  ;;  %vm1314_vm9 = vcmp.ge.f32.partialorder %v1250_v31, 0.0 }
 0x127   : > { %v1378_v39 = vmul.f32 0.01, %v1250_v31  ;;  %v1282_v40 = vadd.f32 %v2406_v8, %v2615_v34  ;;  %v2263_v41 = vpack.c.bf16 %v1471_v38, %v1470_v17  ;;  %v1437_v42 = vsel %vm1309_vm7, %v1245_v25, %v1373_v36 }
 0x128   : > { %2287 = vst [vmem:[%s2630_s29 + $0x68] sm:$0xff] %v2183_v35   ;;  %v1469_v43 = vsel %vm1341_vm8, %v1277_v30, %v1405_v37  ;;  %v1248_v44 = vadd.f32 %v2615_v34, %v875_v13  ;;  %v2178_v45 = vpack.c.bf16 %v1437_v42, %v1436_v28  ;;  %v1280_v49 = vadd.f32 %v2615_v34, %v1003_v14 }
 0x129   : > { %v2258_v46 = vpack.c.bf16 %v1469_v43, %v1468_v29  ;;  %2303 = vst [vmem:[%s2630_s29 + $0xe8] sm:$0xff] %v2263_v41   ;;  %v1442_v47 = vsel %vm1314_vm9, %v1250_v31, %v1378_v39  ;;  %v1410_v48 = vmul.f32 0.01, %v1282_v40  ;;  %v1251_v50 = vadd.f32 %v2375_v19, %v2615_v34 }
 0x12a   : > { %2286 = vst [vmem:[%s2630_s29 + $0x60] sm:$0xff] %v2178_v45   ;;  %v1283_v51 = vadd.f32 %v2407_v20, %v2615_v34  ;;  %v1249_v52 = vadd.f32 %v2615_v34, %v878_v26  ;;  %v1281_v53 = vadd.f32 %v2615_v34, %v1006_v27  ;;  %vm1346_vm10 = vcmp.ge.f32.partialorder %v1282_v40, 0.0 }
 0x12b   : > { %2302 = vst [vmem:[%s2630_s29 + $0xe0] sm:$0xff] %v2258_v46   ;;  %vm1312_vm11 = vcmp.ge.f32.partialorder %v1248_v44, 0.0  ;;  %v1376_v54 = vmul.f32 0.01, %v1248_v44  ;;  %v1408_v55 = vmul.f32 0.01, %v1280_v49  ;;  %v1474_v59 = vsel %vm1346_vm10, %v1282_v40, %v1410_v48 }
 0x12c   : > { %vm1315_vm12 = vcmp.ge.f32.partialorder %v1251_v50, 0.0  ;;  %v1379_v56 = vmul.f32 0.01, %v1251_v50  ;;  %vm1347_vm13 = vcmp.ge.f32.partialorder %v1283_v51, 0.0  ;;  %v1411_v57 = vmul.f32 0.01, %v1283_v51 }
 0x12d   : > { %vm1344_vm14 = vcmp.ge.f32.partialorder %v1280_v49, 0.0  ;;  %vm1313_vm15 = vcmp.ge.f32.partialorder %v1249_v52, 0.0  ;;  %v1377_v58 = vmul.f32 0.01, %v1249_v52  ;;  %vm1345_vm0 = vcmp.ge.f32.partialorder %v1281_v53, 0.0 }
 0x12e   : > { %v1443_v60 = vsel %vm1315_vm12, %v1251_v50, %v1379_v56  ;;  %v1475_v61 = vsel %vm1347_vm13, %v1283_v51, %v1411_v57  ;;  %v1409_v34 = vmul.f32 0.01, %v1281_v53  ;;  %v1440_v62 = vsel %vm1312_vm11, %v1248_v44, %v1376_v54 }
 0x12f   : > { %v2193_v63 = vpack.c.bf16 %v1443_v60, %v1442_v47  ;;  %v2273_v0 = vpack.c.bf16 %v1475_v61, %v1474_v59  ;;  %v1441_v1 = vsel %vm1313_vm15, %v1249_v52, %v1377_v58  ;;  %v1472_v2 = vsel %vm1344_vm14, %v1280_v49, %v1408_v55 }
 0x130   : > { %v2188_v3 = vpack.c.bf16 %v1441_v1, %v1440_v62  ;;  %v1473_v4 = vsel %vm1345_vm0, %v1281_v53, %v1409_v34 }
 0x131   : > { %2289 = vst [vmem:[%s2630_s29 + $0x78] sm:$0xff] %v2193_v63   ;;  %2305 = vst [vmem:[%s2630_s29 + $0xf8] sm:$0xff] %v2273_v0   ;;  %v2268_v5 = vpack.c.bf16 %v1473_v4, %v1472_v2 }
 0x132   : > { %2288 = vst [vmem:[%s2630_s29 + $0x70] sm:$0xff] %v2188_v3  }
 0x133   : > { %2304 = vst [vmem:[%s2630_s29 + $0xf0] sm:$0xff] %v2268_v5  }
 0x134 PF: > { %s13_s14 = sadd.s32 1, %s2492_s14   ;;  %s2736_s12 = smov %s2488_s13 }
 0x135   : > { %p10_p5 = scmp.ge.s32.totalorder %s13_s14, 4   ;;  %s2737_s13 = smov %s2739_s15 }
 0x137   :  { %12 = sbr.rel (!%p10_p5) target bundleno = 2 (0x2), region = 76 }

// kernel: patch_autoencoder.8
= control target key start
LH: loop header
LB: loop body
LE: loop exit
PB: predicated region body
PF: predicated region fallthrough
CT: control target
= control target key end

     0   :  { %vm867_vm0 = vcmask 523264   ;;  %s3123_s1 = inlined_call_operand.vmem [shape: bf16[576,128], index: 1, kind: input, shape index: {}]   ;;  %s3124_s0 = inlined_call_operand.vmem [shape: bf16[256,576], index: 0, kind: input, shape index: {}]   ;;  %s3125_s2 = inlined_call_operand.vmem [shape: f32[1,128], index: 2, kind: input, shape index: {}]   ;;  %s3126_s3 = inlined_call_operand.vmem [shape: bf16[256,128], index: 3, kind: output, shape index: {}]  }
   0x1   :  { %v2389_v0 = vld [vmem:[%s3123_s1 + $0x40] sm:$0xff]   ;;  %v2391_v2 = vld [vmem:[%s3123_s1 + $0x48] sm:$0xff]   ;;  %v2393_v4 = vld [vmem:[%s3123_s1 + $0x50] sm:$0xff]  }
   0x2   :  { %v2390_v1 = vld [vmem:[%s3123_s1] sm:$0xff]   ;;  %2089 = vmatprep.subr.bf16.mxu0 %v2389_v0  ;;  %2373 = vmatprep.subr.bf16.mxu1 %v2389_v0  ;;  %v2392_v3 = vld [vmem:[%s3123_s1 + $0x8] sm:$0xff]   ;;  %v2394_v5 = vld [vmem:[%s3123_s1 + $0x10] sm:$0xff]  }
   0x3   :  { %2090 = vmatpush3.bf16.msra.mxu0 %v2390_v1  ;;  %2381 = vmatpush3.bf16.msra.mxu1 %v2390_v1  ;;  %v2395_v6 = vld [vmem:[%s3123_s1 + $0x58] sm:$0xff]   ;;  %v2397_v8 = vld [vmem:[%s3123_s1 + $0x60] sm:$0xff]   ;;  %v2399_v10 = vld [vmem:[%s3123_s1 + $0x68] sm:$0xff]  }
   0x4   :  { %2091 = vmatprep.subr.bf16.mxu0 %v2391_v2  ;;  %2374 = vmatprep.subr.bf16.mxu1 %v2391_v2  ;;  %v2396_v7 = vld [vmem:[%s3123_s1 + $0x18] sm:$0xff]   ;;  %v2398_v9 = vld [vmem:[%s3123_s1 + $0x20] sm:$0xff]   ;;  %v2400_v13 = vld [vmem:[%s3123_s1 + $0x28] sm:$0xff]  }
   0x5   :  { %v2407_v11 = vld [vmem:[%s3124_s0 + $0x4] ss:$20 sps:$4 sm:$0xff]   ;;  %v2401_v14 = vld [vmem:[%s3123_s1 + $0x70] sm:$0xff]   ;;  %v2413_v23 = vld [vmem:[%s3123_s1 + $0xc8] sm:$0xff]  }
   0x6   :  { %v2410_v12 = vld [vmem:[%s3124_s0 + $0x1e4] ss:$20 sps:$4 sm:$0xff]   ;;  %948 = vmatprep.mubr.bf16.mxu0 %v2407_v11  ;;  %v2402_v15 = vld [vmem:[%s3123_s1 + $0x30] sm:$0xff]   ;;  %v2416_v24 = vld [vmem:[%s3124_s0 + $0x2c] ss:$20 sps:$4 sm:$0xff]  }
   0x7   :  { %2092 = vmatpush3.bf16.msra.mxu0 %v2392_v3  ;;  %2382 = vmatpush3.bf16.msra.mxu1 %v2392_v3  ;;  %v2403_v16 = vld [vmem:[%s3123_s1 + $0x78] sm:$0xff]   ;;  %v2411_v18 = vld [vmem:[%s3123_s1 + $0xc0] sm:$0xff]   ;;  %v2415_v26 = vld [vmem:[%s3123_s1 + $0x88] sm:$0xff]  }
   0x8   :  { %2093 = vmatprep.subr.bf16.mxu0 %v2393_v4  ;;  %2375 = vmatprep.subr.bf16.mxu1 %v2393_v4  ;;  %v2404_v17 = vld [vmem:[%s3123_s1 + $0x38] sm:$0xff]   ;;  %v2414_v19 = vld [vmem:[%s3123_s1 + $0x100] sm:$0xff]   ;;  %v2422_v28 = vld [vmem:[%s3123_s1 + $0xd0] sm:$0xff]  }
   0x9   :  { %1044 = vmatprep.mubr.bf16.mxu1 %v2410_v12  ;;  %v2405_v20 = vld [vmem:[%s3124_s0] ss:$20 sps:$4 sm:$0xff]   ;;  %v2420_v27 = vld [vmem:[%s3124_s0 + $0x28] ss:$20 sps:$4 sm:$0xff]   ;;  %v2430_v36 = vld [vmem:[%s3124_s0 + $0x50] ss:$20 sps:$4 sm:$0xff]  }
   0xa   :  { %v2408_v21 = vld [vmem:[%s3124_s0 + $0x1e0] ss:$20 sps:$4 sm:$0xff]   ;;  %v2421_v29 = vld [vmem:[%s3124_s0 + $0x208] ss:$20 sps:$4 sm:$0xff]   ;;  %v2431_v38 = vld [vmem:[%s3124_s0 + $0x230] ss:$20 sps:$4 sm:$0xff]  }
   0xb   :  { %2094 = vmatpush3.bf16.msra.mxu0 %v2394_v5  ;;  %2383 = vmatpush3.bf16.msra.mxu1 %v2394_v5  ;;  %v2412_v22 = vld [vmem:[%s3123_s1 + $0x80] sm:$0xff]   ;;  %v2423_v30 = vld [vmem:[%s3123_s1 + $0x90] sm:$0xff]   ;;  %v2424_v31 = vld [vmem:[%s3123_s1 + $0xd8] sm:$0xff]  }
   0xc   :  { %2095 = vmatprep.subr.bf16.mxu0 %v2395_v6  ;;  %2376 = vmatprep.subr.bf16.mxu1 %v2395_v6  ;;  %v2418_v25 = vld [vmem:[%s3124_s0 + $0x20c] ss:$20 sps:$4 sm:$0xff]   ;;  %v2426_v32 = vld [vmem:[%s3124_s0 + $0x54] ss:$20 sps:$4 sm:$0xff]   ;;  %v2425_v34 = vld [vmem:[%s3123_s1 + $0x98] sm:$0xff]  }
   0xd   :  { %v2428_v33 = vld [vmem:[%s3124_s0 + $0x234] ss:$20 sps:$4 sm:$0xff]   ;;  %v2432_v37 = vld [vmem:[%s3123_s1 + $0xe0] sm:$0xff]   ;;  %v2436_v41 = vld [vmem:[%s3124_s0 + $0x7c] ss:$20 sps:$4 sm:$0xff]  }
   0xe   :  { %v2445_v35 = vld [vmem:[%s3123_s1 + $0x108] sm:$0xff]   ;;  %v2433_v39 = vld [vmem:[%s3123_s1 + $0xa0] sm:$0xff]   ;;  %v2438_v42 = vld [vmem:[%s3124_s0 + $0x25c] ss:$20 sps:$4 sm:$0xff]  }
   0xf   :  { %2096 = vmatpush3.bf16.msra.mxu0 %v2396_v7  ;;  %2384 = vmatpush3.bf16.msra.mxu1 %v2396_v7  ;;  %v2434_v40 = vld [vmem:[%s3123_s1 + $0xe8] sm:$0xff]   ;;  %v2442_v46 = vld [vmem:[%s3123_s1 + $0xf0] sm:$0xff]   ;;  %v2444_v49 = vld [vmem:[%s3123_s1 + $0xf8] sm:$0xff]  }
  0x10   :  { %2097 = vmatprep.subr.bf16.mxu0 %v2397_v8  ;;  %2377 = vmatprep.subr.bf16.mxu1 %v2397_v8  ;;  %v2435_v43 = vld [vmem:[%s3123_s1 + $0xa8] sm:$0xff]   ;;  %v2465_v47 = vld [vmem:[%s3123_s1 + $0x110] sm:$0xff]   ;;  %v2447_v50 = vld [vmem:[%s3124_s0 + $0xa4] ss:$20 sps:$4 sm:$0xff]  }
  0x11   :  { %v2440_v44 = vld [vmem:[%s3124_s0 + $0x78] ss:$20 sps:$4 sm:$0xff]   ;;  %v2443_v48 = vld [vmem:[%s3123_s1 + $0xb0] sm:$0xff]   ;;  %v2449_v53 = vld [vmem:[%s3124_s0 + $0x8] ss:$20 sps:$4 sm:$0xff]  }
  0x12   :  { %v2441_v45 = vld [vmem:[%s3124_s0 + $0x258] ss:$20 sps:$4 sm:$0xff]   ;;  %v2452_v54 = vld [vmem:[%s3124_s0 + $0xa0] ss:$20 sps:$4 sm:$0xff]   ;;  %v2457_v58 = vld [vmem:[%s3124_s0 + $0xc8] ss:$20 sps:$4 sm:$0xff]  }
  0x13   :  { %2098 = vmatpush3.bf16.msra.mxu0 %v2398_v9  ;;  %2385 = vmatpush3.bf16.msra.mxu1 %v2398_v9  ;;  %v2451_v51 = vld [vmem:[%s3124_s0 + $0xc] ss:$20 sps:$4 sm:$0xff]   ;;  %v2446_v52 = vld [vmem:[%s3123_s1 + $0xb8] sm:$0xff]   ;;  %v2455_v57 = vld [vmem:[%s3124_s0 + $0x34] ss:$20 sps:$4 sm:$0xff]  }
  0x14   :  { %2099 = vmatprep.subr.bf16.mxu0 %v2399_v10  ;;  %2378 = vmatprep.subr.bf16.mxu1 %v2399_v10  ;;  %v2453_v55 = vld [vmem:[%s3124_s0 + $0xcc] ss:$20 sps:$4 sm:$0xff]   ;;  %v2484_v56 = vld [vmem:[%s3123_s1 + $0x118] sm:$0xff]   ;;  %v2458_v59 = vld [vmem:[%s3124_s0 + $0x30] ss:$20 sps:$4 sm:$0xff]  }
  0x15   :  { %v2459_v60 = vld [vmem:[%s3124_s0 + $0xf4] ss:$20 sps:$4 sm:$0xff]   ;;  %v2461_v61 = vld [vmem:[%s3124_s0 + $0x5c] ss:$20 sps:$4 sm:$0xff]   ;;  %v2464_v63 = vld [vmem:[%s3124_s0 + $0x58] ss:$20 sps:$4 sm:$0xff]  }
  0x16   :  { %v2463_v62 = vld [vmem:[%s3124_s0 + $0xf0] ss:$20 sps:$4 sm:$0xff]   ;;  %v2470_v2 = vld [vmem:[%s3124_s0 + $0x118] ss:$20 sps:$4 sm:$0xff]   ;;  %v2471_v3 = vld [vmem:[%s3124_s0 + $0x80] ss:$20 sps:$4 sm:$0xff]  }
  0x17   :  { %2100 = vmatpush3.bf16.msra.mxu0 %v2400_v13  ;;  %2386 = vmatpush3.bf16.msra.mxu1 %v2400_v13  ;;  %v2466_v0 = vld [vmem:[%s3124_s0 + $0x11c] ss:$20 sps:$4 sm:$0xff]   ;;  %v2468_v1 = vld [vmem:[%s3124_s0 + $0x84] ss:$20 sps:$4 sm:$0xff]   ;;  %v2474_v5 = vld [vmem:[%s3124_s0 + $0xac] ss:$20 sps:$4 sm:$0xff]  }
  0x18   :  { %2101 = vmatprep.subr.bf16.mxu0 %v2401_v14  ;;  %2379 = vmatprep.subr.bf16.mxu1 %v2401_v14  ;;  %v2472_v4 = vld [vmem:[%s3124_s0 + $0x144] ss:$20 sps:$4 sm:$0xff]   ;;  %v2476_v6 = vld [vmem:[%s3124_s0 + $0x140] ss:$20 sps:$4 sm:$0xff]   ;;  %v2477_v7 = vld [vmem:[%s3124_s0 + $0xa8] ss:$20 sps:$4 sm:$0xff]  }
  0x19   :  { %v2478_v8 = vld [vmem:[%s3124_s0 + $0x16c] ss:$20 sps:$4 sm:$0xff]   ;;  %v2480_v9 = vld [vmem:[%s3124_s0 + $0xd4] ss:$20 sps:$4 sm:$0xff]   ;;  %v2483_v11 = vld [vmem:[%s3124_s0 + $0xd0] ss:$20 sps:$4 sm:$0xff]  }
  0x1a   :  { %v2482_v10 = vld [vmem:[%s3124_s0 + $0x168] ss:$20 sps:$4 sm:$0xff]   ;;  %v2489_v14 = vld [vmem:[%s3124_s0 + $0x190] ss:$20 sps:$4 sm:$0xff]  }
  0x1b   :  { %2102 = vmatpush3.bf16.msra.mxu0 %v2402_v15  ;;  %2387 = vmatpush3.bf16.msra.mxu1 %v2402_v15  ;;  %v2485_v12 = vld [vmem:[%s3124_s0 + $0x194] ss:$20 sps:$4 sm:$0xff]   ;;  %v2487_v13 = vld [vmem:[%s3124_s0 + $0xfc] ss:$20 sps:$4 sm:$0xff]   ;;  %v2490_v15 = vld [vmem:[%s3124_s0 + $0xf8] ss:$20 sps:$4 sm:$0xff]  }
  0x1c   :  { %2103 = vmatprep.subr.bf16.mxu0 %v2403_v16  ;;  %2380 = vmatprep.subr.bf16.mxu1 %v2403_v16  ;;  %v2491_v16 = vld [vmem:[%s3124_s0 + $0x1bc] ss:$20 sps:$4 sm:$0xff]  }
  0x1f   :  { %2104 = vmatpush3.bf16.msra.mxu0 %v2404_v17  ;;  %2388 = vmatpush3.bf16.msra.mxu1 %v2404_v17  ;;  %v2493_v17 = vld [vmem:[%s3124_s0 + $0x124] ss:$20 sps:$4 sm:$0xff]  }
  0x20   :  { %2201 = vmatprep.subr.bf16.mxu1 %v2411_v18  ;;  %2333 = vmatprep.subr.bf16.mxu0 %v2414_v19  ;;  %v2495_v18 = vld [vmem:[%s3124_s0 + $0x1b8] ss:$20 sps:$4 sm:$0xff]  }
  0x22   :  { %949 = vmatmul.mubr.bf16.vlgmr.msra.gmra.mrb[0].mxu0 %v2405_v20  ;;  %1045 = vmatmul.mubr.bf16.vlgmr.msra.gmra.mrb[0].mxu1 %v2408_v21  ;;  %v2497_v20 = vld [vmem:[%s3124_s0 + $0x14c] ss:$20 sps:$4 sm:$0xff]   ;;  %v2499_v21 = vld [vmem:[%s3124_s0 + $0x10] ss:$20 sps:$4 sm:$0xff]  }
  0x23   :  { %2202 = vmatpush3.bf16.msra.mxu1 %v2412_v22  ;;  %2334 = vmatpush3.bf16.msra.mxu0 %v2414_v19  ;;  %v2496_v19 = vld [vmem:[%s3124_s0 + $0x120] ss:$20 sps:$4 sm:$0xff]   ;;  %v2500_v22 = vld [vmem:[%s3124_s0 + $0x148] ss:$20 sps:$4 sm:$0xff]  }
  0x24   :  { %2203 = vmatprep.subr.bf16.mxu1 %v2413_v23  ;;  %956 = vmatprep.mubr.bf16.mxu0 %v2416_v24  ;;  %v2501_v23 = vld [vmem:[%s3124_s0 + $0x38] ss:$20 sps:$4 sm:$0xff]   ;;  %v2502_v24 = vld [vmem:[%s3124_s0 + $0x174] ss:$20 sps:$4 sm:$0xff]  }
  0x25   :  { %1052 = vmatprep.mubr.bf16.mxu1 %v2418_v25  ;;  %2335 = vmatprep.subr.bf16.mxu0 %v2445_v35  ;;  %v2504_v25 = vld [vmem:[%s3124_s0 + $0x60] ss:$20 sps:$4 sm:$0xff]  }
  0x27   :  { %2204 = vmatpush3.bf16.msra.mxu1 %v2415_v26  ;;  %2336 = vmatpush3.bf16.msra.mxu0 %v2445_v35  ;;  %v2505_v26 = vld [vmem:[%s3124_s0 + $0x170] ss:$20 sps:$4 sm:$0xff]   ;;  %v2516_v35 = vld [vmem:[%s3124_s0 + $0x128] ss:$20 sps:$4 sm:$0xff]  }
  0x28   :  { %2205 = vmatprep.subr.bf16.mxu1 %v2422_v28  ;;  %2337 = vmatprep.subr.bf16.mxu0 %v2465_v47  ;;  %v2507_v28 = vld [vmem:[%s3124_s0 + $0x19c] ss:$20 sps:$4 sm:$0xff]  }
  0x2a   :  { %957 = vmatmul.mubr.bf16.gmra.mrb[4].mxu0 %v2420_v27  ;;  %1053 = vmatmul.mubr.bf16.gmra.mrb[4].mxu1 %v2421_v29  ;;  %v2506_v27 = vld [vmem:[%s3124_s0 + $0x88] ss:$20 sps:$4 sm:$0xff]   ;;  %v2509_v29 = vld [vmem:[%s3124_s0 + $0xb0] ss:$20 sps:$4 sm:$0xff]  }
  0x2b   :  { %2206 = vmatpush3.bf16.msra.mxu1 %v2423_v30  ;;  %964 = vmatprep.mubr.bf16.mxu0 %v2426_v32  ;;  %v2510_v30 = vld [vmem:[%s3124_s0 + $0x198] ss:$20 sps:$4 sm:$0xff]  }
  0x2c   :  { %2207 = vmatprep.subr.bf16.mxu1 %v2424_v31  ;;  %1060 = vmatprep.mubr.bf16.mxu1 %v2428_v33  ;;  %v2511_v31 = vld [vmem:[%s3124_s0 + $0xd8] ss:$20 sps:$4 sm:$0xff]   ;;  %v2514_v33 = vld [vmem:[%s3124_s0 + $0x100] ss:$20 sps:$4 sm:$0xff]  }
  0x2d   :  { %2338 = vmatpush3.bf16.msra.mxu0 %v2465_v47  ;;  %v2512_v32 = vld [vmem:[%s3124_s0 + $0x1c4] ss:$20 sps:$4 sm:$0xff]  }
  0x2e   :  { %2339 = vmatprep.subr.bf16.mxu0 %v2484_v56  ;;  %v2531_v47 = vld [vmem:[%s3124_s0 + $0x218] ss:$20 sps:$4 sm:$0xff]  }
  0x2f   :  { %2208 = vmatpush3.bf16.msra.mxu1 %v2425_v34  ;;  %v2515_v34 = vld [vmem:[%s3124_s0 + $0x1c0] ss:$20 sps:$4 sm:$0xff]  }
  0x30   :  { %2209 = vmatprep.subr.bf16.mxu1 %v2432_v37  ;;  %v2519_v37 = vld [vmem:[%s3124_s0 + $0x150] ss:$20 sps:$4 sm:$0xff]  }
  0x31   :  { %2340 = vmatpush3.bf16.msra.mxu0 %v2484_v56 }
  0x32   :  { %965 = vmatmul.mubr.bf16.gmra.mrb[8].mxu0 %v2430_v36  ;;  %1061 = vmatmul.mubr.bf16.gmra.mrb[8].mxu1 %v2431_v38  ;;  %v2517_v36 = vld [vmem:[%s3124_s0 + $0x1ec] ss:$20 sps:$4 sm:$0xff]   ;;  %v2520_v38 = vld [vmem:[%s3124_s0 + $0x1e8] ss:$20 sps:$4 sm:$0xff]  }
  0x33   :  { %2210 = vmatpush3.bf16.msra.mxu1 %v2433_v39  ;;  %972 = vmatprep.mubr.bf16.mxu0 %v2436_v41  ;;  %v2521_v39 = vld [vmem:[%s3124_s0 + $0x178] ss:$20 sps:$4 sm:$0xff]   ;;  %v2524_v41 = vld [vmem:[%s3124_s0 + $0x1a0] ss:$20 sps:$4 sm:$0xff]  }
  0x34   :  { %2211 = vmatprep.subr.bf16.mxu1 %v2434_v40  ;;  %1068 = vmatprep.mubr.bf16.mxu1 %v2438_v42  ;;  %v2522_v40 = vld [vmem:[%s3124_s0 + $0x214] ss:$20 sps:$4 sm:$0xff]   ;;  %v2525_v42 = vld [vmem:[%s3124_s0 + $0x210] ss:$20 sps:$4 sm:$0xff]  }
  0x37   :  { %2212 = vmatpush3.bf16.msra.mxu1 %v2435_v43  ;;  %v2526_v43 = vld [vmem:[%s3124_s0 + $0x1c8] ss:$20 sps:$4 sm:$0xff]  }
  0x38   :  { %2213 = vmatprep.subr.bf16.mxu1 %v2442_v46  ;;  %v2530_v46 = vld [vmem:[%s3124_s0 + $0x238] ss:$20 sps:$4 sm:$0xff]  }
  0x3a   :  { %973 = vmatmul.mubr.bf16.gmra.mrb[12].mxu0 %v2440_v44  ;;  %1069 = vmatmul.mubr.bf16.gmra.mrb[12].mxu1 %v2441_v45  ;;  %v2527_v44 = vld [vmem:[%s3124_s0 + $0x23c] ss:$20 sps:$4 sm:$0xff]  }
  0x3b   :  { %2214 = vmatpush3.bf16.msra.mxu1 %v2443_v48  ;;  %980 = vmatprep.mubr.bf16.mxu0 %v2447_v50  ;;  %v2529_v45 = vld [vmem:[%s3124_s0 + $0x1f0] ss:$20 sps:$4 sm:$0xff]   ;;  %v2535_v50 = vld [vmem:[%s3124_s0 + $0x260] ss:$20 sps:$4 sm:$0xff]  }
  0x3c   :  { %2215 = vmatprep.subr.bf16.mxu1 %v2444_v49  ;;  %1109 = vmatprep.mubr.bf16.mxu1 %v2451_v51  ;;  %v2532_v48 = vld [vmem:[%s3124_s0 + $0x264] ss:$20 sps:$4 sm:$0xff]   ;;  %v2534_v49 = vld [vmem:[%s3124_s0 + $0x240] ss:$20 sps:$4 sm:$0xff]   ;;  %v2536_v51 = vld [vmem:[%s3124_s0 + $0x268] ss:$20 sps:$4 sm:$0xff]  }
  0x3f   :  { %2216 = vmatpush3.bf16.msra.mxu1 %v2446_v52 }
  0x42   :  { %981 = vmatmul.mubr.bf16.gmra.mrb[16].mxu0 %v2452_v54  ;;  %1110 = vmatmul.mubr.bf16.vlgmr.msra.gmra.mrb[16].mxu1 %v2449_v53 }
  0x43   :  { %988 = vmatprep.mubr.bf16.mxu0 %v2453_v55  ;;  %1117 = vmatprep.mubr.bf16.mxu1 %v2455_v57 }
  0x4a   :  { %989 = vmatmul.mubr.bf16.gmra.mrb[20].mxu0 %v2457_v58  ;;  %1118 = vmatmul.mubr.bf16.gmra.mrb[20].mxu1 %v2458_v59 }
  0x4b   :  { %996 = vmatprep.mubr.bf16.mxu0 %v2459_v60  ;;  %1125 = vmatprep.mubr.bf16.mxu1 %v2461_v61 }
  0x52   :  { %997 = vmatmul.mubr.bf16.gmra.mrb[24].mxu0 %v2463_v62  ;;  %1126 = vmatmul.mubr.bf16.gmra.mrb[24].mxu1 %v2464_v63 }
  0x53   :  { %1004 = vmatprep.mubr.bf16.mxu0 %v2466_v0  ;;  %1133 = vmatprep.mubr.bf16.mxu1 %v2468_v1 }
  0x5a   :  { %1005 = vmatmul.mubr.bf16.gmra.mrb[28].mxu0 %v2470_v2  ;;  %1134 = vmatmul.mubr.bf16.gmra.mrb[28].mxu1 %v2471_v3 }
  0x5b   :  { %1012 = vmatprep.mubr.bf16.mxu0 %v2472_v4  ;;  %1141 = vmatprep.mubr.bf16.mxu1 %v2474_v5 }
  0x62   :  { %1013 = vmatmul.mubr.bf16.gmra.mrb[32].mxu0 %v2476_v6  ;;  %1142 = vmatmul.mubr.bf16.gmra.mrb[32].mxu1 %v2477_v7 }
  0x63   :  { %1020 = vmatprep.mubr.bf16.mxu0 %v2478_v8  ;;  %1149 = vmatprep.mubr.bf16.mxu1 %v2480_v9 }
  0x6a   :  { %1021 = vmatmul.mubr.bf16.gmra.mrb[36].mxu0 %v2482_v10  ;;  %1150 = vmatmul.mubr.bf16.gmra.mrb[36].mxu1 %v2483_v11 }
  0x6b   :  { %1028 = vmatprep.mubr.bf16.mxu0 %v2485_v12  ;;  %1157 = vmatprep.mubr.bf16.mxu1 %v2487_v13 }
  0x72   :  { %1029 = vmatmul.mubr.bf16.gmra.mrb[40].mxu0 %v2489_v14  ;;  %1158 = vmatmul.mubr.bf16.gmra.mrb[40].mxu1 %v2490_v15 }
  0x73   :  { %1036 = vmatprep.mubr.bf16.mxu0 %v2491_v16  ;;  %1165 = vmatprep.mubr.bf16.mxu1 %v2493_v17 }
  0x7a   :  { %1037 = vmatmul.mubr.bf16.gmra.mrb[44].mxu0 %v2495_v18  ;;  %1166 = vmatmul.mubr.bf16.gmra.mrb[44].mxu1 %v2496_v19 }
  0x7b   :  { %1173 = vmatprep.mubr.bf16.mxu1 %v2497_v20  ;;  %2341 = vmatprep.mubr.msk.bf16.mxu0 %vm867_vm0, %v2499_v21 }
  0x82   :  { %1174 = vmatmul.mubr.bf16.gmra.mrb[48].mxu1 %v2500_v22  ;;  %2342 = vmatmul.mubr.msk.bf16.vlgmr.msra.gmra.mrb[48].mxu0 %vm867_vm0, %v2501_v23 }
  0x83   :  { %1181 = vmatprep.mubr.bf16.mxu1 %v2502_v24  ;;  %2345 = vmatprep.mubr.msk.bf16.mxu0 %vm867_vm0, %v2504_v25 }
  0x8a   :  { %1182 = vmatmul.mubr.bf16.gmra.mrb[52].mxu1 %v2505_v26  ;;  %2346 = vmatmul.mubr.msk.bf16.gmra.mrb[52].mxu0 %vm867_vm0, %v2506_v27 }
  0x8b   :  { %1189 = vmatprep.mubr.bf16.mxu1 %v2507_v28  ;;  %2349 = vmatprep.mubr.msk.bf16.mxu0 %vm867_vm0, %v2509_v29 }
  0x92   :  { %1190 = vmatmul.mubr.bf16.gmra.mrb[56].mxu1 %v2510_v30  ;;  %2350 = vmatmul.mubr.msk.bf16.gmra.mrb[56].mxu0 %vm867_vm0, %v2511_v31 }
  0x93   :  { %1197 = vmatprep.mubr.bf16.mxu1 %v2512_v32  ;;  %2353 = vmatprep.mubr.msk.bf16.mxu0 %vm867_vm0, %v2514_v33 }
  0x9a   :  { %1198 = vmatmul.mubr.bf16.gmra.mrb[60].mxu1 %v2515_v34  ;;  %2354 = vmatmul.mubr.msk.bf16.gmra.mrb[60].mxu0 %vm867_vm0, %v2516_v35 }
  0x9b   :  { %1205 = vmatprep.mubr.bf16.mxu1 %v2517_v36  ;;  %2357 = vmatprep.mubr.msk.bf16.mxu0 %vm867_vm0, %v2519_v37 }
  0xa2   :  { %1206 = vmatmul.mubr.bf16.gmra.mrb[64].mxu1 %v2520_v38  ;;  %2358 = vmatmul.mubr.msk.bf16.gmra.mrb[64].mxu0 %vm867_vm0, %v2521_v39 }
  0xa3   :  { %1213 = vmatprep.mubr.bf16.mxu1 %v2522_v40  ;;  %2361 = vmatprep.mubr.msk.bf16.mxu0 %vm867_vm0, %v2524_v41 }
  0xaa   :  { %1214 = vmatmul.mubr.bf16.gmra.mrb[68].mxu1 %v2525_v42  ;;  %2362 = vmatmul.mubr.msk.bf16.gmra.mrb[68].mxu0 %vm867_vm0, %v2526_v43 }
  0xab   :  { %1221 = vmatprep.mubr.bf16.mxu1 %v2527_v44  ;;  %2365 = vmatprep.mubr.msk.bf16.mxu0 %vm867_vm0, %v2529_v45 }
  0xb2   :  { %1222 = vmatmul.mubr.bf16.gmra.mrb[72].mxu1 %v2530_v46  ;;  %2366 = vmatmul.mubr.msk.bf16.gmra.mrb[72].mxu0 %vm867_vm0, %v2531_v47 }
  0xb3   :  { %1229 = vmatprep.mubr.bf16.mxu1 %v2532_v48  ;;  %2369 = vmatprep.mubr.msk.bf16.mxu0 %vm867_vm0, %v2534_v49 }
  0xba   :  { %1230 = vmatmul.mubr.bf16.gmra.mrb[76].mxu1 %v2535_v50  ;;  %2370 = vmatmul.mubr.msk.bf16.gmra.mrb[76].mxu0 %vm867_vm0, %v2536_v51 }
  0xf5   :  { %v2177_v52 = vpop.f32.mrb[0].mxu1  ;;  %v2105_v53 = vpop.f32.mrb[0].mxu0 }
  0xf6   :  { %v2178_v54 = vpop.f32.mrb[1].mxu1  ;;  %v2106_v55 = vpop.f32.mrb[1].mxu0 }
  0xf7   :  { %v2921_v56 = vadd.f32 %v2178_v54, %v2177_v52  ;;  %v2180_v57 = vpop.f32.mrb[2].mxu1  ;;  %v2107_v58 = vadd.f32 %v2106_v55, %v2105_v53  ;;  %v2108_v59 = vpop.f32.mrb[2].mxu0 }
  0xf8   :  { %v2181_v60 = vpop.f32.mrb[3].mxu1  ;;  %v2109_v61 = vpop.f32.mrb[3].mxu0 }
  0xf9   :  { %v2923_v62 = vadd.f32 %v2181_v60, %v2180_v57  ;;  %v2110_v63 = vadd.f32 %v2109_v61, %v2108_v59 }
  0xfd   :  { %v2183_v0 = vpop.f32.mrb[4].mxu1  ;;  %v2111_v1 = vpop.f32.mrb[4].mxu0 }
  0xfe   :  { %v2184_v2 = vpop.f32.mrb[5].mxu1  ;;  %v2112_v3 = vpop.f32.mrb[5].mxu0 }
  0xff   :  { %v2925_v4 = vadd.f32 %v2184_v2, %v2183_v0  ;;  %v2186_v5 = vpop.f32.mrb[6].mxu1  ;;  %v2113_v6 = vadd.f32 %v2112_v3, %v2111_v1  ;;  %v2114_v7 = vpop.f32.mrb[6].mxu0 }
 0x100   :  { %v2187_v8 = vpop.f32.mrb[7].mxu1  ;;  %v2115_v9 = vpop.f32.mrb[7].mxu0 }
 0x101   :  { %v2927_v10 = vadd.f32 %v2187_v8, %v2186_v5  ;;  %v2116_v11 = vadd.f32 %v2115_v9, %v2114_v7 }
 0x105   :  { %v2189_v12 = vpop.f32.mrb[8].mxu1  ;;  %v2117_v13 = vpop.f32.mrb[8].mxu0 }
 0x106   :  { %v2190_v14 = vpop.f32.mrb[9].mxu1  ;;  %v2118_v15 = vpop.f32.mrb[9].mxu0 }
 0x107   :  { %v2929_v16 = vadd.f32 %v2190_v14, %v2189_v12  ;;  %v2192_v17 = vpop.f32.mrb[10].mxu1  ;;  %v2119_v18 = vadd.f32 %v2118_v15, %v2117_v13  ;;  %v2120_v19 = vpop.f32.mrb[10].mxu0 }
 0x108   :  { %v2193_v20 = vpop.f32.mrb[11].mxu1  ;;  %v2121_v21 = vpop.f32.mrb[11].mxu0 }
 0x109   :  { %v2931_v22 = vadd.f32 %v2193_v20, %v2192_v17  ;;  %v2122_v23 = vadd.f32 %v2121_v21, %v2120_v19 }
 0x10d   :  { %v2195_v24 = vpop.f32.mrb[12].mxu1  ;;  %v2123_v25 = vpop.f32.mrb[12].mxu0 }
 0x10e   :  { %v2196_v26 = vpop.f32.mrb[13].mxu1  ;;  %v2124_v27 = vpop.f32.mrb[13].mxu0 }
 0x10f   :  { %v2933_v28 = vadd.f32 %v2196_v26, %v2195_v24  ;;  %v2198_v29 = vpop.f32.mrb[14].mxu1  ;;  %v2125_v30 = vadd.f32 %v2124_v27, %v2123_v25  ;;  %v2126_v31 = vpop.f32.mrb[14].mxu0 }
 0x110   :  { %v2199_v32 = vpop.f32.mrb[15].mxu1  ;;  %v2127_v33 = vpop.f32.mrb[15].mxu0 }
 0x111   :  { %v2935_v34 = vadd.f32 %v2199_v32, %v2198_v29  ;;  %v2128_v35 = vadd.f32 %v2127_v33, %v2126_v31 }
 0x115   :  { %v2217_v36 = vpop.f32.mrb[16].mxu1  ;;  %v2129_v37 = vpop.f32.mrb[16].mxu0 }
 0x116   :  { %v2218_v38 = vpop.f32.mrb[17].mxu1  ;;  %v2130_v39 = vpop.f32.mrb[17].mxu0 }
 0x117   :  { %v2219_v40 = vadd.f32 %v2218_v38, %v2217_v36  ;;  %v2220_v41 = vpop.f32.mrb[18].mxu1  ;;  %v2131_v42 = vadd.f32 %v2130_v39, %v2129_v37  ;;  %v2132_v43 = vpop.f32.mrb[18].mxu0 }
 0x118   :  { %v2221_v44 = vpop.f32.mrb[19].mxu1  ;;  %v2133_v45 = vpop.f32.mrb[19].mxu0 }
 0x119   :  { %v2222_v46 = vadd.f32 %v2221_v44, %v2220_v41  ;;  %v2134_v47 = vadd.f32 %v2133_v45, %v2132_v43  ;;  %v2937_v48 = vadd.f32 %v2219_v40, %v2107_v58 }
 0x11b   :  { %v2939_v49 = vadd.f32 %v2222_v46, %v2110_v63 }
 0x11d   :  { %v2223_v50 = vpop.f32.mrb[20].mxu1  ;;  %v2135_v51 = vpop.f32.mrb[20].mxu0 }
 0x11e   :  { %v2224_v52 = vpop.f32.mrb[21].mxu1  ;;  %v2136_v53 = vpop.f32.mrb[21].mxu0 }
 0x11f   :  { %v2225_v54 = vadd.f32 %v2224_v52, %v2223_v50  ;;  %v2226_v55 = vpop.f32.mrb[22].mxu1  ;;  %v2137_v57 = vadd.f32 %v2136_v53, %v2135_v51  ;;  %v2138_v59 = vpop.f32.mrb[22].mxu0 }
 0x120   :  { %v2227_v60 = vpop.f32.mrb[23].mxu1  ;;  %v2139_v61 = vpop.f32.mrb[23].mxu0 }
 0x121   :  { %v2228_v0 = vadd.f32 %v2227_v60, %v2226_v55  ;;  %v2140_v1 = vadd.f32 %v2139_v61, %v2138_v59  ;;  %v2941_v2 = vadd.f32 %v2225_v54, %v2113_v6 }
 0x123   :  { %v2943_v3 = vadd.f32 %v2228_v0, %v2116_v11 }
 0x125   :  { %v2229_v58 = vpop.f32.mrb[24].mxu1  ;;  %v2141_v5 = vpop.f32.mrb[24].mxu0 }
 0x126   :  { %v2230_v63 = vpop.f32.mrb[25].mxu1  ;;  %v2142_v7 = vpop.f32.mrb[25].mxu0 }
 0x127   :  { %v2231_v8 = vadd.f32 %v2230_v63, %v2229_v58  ;;  %v2232_v9 = vpop.f32.mrb[26].mxu1  ;;  %v2143_v12 = vadd.f32 %v2142_v7, %v2141_v5  ;;  %v2144_v13 = vpop.f32.mrb[26].mxu0 }
 0x128   :  { %v2233_v14 = vpop.f32.mrb[27].mxu1  ;;  %v2145_v15 = vpop.f32.mrb[27].mxu0 }
 0x129   :  { %v2234_v17 = vadd.f32 %v2233_v14, %v2232_v9  ;;  %v2146_v19 = vadd.f32 %v2145_v15, %v2144_v13  ;;  %v2945_v20 = vadd.f32 %v2231_v8, %v2119_v18 }
 0x12b   :  { %v2947_v21 = vadd.f32 %v2234_v17, %v2122_v23 }
 0x12d   :  { %v2235_v6 = vpop.f32.mrb[28].mxu1  ;;  %v2147_v24 = vpop.f32.mrb[28].mxu0 }
 0x12e   :  { %v2236_v11 = vpop.f32.mrb[29].mxu1  ;;  %v2148_v25 = vpop.f32.mrb[29].mxu0 }
 0x12f   :  { %v2237_v26 = vadd.f32 %v2236_v11, %v2235_v6  ;;  %v2238_v27 = vpop.f32.mrb[30].mxu1  ;;  %v2149_v29 = vadd.f32 %v2148_v25, %v2147_v24  ;;  %v2150_v31 = vpop.f32.mrb[30].mxu0 }
 0x130   :  { %v2239_v32 = vpop.f32.mrb[31].mxu1  ;;  %v2151_v33 = vpop.f32.mrb[31].mxu0 }
 0x131   :  { %v2240_v36 = vadd.f32 %v2239_v32, %v2238_v27  ;;  %v2152_v37 = vadd.f32 %v2151_v33, %v2150_v31  ;;  %v2949_v38 = vadd.f32 %v2237_v26, %v2125_v30 }
 0x133   :  { %v2951_v39 = vadd.f32 %v2240_v36, %v2128_v35 }
 0x135   :  { %v2241_v18 = vpop.f32.mrb[32].mxu1  ;;  %v2153_v40 = vpop.f32.mrb[32].mxu0 }
 0x136   :  { %v2242_v23 = vpop.f32.mrb[33].mxu1  ;;  %v2154_v41 = vpop.f32.mrb[33].mxu0 }
 0x137   :  { %v2243_v43 = vadd.f32 %v2242_v23, %v2241_v18  ;;  %v2244_v44 = vpop.f32.mrb[34].mxu1  ;;  %v2953_v45 = vadd.f32 %v2154_v41, %v2153_v40  ;;  %v2156_v46 = vpop.f32.mrb[34].mxu0 }
 0x138   :  { %v2245_v50 = vpop.f32.mrb[35].mxu1  ;;  %v2157_v51 = vpop.f32.mrb[35].mxu0 }
 0x139   :  { %v2246_v52 = vadd.f32 %v2245_v50, %v2244_v44  ;;  %v2955_v53 = vadd.f32 %v2157_v51, %v2156_v46  ;;  %v2957_v54 = vadd.f32 %v2243_v43, %v2131_v42 }
 0x13b   :  { %v2959_v30 = vadd.f32 %v2246_v52, %v2134_v47 }
 0x13d   :  { %v2247_v35 = vpop.f32.mrb[36].mxu1  ;;  %v2159_v55 = vpop.f32.mrb[36].mxu0 }
 0x13e   :  { %v2248_v59 = vpop.f32.mrb[37].mxu1  ;;  %v2160_v60 = vpop.f32.mrb[37].mxu0 }
 0x13f   :  { %v2249_v61 = vadd.f32 %v2248_v59, %v2247_v35  ;;  %v2250_v0 = vpop.f32.mrb[38].mxu1  ;;  %v2961_v58 = vadd.f32 %v2160_v60, %v2159_v55  ;;  %v2162_v5 = vpop.f32.mrb[38].mxu0  ;;  %v2988_v59 = vld [vmem:[%s3125_s2] ss:$0 sm:$0xff] }
 0x140   :  { %v2251_v63 = vpop.f32.mrb[39].mxu1  ;;  %v2163_v7 = vpop.f32.mrb[39].mxu0 }
 0x141   :  { %v2252_v8 = vadd.f32 %v2251_v63, %v2250_v0  ;;  %v2963_v9 = vadd.f32 %v2163_v7, %v2162_v5  ;;  %v2965_v13 = vadd.f32 %v2249_v61, %v2137_v57 }
 0x143   :  { %v2967_v42 = vadd.f32 %v2252_v8, %v2140_v1 }
 0x145   :  { %v2253_v47 = vpop.f32.mrb[40].mxu1  ;;  %v2165_v14 = vpop.f32.mrb[40].mxu0 }
 0x146   :  { %v2254_v15 = vpop.f32.mrb[41].mxu1  ;;  %v2166_v17 = vpop.f32.mrb[41].mxu0 }
 0x147   :  { %v2255_v6 = vadd.f32 %v2254_v15, %v2253_v47  ;;  %v2256_v24 = vpop.f32.mrb[42].mxu1  ;;  %v2969_v11 = vadd.f32 %v2166_v17, %v2165_v14  ;;  %v2168_v25 = vpop.f32.mrb[42].mxu0 }
 0x148   :  { %v2257_v26 = vpop.f32.mrb[43].mxu1  ;;  %v2169_v27 = vpop.f32.mrb[43].mxu0 }
 0x149   :  { %v2258_v31 = vadd.f32 %v2257_v26, %v2256_v24  ;;  %v2971_v32 = vadd.f32 %v2169_v27, %v2168_v25  ;;  %v2973_v33 = vadd.f32 %v2255_v6, %v2143_v12 }
 0x14b   :  { %v2975_v57 = vadd.f32 %v2258_v31, %v2146_v19 }
 0x14d   :  { %v2259_v1 = vpop.f32.mrb[44].mxu1  ;;  %v2171_v36 = vpop.f32.mrb[44].mxu0 }
 0x14e   :  { %v2260_v18 = vpop.f32.mrb[45].mxu1  ;;  %v2172_v40 = vpop.f32.mrb[45].mxu0 }
 0x14f   :  { %v2261_v23 = vadd.f32 %v2260_v18, %v2259_v1  ;;  %v2262_v41 = vpop.f32.mrb[46].mxu1  ;;  %v2977_v43 = vadd.f32 %v2172_v40, %v2171_v36  ;;  %v2174_v44 = vpop.f32.mrb[46].mxu0 }
 0x150   :  { %v2263_v46 = vpop.f32.mrb[47].mxu1  ;;  %v2175_v50 = vpop.f32.mrb[47].mxu0 }
 0x151   :  { %v2264_v51 = vadd.f32 %v2263_v46, %v2262_v41  ;;  %v2979_v52 = vadd.f32 %v2175_v50, %v2174_v44  ;;  %v2981_v35 = vadd.f32 %v2261_v23, %v2149_v29 }
 0x153   :  { %v2983_v12 = vadd.f32 %v2264_v51, %v2152_v37 }
 0x155   :  { %v2265_v19 = vpop.f32.mrb[48].mxu1  ;;  %v2343_v55 = vpop.f32.mrb[48].mxu0 }
 0x156   :  { %v1281_v60 = vadd.f32 %v2343_v55, %v2941_v2  ;;  %v2266_v61 = vpop.f32.mrb[49].mxu1  ;;  %v1272_v0 = vpop.f32.mrb[49].mxu0 }
 0x157   :  { %v2267_v5 = vadd.f32 %v2266_v61, %v2265_v19  ;;  %v1273_v63 = vadd.f32 %v1272_v0, %v2937_v48  ;;  %v2268_v7 = vpop.f32.mrb[50].mxu1  ;;  %v2344_v8 = vpop.f32.mrb[50].mxu0 }
 0x158   :  { %v1507_v29 = vadd.f32 %v2988_v59, %v1281_v60  ;;  %v1284_v37 = vadd.f32 %v2344_v8, %v2943_v3  ;;  %v2269_v47 = vpop.f32.mrb[51].mxu1  ;;  %v1275_v14 = vpop.f32.mrb[51].mxu0 }
 0x159   :  { %v1505_v15 = vadd.f32 %v2988_v59, %v1273_v63  ;;  %v2270_v17 = vadd.f32 %v2269_v47, %v2268_v7  ;;  %v1276_v6 = vadd.f32 %v1275_v14, %v2939_v49  ;;  %v2997_v2 = vadd.f32 %v2267_v5, %v2953_v45 }
 0x15a   :  { %vm1539_vm1 = vcmp.ge.f32.partialorder %v1507_v29, 0.0  ;;  %v1571_v24 = vmul.f32 0.01, %v1507_v29  ;;  %v1508_v48 = vadd.f32 %v2988_v59, %v1284_v37 }
 0x15b   :  { %vm1537_vm2 = vcmp.ge.f32.partialorder %v1505_v15, 0.0  ;;  %v1569_v25 = vmul.f32 0.01, %v1505_v15  ;;  %v1506_v26 = vadd.f32 %v2988_v59, %v1276_v6  ;;  %v3002_v3 = vadd.f32 %v2270_v17, %v2955_v53 }
 0x15c   :  { %vm1540_vm3 = vcmp.ge.f32.partialorder %v1508_v48, 0.0  ;;  %v1572_v27 = vmul.f32 0.01, %v1508_v48  ;;  %v1603_v36 = vsel %vm1539_vm1, %v1507_v29, %v1571_v24 }
 0x15d   :  { %vm1538_vm4 = vcmp.ge.f32.partialorder %v1506_v26, 0.0  ;;  %v1570_v31 = vmul.f32 0.01, %v1506_v26  ;;  %v2271_v1 = vpop.f32.mrb[52].mxu1  ;;  %v2347_v49 = vpop.f32.mrb[52].mxu0  ;;  %v1601_v45 = vsel %vm1537_vm2, %v1505_v15, %v1569_v25 }
 0x15e   :  { %v1604_v18 = vsel %vm1540_vm3, %v1508_v48, %v1572_v27  ;;  %v1297_v40 = vadd.f32 %v2347_v49, %v2949_v38  ;;  %v2272_v23 = vpop.f32.mrb[53].mxu1  ;;  %v1288_v41 = vpop.f32.mrb[53].mxu0 }
 0x15f   :  { %v2002_v44 = vpack.c.bf16 %v1604_v18, %v1603_v36  ;;  %v1602_v46 = vsel %vm1538_vm4, %v1506_v26, %v1570_v31  ;;  %v2273_v50 = vadd.f32 %v2272_v23, %v2271_v1  ;;  %v1289_v51 = vadd.f32 %v1288_v41, %v2945_v20  ;;  %v2274_v53 = vpop.f32.mrb[54].mxu1  ;;  %v2348_v19 = vpop.f32.mrb[54].mxu0 }
 0x160   :  { %v1997_v55 = vpack.c.bf16 %v1602_v46, %v1601_v45  ;;  %v1511_v60 = vadd.f32 %v2988_v59, %v1297_v40  ;;  %v1300_v61 = vadd.f32 %v2348_v19, %v2951_v39  ;;  %v2275_v0 = vpop.f32.mrb[55].mxu1  ;;  %v1291_v5 = vpop.f32.mrb[55].mxu0 }
 0x161   :  { %2074 = vst [vmem:[%s3126_s3 + $0x8] sm:$0xff] %v2002_v44   ;;  %v1509_v38 = vadd.f32 %v2988_v59, %v1289_v51  ;;  %v2276_v63 = vadd.f32 %v2275_v0, %v2274_v53  ;;  %v1292_v7 = vadd.f32 %v1291_v5, %v2947_v21  ;;  %v3014_v20 = vadd.f32 %v2273_v50, %v2961_v58 }
 0x162   :  { %1998 = vst [vmem:[%s3126_s3] sm:$0xff] %v1997_v55   ;;  %vm1543_vm5 = vcmp.ge.f32.partialorder %v1511_v60, 0.0  ;;  %v1575_v39 = vmul.f32 0.01, %v1511_v60  ;;  %v1512_v8 = vadd.f32 %v2988_v59, %v1300_v61 }
 0x163   :  { %vm1541_vm6 = vcmp.ge.f32.partialorder %v1509_v38, 0.0  ;;  %v1573_v29 = vmul.f32 0.01, %v1509_v38  ;;  %v1510_v37 = vadd.f32 %v2988_v59, %v1292_v7  ;;  %v3022_v47 = vadd.f32 %v2276_v63, %v2963_v9 }
 0x164   :  { %vm1544_vm7 = vcmp.ge.f32.partialorder %v1512_v8, 0.0  ;;  %v1576_v21 = vmul.f32 0.01, %v1512_v8  ;;  %v1607_v17 = vsel %vm1543_vm5, %v1511_v60, %v1575_v39 }
 0x165   :  { %vm1542_vm8 = vcmp.ge.f32.partialorder %v1510_v37, 0.0  ;;  %v1574_v58 = vmul.f32 0.01, %v1510_v37  ;;  %v2277_v14 = vpop.f32.mrb[56].mxu1  ;;  %v2351_v15 = vpop.f32.mrb[56].mxu0  ;;  %v1605_v6 = vsel %vm1541_vm6, %v1509_v38, %v1573_v29 }
 0x166   :  { %v1608_v24 = vsel %vm1544_vm7, %v1512_v8, %v1576_v21  ;;  %v1313_v48 = vadd.f32 %v2351_v15, %v2965_v13  ;;  %v2278_v25 = vpop.f32.mrb[57].mxu1  ;;  %v1304_v26 = vpop.f32.mrb[57].mxu0 }
 0x167   :  { %v2012_v27 = vpack.c.bf16 %v1608_v24, %v1607_v17  ;;  %v1606_v31 = vsel %vm1542_vm8, %v1510_v37, %v1574_v58  ;;  %v2279_v1 = vadd.f32 %v2278_v25, %v2277_v14  ;;  %v1305_v49 = vadd.f32 %v1304_v26, %v2957_v54  ;;  %v2280_v9 = vpop.f32.mrb[58].mxu1  ;;  %v2352_v36 = vpop.f32.mrb[58].mxu0 }
 0x168   :  { %v2007_v45 = vpack.c.bf16 %v1606_v31, %v1605_v6  ;;  %v1515_v18 = vadd.f32 %v2988_v59, %v1313_v48  ;;  %v1316_v40 = vadd.f32 %v2352_v36, %v2967_v42  ;;  %v2281_v23 = vpop.f32.mrb[59].mxu1  ;;  %v1307_v41 = vpop.f32.mrb[59].mxu0 }
 0x169   :  { %2076 = vst [vmem:[%s3126_s3 + $0x18] sm:$0xff] %v2012_v27   ;;  %v1513_v13 = vadd.f32 %v2988_v59, %v1305_v49  ;;  %v2282_v44 = vadd.f32 %v2281_v23, %v2280_v9  ;;  %v1308_v46 = vadd.f32 %v1307_v41, %v2959_v30  ;;  %v3034_v54 = vadd.f32 %v2279_v1, %v2969_v11 }
 0x16a   :  { %2075 = vst [vmem:[%s3126_s3 + $0x10] sm:$0xff] %v2007_v45   ;;  %vm1547_vm9 = vcmp.ge.f32.partialorder %v1515_v18, 0.0  ;;  %v1579_v42 = vmul.f32 0.01, %v1515_v18  ;;  %v1516_v50 = vadd.f32 %v2988_v59, %v1316_v40 }
 0x16b   :  { %vm1545_vm10 = vcmp.ge.f32.partialorder %v1513_v13, 0.0  ;;  %v1577_v51 = vmul.f32 0.01, %v1513_v13  ;;  %v1514_v53 = vadd.f32 %v2988_v59, %v1308_v46  ;;  %v3042_v19 = vadd.f32 %v2282_v44, %v2971_v32 }
 0x16c   :  { %vm1548_vm11 = vcmp.ge.f32.partialorder %v1516_v50, 0.0  ;;  %v1580_v30 = vmul.f32 0.01, %v1516_v50  ;;  %v1611_v61 = vsel %vm1547_vm9, %v1515_v18, %v1579_v42 }
 0x16d   :  { %vm1546_vm12 = vcmp.ge.f32.partialorder %v1514_v53, 0.0  ;;  %v1578_v11 = vmul.f32 0.01, %v1514_v53  ;;  %v2283_v55 = vpop.f32.mrb[60].mxu1  ;;  %v2355_v60 = vpop.f32.mrb[60].mxu0  ;;  %v1609_v0 = vsel %vm1545_vm10, %v1513_v13, %v1577_v51 }
 0x16e   :  { %v1612_v5 = vsel %vm1548_vm11, %v1516_v50, %v1580_v30  ;;  %v1329_v38 = vadd.f32 %v2355_v60, %v2981_v35  ;;  %v2284_v63 = vpop.f32.mrb[61].mxu1  ;;  %v1320_v7 = vpop.f32.mrb[61].mxu0 }
 0x16f   :  { %v2022_v39 = vpack.c.bf16 %v1612_v5, %v1611_v61  ;;  %v1610_v8 = vsel %vm1546_vm12, %v1514_v53, %v1578_v11  ;;  %v2285_v29 = vadd.f32 %v2284_v63, %v2283_v55  ;;  %v1321_v37 = vadd.f32 %v1320_v7, %v2973_v33  ;;  %v2286_v32 = vpop.f32.mrb[62].mxu1  ;;  %v2356_v21 = vpop.f32.mrb[62].mxu0 }
 0x170   :  { %v2017_v58 = vpack.c.bf16 %v1610_v8, %v1609_v0  ;;  %v1519_v14 = vadd.f32 %v2988_v59, %v1329_v38  ;;  %v1332_v15 = vadd.f32 %v2356_v21, %v2983_v12  ;;  %v2287_v17 = vpop.f32.mrb[63].mxu1  ;;  %v1323_v6 = vpop.f32.mrb[63].mxu0 }
 0x171   :  { %2078 = vst [vmem:[%s3126_s3 + $0x28] sm:$0xff] %v2022_v39   ;;  %v1517_v35 = vadd.f32 %v2988_v59, %v1321_v37  ;;  %v2288_v24 = vadd.f32 %v2287_v17, %v2286_v32  ;;  %v1324_v48 = vadd.f32 %v1323_v6, %v2975_v57  ;;  %v1200_v33 = vadd.f32 %v2285_v29, %v2977_v43 }
 0x172   :  { %2077 = vst [vmem:[%s3126_s3 + $0x20] sm:$0xff] %v2017_v58   ;;  %vm1551_vm13 = vcmp.ge.f32.partialorder %v1519_v14, 0.0  ;;  %v1583_v25 = vmul.f32 0.01, %v1519_v14  ;;  %v1520_v12 = vadd.f32 %v2988_v59, %v1332_v15 }
 0x173   :  { %vm1549_vm14 = vcmp.ge.f32.partialorder %v1517_v35, 0.0  ;;  %v1581_v26 = vmul.f32 0.01, %v1517_v35  ;;  %v1518_v27 = vadd.f32 %v2988_v59, %v1324_v48  ;;  %v1203_v31 = vadd.f32 %v2288_v24, %v2979_v52 }
 0x174   :  { %vm1552_vm15 = vcmp.ge.f32.partialorder %v1520_v12, 0.0  ;;  %v1584_v1 = vmul.f32 0.01, %v1520_v12  ;;  %v1615_v9 = vsel %vm1551_vm13, %v1519_v14, %v1583_v25 }
 0x175   :  { %vm1550_vm0 = vcmp.ge.f32.partialorder %v1518_v27, 0.0  ;;  %v1582_v57 = vmul.f32 0.01, %v1518_v27  ;;  %v2289_v49 = vpop.f32.mrb[64].mxu1  ;;  %v2359_v43 = vpop.f32.mrb[64].mxu0  ;;  %v1613_v36 = vsel %vm1549_vm14, %v1517_v35, %v1581_v26 }
 0x176   :  { %v1616_v45 = vsel %vm1552_vm15, %v1520_v12, %v1584_v1  ;;  %v1345_v18 = vadd.f32 %v2359_v43, %v3014_v20  ;;  %v2290_v40 = vpop.f32.mrb[65].mxu1  ;;  %v1336_v23 = vpop.f32.mrb[65].mxu0 }
 0x177   :  { %v2032_v41 = vpack.c.bf16 %v1616_v45, %v1615_v9  ;;  %v1614_v13 = vsel %vm1550_vm0, %v1518_v27, %v1582_v57  ;;  %v2291_v44 = vadd.f32 %v2290_v40, %v2289_v49  ;;  %v1337_v46 = vadd.f32 %v1336_v23, %v2997_v2  ;;  %v2292_v42 = vpop.f32.mrb[66].mxu1  ;;  %v2360_v52 = vpop.f32.mrb[66].mxu0 }
 0x178   :  { %v2027_v50 = vpack.c.bf16 %v1614_v13, %v1613_v36  ;;  %v1523_v51 = vadd.f32 %v2988_v59, %v1345_v18  ;;  %v1348_v53 = vadd.f32 %v2360_v52, %v3022_v47  ;;  %v2293_v30 = vpop.f32.mrb[67].mxu1  ;;  %v1339_v11 = vpop.f32.mrb[67].mxu0 }
 0x179   :  { %2080 = vst [vmem:[%s3126_s3 + $0x38] sm:$0xff] %v2032_v41   ;;  %v1521_v20 = vadd.f32 %v2988_v59, %v1337_v46  ;;  %v2294_v55 = vadd.f32 %v2293_v30, %v2292_v42  ;;  %v1340_v60 = vadd.f32 %v1339_v11, %v3002_v3  ;;  %v1208_v2 = vadd.f32 %v2291_v44, %v2921_v56 }
 0x17a   :  { %2079 = vst [vmem:[%s3126_s3 + $0x30] sm:$0xff] %v2027_v50   ;;  %vm1555_vm1 = vcmp.ge.f32.partialorder %v1523_v51, 0.0  ;;  %v1587_v61 = vmul.f32 0.01, %v1523_v51  ;;  %v1524_v47 = vadd.f32 %v2988_v59, %v1348_v53 }
 0x17b   :  { %vm1553_vm2 = vcmp.ge.f32.partialorder %v1521_v20, 0.0  ;;  %v1585_v0 = vmul.f32 0.01, %v1521_v20  ;;  %v1522_v5 = vadd.f32 %v2988_v59, %v1340_v60  ;;  %v3076_v38 = vadd.f32 %v2294_v55, %v2923_v62 }
 0x17c   :  { %vm1556_vm3 = vcmp.ge.f32.partialorder %v1524_v47, 0.0  ;;  %v1588_v63 = vmul.f32 0.01, %v1524_v47  ;;  %v1619_v39 = vsel %vm1555_vm1, %v1523_v51, %v1587_v61 }
 0x17d   :  { %vm1554_vm4 = vcmp.ge.f32.partialorder %v1522_v5, 0.0  ;;  %v1586_v3 = vmul.f32 0.01, %v1522_v5  ;;  %v2295_v56 = vpop.f32.mrb[68].mxu1  ;;  %v2363_v7 = vpop.f32.mrb[68].mxu0  ;;  %v1617_v8 = vsel %vm1553_vm2, %v1521_v20, %v1585_v0 }
 0x17e   :  { %v1620_v29 = vsel %vm1556_vm3, %v1524_v47, %v1588_v63  ;;  %v1361_v37 = vadd.f32 %v2363_v7, %v1200_v33  ;;  %v2296_v32 = vpop.f32.mrb[69].mxu1  ;;  %v1352_v21 = vpop.f32.mrb[69].mxu0 }
 0x17f   :  { %v2042_v58 = vpack.c.bf16 %v1620_v29, %v1619_v39  ;;  %v1618_v14 = vsel %vm1554_vm4, %v1522_v5, %v1586_v3  ;;  %v2297_v15 = vadd.f32 %v2296_v32, %v2295_v56  ;;  %v1353_v17 = vadd.f32 %v1352_v21, %v3034_v54  ;;  %v2298_v6 = vpop.f32.mrb[70].mxu1  ;;  %v2364_v62 = vpop.f32.mrb[70].mxu0 }
 0x180   :  { %v2037_v35 = vpack.c.bf16 %v1618_v14, %v1617_v8  ;;  %v1527_v24 = vadd.f32 %v2988_v59, %v1361_v37  ;;  %v1364_v48 = vadd.f32 %v2364_v62, %v1203_v31  ;;  %v2299_v25 = vpop.f32.mrb[71].mxu1  ;;  %v1355_v12 = vpop.f32.mrb[71].mxu0 }
 0x181   :  { %2082 = vst [vmem:[%s3126_s3 + $0x48] sm:$0xff] %v2042_v58   ;;  %v1525_v33 = vadd.f32 %v2988_v59, %v1353_v17  ;;  %v2300_v26 = vadd.f32 %v2299_v25, %v2298_v6  ;;  %v1356_v27 = vadd.f32 %v1355_v12, %v3042_v19  ;;  %v1216_v1 = vadd.f32 %v2297_v15, %v2925_v4 }
 0x182   :  { %2081 = vst [vmem:[%s3126_s3 + $0x40] sm:$0xff] %v2037_v35   ;;  %vm1559_vm5 = vcmp.ge.f32.partialorder %v1527_v24, 0.0  ;;  %v1591_v54 = vmul.f32 0.01, %v1527_v24  ;;  %v1528_v31 = vadd.f32 %v2988_v59, %v1364_v48 }
 0x183   :  { %vm1557_vm6 = vcmp.ge.f32.partialorder %v1525_v33, 0.0  ;;  %v1589_v57 = vmul.f32 0.01, %v1525_v33  ;;  %v1526_v49 = vadd.f32 %v2988_v59, %v1356_v27  ;;  %v1219_v43 = vadd.f32 %v2300_v26, %v2927_v10 }
 0x184   :  { %vm1560_vm7 = vcmp.ge.f32.partialorder %v1528_v31, 0.0  ;;  %v1592_v9 = vmul.f32 0.01, %v1528_v31  ;;  %v1623_v45 = vsel %vm1559_vm5, %v1527_v24, %v1591_v54 }
 0x185   :  { %vm1558_vm8 = vcmp.ge.f32.partialorder %v1526_v49, 0.0  ;;  %v1590_v19 = vmul.f32 0.01, %v1526_v49  ;;  %v2301_v36 = vpop.f32.mrb[72].mxu1  ;;  %v2367_v4 = vpop.f32.mrb[72].mxu0  ;;  %v1621_v18 = vsel %vm1557_vm6, %v1525_v33, %v1589_v57 }
 0x186   :  { %v1624_v40 = vsel %vm1560_vm7, %v1528_v31, %v1592_v9  ;;  %v1377_v23 = vadd.f32 %v2367_v4, %v1216_v1  ;;  %v2302_v41 = vpop.f32.mrb[73].mxu1  ;;  %v1368_v13 = vpop.f32.mrb[73].mxu0 }
 0x187   :  { %v2052_v44 = vpack.c.bf16 %v1624_v40, %v1623_v45  ;;  %v1622_v46 = vsel %vm1558_vm8, %v1526_v49, %v1590_v19  ;;  %v2303_v42 = vadd.f32 %v2302_v41, %v2301_v36  ;;  %v1369_v52 = vadd.f32 %v1368_v13, %v1208_v2  ;;  %v2304_v50 = vpop.f32.mrb[74].mxu1  ;;  %v2368_v51 = vpop.f32.mrb[74].mxu0 }
 0x188   :  { %v2047_v53 = vpack.c.bf16 %v1622_v46, %v1621_v18  ;;  %v1531_v10 = vadd.f32 %v2988_v59, %v1377_v23  ;;  %v1380_v30 = vadd.f32 %v2368_v51, %v1219_v43  ;;  %v2305_v11 = vpop.f32.mrb[75].mxu1  ;;  %v1371_v20 = vpop.f32.mrb[75].mxu0 }
 0x189   :  { %2084 = vst [vmem:[%s3126_s3 + $0x58] sm:$0xff] %v2052_v44   ;;  %v1529_v55 = vadd.f32 %v2988_v59, %v1369_v52  ;;  %v2306_v60 = vadd.f32 %v2305_v11, %v2304_v50  ;;  %v1372_v61 = vadd.f32 %v1371_v20, %v3076_v38  ;;  %v1224_v47 = vadd.f32 %v2303_v42, %v2929_v16 }
 0x18a   :  { %2083 = vst [vmem:[%s3126_s3 + $0x50] sm:$0xff] %v2047_v53   ;;  %vm1563_vm9 = vcmp.ge.f32.partialorder %v1531_v10, 0.0  ;;  %v1595_v2 = vmul.f32 0.01, %v1531_v10  ;;  %v1532_v0 = vadd.f32 %v2988_v59, %v1380_v30 }
 0x18b   :  { %vm1561_vm10 = vcmp.ge.f32.partialorder %v1529_v55, 0.0  ;;  %v1593_v5 = vmul.f32 0.01, %v1529_v55  ;;  %v1530_v63 = vadd.f32 %v2988_v59, %v1372_v61  ;;  %v1227_v3 = vadd.f32 %v2306_v60, %v2931_v22 }
 0x18c   :  { %vm1564_vm11 = vcmp.ge.f32.partialorder %v1532_v0, 0.0  ;;  %v1596_v56 = vmul.f32 0.01, %v1532_v0  ;;  %v1627_v39 = vsel %vm1563_vm9, %v1531_v10, %v1595_v2 }
 0x18d   :  { %vm1562_vm12 = vcmp.ge.f32.partialorder %v1530_v63, 0.0  ;;  %v1594_v38 = vmul.f32 0.01, %v1530_v63  ;;  %v2307_v7 = vpop.f32.mrb[76].mxu1  ;;  %v2371_v16 = vpop.f32.mrb[76].mxu0  ;;  %v1625_v8 = vsel %vm1561_vm10, %v1529_v55, %v1593_v5 }
 0x18e   :  { %v1628_v29 = vsel %vm1564_vm11, %v1532_v0, %v1596_v56  ;;  %v2308_v37 = vpop.f32.mrb[77].mxu1  ;;  %v1384_v32 = vpop.f32.mrb[77].mxu0 }
 0x18f   :  { %v2062_v21 = vpack.c.bf16 %v1628_v29, %v1627_v39  ;;  %v1626_v58 = vsel %vm1562_vm12, %v1530_v63, %v1594_v38  ;;  %v2309_v14 = vadd.f32 %v2308_v37, %v2307_v7  ;;  %v1385_v15 = vadd.f32 %v1384_v32, %v1224_v47  ;;  %v2310_v17 = vpop.f32.mrb[78].mxu1  ;;  %v2372_v6 = vpop.f32.mrb[78].mxu0 }
 0x190   :  { %v2057_v62 = vpack.c.bf16 %v1626_v58, %v1625_v8  ;;  %v2311_v35 = vpop.f32.mrb[79].mxu1  ;;  %v1387_v22 = vpop.f32.mrb[79].mxu0 }
 0x191   :  { %2086 = vst [vmem:[%s3126_s3 + $0x68] sm:$0xff] %v2062_v21   ;;  %v1232_v24 = vadd.f32 %v2309_v14, %v2933_v28  ;;  %v1533_v48 = vadd.f32 %v2988_v59, %v1385_v15  ;;  %v2312_v25 = vadd.f32 %v2311_v35, %v2310_v17  ;;  %v1388_v12 = vadd.f32 %v1387_v22, %v1227_v3 }
 0x192   :  { %2085 = vst [vmem:[%s3126_s3 + $0x60] sm:$0xff] %v2057_v62  }
 0x193   :  { %v1393_v33 = vadd.f32 %v2371_v16, %v1232_v24  ;;  %v1235_v26 = vadd.f32 %v2312_v25, %v2935_v34  ;;  %v1597_v27 = vmul.f32 0.01, %v1533_v48  ;;  %v1534_v1 = vadd.f32 %v2988_v59, %v1388_v12 }
 0x194   :  { %vm1565_vm13 = vcmp.ge.f32.partialorder %v1533_v48, 0.0 }
 0x195   :  { %v1535_v54 = vadd.f32 %v2988_v59, %v1393_v33  ;;  %v1396_v31 = vadd.f32 %v2372_v6, %v1235_v26  ;;  %vm1566_vm14 = vcmp.ge.f32.partialorder %v1534_v1, 0.0  ;;  %v1598_v28 = vmul.f32 0.01, %v1534_v1 }
 0x196   :  { %v1629_v43 = vsel %vm1565_vm13, %v1533_v48, %v1597_v27 }
 0x197   :  { %v1599_v57 = vmul.f32 0.01, %v1535_v54  ;;  %v1536_v49 = vadd.f32 %v2988_v59, %v1396_v31  ;;  %vm1567_vm15 = vcmp.ge.f32.partialorder %v1535_v54, 0.0  ;;  %v1630_v9 = vsel %vm1566_vm14, %v1534_v1, %v1598_v28 }
 0x198   :  { %v2067_v36 = vpack.c.bf16 %v1630_v9, %v1629_v43 }
 0x199   :  { %vm1568_vm0 = vcmp.ge.f32.partialorder %v1536_v49, 0.0  ;;  %v1600_v19 = vmul.f32 0.01, %v1536_v49  ;;  %v1631_v4 = vsel %vm1567_vm15, %v1535_v54, %v1599_v57 }
 0x19a   :  { %2087 = vst [vmem:[%s3126_s3 + $0x70] sm:$0xff] %v2067_v36  }
 0x19b   :  { %v1632_v34 = vsel %vm1568_vm0, %v1536_v49, %v1600_v19 }
 0x19c   :  { %v2072_v45 = vpack.c.bf16 %v1632_v34, %v1631_v4 }
 0x19e   :  { %2088 = vst [vmem:[%s3126_s3 + $0x78] sm:$0xff] %v2072_v45  }

// kernel: patch_autoencoder.9
= control target key start
LH: loop header
LB: loop body
LE: loop exit
PB: predicated region body
PF: predicated region fallthrough
CT: control target
= control target key end

     0   :  { %s2092_s1 = inlined_call_operand.vmem [shape: bf16[1152,128], index: 1, kind: input, shape index: {}]   ;;  %s2093_s0 = inlined_call_operand.vmem [shape: bf16[64,1152], index: 0, kind: input, shape index: {}]   ;;  %s2094_s2 = inlined_call_operand.vmem [shape: f32[1,128], index: 2, kind: input, shape index: {}]   ;;  %s2095_s3 = inlined_call_operand.vmem [shape: bf16[64,128], index: 3, kind: output, shape index: {}]  }
   0x1   :  { %v1606_v0 = vld [vmem:[%s2092_s1 + $0x40] sm:$0xff]   ;;  %v1610_v4 = vld [vmem:[%s2092_s1 + $0x48] sm:$0xff]   ;;  %v1614_v8 = vld [vmem:[%s2092_s1 + $0x50] sm:$0xff]  }
   0x2   :  { %v1607_v1 = vld [vmem:[%s2092_s1 + $0xc0] sm:$0xff]   ;;  %1394 = vmatprep.subr.bf16.mxu0 %v1606_v0  ;;  %v1611_v5 = vld [vmem:[%s2092_s1 + $0xc8] sm:$0xff]   ;;  %v1615_v9 = vld [vmem:[%s2092_s1 + $0xd0] sm:$0xff]  }
   0x3   :  { %v1608_v2 = vld [vmem:[%s2092_s1] sm:$0xff]   ;;  %1434 = vmatprep.subr.bf16.mxu1 %v1607_v1  ;;  %v1612_v6 = vld [vmem:[%s2092_s1 + $0x8] sm:$0xff]   ;;  %v1616_v10 = vld [vmem:[%s2092_s1 + $0x10] sm:$0xff]  }
   0x4   :  { %v1609_v3 = vld [vmem:[%s2092_s1 + $0x80] sm:$0xff]   ;;  %1395 = vmatpush3.bf16.msra.mxu0 %v1608_v2  ;;  %v1613_v7 = vld [vmem:[%s2092_s1 + $0x88] sm:$0xff]   ;;  %v1617_v11 = vld [vmem:[%s2092_s1 + $0x90] sm:$0xff]  }
   0x5   :  { %1435 = vmatpush3.bf16.msra.mxu1 %v1609_v3  ;;  %1396 = vmatprep.subr.bf16.mxu0 %v1610_v4  ;;  %v1618_v12 = vld [vmem:[%s2092_s1 + $0x58] sm:$0xff]   ;;  %v1622_v16 = vld [vmem:[%s2092_s1 + $0x60] sm:$0xff]   ;;  %v1626_v20 = vld [vmem:[%s2092_s1 + $0x68] sm:$0xff]  }
   0x6   :  { %1436 = vmatprep.subr.bf16.mxu1 %v1611_v5  ;;  %v1619_v13 = vld [vmem:[%s2092_s1 + $0xd8] sm:$0xff]   ;;  %v1623_v17 = vld [vmem:[%s2092_s1 + $0xe0] sm:$0xff]   ;;  %v1627_v21 = vld [vmem:[%s2092_s1 + $0xe8] sm:$0xff]  }
   0x7   :  { %v1620_v14 = vld [vmem:[%s2092_s1 + $0x18] sm:$0xff]   ;;  %v1624_v18 = vld [vmem:[%s2092_s1 + $0x20] sm:$0xff]   ;;  %v1628_v22 = vld [vmem:[%s2092_s1 + $0x28] sm:$0xff]  }
   0x8   :  { %1397 = vmatpush3.bf16.msra.mxu0 %v1612_v6  ;;  %v1621_v15 = vld [vmem:[%s2092_s1 + $0x98] sm:$0xff]   ;;  %v1625_v19 = vld [vmem:[%s2092_s1 + $0xa0] sm:$0xff]   ;;  %v1629_v23 = vld [vmem:[%s2092_s1 + $0xa8] sm:$0xff]  }
   0x9   :  { %1437 = vmatpush3.bf16.msra.mxu1 %v1613_v7  ;;  %1398 = vmatprep.subr.bf16.mxu0 %v1614_v8  ;;  %v1630_v24 = vld [vmem:[%s2092_s1 + $0x70] sm:$0xff]   ;;  %v1634_v28 = vld [vmem:[%s2092_s1 + $0x78] sm:$0xff]   ;;  %v1638_v32 = vld [vmem:[%s2093_s0] ss:$36 sps:$4 sm:$0xff]  }
   0xa   :  { %1438 = vmatprep.subr.bf16.mxu1 %v1615_v9  ;;  %v1631_v25 = vld [vmem:[%s2092_s1 + $0xf0] sm:$0xff]   ;;  %v1635_v29 = vld [vmem:[%s2092_s1 + $0xf8] sm:$0xff]   ;;  %v1640_v33 = vld [vmem:[%s2093_s0 + $0x4] ss:$36 sps:$4 sm:$0xff]  }
   0xb   :  { %v1632_v26 = vld [vmem:[%s2092_s1 + $0x30] sm:$0xff]   ;;  %v1636_v30 = vld [vmem:[%s2092_s1 + $0x38] sm:$0xff]   ;;  %v1641_v34 = vld [vmem:[%s2093_s0 + $0x8] ss:$36 sps:$4 sm:$0xff]   ;;  %867 = vmatprep.mubr.bf16.mxu0 %v1640_v33 }
   0xc   :  { %1399 = vmatpush3.bf16.msra.mxu0 %v1616_v10  ;;  %v1633_v27 = vld [vmem:[%s2092_s1 + $0xb0] sm:$0xff]   ;;  %v1637_v31 = vld [vmem:[%s2092_s1 + $0xb8] sm:$0xff]   ;;  %v1644_v36 = vld [vmem:[%s2092_s1 + $0x140] sm:$0xff]  }
   0xd   :  { %1439 = vmatpush3.bf16.msra.mxu1 %v1617_v11  ;;  %1400 = vmatprep.subr.bf16.mxu0 %v1618_v12  ;;  %v1643_v35 = vld [vmem:[%s2093_s0 + $0xc] ss:$36 sps:$4 sm:$0xff]   ;;  %v1645_v37 = vld [vmem:[%s2092_s1 + $0x1c0] sm:$0xff]   ;;  %v1654_v45 = vld [vmem:[%s2093_s0 + $0x54] ss:$36 sps:$4 sm:$0xff]  }
   0xe   :  { %1440 = vmatprep.subr.bf16.mxu1 %v1619_v13  ;;  %932 = vmatprep.mubr.bf16.mxu1 %v1643_v35  ;;  %v1646_v38 = vld [vmem:[%s2092_s1 + $0x100] sm:$0xff]   ;;  %v1648_v40 = vld [vmem:[%s2092_s1 + $0x148] sm:$0xff]   ;;  %v1657_v47 = vld [vmem:[%s2093_s0 + $0x50] ss:$36 sps:$4 sm:$0xff]  }
   0xf   :  { %v1647_v39 = vld [vmem:[%s2092_s1 + $0x180] sm:$0xff]   ;;  %v1649_v41 = vld [vmem:[%s2092_s1 + $0x1c8] sm:$0xff]   ;;  %v1658_v48 = vld [vmem:[%s2092_s1 + $0x150] sm:$0xff]  }
  0x10   :  { %1401 = vmatpush3.bf16.msra.mxu0 %v1620_v14  ;;  %v1650_v42 = vld [vmem:[%s2092_s1 + $0x108] sm:$0xff]   ;;  %v1659_v49 = vld [vmem:[%s2092_s1 + $0x1d0] sm:$0xff]   ;;  %v1662_v52 = vld [vmem:[%s2092_s1 + $0x158] sm:$0xff]  }
  0x11   :  { %1441 = vmatpush3.bf16.msra.mxu1 %v1621_v15  ;;  %1402 = vmatprep.subr.bf16.mxu0 %v1622_v16  ;;  %v1651_v43 = vld [vmem:[%s2092_s1 + $0x188] sm:$0xff]   ;;  %v1660_v50 = vld [vmem:[%s2092_s1 + $0x110] sm:$0xff]   ;;  %v1663_v53 = vld [vmem:[%s2092_s1 + $0x1d8] sm:$0xff]  }
  0x12   :  { %1442 = vmatprep.subr.bf16.mxu1 %v1623_v17  ;;  %v1652_v44 = vld [vmem:[%s2093_s0 + $0x4c] ss:$36 sps:$4 sm:$0xff]   ;;  %v1664_v54 = vld [vmem:[%s2092_s1 + $0x118] sm:$0xff]   ;;  %v1672_v60 = vld [vmem:[%s2092_s1 + $0x160] sm:$0xff]  }
  0x13   :  { %v1656_v46 = vld [vmem:[%s2093_s0 + $0x48] ss:$36 sps:$4 sm:$0xff]   ;;  %v1661_v51 = vld [vmem:[%s2092_s1 + $0x190] sm:$0xff]   ;;  %v1665_v55 = vld [vmem:[%s2092_s1 + $0x198] sm:$0xff]  }
  0x14   :  { %1403 = vmatpush3.bf16.msra.mxu0 %v1624_v18  ;;  %v1666_v56 = vld [vmem:[%s2093_s0 + $0x94] ss:$36 sps:$4 sm:$0xff]   ;;  %v1668_v57 = vld [vmem:[%s2093_s0 + $0x9c] ss:$36 sps:$4 sm:$0xff]   ;;  %v1676_v0 = vld [vmem:[%s2092_s1 + $0x168] sm:$0xff]  }
  0x15   :  { %1443 = vmatpush3.bf16.msra.mxu1 %v1625_v19  ;;  %1404 = vmatprep.subr.bf16.mxu0 %v1626_v20  ;;  %v1670_v58 = vld [vmem:[%s2093_s0 + $0x90] ss:$36 sps:$4 sm:$0xff]   ;;  %v1671_v59 = vld [vmem:[%s2093_s0 + $0x98] ss:$36 sps:$4 sm:$0xff]   ;;  %v1673_v61 = vld [vmem:[%s2092_s1 + $0x1e0] sm:$0xff]  }
  0x16   :  { %1444 = vmatprep.subr.bf16.mxu1 %v1627_v21  ;;  %v1674_v62 = vld [vmem:[%s2092_s1 + $0x120] sm:$0xff]   ;;  %v1677_v1 = vld [vmem:[%s2092_s1 + $0x1e8] sm:$0xff]   ;;  %v1684_v6 = vld [vmem:[%s2093_s0 + $0xd8] ss:$36 sps:$4 sm:$0xff]  }
  0x17   :  { %v1675_v63 = vld [vmem:[%s2092_s1 + $0x1a0] sm:$0xff]   ;;  %v1678_v2 = vld [vmem:[%s2092_s1 + $0x128] sm:$0xff]   ;;  %v1686_v8 = vld [vmem:[%s2092_s1 + $0x170] sm:$0xff]  }
  0x18   :  { %1405 = vmatpush3.bf16.msra.mxu0 %v1628_v22  ;;  %v1679_v3 = vld [vmem:[%s2092_s1 + $0x1a8] sm:$0xff]   ;;  %v1680_v4 = vld [vmem:[%s2093_s0 + $0xdc] ss:$36 sps:$4 sm:$0xff]   ;;  %v1687_v9 = vld [vmem:[%s2092_s1 + $0x1f0] sm:$0xff]  }
  0x19   :  { %1445 = vmatpush3.bf16.msra.mxu1 %v1629_v23  ;;  %1406 = vmatprep.subr.bf16.mxu0 %v1630_v24  ;;  %v1682_v5 = vld [vmem:[%s2093_s0 + $0xe4] ss:$36 sps:$4 sm:$0xff]   ;;  %v1688_v10 = vld [vmem:[%s2092_s1 + $0x130] sm:$0xff]   ;;  %v1690_v12 = vld [vmem:[%s2092_s1 + $0x178] sm:$0xff]  }
  0x1a   :  { %1446 = vmatprep.subr.bf16.mxu1 %v1631_v25  ;;  %v1685_v7 = vld [vmem:[%s2093_s0 + $0xe0] ss:$36 sps:$4 sm:$0xff]   ;;  %v1689_v11 = vld [vmem:[%s2092_s1 + $0x1b0] sm:$0xff]   ;;  %v1691_v13 = vld [vmem:[%s2092_s1 + $0x1f8] sm:$0xff]  }
  0x1b   :  { %v1692_v14 = vld [vmem:[%s2092_s1 + $0x138] sm:$0xff]   ;;  %v1694_v16 = vld [vmem:[%s2093_s0 + $0x10] ss:$36 sps:$4 sm:$0xff]   ;;  %v1700_v20 = vld [vmem:[%s2092_s1 + $0x200] sm:$0xff]  }
  0x1c   :  { %1407 = vmatpush3.bf16.msra.mxu0 %v1632_v26  ;;  %v1693_v15 = vld [vmem:[%s2092_s1 + $0x1b8] sm:$0xff]   ;;  %v1701_v21 = vld [vmem:[%s2092_s1 + $0x208] sm:$0xff]   ;;  %v1707_v25 = vld [vmem:[%s2093_s0 + $0x60] ss:$36 sps:$4 sm:$0xff]  }
  0x1d   :  { %1447 = vmatpush3.bf16.msra.mxu1 %v1633_v27  ;;  %1408 = vmatprep.subr.bf16.mxu0 %v1634_v28  ;;  %v1696_v17 = vld [vmem:[%s2093_s0 + $0x14] ss:$36 sps:$4 sm:$0xff]   ;;  %v1699_v19 = vld [vmem:[%s2093_s0 + $0x1c] ss:$36 sps:$4 sm:$0xff]   ;;  %v1704_v23 = vld [vmem:[%s2093_s0 + $0x64] ss:$36 sps:$4 sm:$0xff]  }
  0x1e   :  { %1448 = vmatprep.subr.bf16.mxu1 %v1635_v29  ;;  %v1697_v18 = vld [vmem:[%s2093_s0 + $0x18] ss:$36 sps:$4 sm:$0xff]   ;;  %v1708_v26 = vld [vmem:[%s2092_s1 + $0x210] sm:$0xff]   ;;  %v1710_v27 = vld [vmem:[%s2093_s0 + $0xa4] ss:$36 sps:$4 sm:$0xff]  }
  0x1f   :  { %v1702_v22 = vld [vmem:[%s2093_s0 + $0x5c] ss:$36 sps:$4 sm:$0xff]   ;;  %v1712_v28 = vld [vmem:[%s2093_s0 + $0xac] ss:$36 sps:$4 sm:$0xff]  }
  0x20   :  { %1409 = vmatpush3.bf16.msra.mxu0 %v1636_v30  ;;  %v1706_v24 = vld [vmem:[%s2093_s0 + $0x58] ss:$36 sps:$4 sm:$0xff]   ;;  %v1714_v30 = vld [vmem:[%s2093_s0 + $0xa0] ss:$36 sps:$4 sm:$0xff]   ;;  %v1718_v33 = vld [vmem:[%s2093_s0 + $0xec] ss:$36 sps:$4 sm:$0xff]  }
  0x21   :  { %1449 = vmatpush3.bf16.msra.mxu1 %v1637_v31  ;;  %1474 = vmatprep.subr.bf16.mxu0 %v1644_v36  ;;  %v1709_v29 = vld [vmem:[%s2092_s1 + $0x218] sm:$0xff]   ;;  %v1715_v31 = vld [vmem:[%s2093_s0 + $0xa8] ss:$36 sps:$4 sm:$0xff]  }
  0x22   :  { %1514 = vmatprep.subr.bf16.mxu1 %v1645_v37  ;;  %v1717_v35 = vld [vmem:[%s2092_s1 + $0x228] sm:$0xff]   ;;  %v1724_v37 = vld [vmem:[%s2092_s1 + $0x230] sm:$0xff]  }
  0x23   :  { %868 = vmatmul.mubr.bf16.vlgmr.msra.gmra.mrb[0].mxu0 %v1638_v32  ;;  %v1716_v32 = vld [vmem:[%s2092_s1 + $0x220] sm:$0xff]   ;;  %v1722_v36 = vld [vmem:[%s2093_s0 + $0xe8] ss:$36 sps:$4 sm:$0xff]  }
  0x24   :  { %933 = vmatmul.mubr.bf16.vlgmr.msra.gmra.mrb[0].mxu1 %v1641_v34  ;;  %1475 = vmatpush3.bf16.msra.mxu0 %v1646_v38  ;;  %v1720_v34 = vld [vmem:[%s2093_s0 + $0xf4] ss:$36 sps:$4 sm:$0xff]  }
  0x25   :  { %1515 = vmatpush3.bf16.msra.mxu1 %v1647_v39  ;;  %1476 = vmatprep.subr.bf16.mxu0 %v1648_v40  ;;  %v1723_v38 = vld [vmem:[%s2093_s0 + $0xf0] ss:$36 sps:$4 sm:$0xff]   ;;  %v1726_v39 = vld [vmem:[%s2093_s0 + $0x20] ss:$36 sps:$4 sm:$0xff]  }
  0x26   :  { %1516 = vmatprep.subr.bf16.mxu1 %v1649_v41  ;;  %875 = vmatprep.mubr.bf16.mxu0 %v1652_v44  ;;  %v1727_v40 = vld [vmem:[%s2093_s0 + $0xb0] ss:$36 sps:$4 sm:$0xff]   ;;  %v1725_v41 = vld [vmem:[%s2092_s1 + $0x238] sm:$0xff]  }
  0x27   :  { %940 = vmatprep.mubr.bf16.mxu1 %v1654_v45 }
  0x28   :  { %1477 = vmatpush3.bf16.msra.mxu0 %v1650_v42  ;;  %v1728_v42 = vld [vmem:[%s2093_s0 + $0x68] ss:$36 sps:$4 sm:$0xff]  }
  0x29   :  { %1517 = vmatpush3.bf16.msra.mxu1 %v1651_v43  ;;  %1478 = vmatprep.subr.bf16.mxu0 %v1658_v48  ;;  %v1729_v43 = vld [vmem:[%s2093_s0 + $0xf8] ss:$36 sps:$4 sm:$0xff]  }
  0x2a   :  { %1518 = vmatprep.subr.bf16.mxu1 %v1659_v49 }
  0x2b   :  { %876 = vmatmul.mubr.bf16.gmra.mrb[4].mxu0 %v1656_v46 }
  0x2c   :  { %941 = vmatmul.mubr.bf16.gmra.mrb[4].mxu1 %v1657_v47  ;;  %1479 = vmatpush3.bf16.msra.mxu0 %v1660_v50 }
  0x2d   :  { %1519 = vmatpush3.bf16.msra.mxu1 %v1661_v51  ;;  %1480 = vmatprep.subr.bf16.mxu0 %v1662_v52 }
  0x2e   :  { %1520 = vmatprep.subr.bf16.mxu1 %v1663_v53  ;;  %883 = vmatprep.mubr.bf16.mxu0 %v1666_v56 }
  0x2f   :  { %948 = vmatprep.mubr.bf16.mxu1 %v1668_v57 }
  0x30   :  { %1481 = vmatpush3.bf16.msra.mxu0 %v1664_v54 }
  0x31   :  { %1521 = vmatpush3.bf16.msra.mxu1 %v1665_v55  ;;  %1482 = vmatprep.subr.bf16.mxu0 %v1672_v60 }
  0x32   :  { %1522 = vmatprep.subr.bf16.mxu1 %v1673_v61 }
  0x33   :  { %884 = vmatmul.mubr.bf16.gmra.mrb[8].mxu0 %v1670_v58 }
  0x34   :  { %949 = vmatmul.mubr.bf16.gmra.mrb[8].mxu1 %v1671_v59  ;;  %1483 = vmatpush3.bf16.msra.mxu0 %v1674_v62 }
  0x35   :  { %1523 = vmatpush3.bf16.msra.mxu1 %v1675_v63  ;;  %1484 = vmatprep.subr.bf16.mxu0 %v1676_v0 }
  0x36   :  { %1524 = vmatprep.subr.bf16.mxu1 %v1677_v1  ;;  %891 = vmatprep.mubr.bf16.mxu0 %v1680_v4 }
  0x37   :  { %956 = vmatprep.mubr.bf16.mxu1 %v1682_v5 }
  0x38   :  { %1485 = vmatpush3.bf16.msra.mxu0 %v1678_v2 }
  0x39   :  { %1525 = vmatpush3.bf16.msra.mxu1 %v1679_v3  ;;  %1486 = vmatprep.subr.bf16.mxu0 %v1686_v8 }
  0x3a   :  { %1526 = vmatprep.subr.bf16.mxu1 %v1687_v9 }
  0x3b   :  { %892 = vmatmul.mubr.bf16.gmra.mrb[12].mxu0 %v1684_v6 }
  0x3c   :  { %957 = vmatmul.mubr.bf16.gmra.mrb[12].mxu1 %v1685_v7  ;;  %1487 = vmatpush3.bf16.msra.mxu0 %v1688_v10 }
  0x3d   :  { %1527 = vmatpush3.bf16.msra.mxu1 %v1689_v11  ;;  %1488 = vmatprep.subr.bf16.mxu0 %v1690_v12 }
  0x3e   :  { %1528 = vmatprep.subr.bf16.mxu1 %v1691_v13  ;;  %997 = vmatprep.mubr.bf16.mxu0 %v1696_v17 }
  0x3f   :  { %1062 = vmatprep.mubr.bf16.mxu1 %v1699_v19 }
  0x40   :  { %1489 = vmatpush3.bf16.msra.mxu0 %v1692_v14 }
  0x41   :  { %1529 = vmatpush3.bf16.msra.mxu1 %v1693_v15  ;;  %1566 = vmatprep.subr.bf16.mxu0 %v1700_v20 }
  0x42   :  { %1590 = vmatprep.subr.bf16.mxu1 %v1700_v20 }
  0x43   :  { %998 = vmatmul.mubr.bf16.vlgmr.msra.gmra.mrb[16].mxu0 %v1694_v16 }
  0x44   :  { %1063 = vmatmul.mubr.bf16.vlgmr.msra.gmra.mrb[16].mxu1 %v1697_v18  ;;  %1567 = vmatpush3.bf16.msra.mxu0 %v1700_v20 }
  0x45   :  { %1598 = vmatpush3.bf16.msra.mxu1 %v1700_v20  ;;  %1568 = vmatprep.subr.bf16.mxu0 %v1701_v21 }
  0x46   :  { %1591 = vmatprep.subr.bf16.mxu1 %v1701_v21  ;;  %1005 = vmatprep.mubr.bf16.mxu0 %v1702_v22 }
  0x47   :  { %1070 = vmatprep.mubr.bf16.mxu1 %v1704_v23 }
  0x48   :  { %1569 = vmatpush3.bf16.msra.mxu0 %v1701_v21 }
  0x49   :  { %1599 = vmatpush3.bf16.msra.mxu1 %v1701_v21  ;;  %1570 = vmatprep.subr.bf16.mxu0 %v1708_v26 }
  0x4a   :  { %1592 = vmatprep.subr.bf16.mxu1 %v1708_v26 }
  0x4b   :  { %1006 = vmatmul.mubr.bf16.gmra.mrb[20].mxu0 %v1706_v24 }
  0x4c   :  { %1071 = vmatmul.mubr.bf16.gmra.mrb[20].mxu1 %v1707_v25  ;;  %1013 = vmatprep.mubr.bf16.mxu0 %v1710_v27 }
  0x4d   :  { %1571 = vmatpush3.bf16.msra.mxu0 %v1708_v26  ;;  %1078 = vmatprep.mubr.bf16.mxu1 %v1712_v28 }
  0x4e   :  { %1600 = vmatpush3.bf16.msra.mxu1 %v1708_v26  ;;  %1572 = vmatprep.subr.bf16.mxu0 %v1709_v29 }
  0x4f   :  { %1593 = vmatprep.subr.bf16.mxu1 %v1709_v29 }
  0x51   :  { %1573 = vmatpush3.bf16.msra.mxu0 %v1709_v29 }
  0x52   :  { %1601 = vmatpush3.bf16.msra.mxu1 %v1709_v29  ;;  %1574 = vmatprep.subr.bf16.mxu0 %v1716_v32 }
  0x53   :  { %1014 = vmatmul.mubr.bf16.gmra.mrb[24].mxu0 %v1714_v30  ;;  %1594 = vmatprep.subr.bf16.mxu1 %v1716_v32 }
  0x54   :  { %1079 = vmatmul.mubr.bf16.gmra.mrb[24].mxu1 %v1715_v31  ;;  %1021 = vmatprep.mubr.bf16.mxu0 %v1718_v33 }
  0x55   :  { %1575 = vmatpush3.bf16.msra.mxu0 %v1716_v32  ;;  %1086 = vmatprep.mubr.bf16.mxu1 %v1720_v34 }
  0x56   :  { %1602 = vmatpush3.bf16.msra.mxu1 %v1716_v32  ;;  %1576 = vmatprep.subr.bf16.mxu0 %v1717_v35 }
  0x57   :  { %1595 = vmatprep.subr.bf16.mxu1 %v1717_v35 }
  0x59   :  { %1577 = vmatpush3.bf16.msra.mxu0 %v1717_v35 }
  0x5a   :  { %1603 = vmatpush3.bf16.msra.mxu1 %v1717_v35  ;;  %1578 = vmatprep.subr.bf16.mxu0 %v1724_v37 }
  0x5b   :  { %1022 = vmatmul.mubr.bf16.gmra.mrb[28].mxu0 %v1722_v36  ;;  %1596 = vmatprep.subr.bf16.mxu1 %v1724_v37 }
  0x5c   :  { %1087 = vmatmul.mubr.bf16.gmra.mrb[28].mxu1 %v1723_v38  ;;  %1582 = vmatprep.mubr.bf16.mxu0 %v1726_v39 }
  0x5d   :  { %1579 = vmatpush3.bf16.msra.mxu0 %v1724_v37  ;;  %1586 = vmatprep.mubr.bf16.mxu1 %v1727_v40 }
  0x5e   :  { %1604 = vmatpush3.bf16.msra.mxu1 %v1724_v37  ;;  %1580 = vmatprep.subr.bf16.mxu0 %v1725_v41 }
  0x5f   :  { %1597 = vmatprep.subr.bf16.mxu1 %v1725_v41 }
  0x61   :  { %1581 = vmatpush3.bf16.msra.mxu0 %v1725_v41 }
  0x62   :  { %1605 = vmatpush3.bf16.msra.mxu1 %v1725_v41 }
  0x64   :  { %1583 = vmatmul.mubr.bf16.vlgmr.msra.gmra.mrb[32].mxu0 %v1728_v42 }
  0x65   :  { %1587 = vmatmul.mubr.bf16.vlgmr.msra.gmra.mrb[32].mxu1 %v1729_v43 }
  0xf6   :  { %v1410_v44 = vpop.f32.mrb[0].mxu0 }
  0xf7   :  { %v1450_v45 = vpop.f32.mrb[0].mxu1  ;;  %v1411_v46 = vpop.f32.mrb[1].mxu0 }
  0xf8   :  { %v1412_v47 = vadd.f32 %v1411_v46, %v1410_v44  ;;  %v1451_v48 = vpop.f32.mrb[1].mxu1  ;;  %v1413_v49 = vpop.f32.mrb[2].mxu0 }
  0xf9   :  { %v1452_v50 = vadd.f32 %v1451_v48, %v1450_v45  ;;  %v1453_v51 = vpop.f32.mrb[2].mxu1  ;;  %v1414_v52 = vpop.f32.mrb[3].mxu0 }
  0xfa   :  { %v1415_v53 = vadd.f32 %v1414_v52, %v1413_v49  ;;  %v1454_v54 = vpop.f32.mrb[3].mxu1 }
  0xfb   :  { %v935_v55 = vadd.f32 %v1452_v50, %v1412_v47  ;;  %v1455_v56 = vadd.f32 %v1454_v54, %v1453_v51 }
  0xfd   :  { %v938_v57 = vadd.f32 %v1455_v56, %v1415_v53 }
  0xfe   :  { %v1416_v58 = vpop.f32.mrb[4].mxu0 }
  0xff   :  { %v1456_v59 = vpop.f32.mrb[4].mxu1  ;;  %v1417_v60 = vpop.f32.mrb[5].mxu0 }
 0x100   :  { %v1418_v61 = vadd.f32 %v1417_v60, %v1416_v58  ;;  %v1457_v62 = vpop.f32.mrb[5].mxu1  ;;  %v1419_v63 = vpop.f32.mrb[6].mxu0 }
 0x101   :  { %v1458_v0 = vadd.f32 %v1457_v62, %v1456_v59  ;;  %v1459_v1 = vpop.f32.mrb[6].mxu1  ;;  %v1420_v2 = vpop.f32.mrb[7].mxu0 }
 0x102   :  { %v1421_v3 = vadd.f32 %v1420_v2, %v1419_v63  ;;  %v1460_v4 = vpop.f32.mrb[7].mxu1 }
 0x103   :  { %v943_v5 = vadd.f32 %v1458_v0, %v1418_v61  ;;  %v1461_v6 = vadd.f32 %v1460_v4, %v1459_v1 }
 0x105   :  { %v946_v7 = vadd.f32 %v1461_v6, %v1421_v3 }
 0x106   :  { %v1422_v8 = vpop.f32.mrb[8].mxu0 }
 0x107   :  { %v1462_v9 = vpop.f32.mrb[8].mxu1  ;;  %v1423_v10 = vpop.f32.mrb[9].mxu0 }
 0x108   :  { %v1424_v11 = vadd.f32 %v1423_v10, %v1422_v8  ;;  %v1463_v12 = vpop.f32.mrb[9].mxu1  ;;  %v1425_v13 = vpop.f32.mrb[10].mxu0 }
 0x109   :  { %v1464_v14 = vadd.f32 %v1463_v12, %v1462_v9  ;;  %v1465_v15 = vpop.f32.mrb[10].mxu1  ;;  %v1426_v16 = vpop.f32.mrb[11].mxu0 }
 0x10a   :  { %v1427_v17 = vadd.f32 %v1426_v16, %v1425_v13  ;;  %v1466_v18 = vpop.f32.mrb[11].mxu1 }
 0x10b   :  { %v951_v19 = vadd.f32 %v1464_v14, %v1424_v11  ;;  %v1467_v20 = vadd.f32 %v1466_v18, %v1465_v15 }
 0x10d   :  { %v954_v21 = vadd.f32 %v1467_v20, %v1427_v17 }
 0x10e   :  { %v1428_v22 = vpop.f32.mrb[12].mxu0 }
 0x10f   :  { %v1468_v23 = vpop.f32.mrb[12].mxu1  ;;  %v1429_v24 = vpop.f32.mrb[13].mxu0 }
 0x110   :  { %v1469_v25 = vpop.f32.mrb[13].mxu1  ;;  %v1430_v26 = vadd.f32 %v1429_v24, %v1428_v22  ;;  %v1431_v28 = vpop.f32.mrb[14].mxu0 }
 0x111   :  { %v1470_v27 = vadd.f32 %v1469_v25, %v1468_v23  ;;  %v1471_v29 = vpop.f32.mrb[14].mxu1  ;;  %v1432_v30 = vpop.f32.mrb[15].mxu0 }
 0x112   :  { %v1472_v31 = vpop.f32.mrb[15].mxu1  ;;  %v1433_v33 = vadd.f32 %v1432_v30, %v1431_v28 }
 0x113   :  { %v959_v32 = vadd.f32 %v1470_v27, %v1430_v26  ;;  %v1473_v34 = vadd.f32 %v1472_v31, %v1471_v29 }
 0x115   :  { %v962_v35 = vadd.f32 %v1473_v34, %v1433_v33 }
 0x116   :  { %v1490_v36 = vpop.f32.mrb[16].mxu0 }
 0x117   :  { %v1491_v37 = vpop.f32.mrb[17].mxu0  ;;  %v1530_v38 = vpop.f32.mrb[16].mxu1 }
 0x118   :  { %v1492_v39 = vadd.f32 %v1491_v37, %v1490_v36  ;;  %v1493_v40 = vpop.f32.mrb[18].mxu0  ;;  %v1531_v41 = vpop.f32.mrb[17].mxu1 }
 0x119   :  { %v1494_v42 = vpop.f32.mrb[19].mxu0  ;;  %v1532_v44 = vadd.f32 %v1531_v41, %v1530_v38  ;;  %v1533_v45 = vpop.f32.mrb[18].mxu1 }
 0x11a   :  { %v1000_v43 = vadd.f32 %v1492_v39, %v935_v55  ;;  %v1495_v46 = vadd.f32 %v1494_v42, %v1493_v40  ;;  %v1534_v47 = vpop.f32.mrb[19].mxu1  ;;  %v1354_v42 = vld [vmem:[%s2094_s2] ss:$0 sm:$0xff] }
 0x11b   :  { %v1535_v49 = vadd.f32 %v1534_v47, %v1533_v45 }
 0x11c   :  { %v1003_v48 = vadd.f32 %v1495_v46, %v938_v57  ;;  %v1065_v50 = vadd.f32 %v1532_v44, %v1000_v43 }
 0x11e   :  { %v1496_v51 = vpop.f32.mrb[20].mxu0  ;;  %v2074_v52 = vadd.f32 %v1535_v49, %v1003_v48 }
 0x11f   :  { %v1497_v53 = vpop.f32.mrb[21].mxu0  ;;  %v1536_v54 = vpop.f32.mrb[20].mxu1 }
 0x120   :  { %v1498_v56 = vadd.f32 %v1497_v53, %v1496_v51  ;;  %v1499_v58 = vpop.f32.mrb[22].mxu0  ;;  %v1537_v59 = vpop.f32.mrb[21].mxu1 }
 0x121   :  { %v1500_v60 = vpop.f32.mrb[23].mxu0  ;;  %v1538_v62 = vadd.f32 %v1537_v59, %v1536_v54  ;;  %v1539_v63 = vpop.f32.mrb[22].mxu1 }
 0x122   :  { %v1008_v61 = vadd.f32 %v1498_v56, %v943_v5  ;;  %v1501_v55 = vadd.f32 %v1500_v60, %v1499_v58  ;;  %v1540_v0 = vpop.f32.mrb[23].mxu1 }
 0x123   :  { %v1541_v2 = vadd.f32 %v1540_v0, %v1539_v63 }
 0x124   :  { %v1011_v1 = vadd.f32 %v1501_v55, %v946_v7  ;;  %v1073_v3 = vadd.f32 %v1538_v62, %v1008_v61 }
 0x126   :  { %v1502_v57 = vpop.f32.mrb[24].mxu0  ;;  %v1076_v4 = vadd.f32 %v1541_v2, %v1011_v1 }
 0x127   :  { %v1503_v6 = vpop.f32.mrb[25].mxu0  ;;  %v1542_v8 = vpop.f32.mrb[24].mxu1 }
 0x128   :  { %v1504_v9 = vadd.f32 %v1503_v6, %v1502_v57  ;;  %v1505_v10 = vpop.f32.mrb[26].mxu0  ;;  %v1543_v11 = vpop.f32.mrb[25].mxu1 }
 0x129   :  { %v1506_v12 = vpop.f32.mrb[27].mxu0  ;;  %v1544_v14 = vadd.f32 %v1543_v11, %v1542_v8  ;;  %v1545_v15 = vpop.f32.mrb[26].mxu1 }
 0x12a   :  { %v1016_v13 = vadd.f32 %v1504_v9, %v951_v19  ;;  %v1507_v16 = vadd.f32 %v1506_v12, %v1505_v10  ;;  %v1546_v5 = vpop.f32.mrb[27].mxu1 }
 0x12b   :  { %v1547_v18 = vadd.f32 %v1546_v5, %v1545_v15 }
 0x12c   :  { %v1019_v17 = vadd.f32 %v1507_v16, %v954_v21  ;;  %v1081_v20 = vadd.f32 %v1544_v14, %v1016_v13 }
 0x12e   :  { %v1508_v22 = vpop.f32.mrb[28].mxu0  ;;  %v1084_v7 = vadd.f32 %v1547_v18, %v1019_v17 }
 0x12f   :  { %v1509_v23 = vpop.f32.mrb[29].mxu0  ;;  %v1548_v24 = vpop.f32.mrb[28].mxu1 }
 0x130   :  { %v1510_v25 = vadd.f32 %v1509_v23, %v1508_v22  ;;  %v1511_v26 = vpop.f32.mrb[30].mxu0  ;;  %v1549_v27 = vpop.f32.mrb[29].mxu1 }
 0x131   :  { %v1512_v28 = vpop.f32.mrb[31].mxu0  ;;  %v1550_v30 = vadd.f32 %v1549_v27, %v1548_v24  ;;  %v1551_v31 = vpop.f32.mrb[30].mxu1 }
 0x132   :  { %v1024_v29 = vadd.f32 %v1510_v25, %v959_v32  ;;  %v1513_v33 = vadd.f32 %v1512_v28, %v1511_v26  ;;  %v1552_v19 = vpop.f32.mrb[31].mxu1 }
 0x133   :  { %v1553_v36 = vadd.f32 %v1552_v19, %v1551_v31 }
 0x134   :  { %v1027_v34 = vadd.f32 %v1513_v33, %v962_v35  ;;  %v1089_v37 = vadd.f32 %v1550_v30, %v1024_v29 }
 0x136   :  { %v1092_v38 = vadd.f32 %v1553_v36, %v1027_v34 }
 0x137   :  { %v1584_v21 = vpop.f32.mrb[32].mxu0 }
 0x138   :  { %v1138_v39 = vadd.f32 %v1584_v21, %v1073_v3  ;;  %v1588_v40 = vpop.f32.mrb[32].mxu1  ;;  %v1129_v41 = vpop.f32.mrb[33].mxu0 }
 0x139   :  { %v1154_v43 = vadd.f32 %v1588_v40, %v1089_v37  ;;  %v1130_v44 = vadd.f32 %v1129_v41, %v1065_v50  ;;  %v1145_v45 = vpop.f32.mrb[33].mxu1  ;;  %v1585_v32 = vpop.f32.mrb[34].mxu0 }
 0x13a   :  { %v1146_v46 = vadd.f32 %v1145_v45, %v1081_v20  ;;  %v1141_v47 = vadd.f32 %v1585_v32, %v1076_v4  ;;  %v1589_v48 = vpop.f32.mrb[34].mxu1  ;;  %v1132_v49 = vpop.f32.mrb[35].mxu0  ;;  %v1196_v54 = vadd.f32 %v1354_v42, %v1138_v39 }
 0x13b   :  { %v1157_v35 = vadd.f32 %v1589_v48, %v1092_v38  ;;  %v1133_v51 = vadd.f32 %v1132_v49, %v2074_v52  ;;  %v1148_v53 = vpop.f32.mrb[35].mxu1  ;;  %v1200_v59 = vadd.f32 %v1354_v42, %v1154_v43  ;;  %v1194_v60 = vadd.f32 %v1354_v42, %v1130_v44 }
 0x13c   :  { %v1197_v56 = vadd.f32 %v1354_v42, %v1141_v47  ;;  %v1149_v58 = vadd.f32 %v1148_v53, %v1084_v7  ;;  %v1198_v63 = vadd.f32 %v1354_v42, %v1146_v46 }
 0x13d   :  { %v1201_v61 = vadd.f32 %v1354_v42, %v1157_v35  ;;  %v1195_v62 = vadd.f32 %v1354_v42, %v1133_v51 }
 0x13e   :  { %v1379_v55 = vpack.c.bf16 %v1197_v56, %v1196_v54  ;;  %v1199_v50 = vadd.f32 %v1354_v42, %v1149_v58 }
 0x13f   :  { %v1389_v0 = vpack.c.bf16 %v1201_v61, %v1200_v59  ;;  %v1374_v1 = vpack.c.bf16 %v1195_v62, %v1194_v60 }
 0x140   :  { %1391 = vst [vmem:[%s2095_s3 + $0x8] sm:$0xff] %v1379_v55   ;;  %v1384_v2 = vpack.c.bf16 %v1199_v50, %v1198_v63 }
 0x141   :  { %1393 = vst [vmem:[%s2095_s3 + $0x18] sm:$0xff] %v1389_v0   ;;  %1375 = vst [vmem:[%s2095_s3] sm:$0xff] %v1374_v1  }
 0x142   :  { %1392 = vst [vmem:[%s2095_s3 + $0x10] sm:$0xff] %v1384_v2  }

// kernel: patch_autoencoder.10
= control target key start
LH: loop header
LB: loop body
LE: loop exit
PB: predicated region body
PF: predicated region fallthrough
CT: control target
= control target key end

     0   :  { %s1176_s12 = smov 0   ;;  %s1178_s13 = smov 0   ;;  %s1291_s0 = inlined_call_operand.vmem [shape: bf16[8,4608], index: 0, kind: input, shape index: {}]   ;;  %s1292_s1 = inlined_call_operand.vmem [shape: bf16[4608,256], index: 1, kind: input, shape index: {}]   ;;  %s1293_s2 = inlined_call_operand.vmem [shape: f32[1,256], index: 2, kind: input, shape index: {}]   ;;  %s1294_s3 = inlined_call_operand.vmem [shape: bf16[8,256], index: 3, kind: output, shape index: {}]  }
   0x1   :  { %s1180_s14 = smov 0  }
   0x2 LB: > { %s25_s15 = sadd.s32 1, %s1149_s13  ;;  %p923_p0 = scmp.ge.s32.totalorder %s1153_s14, 1  ;;  %s1153_s14 = sphi %s1180_s14, %s13_s14   ;;  %s1149_s13 = sphi %s1178_s13, %s1296_s13   ;;  %s1145_s12 = sphi %s1176_s12, %s1295_s12  }
   0x3   : > { %p26_p1 = scmp.ge.s32.totalorder %s25_s15, 9  ;;  %p194_p2 = scmp.lt.s32.totalorder %s1153_s14, 10 }
   0x5   : > { %s1298_s15 = smov (%p26_p1, %s25_s15), 0  ;;  %p195_p3 = pnand %p923_p0, %p194_p2 }
   0x6   : > { %s924_s16 = sshll.u32 (!%p195_p3), %s1145_s12, 2  ;;  %s926_s17 = sshll.u32 (!%p195_p3), %s1145_s12, 6 }
   0x7   : > { %198 = sbr.rel (%p195_p3) target bundleno = 322 (0x142), region = 32  ;;  %p243_p4 = scmp.lt.s32.totalorder (!%p195_p3), %s924_s16, 35 }
   0x8   : > { %p252_p5 = scmp.lt.s32.totalorder (!%p195_p3), %s926_s17, 575  ;;  %p929_p6 = scmp.ne.s32.totalorder (!%p195_p3), %s1145_s12, 0 }
   0xe   : > { %s1300_s16 = smov (!%p243_p4, %s924_s16), 35  ;;  %s1302_s17 = smov (!%p252_p5, %s926_s17), 575 }
   0xf   : > { %s925_s18 = sshll.u32 %s1300_s16, 2  ;;  %s1004_s22 = sshll.u32 %s1302_s17, 3  ;;  %v1155_v0 = vmov (!%p929_p6), 0.0  }
  0x10   : > { %s1201_s21 = scalar_lea.vmem %s1291_s0, %s925_s18  ;;  %s1206_s25 = scalar_lea.vmem %s1292_s1, %s1004_s22  ;;  %281 = vst [vmem:[#allocation2] sm:$0xff] (!%p929_p6), %v1155_v0  ;;  %282 = vst [vmem:[#allocation2 + $0x8] sm:$0xff] (!%p929_p6), %v1155_v0 }
  0x11   : > { %280 = sbr.rel (%p929_p6) target bundleno = 24 (0x18), region = 36 }
  0x18 PF: > { %v1031_v1 = vld [vmem:[%s1206_s25 + $0x4] ss:$8 sps:$4 sm:$0xff]   ;;  %v1035_v3 = vld [vmem:[%s1206_s25] ss:$8 sps:$4 sm:$0xff]   ;;  %v1037_v5 = vld [vmem:[%s1206_s25 + $0x14] ss:$8 sps:$4 sm:$0xff]  }
  0x19   : > { %v1033_v2 = vld [vmem:[%s1206_s25 + $0x104] ss:$8 sps:$4 sm:$0xff]   ;;  %685 = vmatprep.subr.bf16.mxu0 %v1031_v1  ;;  %v1036_v4 = vld [vmem:[%s1206_s25 + $0x100] ss:$8 sps:$4 sm:$0xff]   ;;  %v1039_v6 = vld [vmem:[%s1206_s25 + $0x114] ss:$8 sps:$4 sm:$0xff]  }
  0x1a   : > { %726 = vmatprep.subr.bf16.mxu1 %v1033_v2  ;;  %686 = vmatpush1.bf16.msra.mxu0 %v1035_v3  ;;  %v1041_v7 = vld [vmem:[%s1206_s25 + $0x10] ss:$8 sps:$4 sm:$0xff]   ;;  %v1043_v9 = vld [vmem:[%s1206_s25 + $0x24] ss:$8 sps:$4 sm:$0xff]   ;;  %v1047_v11 = vld [vmem:[%s1206_s25 + $0x20] ss:$8 sps:$4 sm:$0xff]  }
  0x1b   : > { %727 = vmatpush1.bf16.msra.mxu1 %v1036_v4  ;;  %687 = vmatprep.subr.bf16.mxu0 %v1037_v5  ;;  %v1042_v8 = vld [vmem:[%s1206_s25 + $0x110] ss:$8 sps:$4 sm:$0xff]   ;;  %v1045_v10 = vld [vmem:[%s1206_s25 + $0x124] ss:$8 sps:$4 sm:$0xff]   ;;  %v1048_v12 = vld [vmem:[%s1206_s25 + $0x120] ss:$8 sps:$4 sm:$0xff]  }
  0x1c   : > { %728 = vmatprep.subr.bf16.mxu1 %v1039_v6  ;;  %v1049_v13 = vld [vmem:[%s1206_s25 + $0x34] ss:$8 sps:$4 sm:$0xff]   ;;  %v1053_v15 = vld [vmem:[%s1206_s25 + $0x30] ss:$8 sps:$4 sm:$0xff]   ;;  %v1055_v17 = vld [vmem:[%s1206_s25 + $0x44] ss:$8 sps:$4 sm:$0xff]  }
  0x1d   : > { %v1051_v14 = vld [vmem:[%s1206_s25 + $0x134] ss:$8 sps:$4 sm:$0xff]   ;;  %v1054_v16 = vld [vmem:[%s1206_s25 + $0x130] ss:$8 sps:$4 sm:$0xff]   ;;  %v1057_v18 = vld [vmem:[%s1206_s25 + $0x144] ss:$8 sps:$4 sm:$0xff]  }
  0x1e   : > { %688 = vmatpush1.bf16.msra.mxu0 %v1041_v7  ;;  %v1059_v19 = vld [vmem:[%s1206_s25 + $0x40] ss:$8 sps:$4 sm:$0xff]   ;;  %v1061_v21 = vld [vmem:[%s1206_s25 + $0x54] ss:$8 sps:$4 sm:$0xff]   ;;  %v1065_v23 = vld [vmem:[%s1206_s25 + $0x50] ss:$8 sps:$4 sm:$0xff]  }
  0x1f   : > { %729 = vmatpush1.bf16.msra.mxu1 %v1042_v8  ;;  %689 = vmatprep.subr.bf16.mxu0 %v1043_v9  ;;  %v1060_v20 = vld [vmem:[%s1206_s25 + $0x140] ss:$8 sps:$4 sm:$0xff]   ;;  %v1063_v22 = vld [vmem:[%s1206_s25 + $0x154] ss:$8 sps:$4 sm:$0xff]   ;;  %v1066_v24 = vld [vmem:[%s1206_s25 + $0x150] ss:$8 sps:$4 sm:$0xff]  }
  0x20   : > { %730 = vmatprep.subr.bf16.mxu1 %v1045_v10  ;;  %v1067_v25 = vld [vmem:[%s1206_s25 + $0x64] ss:$8 sps:$4 sm:$0xff]   ;;  %v1071_v27 = vld [vmem:[%s1206_s25 + $0x60] ss:$8 sps:$4 sm:$0xff]   ;;  %v1073_v29 = vld [vmem:[%s1206_s25 + $0x74] ss:$8 sps:$4 sm:$0xff]  }
  0x21   : > { %v1069_v26 = vld [vmem:[%s1206_s25 + $0x164] ss:$8 sps:$4 sm:$0xff]   ;;  %v1072_v28 = vld [vmem:[%s1206_s25 + $0x160] ss:$8 sps:$4 sm:$0xff]   ;;  %v1075_v30 = vld [vmem:[%s1206_s25 + $0x174] ss:$8 sps:$4 sm:$0xff]  }
  0x22   : > { %690 = vmatpush1.bf16.msra.mxu0 %v1047_v11  ;;  %v1077_v31 = vld [vmem:[%s1206_s25 + $0x70] ss:$8 sps:$4 sm:$0xff]   ;;  %v1079_v33 = vld [vmem:[%s1206_s25 + $0x84] ss:$8 sps:$4 sm:$0xff]   ;;  %v1083_v35 = vld [vmem:[%s1206_s25 + $0x80] ss:$8 sps:$4 sm:$0xff]  }
  0x23   : > { %731 = vmatpush1.bf16.msra.mxu1 %v1048_v12  ;;  %691 = vmatprep.subr.bf16.mxu0 %v1049_v13  ;;  %v1078_v32 = vld [vmem:[%s1206_s25 + $0x170] ss:$8 sps:$4 sm:$0xff]   ;;  %v1081_v34 = vld [vmem:[%s1206_s25 + $0x184] ss:$8 sps:$4 sm:$0xff]   ;;  %v1084_v36 = vld [vmem:[%s1206_s25 + $0x180] ss:$8 sps:$4 sm:$0xff]  }
  0x24   : > { %732 = vmatprep.subr.bf16.mxu1 %v1051_v14  ;;  %v1085_v37 = vld [vmem:[%s1206_s25 + $0x94] ss:$8 sps:$4 sm:$0xff]   ;;  %v1089_v39 = vld [vmem:[%s1206_s25 + $0x90] ss:$8 sps:$4 sm:$0xff]   ;;  %v1091_v41 = vld [vmem:[%s1206_s25 + $0xa4] ss:$8 sps:$4 sm:$0xff]  }
  0x25   : > { %v1087_v38 = vld [vmem:[%s1206_s25 + $0x194] ss:$8 sps:$4 sm:$0xff]   ;;  %v1090_v40 = vld [vmem:[%s1206_s25 + $0x190] ss:$8 sps:$4 sm:$0xff]   ;;  %v1093_v42 = vld [vmem:[%s1206_s25 + $0x1a4] ss:$8 sps:$4 sm:$0xff]  }
  0x26   : > { %692 = vmatpush1.bf16.msra.mxu0 %v1053_v15  ;;  %v1095_v43 = vld [vmem:[%s1206_s25 + $0xa0] ss:$8 sps:$4 sm:$0xff]   ;;  %v1097_v45 = vld [vmem:[%s1206_s25 + $0xb4] ss:$8 sps:$4 sm:$0xff]   ;;  %v1101_v50 = vld [vmem:[%s1206_s25 + $0xb0] ss:$8 sps:$4 sm:$0xff]  }
  0x27   : > { %733 = vmatpush1.bf16.msra.mxu1 %v1054_v16  ;;  %693 = vmatprep.subr.bf16.mxu0 %v1055_v17  ;;  %v1096_v44 = vld [vmem:[%s1206_s25 + $0x1a0] ss:$8 sps:$4 sm:$0xff]   ;;  %v1099_v46 = vld [vmem:[%s1206_s25 + $0x1b4] ss:$8 sps:$4 sm:$0xff]   ;;  %v1102_v51 = vld [vmem:[%s1206_s25 + $0x1b0] ss:$8 sps:$4 sm:$0xff]  }
  0x28   : > { %734 = vmatprep.subr.bf16.mxu1 %v1057_v18  ;;  %v285_v47 = vld [vmem:[%s1201_s21] sm:$0xff]  ;;  %v286_v49 = vld [vmem:[%s1201_s21 + $0x8] sm:$0xff]  ;;  %v1109_v57 = vld [vmem:[%s1206_s25 + $0xd4] ss:$8 sps:$4 sm:$0xff]   ;;  %p998_p7 = scmp.ne.s32.totalorder %s1145_s12, 8 }
  0x29   : > { %v931_v48 = vcombine.high %v285_v47, %v285_v47  ;;  %v933_v52 = vcombine.high %v286_v49, %v286_v49  ;;  %v1103_v53 = vld [vmem:[%s1206_s25 + $0xc4] ss:$8 sps:$4 sm:$0xff]   ;;  %v1107_v55 = vld [vmem:[%s1206_s25 + $0xc0] ss:$8 sps:$4 sm:$0xff]   ;;  %v1111_v58 = vld [vmem:[%s1206_s25 + $0x1d4] ss:$8 sps:$4 sm:$0xff]   ;;  %v930_v5 = vcombine.low %v285_v47, %v285_v47  ;;  %v932_v6 = vcombine.low %v286_v49, %v286_v49 }
  0x2a   : > { %694 = vmatpush1.bf16.msra.mxu0 %v1059_v19  ;;  %v1105_v54 = vld [vmem:[%s1206_s25 + $0x1c4] ss:$8 sps:$4 sm:$0xff]   ;;  %v1108_v56 = vld [vmem:[%s1206_s25 + $0x1c0] ss:$8 sps:$4 sm:$0xff]   ;;  %v1113_v59 = vld [vmem:[%s1206_s25 + $0xd0] ss:$8 sps:$4 sm:$0xff]  }
  0x2b   : > { %735 = vmatpush1.bf16.msra.mxu1 %v1060_v20  ;;  %695 = vmatprep.subr.bf16.mxu0 %v1061_v21  ;;  %v1114_v60 = vld [vmem:[%s1206_s25 + $0x1d0] ss:$8 sps:$4 sm:$0xff]   ;;  %v1115_v61 = vld [vmem:[%s1206_s25 + $0xe4] ss:$8 sps:$4 sm:$0xff]   ;;  %v1119_v63 = vld [vmem:[%s1206_s25 + $0xe0] ss:$8 sps:$4 sm:$0xff]   ;;  %v779_v21 = vlaneseq (!%p998_p7) }
  0x2c   : > { %736 = vmatprep.subr.bf16.mxu1 %v1063_v22  ;;  %717 = vmatprep.mubr.bf16.mxu0 %v931_v48  ;;  %v1117_v62 = vld [vmem:[%s1206_s25 + $0x1e4] ss:$8 sps:$4 sm:$0xff]   ;;  %v1120_v0 = vld [vmem:[%s1206_s25 + $0x1e0] ss:$8 sps:$4 sm:$0xff]   ;;  %v1121_v1 = vld [vmem:[%s1206_s25 + $0xf4] ss:$8 sps:$4 sm:$0xff]  }
  0x2d   : > { %758 = vmatprep.mubr.bf16.mxu1 %v933_v52  ;;  %v1123_v2 = vld [vmem:[%s1206_s25 + $0x1f4] ss:$8 sps:$4 sm:$0xff]   ;;  %v1125_v3 = vld [vmem:[%s1206_s25 + $0xf0] ss:$8 sps:$4 sm:$0xff]   ;;  %v283_v8 = vld [vmem:[#allocation2] sm:$0xff]  ;;  %v780_v22 = vshrl.u32 (!%p998_p7), %v779_v21, 7 }
  0x2e   : > { %696 = vmatpush1.bf16.msra.mxu0 %v1065_v23  ;;  %v1126_v4 = vld [vmem:[%s1206_s25 + $0x1f0] ss:$8 sps:$4 sm:$0xff]   ;;  %v284_v12 = vld [vmem:[#allocation2 + $0x8] sm:$0xff]  ;;  %v777_v23 = vld [vmem:[%s1293_s2] sm:$0x3] (!%p998_p7) }
  0x2f   : > { %737 = vmatpush1.bf16.msra.mxu1 %v1066_v24  ;;  %697 = vmatprep.subr.bf16.mxu0 %v1067_v25  ;;  %v781_v24 = vsub.s32 (!%p998_p7), 0, %v780_v22  ;;  %v785_v25 = vsub.s32 (!%p998_p7), 1, %v780_v22 }
  0x30   : > { %738 = vmatprep.subr.bf16.mxu1 %v1069_v26 }
  0x32   : > { %698 = vmatpush1.bf16.msra.mxu0 %v1071_v27 }
  0x33   : > { %739 = vmatpush1.bf16.msra.mxu1 %v1072_v28  ;;  %699 = vmatprep.subr.bf16.mxu0 %v1073_v29  ;;  %v782_v28 = vrot.slane (!%p998_p7), %v777_v23, %v781_v24  ;;  %v786_v29 = vrot.slane (!%p998_p7), %v777_v23, %v785_v25 }
  0x34   : > { %740 = vmatprep.subr.bf16.mxu1 %v1075_v30 }
  0x36   : > { %700 = vmatpush1.bf16.msra.mxu0 %v1077_v31 }
  0x37   : > { %741 = vmatpush1.bf16.msra.mxu1 %v1078_v32  ;;  %701 = vmatprep.subr.bf16.mxu0 %v1079_v33 }
  0x38   : > { %742 = vmatprep.subr.bf16.mxu1 %v1081_v34 }
  0x3a   : > { %702 = vmatpush1.bf16.msra.mxu0 %v1083_v35 }
  0x3b   : > { %743 = vmatpush1.bf16.msra.mxu1 %v1084_v36  ;;  %703 = vmatprep.subr.bf16.mxu0 %v1085_v37 }
  0x3c   : > { %744 = vmatprep.subr.bf16.mxu1 %v1087_v38 }
  0x3e   : > { %704 = vmatpush1.bf16.msra.mxu0 %v1089_v39 }
  0x3f   : > { %745 = vmatpush1.bf16.msra.mxu1 %v1090_v40  ;;  %705 = vmatprep.subr.bf16.mxu0 %v1091_v41 }
  0x40   : > { %746 = vmatprep.subr.bf16.mxu1 %v1093_v42 }
  0x42   : > { %706 = vmatpush1.bf16.msra.mxu0 %v1095_v43 }
  0x43   : > { %747 = vmatpush1.bf16.msra.mxu1 %v1096_v44  ;;  %707 = vmatprep.subr.bf16.mxu0 %v1097_v45 }
  0x44   : > { %748 = vmatprep.subr.bf16.mxu1 %v1099_v46 }
  0x46   : > { %708 = vmatpush1.bf16.msra.mxu0 %v1101_v50 }
  0x47   : > { %749 = vmatpush1.bf16.msra.mxu1 %v1102_v51  ;;  %709 = vmatprep.subr.bf16.mxu0 %v1103_v53 }
  0x48   : > { %750 = vmatprep.subr.bf16.mxu1 %v1105_v54 }
  0x4a   : > { %710 = vmatpush1.bf16.msra.mxu0 %v1107_v55 }
  0x4b   : > { %751 = vmatpush1.bf16.msra.mxu1 %v1108_v56  ;;  %711 = vmatprep.subr.bf16.mxu0 %v1109_v57 }
  0x4c   : > { %752 = vmatprep.subr.bf16.mxu1 %v1111_v58 }
  0x4e   : > { %712 = vmatpush1.bf16.msra.mxu0 %v1113_v59 }
  0x4f   : > { %753 = vmatpush1.bf16.msra.mxu1 %v1114_v60  ;;  %713 = vmatprep.subr.bf16.mxu0 %v1115_v61 }
  0x50   : > { %754 = vmatprep.subr.bf16.mxu1 %v1117_v62 }
  0x52   : > { %714 = vmatpush1.bf16.msra.mxu0 %v1119_v63 }
  0x53   : > { %755 = vmatpush1.bf16.msra.mxu1 %v1120_v0  ;;  %715 = vmatprep.subr.bf16.mxu0 %v1121_v1 }
  0x54   : > { %756 = vmatprep.subr.bf16.mxu1 %v1123_v2 }
  0x56   : > { %716 = vmatpush1.bf16.msra.mxu0 %v1125_v3 }
  0x57   : > { %757 = vmatpush1.bf16.msra.mxu1 %v1126_v4 }
  0x59   : > { %718 = vmatmul.mubr.bf16.vlgmr.msra.gmra.mrb[0].mxu0 %v930_v5 }
  0x5a   : > { %759 = vmatmul.mubr.bf16.vlgmr.msra.gmra.mrb[0].mxu1 %v932_v6 }
 0x12c   : > { %v719_v7 = vpop.f32.mrb[0].mxu0 }
 0x12d   : > { %v760_v9 = vpop.f32.mrb[0].mxu1  ;;  %v721_v11 = vpop.f32.mrb[1].mxu0  ;;  %774 = sbr.rel (%p998_p7) target bundleno = 322 (0x142), region = 40 }
 0x12e   : > { %v761_v10 = vadd.f32 %v760_v9, %v719_v7  ;;  %v762_v13 = vpop.f32.mrb[1].mxu1  ;;  %v723_v15 = vpop.f32.mrb[2].mxu0 }
 0x12f   : > { %v763_v14 = vadd.f32 %v762_v13, %v721_v11  ;;  %v764_v16 = vpop.f32.mrb[2].mxu1  ;;  %v724_v18 = vpop.f32.mrb[3].mxu0 }
 0x130   : > { %v767_v17 = vadd.f32 %v761_v10, %v283_v8  ;;  %v765_v19 = vpop.f32.mrb[3].mxu1 }
 0x131   : > { %v768_v20 = vadd.f32 %v763_v14, %v284_v12 }
 0x132   : > { %769 = vst [vmem:[#allocation2] sm:$0xff] %v767_v17 }
 0x133   : > { %770 = vst [vmem:[#allocation2 + $0x8] sm:$0xff] %v768_v20 }
 0x139   : > { %v775_v26 = vld [vmem:[#allocation2] sm:$0xff] }
 0x13a   : > { %v776_v27 = vld [vmem:[#allocation2 + $0x8] sm:$0xff]  ;;  %v789_v30 = vadd.f32 %v782_v28, %v775_v26 }
 0x13b   : > { %v790_v31 = vadd.f32 %v786_v29, %v776_v27 }
 0x13c   : > { %v791_v32 = vmax.f32 %v789_v30, 0.0 }
 0x13d   : > { %v792_v33 = vmax.f32 %v790_v31, 0.0 }
 0x13f   : > { %v1005_v34 = vpack.c.bf16 %v792_v33, %v791_v32 }
 0x141   : > { %801 = vst [vmem:[%s1294_s3] sm:$0xff] %v1005_v34 }
 0x142 PF: > { %s13_s14 = sadd.s32 1, %s1153_s14   ;;  %s1295_s12 = smov %s1149_s13 }
 0x143   : > { %p10_p8 = scmp.ge.s32.totalorder %s13_s14, 11   ;;  %s1296_s13 = smov %s1298_s15 }
 0x145   :  { %12 = sbr.rel (!%p10_p8) target bundleno = 2 (0x2), region = 76 }

// kernel: patch_autoencoder.11
= control target key start
LH: loop header
LB: loop body
LE: loop exit
PB: predicated region body
PF: predicated region fallthrough
CT: control target
= control target key end

     0   :  { %s3125_s1 = inlined_call_operand.vmem [shape: bf16[2304,128], index: 1, kind: input, shape index: {}]   ;;  %s3126_s0 = inlined_call_operand.vmem [shape: bf16[32,2304], index: 0, kind: input, shape index: {}]   ;;  %s3127_s2 = inlined_call_operand.vmem [shape: f32[1,128], index: 2, kind: input, shape index: {}]   ;;  %s3128_s3 = inlined_call_operand.vmem [shape: bf16[32,128], index: 3, kind: output, shape index: {}]  }
   0x1   :  { %v2358_v0 = vld [vmem:[%s3125_s1 + $0x40] sm:$0xff]   ;;  %v2362_v4 = vld [vmem:[%s3125_s1 + $0x48] sm:$0xff]   ;;  %v2366_v8 = vld [vmem:[%s3125_s1 + $0x50] sm:$0xff]  }
   0x2   :  { %v2359_v1 = vld [vmem:[%s3125_s1 + $0xc0] sm:$0xff]   ;;  %2090 = vmatprep.subr.bf16.mxu0 %v2358_v0  ;;  %v2363_v5 = vld [vmem:[%s3125_s1 + $0xc8] sm:$0xff]   ;;  %v2367_v9 = vld [vmem:[%s3125_s1 + $0xd0] sm:$0xff]  }
   0x3   :  { %v2360_v2 = vld [vmem:[%s3125_s1] sm:$0xff]   ;;  %2118 = vmatprep.subr.bf16.mxu1 %v2359_v1  ;;  %v2364_v6 = vld [vmem:[%s3125_s1 + $0x8] sm:$0xff]   ;;  %v2368_v10 = vld [vmem:[%s3125_s1 + $0x10] sm:$0xff]  }
   0x4   :  { %v2361_v3 = vld [vmem:[%s3125_s1 + $0x80] sm:$0xff]   ;;  %2091 = vmatpush3.bf16.msra.mxu0 %v2360_v2  ;;  %v2365_v7 = vld [vmem:[%s3125_s1 + $0x88] sm:$0xff]   ;;  %v2369_v11 = vld [vmem:[%s3125_s1 + $0x90] sm:$0xff]  }
   0x5   :  { %2119 = vmatpush3.bf16.msra.mxu1 %v2361_v3  ;;  %2092 = vmatprep.subr.bf16.mxu0 %v2362_v4  ;;  %v2370_v12 = vld [vmem:[%s3125_s1 + $0x58] sm:$0xff]   ;;  %v2374_v16 = vld [vmem:[%s3125_s1 + $0x60] sm:$0xff]   ;;  %v2378_v20 = vld [vmem:[%s3125_s1 + $0x68] sm:$0xff]  }
   0x6   :  { %2120 = vmatprep.subr.bf16.mxu1 %v2363_v5  ;;  %v2371_v13 = vld [vmem:[%s3125_s1 + $0xd8] sm:$0xff]   ;;  %v2375_v17 = vld [vmem:[%s3125_s1 + $0xe0] sm:$0xff]   ;;  %v2379_v21 = vld [vmem:[%s3125_s1 + $0xe8] sm:$0xff]  }
   0x7   :  { %v2372_v14 = vld [vmem:[%s3125_s1 + $0x18] sm:$0xff]   ;;  %v2376_v18 = vld [vmem:[%s3125_s1 + $0x20] sm:$0xff]   ;;  %v2380_v22 = vld [vmem:[%s3125_s1 + $0x28] sm:$0xff]  }
   0x8   :  { %2093 = vmatpush3.bf16.msra.mxu0 %v2364_v6  ;;  %v2373_v15 = vld [vmem:[%s3125_s1 + $0x98] sm:$0xff]   ;;  %v2377_v19 = vld [vmem:[%s3125_s1 + $0xa0] sm:$0xff]   ;;  %v2381_v23 = vld [vmem:[%s3125_s1 + $0xa8] sm:$0xff]  }
   0x9   :  { %2121 = vmatpush3.bf16.msra.mxu1 %v2365_v7  ;;  %2094 = vmatprep.subr.bf16.mxu0 %v2366_v8  ;;  %v2382_v24 = vld [vmem:[%s3125_s1 + $0x70] sm:$0xff]   ;;  %v2386_v28 = vld [vmem:[%s3125_s1 + $0x78] sm:$0xff]   ;;  %v2390_v32 = vld [vmem:[%s3126_s0] ss:$72 sps:$4 sm:$0xff]  }
   0xa   :  { %2122 = vmatprep.subr.bf16.mxu1 %v2367_v9  ;;  %v2383_v25 = vld [vmem:[%s3125_s1 + $0xf0] sm:$0xff]   ;;  %v2387_v29 = vld [vmem:[%s3125_s1 + $0xf8] sm:$0xff]   ;;  %v2392_v33 = vld [vmem:[%s3126_s0 + $0x4] ss:$72 sps:$4 sm:$0xff]  }
   0xb   :  { %v2384_v26 = vld [vmem:[%s3125_s1 + $0x30] sm:$0xff]   ;;  %v2388_v30 = vld [vmem:[%s3125_s1 + $0x38] sm:$0xff]   ;;  %1427 = vmatprep.mubr.bf16.mxu0 %v2392_v33  ;;  %v2396_v36 = vld [vmem:[%s3125_s1 + $0x140] sm:$0xff]  }
   0xc   :  { %2095 = vmatpush3.bf16.msra.mxu0 %v2368_v10  ;;  %v2385_v27 = vld [vmem:[%s3125_s1 + $0xb0] sm:$0xff]   ;;  %v2389_v31 = vld [vmem:[%s3125_s1 + $0xb8] sm:$0xff]   ;;  %v2397_v37 = vld [vmem:[%s3125_s1 + $0x1c0] sm:$0xff]  }
   0xd   :  { %2123 = vmatpush3.bf16.msra.mxu1 %v2369_v11  ;;  %2096 = vmatprep.subr.bf16.mxu0 %v2370_v12  ;;  %v2393_v34 = vld [vmem:[%s3126_s0 + $0x8] ss:$72 sps:$4 sm:$0xff]   ;;  %v2395_v35 = vld [vmem:[%s3126_s0 + $0xc] ss:$72 sps:$4 sm:$0xff]   ;;  %v2398_v38 = vld [vmem:[%s3125_s1 + $0x100] sm:$0xff]  }
   0xe   :  { %2124 = vmatprep.subr.bf16.mxu1 %v2371_v13  ;;  %1476 = vmatprep.mubr.bf16.mxu1 %v2395_v35  ;;  %v2399_v39 = vld [vmem:[%s3125_s1 + $0x180] sm:$0xff]   ;;  %v2400_v40 = vld [vmem:[%s3125_s1 + $0x148] sm:$0xff]   ;;  %v2404_v44 = vld [vmem:[%s3125_s1 + $0x150] sm:$0xff]  }
   0xf   :  { %v2401_v41 = vld [vmem:[%s3125_s1 + $0x1c8] sm:$0xff]   ;;  %v2405_v45 = vld [vmem:[%s3125_s1 + $0x1d0] sm:$0xff]   ;;  %v2408_v48 = vld [vmem:[%s3125_s1 + $0x158] sm:$0xff]  }
  0x10   :  { %2097 = vmatpush3.bf16.msra.mxu0 %v2372_v14  ;;  %v2402_v42 = vld [vmem:[%s3125_s1 + $0x108] sm:$0xff]   ;;  %v2406_v46 = vld [vmem:[%s3125_s1 + $0x110] sm:$0xff]   ;;  %v2409_v49 = vld [vmem:[%s3125_s1 + $0x1d8] sm:$0xff]  }
  0x11   :  { %2125 = vmatpush3.bf16.msra.mxu1 %v2373_v15  ;;  %2098 = vmatprep.subr.bf16.mxu0 %v2374_v16  ;;  %v2403_v43 = vld [vmem:[%s3125_s1 + $0x188] sm:$0xff]   ;;  %v2407_v47 = vld [vmem:[%s3125_s1 + $0x190] sm:$0xff]   ;;  %v2410_v50 = vld [vmem:[%s3125_s1 + $0x118] sm:$0xff]  }
  0x12   :  { %2126 = vmatprep.subr.bf16.mxu1 %v2375_v17  ;;  %v2411_v51 = vld [vmem:[%s3125_s1 + $0x198] sm:$0xff]   ;;  %v2412_v52 = vld [vmem:[%s3125_s1 + $0x160] sm:$0xff]   ;;  %v2416_v56 = vld [vmem:[%s3125_s1 + $0x168] sm:$0xff]  }
  0x13   :  { %v2413_v53 = vld [vmem:[%s3125_s1 + $0x1e0] sm:$0xff]   ;;  %v2417_v57 = vld [vmem:[%s3125_s1 + $0x1e8] sm:$0xff]   ;;  %v2418_v58 = vld [vmem:[%s3126_s0 + $0x94] ss:$72 sps:$4 sm:$0xff]  }
  0x14   :  { %2099 = vmatpush3.bf16.msra.mxu0 %v2376_v18  ;;  %v2414_v54 = vld [vmem:[%s3125_s1 + $0x120] sm:$0xff]   ;;  %v2422_v60 = vld [vmem:[%s3125_s1 + $0x128] sm:$0xff]   ;;  %v2424_v62 = vld [vmem:[%s3126_s0 + $0x90] ss:$72 sps:$4 sm:$0xff]  }
  0x15   :  { %2127 = vmatpush3.bf16.msra.mxu1 %v2377_v19  ;;  %2100 = vmatprep.subr.bf16.mxu0 %v2378_v20  ;;  %v2415_v55 = vld [vmem:[%s3125_s1 + $0x1a0] sm:$0xff]   ;;  %v2423_v61 = vld [vmem:[%s3125_s1 + $0x1a8] sm:$0xff]   ;;  %v2426_v0 = vld [vmem:[%s3125_s1 + $0x170] sm:$0xff]  }
  0x16   :  { %2128 = vmatprep.subr.bf16.mxu1 %v2379_v21  ;;  %v2420_v59 = vld [vmem:[%s3126_s0 + $0x9c] ss:$72 sps:$4 sm:$0xff]   ;;  %v2425_v63 = vld [vmem:[%s3126_s0 + $0x98] ss:$72 sps:$4 sm:$0xff]   ;;  %v2427_v1 = vld [vmem:[%s3125_s1 + $0x1f0] sm:$0xff]  }
  0x17   :  { %v2428_v2 = vld [vmem:[%s3125_s1 + $0x130] sm:$0xff]   ;;  %v2430_v4 = vld [vmem:[%s3125_s1 + $0x178] sm:$0xff]   ;;  %v2440_v12 = vld [vmem:[%s3125_s1 + $0x240] sm:$0xff]  }
  0x18   :  { %2101 = vmatpush3.bf16.msra.mxu0 %v2380_v22  ;;  %v2429_v3 = vld [vmem:[%s3125_s1 + $0x1b0] sm:$0xff]   ;;  %v2431_v5 = vld [vmem:[%s3125_s1 + $0x1f8] sm:$0xff]   ;;  %v2441_v13 = vld [vmem:[%s3125_s1 + $0x2c0] sm:$0xff]  }
  0x19   :  { %2129 = vmatpush3.bf16.msra.mxu1 %v2381_v23  ;;  %2102 = vmatprep.subr.bf16.mxu0 %v2382_v24  ;;  %v2432_v6 = vld [vmem:[%s3125_s1 + $0x138] sm:$0xff]   ;;  %v2442_v14 = vld [vmem:[%s3125_s1 + $0x200] sm:$0xff]   ;;  %v2444_v16 = vld [vmem:[%s3125_s1 + $0x248] sm:$0xff]  }
  0x1a   :  { %2130 = vmatprep.subr.bf16.mxu1 %v2383_v25  ;;  %v2433_v7 = vld [vmem:[%s3125_s1 + $0x1b8] sm:$0xff]   ;;  %v2443_v15 = vld [vmem:[%s3125_s1 + $0x280] sm:$0xff]   ;;  %v2445_v17 = vld [vmem:[%s3125_s1 + $0x2c8] sm:$0xff]  }
  0x1b   :  { %v2434_v8 = vld [vmem:[%s3126_s0 + $0x10] ss:$72 sps:$4 sm:$0xff]   ;;  %v2436_v9 = vld [vmem:[%s3126_s0 + $0x14] ss:$72 sps:$4 sm:$0xff]   ;;  %v2446_v18 = vld [vmem:[%s3125_s1 + $0x208] sm:$0xff]  }
  0x1c   :  { %2103 = vmatpush3.bf16.msra.mxu0 %v2384_v26  ;;  %v2437_v10 = vld [vmem:[%s3126_s0 + $0x18] ss:$72 sps:$4 sm:$0xff]   ;;  %v2439_v11 = vld [vmem:[%s3126_s0 + $0x1c] ss:$72 sps:$4 sm:$0xff]   ;;  %v2447_v19 = vld [vmem:[%s3125_s1 + $0x288] sm:$0xff]  }
  0x1d   :  { %2131 = vmatpush3.bf16.msra.mxu1 %v2385_v27  ;;  %2104 = vmatprep.subr.bf16.mxu0 %v2386_v28  ;;  %v2448_v20 = vld [vmem:[%s3126_s0 + $0xa4] ss:$72 sps:$4 sm:$0xff]   ;;  %v2450_v21 = vld [vmem:[%s3126_s0 + $0xa0] ss:$72 sps:$4 sm:$0xff]   ;;  %v2451_v22 = vld [vmem:[%s3125_s1 + $0x250] sm:$0xff]  }
  0x1e   :  { %2132 = vmatprep.subr.bf16.mxu1 %v2387_v29  ;;  %v2452_v23 = vld [vmem:[%s3125_s1 + $0x2d0] sm:$0xff]   ;;  %v2458_v28 = vld [vmem:[%s3125_s1 + $0x258] sm:$0xff]   ;;  %v2463_v33 = vld [vmem:[%s3125_s1 + $0x2e0] sm:$0xff]  }
  0x1f   :  { %v2453_v24 = vld [vmem:[%s3126_s0 + $0xac] ss:$72 sps:$4 sm:$0xff]   ;;  %v2457_v27 = vld [vmem:[%s3126_s0 + $0xa8] ss:$72 sps:$4 sm:$0xff]   ;;  %v2459_v29 = vld [vmem:[%s3125_s1 + $0x2d8] sm:$0xff]  }
  0x20   :  { %2105 = vmatpush3.bf16.msra.mxu0 %v2388_v30  ;;  %v2455_v25 = vld [vmem:[%s3125_s1 + $0x210] sm:$0xff]   ;;  %v2460_v30 = vld [vmem:[%s3125_s1 + $0x218] sm:$0xff]   ;;  %v2465_v35 = vld [vmem:[%s3125_s1 + $0x2a0] sm:$0xff]  }
  0x21   :  { %2133 = vmatpush3.bf16.msra.mxu1 %v2389_v31  ;;  %2146 = vmatprep.subr.bf16.mxu0 %v2396_v36  ;;  %v2456_v26 = vld [vmem:[%s3125_s1 + $0x290] sm:$0xff]   ;;  %v2461_v31 = vld [vmem:[%s3125_s1 + $0x298] sm:$0xff]   ;;  %v2466_v36 = vld [vmem:[%s3125_s1 + $0x268] sm:$0xff]  }
  0x22   :  { %2174 = vmatprep.subr.bf16.mxu1 %v2397_v37  ;;  %v2467_v37 = vld [vmem:[%s3125_s1 + $0x2e8] sm:$0xff]  }
  0x23   :  { %1428 = vmatmul.mubr.bf16.vlgmr.msra.gmra.mrb[0].mxu0 %v2390_v32  ;;  %v2462_v32 = vld [vmem:[%s3125_s1 + $0x260] sm:$0xff]  }
  0x24   :  { %1477 = vmatmul.mubr.bf16.vlgmr.msra.gmra.mrb[0].mxu1 %v2393_v34  ;;  %2147 = vmatpush3.bf16.msra.mxu0 %v2398_v38  ;;  %v2464_v34 = vld [vmem:[%s3125_s1 + $0x220] sm:$0xff]   ;;  %v2468_v38 = vld [vmem:[%s3125_s1 + $0x228] sm:$0xff]  }
  0x25   :  { %2175 = vmatpush3.bf16.msra.mxu1 %v2399_v39  ;;  %2148 = vmatprep.subr.bf16.mxu0 %v2400_v40  ;;  %v2469_v39 = vld [vmem:[%s3125_s1 + $0x2a8] sm:$0xff]   ;;  %v2470_v40 = vld [vmem:[%s3125_s1 + $0x270] sm:$0xff]  }
  0x26   :  { %2176 = vmatprep.subr.bf16.mxu1 %v2401_v41  ;;  %1435 = vmatprep.mubr.bf16.mxu0 %v2418_v58  ;;  %v2471_v41 = vld [vmem:[%s3125_s1 + $0x2f0] sm:$0xff]   ;;  %v2490_v58 = vld [vmem:[%s3125_s1 + $0x308] sm:$0xff]  }
  0x27   :  { %1484 = vmatprep.mubr.bf16.mxu1 %v2420_v59  ;;  %v2491_v59 = vld [vmem:[%s3125_s1 + $0x388] sm:$0xff]  }
  0x28   :  { %2149 = vmatpush3.bf16.msra.mxu0 %v2402_v42  ;;  %v2472_v42 = vld [vmem:[%s3125_s1 + $0x230] sm:$0xff]  }
  0x29   :  { %2177 = vmatpush3.bf16.msra.mxu1 %v2403_v43  ;;  %2150 = vmatprep.subr.bf16.mxu0 %v2404_v44  ;;  %v2473_v43 = vld [vmem:[%s3125_s1 + $0x2b0] sm:$0xff]   ;;  %v2474_v44 = vld [vmem:[%s3125_s1 + $0x278] sm:$0xff]  }
  0x2a   :  { %2178 = vmatprep.subr.bf16.mxu1 %v2405_v45  ;;  %v2475_v45 = vld [vmem:[%s3125_s1 + $0x2f8] sm:$0xff]  }
  0x2b   :  { %1436 = vmatmul.mubr.bf16.gmra.mrb[4].mxu0 %v2424_v62  ;;  %v2495_v62 = vld [vmem:[%s3125_s1 + $0x350] sm:$0xff]  }
  0x2c   :  { %2151 = vmatpush3.bf16.msra.mxu0 %v2406_v46  ;;  %1485 = vmatmul.mubr.bf16.gmra.mrb[4].mxu1 %v2425_v63  ;;  %v2476_v46 = vld [vmem:[%s3125_s1 + $0x238] sm:$0xff]   ;;  %v2496_v63 = vld [vmem:[%s3125_s1 + $0x3d0] sm:$0xff]  }
  0x2d   :  { %2179 = vmatpush3.bf16.msra.mxu1 %v2407_v47  ;;  %2152 = vmatprep.subr.bf16.mxu0 %v2408_v48  ;;  %v2477_v47 = vld [vmem:[%s3125_s1 + $0x2b8] sm:$0xff]   ;;  %v2478_v48 = vld [vmem:[%s3126_s0 + $0x20] ss:$72 sps:$4 sm:$0xff]  }
  0x2e   :  { %2180 = vmatprep.subr.bf16.mxu1 %v2409_v49  ;;  %1525 = vmatprep.mubr.bf16.mxu0 %v2436_v9  ;;  %v2480_v49 = vld [vmem:[%s3126_s0 + $0x24] ss:$72 sps:$4 sm:$0xff]  }
  0x2f   :  { %1574 = vmatprep.mubr.bf16.mxu1 %v2439_v11  ;;  %v2507_v9 = vld [vmem:[%s3125_s1 + $0x3e0] sm:$0xff]  }
  0x30   :  { %2153 = vmatpush3.bf16.msra.mxu0 %v2410_v50  ;;  %v2481_v50 = vld [vmem:[%s3126_s0 + $0x28] ss:$72 sps:$4 sm:$0xff]   ;;  %v2509_v11 = vld [vmem:[%s3125_s1 + $0x3a0] sm:$0xff]  }
  0x31   :  { %2181 = vmatpush3.bf16.msra.mxu1 %v2411_v51  ;;  %2154 = vmatprep.subr.bf16.mxu0 %v2412_v52  ;;  %v2483_v51 = vld [vmem:[%s3126_s0 + $0x2c] ss:$72 sps:$4 sm:$0xff]   ;;  %v2484_v52 = vld [vmem:[%s3125_s1 + $0x340] sm:$0xff]  }
  0x32   :  { %2182 = vmatprep.subr.bf16.mxu1 %v2413_v53  ;;  %v2485_v53 = vld [vmem:[%s3125_s1 + $0x3c0] sm:$0xff]  }
  0x34   :  { %2155 = vmatpush3.bf16.msra.mxu0 %v2414_v54  ;;  %v2486_v54 = vld [vmem:[%s3125_s1 + $0x300] sm:$0xff]  }
  0x35   :  { %2183 = vmatpush3.bf16.msra.mxu1 %v2415_v55  ;;  %2156 = vmatprep.subr.bf16.mxu0 %v2416_v56  ;;  %v2487_v55 = vld [vmem:[%s3125_s1 + $0x380] sm:$0xff]   ;;  %v2488_v56 = vld [vmem:[%s3125_s1 + $0x348] sm:$0xff]  }
  0x36   :  { %2184 = vmatprep.subr.bf16.mxu1 %v2417_v57  ;;  %v2489_v57 = vld [vmem:[%s3125_s1 + $0x3c8] sm:$0xff]  }
  0x38   :  { %2157 = vmatpush3.bf16.msra.mxu0 %v2422_v60  ;;  %v2492_v60 = vld [vmem:[%s3126_s0 + $0xb4] ss:$72 sps:$4 sm:$0xff]  }
  0x39   :  { %2185 = vmatpush3.bf16.msra.mxu1 %v2423_v61  ;;  %2158 = vmatprep.subr.bf16.mxu0 %v2426_v0  ;;  %v2494_v61 = vld [vmem:[%s3126_s0 + $0xb0] ss:$72 sps:$4 sm:$0xff]   ;;  %v2497_v0 = vld [vmem:[%s3126_s0 + $0xbc] ss:$72 sps:$4 sm:$0xff]  }
  0x3a   :  { %2186 = vmatprep.subr.bf16.mxu1 %v2427_v1  ;;  %v2499_v1 = vld [vmem:[%s3125_s1 + $0x310] sm:$0xff]  }
  0x3c   :  { %2159 = vmatpush3.bf16.msra.mxu0 %v2428_v2  ;;  %v2500_v2 = vld [vmem:[%s3125_s1 + $0x390] sm:$0xff]  }
  0x3d   :  { %2187 = vmatpush3.bf16.msra.mxu1 %v2429_v3  ;;  %2160 = vmatprep.subr.bf16.mxu0 %v2430_v4  ;;  %v2501_v3 = vld [vmem:[%s3126_s0 + $0xb8] ss:$72 sps:$4 sm:$0xff]  }
  0x3e   :  { %2188 = vmatprep.subr.bf16.mxu1 %v2431_v5  ;;  %v2502_v4 = vld [vmem:[%s3125_s1 + $0x358] sm:$0xff]  }
  0x3f   :  { %v2503_v5 = vld [vmem:[%s3125_s1 + $0x3d8] sm:$0xff]  }
  0x40   :  { %2161 = vmatpush3.bf16.msra.mxu0 %v2432_v6  ;;  %v2504_v6 = vld [vmem:[%s3125_s1 + $0x318] sm:$0xff]  }
  0x41   :  { %2189 = vmatpush3.bf16.msra.mxu1 %v2433_v7  ;;  %2202 = vmatprep.subr.bf16.mxu0 %v2440_v12  ;;  %v2505_v7 = vld [vmem:[%s3125_s1 + $0x398] sm:$0xff]   ;;  %v2510_v12 = vld [vmem:[%s3125_s1 + $0x368] sm:$0xff]  }
  0x42   :  { %2230 = vmatprep.subr.bf16.mxu1 %v2441_v13  ;;  %v2511_v13 = vld [vmem:[%s3125_s1 + $0x3e8] sm:$0xff]  }
  0x43   :  { %1526 = vmatmul.mubr.bf16.vlgmr.msra.gmra.mrb[8].mxu0 %v2434_v8  ;;  %v2506_v8 = vld [vmem:[%s3125_s1 + $0x360] sm:$0xff]  }
  0x44   :  { %1575 = vmatmul.mubr.bf16.vlgmr.msra.gmra.mrb[8].mxu1 %v2437_v10  ;;  %2203 = vmatpush3.bf16.msra.mxu0 %v2442_v14  ;;  %v2508_v10 = vld [vmem:[%s3125_s1 + $0x320] sm:$0xff]   ;;  %v2512_v14 = vld [vmem:[%s3125_s1 + $0x328] sm:$0xff]  }
  0x45   :  { %2231 = vmatpush3.bf16.msra.mxu1 %v2443_v15  ;;  %2204 = vmatprep.subr.bf16.mxu0 %v2444_v16  ;;  %v2513_v15 = vld [vmem:[%s3125_s1 + $0x3a8] sm:$0xff]   ;;  %v2514_v16 = vld [vmem:[%s3125_s1 + $0x370] sm:$0xff]  }
  0x46   :  { %2232 = vmatprep.subr.bf16.mxu1 %v2445_v17  ;;  %1533 = vmatprep.mubr.bf16.mxu0 %v2448_v20  ;;  %v2515_v17 = vld [vmem:[%s3125_s1 + $0x3f0] sm:$0xff]   ;;  %v2518_v20 = vld [vmem:[%s3125_s1 + $0x378] sm:$0xff]  }
  0x47   :  { %1582 = vmatprep.mubr.bf16.mxu1 %v2453_v24  ;;  %v2522_v24 = vld [vmem:[%s3126_s0 + $0x30] ss:$72 sps:$4 sm:$0xff]  }
  0x48   :  { %2205 = vmatpush3.bf16.msra.mxu0 %v2446_v18  ;;  %v2516_v18 = vld [vmem:[%s3125_s1 + $0x330] sm:$0xff]  }
  0x49   :  { %2233 = vmatpush3.bf16.msra.mxu1 %v2447_v19  ;;  %2206 = vmatprep.subr.bf16.mxu0 %v2451_v22  ;;  %v2517_v19 = vld [vmem:[%s3125_s1 + $0x3b0] sm:$0xff]   ;;  %v2520_v22 = vld [vmem:[%s3125_s1 + $0x338] sm:$0xff]  }
  0x4a   :  { %2234 = vmatprep.subr.bf16.mxu1 %v2452_v23  ;;  %v2521_v23 = vld [vmem:[%s3125_s1 + $0x3b8] sm:$0xff]  }
  0x4b   :  { %1534 = vmatmul.mubr.bf16.gmra.mrb[12].mxu0 %v2450_v21  ;;  %v2519_v21 = vld [vmem:[%s3125_s1 + $0x3f8] sm:$0xff]  }
  0x4c   :  { %2207 = vmatpush3.bf16.msra.mxu0 %v2455_v25  ;;  %1583 = vmatmul.mubr.bf16.gmra.mrb[12].mxu1 %v2457_v27  ;;  %v2524_v25 = vld [vmem:[%s3126_s0 + $0x34] ss:$72 sps:$4 sm:$0xff]  }
  0x4d   :  { %2235 = vmatpush3.bf16.msra.mxu1 %v2456_v26  ;;  %2208 = vmatprep.subr.bf16.mxu0 %v2458_v28  ;;  %v2525_v26 = vld [vmem:[%s3126_s0 + $0x38] ss:$72 sps:$4 sm:$0xff]   ;;  %v2527_v27 = vld [vmem:[%s3126_s0 + $0x3c] ss:$72 sps:$4 sm:$0xff]  }
  0x4e   :  { %2236 = vmatprep.subr.bf16.mxu1 %v2459_v29  ;;  %1623 = vmatprep.mubr.bf16.mxu0 %v2480_v49  ;;  %v2528_v28 = vld [vmem:[%s3125_s1 + $0x440] sm:$0xff]   ;;  %v2549_v49 = vld [vmem:[%s3125_s1 + $0x438] sm:$0xff]  }
  0x4f   :  { %1672 = vmatprep.mubr.bf16.mxu1 %v2483_v51  ;;  %v2529_v29 = vld [vmem:[%s3125_s1 + $0x400] sm:$0xff]   ;;  %v2553_v51 = vld [vmem:[%s3126_s0 + $0xd0] ss:$72 sps:$4 sm:$0xff]  }
  0x50   :  { %2209 = vmatpush3.bf16.msra.mxu0 %v2460_v30  ;;  %v2530_v30 = vld [vmem:[%s3125_s1 + $0x448] sm:$0xff]  }
  0x51   :  { %2237 = vmatpush3.bf16.msra.mxu1 %v2461_v31  ;;  %2210 = vmatprep.subr.bf16.mxu0 %v2462_v32  ;;  %v2531_v31 = vld [vmem:[%s3125_s1 + $0x408] sm:$0xff]  }
  0x52   :  { %2238 = vmatprep.subr.bf16.mxu1 %v2463_v33  ;;  %v2532_v32 = vld [vmem:[%s3126_s0 + $0xc4] ss:$72 sps:$4 sm:$0xff]   ;;  %v2534_v33 = vld [vmem:[%s3126_s0 + $0xc0] ss:$72 sps:$4 sm:$0xff]  }
  0x54   :  { %2211 = vmatpush3.bf16.msra.mxu0 %v2464_v34  ;;  %v2535_v34 = vld [vmem:[%s3125_s1 + $0x450] sm:$0xff]  }
  0x55   :  { %2239 = vmatpush3.bf16.msra.mxu1 %v2465_v35  ;;  %2212 = vmatprep.subr.bf16.mxu0 %v2466_v36  ;;  %v2536_v35 = vld [vmem:[%s3126_s0 + $0xcc] ss:$72 sps:$4 sm:$0xff]  }
  0x56   :  { %2240 = vmatprep.subr.bf16.mxu1 %v2467_v37  ;;  %v2538_v36 = vld [vmem:[%s3125_s1 + $0x410] sm:$0xff]  }
  0x57   :  { %v2539_v37 = vld [vmem:[%s3126_s0 + $0xc8] ss:$72 sps:$4 sm:$0xff]  }
  0x58   :  { %2213 = vmatpush3.bf16.msra.mxu0 %v2468_v38  ;;  %v2540_v38 = vld [vmem:[%s3125_s1 + $0x458] sm:$0xff]  }
  0x59   :  { %2241 = vmatpush3.bf16.msra.mxu1 %v2469_v39  ;;  %2214 = vmatprep.subr.bf16.mxu0 %v2470_v40  ;;  %v2541_v39 = vld [vmem:[%s3125_s1 + $0x418] sm:$0xff]   ;;  %v2542_v40 = vld [vmem:[%s3125_s1 + $0x460] sm:$0xff]  }
  0x5a   :  { %2242 = vmatprep.subr.bf16.mxu1 %v2471_v41  ;;  %v2543_v41 = vld [vmem:[%s3125_s1 + $0x420] sm:$0xff]  }
  0x5c   :  { %2215 = vmatpush3.bf16.msra.mxu0 %v2472_v42  ;;  %v2544_v42 = vld [vmem:[%s3125_s1 + $0x468] sm:$0xff]  }
  0x5d   :  { %2243 = vmatpush3.bf16.msra.mxu1 %v2473_v43  ;;  %2216 = vmatprep.subr.bf16.mxu0 %v2474_v44  ;;  %v2545_v43 = vld [vmem:[%s3125_s1 + $0x428] sm:$0xff]  }
  0x5e   :  { %2244 = vmatprep.subr.bf16.mxu1 %v2475_v45  ;;  %v2552_v44 = vld [vmem:[%s3126_s0 + $0x44] ss:$72 sps:$4 sm:$0xff]   ;;  %v2546_v45 = vld [vmem:[%s3125_s1 + $0x470] sm:$0xff]  }
  0x60   :  { %2217 = vmatpush3.bf16.msra.mxu0 %v2476_v46  ;;  %v2555_v46 = vld [vmem:[%s3126_s0 + $0xd4] ss:$72 sps:$4 sm:$0xff]  }
  0x61   :  { %2245 = vmatpush3.bf16.msra.mxu1 %v2477_v47  ;;  %2258 = vmatprep.subr.bf16.mxu0 %v2484_v52  ;;  %v2547_v47 = vld [vmem:[%s3125_s1 + $0x430] sm:$0xff]  }
  0x62   :  { %2286 = vmatprep.subr.bf16.mxu1 %v2485_v53 }
  0x63   :  { %1624 = vmatmul.mubr.bf16.vlgmr.msra.gmra.mrb[16].mxu0 %v2478_v48  ;;  %v2548_v48 = vld [vmem:[%s3125_s1 + $0x478] sm:$0xff]  }
  0x64   :  { %1673 = vmatmul.mubr.bf16.vlgmr.msra.gmra.mrb[16].mxu1 %v2481_v50  ;;  %2259 = vmatpush3.bf16.msra.mxu0 %v2486_v54  ;;  %v2550_v50 = vld [vmem:[%s3126_s0 + $0x40] ss:$72 sps:$4 sm:$0xff]  }
  0x65   :  { %2287 = vmatpush3.bf16.msra.mxu1 %v2487_v55  ;;  %2260 = vmatprep.subr.bf16.mxu0 %v2488_v56 }
  0x66   :  { %2288 = vmatprep.subr.bf16.mxu1 %v2489_v57  ;;  %1631 = vmatprep.mubr.bf16.mxu0 %v2492_v60 }
  0x67   :  { %1680 = vmatprep.mubr.bf16.mxu1 %v2497_v0 }
  0x68   :  { %2261 = vmatpush3.bf16.msra.mxu0 %v2490_v58 }
  0x69   :  { %2289 = vmatpush3.bf16.msra.mxu1 %v2491_v59  ;;  %2262 = vmatprep.subr.bf16.mxu0 %v2495_v62 }
  0x6a   :  { %2290 = vmatprep.subr.bf16.mxu1 %v2496_v63 }
  0x6b   :  { %1632 = vmatmul.mubr.bf16.gmra.mrb[20].mxu0 %v2494_v61 }
  0x6c   :  { %2263 = vmatpush3.bf16.msra.mxu0 %v2499_v1  ;;  %1681 = vmatmul.mubr.bf16.gmra.mrb[20].mxu1 %v2501_v3 }
  0x6d   :  { %2291 = vmatpush3.bf16.msra.mxu1 %v2500_v2  ;;  %2264 = vmatprep.subr.bf16.mxu0 %v2502_v4 }
  0x6e   :  { %2292 = vmatprep.subr.bf16.mxu1 %v2503_v5  ;;  %1721 = vmatprep.mubr.bf16.mxu0 %v2524_v25 }
  0x6f   :  { %1770 = vmatprep.mubr.bf16.mxu1 %v2527_v27 }
  0x70   :  { %2265 = vmatpush3.bf16.msra.mxu0 %v2504_v6 }
  0x71   :  { %2293 = vmatpush3.bf16.msra.mxu1 %v2505_v7  ;;  %2266 = vmatprep.subr.bf16.mxu0 %v2506_v8 }
  0x72   :  { %2294 = vmatprep.subr.bf16.mxu1 %v2507_v9 }
  0x74   :  { %2267 = vmatpush3.bf16.msra.mxu0 %v2508_v10 }
  0x75   :  { %2295 = vmatpush3.bf16.msra.mxu1 %v2509_v11  ;;  %2268 = vmatprep.subr.bf16.mxu0 %v2510_v12 }
  0x76   :  { %2296 = vmatprep.subr.bf16.mxu1 %v2511_v13 }
  0x78   :  { %2269 = vmatpush3.bf16.msra.mxu0 %v2512_v14 }
  0x79   :  { %2297 = vmatpush3.bf16.msra.mxu1 %v2513_v15  ;;  %2270 = vmatprep.subr.bf16.mxu0 %v2514_v16 }
  0x7a   :  { %2298 = vmatprep.subr.bf16.mxu1 %v2515_v17 }
  0x7c   :  { %2271 = vmatpush3.bf16.msra.mxu0 %v2516_v18 }
  0x7d   :  { %2299 = vmatpush3.bf16.msra.mxu1 %v2517_v19  ;;  %2272 = vmatprep.subr.bf16.mxu0 %v2518_v20 }
  0x7e   :  { %2300 = vmatprep.subr.bf16.mxu1 %v2519_v21 }
  0x80   :  { %2273 = vmatpush3.bf16.msra.mxu0 %v2520_v22 }
  0x81   :  { %2301 = vmatpush3.bf16.msra.mxu1 %v2521_v23  ;;  %2314 = vmatprep.subr.bf16.mxu0 %v2528_v28 }
  0x82   :  { %2342 = vmatprep.subr.bf16.mxu1 %v2528_v28 }
  0x83   :  { %1722 = vmatmul.mubr.bf16.vlgmr.msra.gmra.mrb[24].mxu0 %v2522_v24 }
  0x84   :  { %1771 = vmatmul.mubr.bf16.vlgmr.msra.gmra.mrb[24].mxu1 %v2525_v26  ;;  %2315 = vmatpush3.bf16.msra.mxu0 %v2529_v29 }
  0x85   :  { %2350 = vmatpush3.bf16.msra.mxu1 %v2529_v29  ;;  %2316 = vmatprep.subr.bf16.mxu0 %v2530_v30 }
  0x86   :  { %2343 = vmatprep.subr.bf16.mxu1 %v2530_v30  ;;  %1729 = vmatprep.mubr.bf16.mxu0 %v2532_v32 }
  0x87   :  { %1778 = vmatprep.mubr.bf16.mxu1 %v2536_v35 }
  0x88   :  { %2317 = vmatpush3.bf16.msra.mxu0 %v2531_v31 }
  0x89   :  { %2351 = vmatpush3.bf16.msra.mxu1 %v2531_v31  ;;  %2318 = vmatprep.subr.bf16.mxu0 %v2535_v34 }
  0x8a   :  { %2344 = vmatprep.subr.bf16.mxu1 %v2535_v34 }
  0x8b   :  { %1730 = vmatmul.mubr.bf16.gmra.mrb[28].mxu0 %v2534_v33 }
  0x8c   :  { %2319 = vmatpush3.bf16.msra.mxu0 %v2538_v36  ;;  %1779 = vmatmul.mubr.bf16.gmra.mrb[28].mxu1 %v2539_v37 }
  0x8d   :  { %2352 = vmatpush3.bf16.msra.mxu1 %v2538_v36  ;;  %2320 = vmatprep.subr.bf16.mxu0 %v2540_v38 }
  0x8e   :  { %2345 = vmatprep.subr.bf16.mxu1 %v2540_v38  ;;  %1819 = vmatprep.mubr.bf16.mxu0 %v2552_v44 }
  0x8f   :  { %1827 = vmatprep.mubr.bf16.mxu1 %v2555_v46 }
  0x90   :  { %2321 = vmatpush3.bf16.msra.mxu0 %v2541_v39 }
  0x91   :  { %2353 = vmatpush3.bf16.msra.mxu1 %v2541_v39  ;;  %2322 = vmatprep.subr.bf16.mxu0 %v2542_v40 }
  0x92   :  { %2346 = vmatprep.subr.bf16.mxu1 %v2542_v40 }
  0x94   :  { %2323 = vmatpush3.bf16.msra.mxu0 %v2543_v41 }
  0x95   :  { %2354 = vmatpush3.bf16.msra.mxu1 %v2543_v41  ;;  %2324 = vmatprep.subr.bf16.mxu0 %v2544_v42 }
  0x96   :  { %2347 = vmatprep.subr.bf16.mxu1 %v2544_v42 }
  0x98   :  { %2325 = vmatpush3.bf16.msra.mxu0 %v2545_v43 }
  0x99   :  { %2355 = vmatpush3.bf16.msra.mxu1 %v2545_v43  ;;  %2326 = vmatprep.subr.bf16.mxu0 %v2546_v45 }
  0x9a   :  { %2348 = vmatprep.subr.bf16.mxu1 %v2546_v45 }
  0x9c   :  { %2327 = vmatpush3.bf16.msra.mxu0 %v2547_v47 }
  0x9d   :  { %2356 = vmatpush3.bf16.msra.mxu1 %v2547_v47  ;;  %2328 = vmatprep.subr.bf16.mxu0 %v2548_v48 }
  0x9e   :  { %2349 = vmatprep.subr.bf16.mxu1 %v2548_v48 }
  0xa0   :  { %2329 = vmatpush3.bf16.msra.mxu0 %v2549_v49 }
  0xa1   :  { %2357 = vmatpush3.bf16.msra.mxu1 %v2549_v49 }
  0xa3   :  { %1820 = vmatmul.mubr.bf16.vlgmr.msra.gmra.mrb[32].mxu0 %v2550_v50 }
  0xa4   :  { %1828 = vmatmul.mubr.bf16.vlgmr.msra.gmra.mrb[32].mxu1 %v2553_v51 }
  0xf6   :  { %v2106_v52 = vpop.f32.mrb[0].mxu0 }
  0xf7   :  { %v2134_v53 = vpop.f32.mrb[0].mxu1  ;;  %v2107_v54 = vpop.f32.mrb[1].mxu0 }
  0xf8   :  { %v2108_v55 = vadd.f32 %v2107_v54, %v2106_v52  ;;  %v2135_v56 = vpop.f32.mrb[1].mxu1  ;;  %v2109_v57 = vpop.f32.mrb[2].mxu0 }
  0xf9   :  { %v2136_v58 = vadd.f32 %v2135_v56, %v2134_v53  ;;  %v2137_v59 = vpop.f32.mrb[2].mxu1  ;;  %v2110_v60 = vpop.f32.mrb[3].mxu0 }
  0xfa   :  { %v2111_v61 = vadd.f32 %v2110_v60, %v2109_v57  ;;  %v2138_v62 = vpop.f32.mrb[3].mxu1 }
  0xfb   :  { %v1479_v63 = vadd.f32 %v2136_v58, %v2108_v55  ;;  %v2139_v0 = vadd.f32 %v2138_v62, %v2137_v59 }
  0xfd   :  { %v1482_v1 = vadd.f32 %v2139_v0, %v2111_v61 }
  0xfe   :  { %v2112_v2 = vpop.f32.mrb[4].mxu0 }
  0xff   :  { %v2140_v3 = vpop.f32.mrb[4].mxu1  ;;  %v2113_v4 = vpop.f32.mrb[5].mxu0 }
 0x100   :  { %v2114_v5 = vadd.f32 %v2113_v4, %v2112_v2  ;;  %v2141_v6 = vpop.f32.mrb[5].mxu1  ;;  %v2115_v7 = vpop.f32.mrb[6].mxu0 }
 0x101   :  { %v2142_v8 = vadd.f32 %v2141_v6, %v2140_v3  ;;  %v2143_v9 = vpop.f32.mrb[6].mxu1  ;;  %v2116_v10 = vpop.f32.mrb[7].mxu0 }
 0x102   :  { %v2117_v11 = vadd.f32 %v2116_v10, %v2115_v7  ;;  %v2144_v12 = vpop.f32.mrb[7].mxu1 }
 0x103   :  { %v1487_v13 = vadd.f32 %v2142_v8, %v2114_v5  ;;  %v2145_v14 = vadd.f32 %v2144_v12, %v2143_v9 }
 0x105   :  { %v1490_v15 = vadd.f32 %v2145_v14, %v2117_v11 }
 0x116   :  { %v2162_v16 = vpop.f32.mrb[8].mxu0 }
 0x117   :  { %v2190_v17 = vpop.f32.mrb[8].mxu1  ;;  %v2163_v18 = vpop.f32.mrb[9].mxu0 }
 0x118   :  { %v2164_v19 = vadd.f32 %v2163_v18, %v2162_v16  ;;  %v2191_v20 = vpop.f32.mrb[9].mxu1  ;;  %v2165_v21 = vpop.f32.mrb[10].mxu0 }
 0x119   :  { %v2192_v22 = vadd.f32 %v2191_v20, %v2190_v17  ;;  %v2193_v23 = vpop.f32.mrb[10].mxu1  ;;  %v2166_v24 = vpop.f32.mrb[11].mxu0 }
 0x11a   :  { %v1528_v25 = vadd.f32 %v2164_v19, %v1479_v63  ;;  %v2167_v26 = vadd.f32 %v2166_v24, %v2165_v21  ;;  %v2194_v27 = vpop.f32.mrb[11].mxu1 }
 0x11b   :  { %v2195_v28 = vadd.f32 %v2194_v27, %v2193_v23 }
 0x11c   :  { %v1577_v29 = vadd.f32 %v2192_v22, %v1528_v25  ;;  %v1531_v30 = vadd.f32 %v2167_v26, %v1482_v1 }
 0x11e   :  { %v1580_v31 = vadd.f32 %v2195_v28, %v1531_v30  ;;  %v2168_v32 = vpop.f32.mrb[12].mxu0 }
 0x11f   :  { %v2169_v33 = vpop.f32.mrb[13].mxu0  ;;  %v2196_v39 = vpop.f32.mrb[12].mxu1 }
 0x120   :  { %v2170_v34 = vadd.f32 %v2169_v33, %v2168_v32  ;;  %v2171_v35 = vpop.f32.mrb[14].mxu0  ;;  %v2197_v41 = vpop.f32.mrb[13].mxu1 }
 0x121   :  { %v2172_v36 = vpop.f32.mrb[15].mxu0  ;;  %v2198_v42 = vadd.f32 %v2197_v41, %v2196_v39  ;;  %v2199_v43 = vpop.f32.mrb[14].mxu1 }
 0x122   :  { %v1536_v37 = vadd.f32 %v2170_v34, %v1487_v13  ;;  %v2173_v38 = vadd.f32 %v2172_v36, %v2171_v35  ;;  %v2200_v44 = vpop.f32.mrb[15].mxu1 }
 0x123   :  { %v2201_v46 = vadd.f32 %v2200_v44, %v2199_v43 }
 0x124   :  { %v1539_v40 = vadd.f32 %v2173_v38, %v1490_v15  ;;  %v1585_v45 = vadd.f32 %v2198_v42, %v1536_v37 }
 0x126   :  { %v1588_v47 = vadd.f32 %v2201_v46, %v1539_v40 }
 0x136   :  { %v2218_v48 = vpop.f32.mrb[16].mxu0 }
 0x137   :  { %v2219_v49 = vpop.f32.mrb[17].mxu0  ;;  %v2246_v50 = vpop.f32.mrb[16].mxu1 }
 0x138   :  { %v2220_v51 = vadd.f32 %v2219_v49, %v2218_v48  ;;  %v2221_v52 = vpop.f32.mrb[18].mxu0  ;;  %v2247_v53 = vpop.f32.mrb[17].mxu1 }
 0x139   :  { %v2222_v54 = vpop.f32.mrb[19].mxu0  ;;  %v2248_v56 = vadd.f32 %v2247_v53, %v2246_v50  ;;  %v2249_v57 = vpop.f32.mrb[18].mxu1 }
 0x13a   :  { %v1626_v55 = vadd.f32 %v2220_v51, %v1577_v29  ;;  %v2223_v58 = vadd.f32 %v2222_v54, %v2221_v52  ;;  %v2250_v59 = vpop.f32.mrb[19].mxu1  ;;  %v2070_v54 = vld [vmem:[%s3127_s2] ss:$0 sm:$0xff] }
 0x13b   :  { %v2251_v62 = vadd.f32 %v2250_v59, %v2249_v57 }
 0x13c   :  { %v1675_v60 = vadd.f32 %v2248_v56, %v1626_v55  ;;  %v1629_v61 = vadd.f32 %v2223_v58, %v1580_v31 }
 0x13e   :  { %v1678_v63 = vadd.f32 %v2251_v62, %v1629_v61  ;;  %v2224_v0 = vpop.f32.mrb[20].mxu0 }
 0x13f   :  { %v2225_v1 = vpop.f32.mrb[21].mxu0  ;;  %v2252_v7 = vpop.f32.mrb[20].mxu1 }
 0x140   :  { %v2226_v2 = vadd.f32 %v2225_v1, %v2224_v0  ;;  %v2227_v3 = vpop.f32.mrb[22].mxu0  ;;  %v2253_v9 = vpop.f32.mrb[21].mxu1 }
 0x141   :  { %v2228_v4 = vpop.f32.mrb[23].mxu0  ;;  %v2254_v10 = vadd.f32 %v2253_v9, %v2252_v7  ;;  %v2255_v11 = vpop.f32.mrb[22].mxu1 }
 0x142   :  { %v1634_v5 = vadd.f32 %v2226_v2, %v1585_v45  ;;  %v2229_v6 = vadd.f32 %v2228_v4, %v2227_v3  ;;  %v2256_v12 = vpop.f32.mrb[23].mxu1 }
 0x143   :  { %v2257_v14 = vadd.f32 %v2256_v12, %v2255_v11 }
 0x144   :  { %v1637_v8 = vadd.f32 %v2229_v6, %v1588_v47  ;;  %v1683_v13 = vadd.f32 %v2254_v10, %v1634_v5 }
 0x146   :  { %v1686_v15 = vadd.f32 %v2257_v14, %v1637_v8 }
 0x156   :  { %v2274_v16 = vpop.f32.mrb[24].mxu0 }
 0x157   :  { %v2302_v17 = vpop.f32.mrb[24].mxu1  ;;  %v2275_v18 = vpop.f32.mrb[25].mxu0 }
 0x158   :  { %v2276_v19 = vadd.f32 %v2275_v18, %v2274_v16  ;;  %v2303_v20 = vpop.f32.mrb[25].mxu1  ;;  %v2277_v21 = vpop.f32.mrb[26].mxu0 }
 0x159   :  { %v2304_v22 = vadd.f32 %v2303_v20, %v2302_v17  ;;  %v2305_v23 = vpop.f32.mrb[26].mxu1  ;;  %v2278_v24 = vpop.f32.mrb[27].mxu0 }
 0x15a   :  { %v1724_v25 = vadd.f32 %v2276_v19, %v1675_v60  ;;  %v2279_v26 = vadd.f32 %v2278_v24, %v2277_v21  ;;  %v2306_v27 = vpop.f32.mrb[27].mxu1 }
 0x15b   :  { %v2307_v28 = vadd.f32 %v2306_v27, %v2305_v23 }
 0x15c   :  { %v1773_v29 = vadd.f32 %v2304_v22, %v1724_v25  ;;  %v1727_v30 = vadd.f32 %v2279_v26, %v1678_v63 }
 0x15e   :  { %v1776_v31 = vadd.f32 %v2307_v28, %v1727_v30  ;;  %v2280_v32 = vpop.f32.mrb[28].mxu0 }
 0x15f   :  { %v2281_v33 = vpop.f32.mrb[29].mxu0  ;;  %v2308_v36 = vpop.f32.mrb[28].mxu1 }
 0x160   :  { %v2282_v34 = vadd.f32 %v2281_v33, %v2280_v32  ;;  %v2283_v35 = vpop.f32.mrb[30].mxu0  ;;  %v2309_v38 = vpop.f32.mrb[29].mxu1 }
 0x161   :  { %v2284_v37 = vpop.f32.mrb[31].mxu0  ;;  %v2310_v41 = vadd.f32 %v2309_v38, %v2308_v36  ;;  %v2311_v42 = vpop.f32.mrb[30].mxu1 }
 0x162   :  { %v1732_v39 = vadd.f32 %v2282_v34, %v1683_v13  ;;  %v2285_v40 = vadd.f32 %v2284_v37, %v2283_v35  ;;  %v2312_v43 = vpop.f32.mrb[31].mxu1 }
 0x163   :  { %v2313_v46 = vadd.f32 %v2312_v43, %v2311_v42 }
 0x164   :  { %v1735_v44 = vadd.f32 %v2285_v40, %v1686_v15  ;;  %v1781_v45 = vadd.f32 %v2310_v41, %v1732_v39 }
 0x166   :  { %v1784_v47 = vadd.f32 %v2313_v46, %v1735_v44 }
 0x176   :  { %v2330_v48 = vpop.f32.mrb[32].mxu0 }
 0x177   :  { %v2336_v49 = vpop.f32.mrb[32].mxu1  ;;  %v2331_v50 = vpop.f32.mrb[33].mxu0 }
 0x178   :  { %v2332_v51 = vadd.f32 %v2331_v50, %v2330_v48  ;;  %v2337_v52 = vpop.f32.mrb[33].mxu1  ;;  %v2333_v53 = vpop.f32.mrb[34].mxu0 }
 0x179   :  { %v2338_v55 = vadd.f32 %v2337_v52, %v2336_v49  ;;  %v2339_v56 = vpop.f32.mrb[34].mxu1  ;;  %v2334_v57 = vpop.f32.mrb[35].mxu0 }
 0x17a   :  { %v1822_v58 = vadd.f32 %v2332_v51, %v1773_v29  ;;  %v2335_v59 = vadd.f32 %v2334_v57, %v2333_v53  ;;  %v2340_v60 = vpop.f32.mrb[35].mxu1 }
 0x17b   :  { %v1830_v61 = vadd.f32 %v2338_v55, %v1781_v45  ;;  %v2341_v62 = vadd.f32 %v2340_v60, %v2339_v56 }
 0x17c   :  { %v1858_v63 = vadd.f32 %v2070_v54, %v1822_v58  ;;  %v1825_v0 = vadd.f32 %v2335_v59, %v1776_v31 }
 0x17d   :  { %v1860_v1 = vadd.f32 %v2070_v54, %v1830_v61  ;;  %v1833_v2 = vadd.f32 %v2341_v62, %v1784_v47 }
 0x17e   :  { %v1859_v3 = vadd.f32 %v2070_v54, %v1825_v0  ;;  %v1862_v5 = vmax.f32 %v1858_v63, 0.0 }
 0x17f   :  { %v1861_v4 = vadd.f32 %v2070_v54, %v1833_v2  ;;  %v1864_v7 = vmax.f32 %v1860_v1, 0.0 }
 0x180   :  { %v1863_v6 = vmax.f32 %v1859_v3, 0.0 }
 0x181   :  { %v1865_v8 = vmax.f32 %v1861_v4, 0.0 }
 0x182   :  { %v2082_v9 = vpack.c.bf16 %v1863_v6, %v1862_v5 }
 0x183   :  { %v2087_v10 = vpack.c.bf16 %v1865_v8, %v1864_v7 }
 0x184   :  { %2083 = vst [vmem:[%s3128_s3] sm:$0xff] %v2082_v9  }
 0x185   :  { %2089 = vst [vmem:[%s3128_s3 + $0x8] sm:$0xff] %v2087_v10  }

// kernel: patch_autoencoder.12
= control target key start
LH: loop header
LB: loop body
LE: loop exit
PB: predicated region body
PF: predicated region fallthrough
CT: control target
= control target key end

     0   :  { %s3032_s1 = inlined_call_operand.vmem [shape: bf16[1152,128], index: 1, kind: input, shape index: {}]   ;;  %s3033_s0 = inlined_call_operand.vmem [shape: bf16[128,1152], index: 0, kind: input, shape index: {}]   ;;  %s3034_s2 = inlined_call_operand.vmem [shape: f32[1,128], index: 2, kind: input, shape index: {}]   ;;  %s3035_s3 = inlined_call_operand.vmem [shape: bf16[128,128], index: 3, kind: output, shape index: {}]  }
   0x1   :  { %v2278_v0 = vld [vmem:[%s3032_s1 + $0x40] sm:$0xff]   ;;  %v2282_v4 = vld [vmem:[%s3032_s1 + $0x48] sm:$0xff]   ;;  %v2286_v8 = vld [vmem:[%s3032_s1 + $0x50] sm:$0xff]  }
   0x2   :  { %v2279_v1 = vld [vmem:[%s3032_s1 + $0xc0] sm:$0xff]   ;;  %1958 = vmatprep.subr.bf16.mxu0 %v2278_v0  ;;  %v2283_v5 = vld [vmem:[%s3032_s1 + $0xc8] sm:$0xff]   ;;  %v2287_v9 = vld [vmem:[%s3032_s1 + $0xd0] sm:$0xff]  }
   0x3   :  { %v2280_v2 = vld [vmem:[%s3032_s1] sm:$0xff]   ;;  %2022 = vmatprep.subr.bf16.mxu1 %v2279_v1  ;;  %v2284_v6 = vld [vmem:[%s3032_s1 + $0x8] sm:$0xff]   ;;  %v2288_v10 = vld [vmem:[%s3032_s1 + $0x10] sm:$0xff]  }
   0x4   :  { %v2281_v3 = vld [vmem:[%s3032_s1 + $0x80] sm:$0xff]   ;;  %1959 = vmatpush3.bf16.msra.mxu0 %v2280_v2  ;;  %v2285_v7 = vld [vmem:[%s3032_s1 + $0x88] sm:$0xff]   ;;  %v2289_v11 = vld [vmem:[%s3032_s1 + $0x90] sm:$0xff]  }
   0x5   :  { %2023 = vmatpush3.bf16.msra.mxu1 %v2281_v3  ;;  %1960 = vmatprep.subr.bf16.mxu0 %v2282_v4  ;;  %v2290_v12 = vld [vmem:[%s3032_s1 + $0x58] sm:$0xff]   ;;  %v2294_v16 = vld [vmem:[%s3032_s1 + $0x60] sm:$0xff]   ;;  %v2298_v20 = vld [vmem:[%s3032_s1 + $0x68] sm:$0xff]  }
   0x6   :  { %2024 = vmatprep.subr.bf16.mxu1 %v2283_v5  ;;  %v2291_v13 = vld [vmem:[%s3032_s1 + $0xd8] sm:$0xff]   ;;  %v2295_v17 = vld [vmem:[%s3032_s1 + $0xe0] sm:$0xff]   ;;  %v2299_v21 = vld [vmem:[%s3032_s1 + $0xe8] sm:$0xff]  }
   0x7   :  { %v2292_v14 = vld [vmem:[%s3032_s1 + $0x18] sm:$0xff]   ;;  %v2296_v18 = vld [vmem:[%s3032_s1 + $0x20] sm:$0xff]   ;;  %v2300_v22 = vld [vmem:[%s3032_s1 + $0x28] sm:$0xff]  }
   0x8   :  { %1961 = vmatpush3.bf16.msra.mxu0 %v2284_v6  ;;  %v2293_v15 = vld [vmem:[%s3032_s1 + $0x98] sm:$0xff]   ;;  %v2297_v19 = vld [vmem:[%s3032_s1 + $0xa0] sm:$0xff]   ;;  %v2301_v23 = vld [vmem:[%s3032_s1 + $0xa8] sm:$0xff]  }
   0x9   :  { %2025 = vmatpush3.bf16.msra.mxu1 %v2285_v7  ;;  %1962 = vmatprep.subr.bf16.mxu0 %v2286_v8  ;;  %v2302_v24 = vld [vmem:[%s3032_s1 + $0x70] sm:$0xff]   ;;  %v2306_v28 = vld [vmem:[%s3032_s1 + $0x78] sm:$0xff]   ;;  %v2310_v32 = vld [vmem:[%s3033_s0] ss:$36 sps:$4 sm:$0xff]  }
   0xa   :  { %2026 = vmatprep.subr.bf16.mxu1 %v2287_v9  ;;  %v2303_v25 = vld [vmem:[%s3032_s1 + $0xf0] sm:$0xff]   ;;  %v2307_v29 = vld [vmem:[%s3032_s1 + $0xf8] sm:$0xff]   ;;  %v2312_v33 = vld [vmem:[%s3033_s0 + $0x4] ss:$36 sps:$4 sm:$0xff]  }
   0xb   :  { %v2304_v26 = vld [vmem:[%s3032_s1 + $0x30] sm:$0xff]   ;;  %v2308_v30 = vld [vmem:[%s3032_s1 + $0x38] sm:$0xff]   ;;  %v2313_v34 = vld [vmem:[%s3033_s0 + $0x8] ss:$36 sps:$4 sm:$0xff]   ;;  %1107 = vmatprep.mubr.bf16.mxu0 %v2312_v33 }
   0xc   :  { %1963 = vmatpush3.bf16.msra.mxu0 %v2288_v10  ;;  %v2305_v27 = vld [vmem:[%s3032_s1 + $0xb0] sm:$0xff]   ;;  %v2309_v31 = vld [vmem:[%s3032_s1 + $0xb8] sm:$0xff]   ;;  %v2316_v36 = vld [vmem:[%s3032_s1 + $0x140] sm:$0xff]  }
   0xd   :  { %2027 = vmatpush3.bf16.msra.mxu1 %v2289_v11  ;;  %1964 = vmatprep.subr.bf16.mxu0 %v2290_v12  ;;  %v2315_v35 = vld [vmem:[%s3033_s0 + $0xc] ss:$36 sps:$4 sm:$0xff]   ;;  %v2317_v37 = vld [vmem:[%s3032_s1 + $0x1c0] sm:$0xff]   ;;  %v2322_v41 = vld [vmem:[%s3033_s0 + $0x54] ss:$36 sps:$4 sm:$0xff]  }
   0xe   :  { %2028 = vmatprep.subr.bf16.mxu1 %v2291_v13  ;;  %1204 = vmatprep.mubr.bf16.mxu1 %v2315_v35  ;;  %v2318_v38 = vld [vmem:[%s3032_s1 + $0x100] sm:$0xff]   ;;  %v2320_v40 = vld [vmem:[%s3033_s0 + $0x4c] ss:$36 sps:$4 sm:$0xff]   ;;  %v2330_v48 = vld [vmem:[%s3033_s0 + $0x94] ss:$36 sps:$4 sm:$0xff]  }
   0xf   :  { %v2319_v39 = vld [vmem:[%s3032_s1 + $0x180] sm:$0xff]   ;;  %v2324_v42 = vld [vmem:[%s3033_s0 + $0x48] ss:$36 sps:$4 sm:$0xff]   ;;  %v2325_v43 = vld [vmem:[%s3033_s0 + $0x50] ss:$36 sps:$4 sm:$0xff]  }
  0x10   :  { %1965 = vmatpush3.bf16.msra.mxu0 %v2292_v14  ;;  %v2326_v44 = vld [vmem:[%s3032_s1 + $0x148] sm:$0xff]   ;;  %v2332_v49 = vld [vmem:[%s3033_s0 + $0x9c] ss:$36 sps:$4 sm:$0xff]   ;;  %v2334_v50 = vld [vmem:[%s3033_s0 + $0x90] ss:$36 sps:$4 sm:$0xff]  }
  0x11   :  { %2029 = vmatpush3.bf16.msra.mxu1 %v2293_v15  ;;  %1966 = vmatprep.subr.bf16.mxu0 %v2294_v16  ;;  %v2327_v45 = vld [vmem:[%s3032_s1 + $0x1c8] sm:$0xff]   ;;  %v2335_v51 = vld [vmem:[%s3033_s0 + $0x98] ss:$36 sps:$4 sm:$0xff]   ;;  %v2336_v52 = vld [vmem:[%s3032_s1 + $0x150] sm:$0xff]  }
  0x12   :  { %2030 = vmatprep.subr.bf16.mxu1 %v2295_v17  ;;  %v2328_v46 = vld [vmem:[%s3032_s1 + $0x108] sm:$0xff]   ;;  %v2337_v53 = vld [vmem:[%s3032_s1 + $0x1d0] sm:$0xff]   ;;  %v2340_v56 = vld [vmem:[%s3033_s0 + $0xdc] ss:$36 sps:$4 sm:$0xff]  }
  0x13   :  { %v2329_v47 = vld [vmem:[%s3032_s1 + $0x188] sm:$0xff]   ;;  %v2338_v54 = vld [vmem:[%s3032_s1 + $0x110] sm:$0xff]   ;;  %v2344_v58 = vld [vmem:[%s3033_s0 + $0xd8] ss:$36 sps:$4 sm:$0xff]  }
  0x14   :  { %1967 = vmatpush3.bf16.msra.mxu0 %v2296_v18  ;;  %v2339_v55 = vld [vmem:[%s3032_s1 + $0x190] sm:$0xff]   ;;  %v2342_v57 = vld [vmem:[%s3033_s0 + $0xe4] ss:$36 sps:$4 sm:$0xff]   ;;  %v2346_v60 = vld [vmem:[%s3032_s1 + $0x158] sm:$0xff]  }
  0x15   :  { %2031 = vmatpush3.bf16.msra.mxu1 %v2297_v19  ;;  %1968 = vmatprep.subr.bf16.mxu0 %v2298_v20  ;;  %v2345_v59 = vld [vmem:[%s3033_s0 + $0xe0] ss:$36 sps:$4 sm:$0xff]   ;;  %v2347_v61 = vld [vmem:[%s3032_s1 + $0x1d8] sm:$0xff]   ;;  %v2352_v1 = vld [vmem:[%s3033_s0 + $0x12c] ss:$36 sps:$4 sm:$0xff]  }
  0x16   :  { %2032 = vmatprep.subr.bf16.mxu1 %v2299_v21  ;;  %v2348_v62 = vld [vmem:[%s3032_s1 + $0x118] sm:$0xff]   ;;  %v2350_v0 = vld [vmem:[%s3033_s0 + $0x124] ss:$36 sps:$4 sm:$0xff]   ;;  %v2360_v8 = vld [vmem:[%s3033_s0 + $0x16c] ss:$36 sps:$4 sm:$0xff]  }
  0x17   :  { %v2349_v63 = vld [vmem:[%s3032_s1 + $0x198] sm:$0xff]   ;;  %v2354_v2 = vld [vmem:[%s3033_s0 + $0x120] ss:$36 sps:$4 sm:$0xff]   ;;  %v2355_v4 = vld [vmem:[%s3033_s0 + $0x128] ss:$36 sps:$4 sm:$0xff]  }
  0x18   :  { %1969 = vmatpush3.bf16.msra.mxu0 %v2300_v22  ;;  %v2356_v3 = vld [vmem:[%s3032_s1 + $0x160] sm:$0xff]   ;;  %v2362_v9 = vld [vmem:[%s3033_s0 + $0x174] ss:$36 sps:$4 sm:$0xff]   ;;  %v2366_v10 = vld [vmem:[%s3032_s1 + $0x168] sm:$0xff]  }
  0x19   :  { %2033 = vmatpush3.bf16.msra.mxu1 %v2301_v23  ;;  %1970 = vmatprep.subr.bf16.mxu0 %v2302_v24  ;;  %v2357_v5 = vld [vmem:[%s3032_s1 + $0x1e0] sm:$0xff]   ;;  %v2367_v11 = vld [vmem:[%s3032_s1 + $0x1e8] sm:$0xff]   ;;  %v2365_v15 = vld [vmem:[%s3033_s0 + $0x170] ss:$36 sps:$4 sm:$0xff]  }
  0x1a   :  { %2034 = vmatprep.subr.bf16.mxu1 %v2303_v25  ;;  %v2358_v6 = vld [vmem:[%s3032_s1 + $0x120] sm:$0xff]   ;;  %v2364_v12 = vld [vmem:[%s3033_s0 + $0x168] ss:$36 sps:$4 sm:$0xff]   ;;  %v2370_v16 = vld [vmem:[%s3033_s0 + $0x1b4] ss:$36 sps:$4 sm:$0xff]  }
  0x1b   :  { %v2359_v7 = vld [vmem:[%s3032_s1 + $0x1a0] sm:$0xff]   ;;  %v2368_v13 = vld [vmem:[%s3032_s1 + $0x128] sm:$0xff]   ;;  %v2376_v18 = vld [vmem:[%s3032_s1 + $0x170] sm:$0xff]  }
  0x1c   :  { %1971 = vmatpush3.bf16.msra.mxu0 %v2304_v26  ;;  %v2369_v14 = vld [vmem:[%s3032_s1 + $0x1a8] sm:$0xff]   ;;  %v2372_v17 = vld [vmem:[%s3033_s0 + $0x1bc] ss:$36 sps:$4 sm:$0xff]   ;;  %v2377_v19 = vld [vmem:[%s3032_s1 + $0x1f0] sm:$0xff]  }
  0x1d   :  { %2035 = vmatpush3.bf16.msra.mxu1 %v2305_v27  ;;  %1972 = vmatprep.subr.bf16.mxu0 %v2306_v28  ;;  %v2378_v20 = vld [vmem:[%s3032_s1 + $0x130] sm:$0xff]   ;;  %v2375_v23 = vld [vmem:[%s3033_s0 + $0x1b8] ss:$36 sps:$4 sm:$0xff]   ;;  %v2382_v25 = vld [vmem:[%s3033_s0 + $0x204] ss:$36 sps:$4 sm:$0xff]  }
  0x1e   :  { %2036 = vmatprep.subr.bf16.mxu1 %v2307_v29  ;;  %v2379_v21 = vld [vmem:[%s3032_s1 + $0x1b0] sm:$0xff]   ;;  %v2380_v24 = vld [vmem:[%s3033_s0 + $0x1fc] ss:$36 sps:$4 sm:$0xff]  }
  0x1f   :  { %v2374_v22 = vld [vmem:[%s3033_s0 + $0x1b0] ss:$36 sps:$4 sm:$0xff]   ;;  %v2386_v26 = vld [vmem:[%s3032_s1 + $0x178] sm:$0xff]  }
  0x20   :  { %1973 = vmatpush3.bf16.msra.mxu0 %v2308_v30  ;;  %v2387_v27 = vld [vmem:[%s3032_s1 + $0x1f8] sm:$0xff]   ;;  %v2390_v35 = vld [vmem:[%s3033_s0 + $0x10] ss:$36 sps:$4 sm:$0xff]  }
  0x21   :  { %2037 = vmatpush3.bf16.msra.mxu1 %v2309_v31  ;;  %2086 = vmatprep.subr.bf16.mxu0 %v2316_v36  ;;  %v2388_v28 = vld [vmem:[%s3032_s1 + $0x138] sm:$0xff]   ;;  %v2385_v31 = vld [vmem:[%s3033_s0 + $0x200] ss:$36 sps:$4 sm:$0xff]  }
  0x22   :  { %2150 = vmatprep.subr.bf16.mxu1 %v2317_v37  ;;  %v2389_v29 = vld [vmem:[%s3032_s1 + $0x1b8] sm:$0xff]  }
  0x23   :  { %1108 = vmatmul.mubr.bf16.vlgmr.msra.gmra.mrb[0].mxu0 %v2310_v32  ;;  %v2384_v30 = vld [vmem:[%s3033_s0 + $0x1f8] ss:$36 sps:$4 sm:$0xff]   ;;  %v2396_v32 = vld [vmem:[%s3032_s1 + $0x200] sm:$0xff]  }
  0x24   :  { %1205 = vmatmul.mubr.bf16.vlgmr.msra.gmra.mrb[0].mxu1 %v2313_v34  ;;  %2087 = vmatpush3.bf16.msra.mxu0 %v2318_v38  ;;  %v2392_v33 = vld [vmem:[%s3033_s0 + $0x14] ss:$36 sps:$4 sm:$0xff]   ;;  %v2395_v34 = vld [vmem:[%s3033_s0 + $0x1c] ss:$36 sps:$4 sm:$0xff]   ;;  %v2399_v38 = vld [vmem:[%s3033_s0 + $0x64] ss:$36 sps:$4 sm:$0xff]  }
  0x25   :  { %2151 = vmatpush3.bf16.msra.mxu1 %v2319_v39  ;;  %1115 = vmatprep.mubr.bf16.mxu0 %v2320_v40  ;;  %v2393_v36 = vld [vmem:[%s3033_s0 + $0x18] ss:$36 sps:$4 sm:$0xff]   ;;  %v2403_v39 = vld [vmem:[%s3032_s1 + $0x208] sm:$0xff]   ;;  %v2410_v40 = vld [vmem:[%s3032_s1 + $0x210] sm:$0xff]  }
  0x26   :  { %1212 = vmatprep.mubr.bf16.mxu1 %v2322_v41  ;;  %2088 = vmatprep.subr.bf16.mxu0 %v2326_v44  ;;  %v2397_v37 = vld [vmem:[%s3033_s0 + $0x5c] ss:$36 sps:$4 sm:$0xff]   ;;  %v2406_v44 = vld [vmem:[%s3033_s0 + $0xac] ss:$36 sps:$4 sm:$0xff]  }
  0x27   :  { %2152 = vmatprep.subr.bf16.mxu1 %v2327_v45  ;;  %v2401_v41 = vld [vmem:[%s3033_s0 + $0x58] ss:$36 sps:$4 sm:$0xff]  }
  0x28   :  { %2089 = vmatpush3.bf16.msra.mxu0 %v2328_v46  ;;  %v2417_v45 = vld [vmem:[%s3032_s1 + $0x218] sm:$0xff]   ;;  %v2424_v46 = vld [vmem:[%s3032_s1 + $0x220] sm:$0xff]  }
  0x29   :  { %2153 = vmatpush3.bf16.msra.mxu1 %v2329_v47  ;;  %2090 = vmatprep.subr.bf16.mxu0 %v2336_v52  ;;  %v2408_v47 = vld [vmem:[%s3033_s0 + $0xa0] ss:$36 sps:$4 sm:$0xff]   ;;  %v2415_v52 = vld [vmem:[%s3033_s0 + $0xe8] ss:$36 sps:$4 sm:$0xff]  }
  0x2a   :  { %2154 = vmatprep.subr.bf16.mxu1 %v2337_v53  ;;  %v2438_v53 = vld [vmem:[%s3032_s1 + $0x230] sm:$0xff]  }
  0x2b   :  { %1116 = vmatmul.mubr.bf16.gmra.mrb[4].mxu0 %v2324_v42  ;;  %v2402_v42 = vld [vmem:[%s3033_s0 + $0x60] ss:$36 sps:$4 sm:$0xff]  }
  0x2c   :  { %1213 = vmatmul.mubr.bf16.gmra.mrb[4].mxu1 %v2325_v43  ;;  %1123 = vmatprep.mubr.bf16.mxu0 %v2330_v48  ;;  %v2404_v43 = vld [vmem:[%s3033_s0 + $0xa4] ss:$36 sps:$4 sm:$0xff]  }
  0x2d   :  { %1220 = vmatprep.mubr.bf16.mxu1 %v2332_v49  ;;  %2091 = vmatpush3.bf16.msra.mxu0 %v2338_v54  ;;  %v2409_v48 = vld [vmem:[%s3033_s0 + $0xa8] ss:$36 sps:$4 sm:$0xff]   ;;  %v2416_v54 = vld [vmem:[%s3033_s0 + $0xf0] ss:$36 sps:$4 sm:$0xff]  }
  0x2e   :  { %2155 = vmatpush3.bf16.msra.mxu1 %v2339_v55  ;;  %2092 = vmatprep.subr.bf16.mxu0 %v2346_v60  ;;  %v2411_v49 = vld [vmem:[%s3033_s0 + $0xec] ss:$36 sps:$4 sm:$0xff]   ;;  %v2418_v55 = vld [vmem:[%s3033_s0 + $0x134] ss:$36 sps:$4 sm:$0xff]   ;;  %v2425_v60 = vld [vmem:[%s3033_s0 + $0x17c] ss:$36 sps:$4 sm:$0xff]  }
  0x2f   :  { %2156 = vmatprep.subr.bf16.mxu1 %v2347_v61  ;;  %v2427_v61 = vld [vmem:[%s3033_s0 + $0x184] ss:$36 sps:$4 sm:$0xff]  }
  0x31   :  { %2093 = vmatpush3.bf16.msra.mxu0 %v2348_v62  ;;  %v2429_v62 = vld [vmem:[%s3033_s0 + $0x178] ss:$36 sps:$4 sm:$0xff]  }
  0x32   :  { %2157 = vmatpush3.bf16.msra.mxu1 %v2349_v63  ;;  %2094 = vmatprep.subr.bf16.mxu0 %v2356_v3  ;;  %v2430_v63 = vld [vmem:[%s3033_s0 + $0x180] ss:$36 sps:$4 sm:$0xff]   ;;  %v2437_v3 = vld [vmem:[%s3033_s0 + $0x1c8] ss:$36 sps:$4 sm:$0xff]  }
  0x33   :  { %1124 = vmatmul.mubr.bf16.gmra.mrb[8].mxu0 %v2334_v50  ;;  %2158 = vmatprep.subr.bf16.mxu1 %v2357_v5  ;;  %v2413_v50 = vld [vmem:[%s3033_s0 + $0xf4] ss:$36 sps:$4 sm:$0xff]  }
  0x34   :  { %1221 = vmatmul.mubr.bf16.gmra.mrb[8].mxu1 %v2335_v51  ;;  %1131 = vmatprep.mubr.bf16.mxu0 %v2340_v56  ;;  %v2431_v51 = vld [vmem:[%s3032_s1 + $0x228] sm:$0xff]   ;;  %v2420_v56 = vld [vmem:[%s3033_s0 + $0x13c] ss:$36 sps:$4 sm:$0xff]   ;;  %v2441_v5 = vld [vmem:[%s3033_s0 + $0x214] ss:$36 sps:$4 sm:$0xff]  }
  0x35   :  { %1228 = vmatprep.mubr.bf16.mxu1 %v2342_v57  ;;  %2095 = vmatpush3.bf16.msra.mxu0 %v2358_v6  ;;  %v2445_v57 = vld [vmem:[%s3032_s1 + $0x238] sm:$0xff]   ;;  %v2443_v6 = vld [vmem:[%s3033_s0 + $0x208] ss:$36 sps:$4 sm:$0xff]  }
  0x36   :  { %2159 = vmatpush3.bf16.msra.mxu1 %v2359_v7  ;;  %2096 = vmatprep.subr.bf16.mxu0 %v2366_v10  ;;  %v2444_v7 = vld [vmem:[%s3033_s0 + $0x210] ss:$36 sps:$4 sm:$0xff]   ;;  %v2448_v10 = vld [vmem:[%s3033_s0 + $0x68] ss:$36 sps:$4 sm:$0xff]  }
  0x37   :  { %2160 = vmatprep.subr.bf16.mxu1 %v2367_v11  ;;  %v2449_v11 = vld [vmem:[%s3033_s0 + $0x188] ss:$36 sps:$4 sm:$0xff]  }
  0x39   :  { %2097 = vmatpush3.bf16.msra.mxu0 %v2368_v13  ;;  %v2451_v13 = vld [vmem:[%s3033_s0 + $0x1d0] ss:$36 sps:$4 sm:$0xff]  }
  0x3a   :  { %2161 = vmatpush3.bf16.msra.mxu1 %v2369_v14  ;;  %2098 = vmatprep.subr.bf16.mxu0 %v2376_v18  ;;  %v2452_v14 = vld [vmem:[%s3033_s0 + $0xf8] ss:$36 sps:$4 sm:$0xff]  }
  0x3b   :  { %1132 = vmatmul.mubr.bf16.gmra.mrb[12].mxu0 %v2344_v58  ;;  %2162 = vmatprep.subr.bf16.mxu1 %v2377_v19  ;;  %v2422_v58 = vld [vmem:[%s3033_s0 + $0x130] ss:$36 sps:$4 sm:$0xff]  }
  0x3c   :  { %1229 = vmatmul.mubr.bf16.gmra.mrb[12].mxu1 %v2345_v59  ;;  %1139 = vmatprep.mubr.bf16.mxu0 %v2350_v0  ;;  %v2423_v59 = vld [vmem:[%s3033_s0 + $0x138] ss:$36 sps:$4 sm:$0xff]   ;;  %v2432_v0 = vld [vmem:[%s3033_s0 + $0x1c4] ss:$36 sps:$4 sm:$0xff]  }
  0x3d   :  { %1236 = vmatprep.mubr.bf16.mxu1 %v2352_v1  ;;  %2099 = vmatpush3.bf16.msra.mxu0 %v2378_v20  ;;  %v2434_v1 = vld [vmem:[%s3033_s0 + $0x1cc] ss:$36 sps:$4 sm:$0xff]  }
  0x3e   :  { %2163 = vmatpush3.bf16.msra.mxu1 %v2379_v21  ;;  %2100 = vmatprep.subr.bf16.mxu0 %v2386_v26 }
  0x3f   :  { %2164 = vmatprep.subr.bf16.mxu1 %v2387_v27 }
  0x41   :  { %2101 = vmatpush3.bf16.msra.mxu0 %v2388_v28 }
  0x42   :  { %2165 = vmatpush3.bf16.msra.mxu1 %v2389_v29  ;;  %2230 = vmatprep.subr.bf16.mxu0 %v2396_v32 }
  0x43   :  { %1140 = vmatmul.mubr.bf16.gmra.mrb[16].mxu0 %v2354_v2  ;;  %2262 = vmatprep.subr.bf16.mxu1 %v2396_v32  ;;  %v2436_v2 = vld [vmem:[%s3033_s0 + $0x1c0] ss:$36 sps:$4 sm:$0xff]  }
  0x44   :  { %1237 = vmatmul.mubr.bf16.gmra.mrb[16].mxu1 %v2355_v4  ;;  %1147 = vmatprep.mubr.bf16.mxu0 %v2360_v8  ;;  %v2439_v4 = vld [vmem:[%s3033_s0 + $0x20c] ss:$36 sps:$4 sm:$0xff]   ;;  %v2446_v8 = vld [vmem:[%s3033_s0 + $0x20] ss:$36 sps:$4 sm:$0xff]  }
  0x45   :  { %1244 = vmatprep.mubr.bf16.mxu1 %v2362_v9  ;;  %v2447_v9 = vld [vmem:[%s3033_s0 + $0x140] ss:$36 sps:$4 sm:$0xff]  }
  0x4b   :  { %1148 = vmatmul.mubr.bf16.gmra.mrb[20].mxu0 %v2364_v12  ;;  %v2450_v12 = vld [vmem:[%s3033_s0 + $0xb0] ss:$36 sps:$4 sm:$0xff]  }
  0x4c   :  { %1245 = vmatmul.mubr.bf16.gmra.mrb[20].mxu1 %v2365_v15  ;;  %1155 = vmatprep.mubr.bf16.mxu0 %v2370_v16  ;;  %v2453_v15 = vld [vmem:[%s3033_s0 + $0x218] ss:$36 sps:$4 sm:$0xff]  }
  0x4d   :  { %1252 = vmatprep.mubr.bf16.mxu1 %v2372_v17 }
  0x53   :  { %1156 = vmatmul.mubr.bf16.gmra.mrb[24].mxu0 %v2374_v22 }
  0x54   :  { %1253 = vmatmul.mubr.bf16.gmra.mrb[24].mxu1 %v2375_v23  ;;  %1163 = vmatprep.mubr.bf16.mxu0 %v2380_v24 }
  0x55   :  { %1260 = vmatprep.mubr.bf16.mxu1 %v2382_v25 }
  0x5b   :  { %1164 = vmatmul.mubr.bf16.gmra.mrb[28].mxu0 %v2384_v30 }
  0x5c   :  { %1261 = vmatmul.mubr.bf16.gmra.mrb[28].mxu1 %v2385_v31  ;;  %1301 = vmatprep.mubr.bf16.mxu0 %v2392_v33 }
  0x5d   :  { %1398 = vmatprep.mubr.bf16.mxu1 %v2395_v34 }
  0x63   :  { %1302 = vmatmul.mubr.bf16.vlgmr.msra.gmra.mrb[32].mxu0 %v2390_v35 }
  0x64   :  { %1399 = vmatmul.mubr.bf16.vlgmr.msra.gmra.mrb[32].mxu1 %v2393_v36  ;;  %2231 = vmatpush3.bf16.msra.mxu0 %v2396_v32 }
  0x65   :  { %2270 = vmatpush3.bf16.msra.mxu1 %v2396_v32  ;;  %1309 = vmatprep.mubr.bf16.mxu0 %v2397_v37 }
  0x66   :  { %1406 = vmatprep.mubr.bf16.mxu1 %v2399_v38  ;;  %2232 = vmatprep.subr.bf16.mxu0 %v2403_v39 }
  0x67   :  { %2263 = vmatprep.subr.bf16.mxu1 %v2403_v39 }
  0x68   :  { %2233 = vmatpush3.bf16.msra.mxu0 %v2403_v39 }
  0x69   :  { %2271 = vmatpush3.bf16.msra.mxu1 %v2403_v39  ;;  %2234 = vmatprep.subr.bf16.mxu0 %v2410_v40 }
  0x6a   :  { %2264 = vmatprep.subr.bf16.mxu1 %v2410_v40 }
  0x6b   :  { %1310 = vmatmul.mubr.bf16.gmra.mrb[36].mxu0 %v2401_v41 }
  0x6c   :  { %1407 = vmatmul.mubr.bf16.gmra.mrb[36].mxu1 %v2402_v42  ;;  %1317 = vmatprep.mubr.bf16.mxu0 %v2404_v43 }
  0x6d   :  { %1414 = vmatprep.mubr.bf16.mxu1 %v2406_v44  ;;  %2235 = vmatpush3.bf16.msra.mxu0 %v2410_v40 }
  0x6e   :  { %2272 = vmatpush3.bf16.msra.mxu1 %v2410_v40  ;;  %2236 = vmatprep.subr.bf16.mxu0 %v2417_v45 }
  0x6f   :  { %2265 = vmatprep.subr.bf16.mxu1 %v2417_v45 }
  0x71   :  { %2237 = vmatpush3.bf16.msra.mxu0 %v2417_v45 }
  0x72   :  { %2273 = vmatpush3.bf16.msra.mxu1 %v2417_v45  ;;  %2238 = vmatprep.subr.bf16.mxu0 %v2424_v46 }
  0x73   :  { %1318 = vmatmul.mubr.bf16.gmra.mrb[40].mxu0 %v2408_v47  ;;  %2266 = vmatprep.subr.bf16.mxu1 %v2424_v46 }
  0x74   :  { %1415 = vmatmul.mubr.bf16.gmra.mrb[40].mxu1 %v2409_v48  ;;  %1325 = vmatprep.mubr.bf16.mxu0 %v2411_v49 }
  0x75   :  { %1422 = vmatprep.mubr.bf16.mxu1 %v2413_v50  ;;  %2239 = vmatpush3.bf16.msra.mxu0 %v2424_v46 }
  0x76   :  { %2274 = vmatpush3.bf16.msra.mxu1 %v2424_v46  ;;  %2240 = vmatprep.subr.bf16.mxu0 %v2431_v51 }
  0x77   :  { %2267 = vmatprep.subr.bf16.mxu1 %v2431_v51 }
  0x79   :  { %2241 = vmatpush3.bf16.msra.mxu0 %v2431_v51 }
  0x7a   :  { %2275 = vmatpush3.bf16.msra.mxu1 %v2431_v51  ;;  %2242 = vmatprep.subr.bf16.mxu0 %v2438_v53 }
  0x7b   :  { %1326 = vmatmul.mubr.bf16.gmra.mrb[44].mxu0 %v2415_v52  ;;  %2268 = vmatprep.subr.bf16.mxu1 %v2438_v53 }
  0x7c   :  { %1423 = vmatmul.mubr.bf16.gmra.mrb[44].mxu1 %v2416_v54  ;;  %1333 = vmatprep.mubr.bf16.mxu0 %v2418_v55 }
  0x7d   :  { %1430 = vmatprep.mubr.bf16.mxu1 %v2420_v56  ;;  %2243 = vmatpush3.bf16.msra.mxu0 %v2438_v53 }
  0x7e   :  { %2276 = vmatpush3.bf16.msra.mxu1 %v2438_v53  ;;  %2244 = vmatprep.subr.bf16.mxu0 %v2445_v57 }
  0x7f   :  { %2269 = vmatprep.subr.bf16.mxu1 %v2445_v57 }
  0x81   :  { %2245 = vmatpush3.bf16.msra.mxu0 %v2445_v57 }
  0x82   :  { %2277 = vmatpush3.bf16.msra.mxu1 %v2445_v57 }
  0x83   :  { %1334 = vmatmul.mubr.bf16.gmra.mrb[48].mxu0 %v2422_v58 }
  0x84   :  { %1431 = vmatmul.mubr.bf16.gmra.mrb[48].mxu1 %v2423_v59  ;;  %1341 = vmatprep.mubr.bf16.mxu0 %v2425_v60 }
  0x85   :  { %1438 = vmatprep.mubr.bf16.mxu1 %v2427_v61 }
  0x8b   :  { %1342 = vmatmul.mubr.bf16.gmra.mrb[52].mxu0 %v2429_v62 }
  0x8c   :  { %1439 = vmatmul.mubr.bf16.gmra.mrb[52].mxu1 %v2430_v63  ;;  %1349 = vmatprep.mubr.bf16.mxu0 %v2432_v0 }
  0x8d   :  { %1446 = vmatprep.mubr.bf16.mxu1 %v2434_v1 }
  0x93   :  { %1350 = vmatmul.mubr.bf16.gmra.mrb[56].mxu0 %v2436_v2 }
  0x94   :  { %1447 = vmatmul.mubr.bf16.gmra.mrb[56].mxu1 %v2437_v3  ;;  %1357 = vmatprep.mubr.bf16.mxu0 %v2439_v4 }
  0x95   :  { %1454 = vmatprep.mubr.bf16.mxu1 %v2441_v5 }
  0x9b   :  { %1358 = vmatmul.mubr.bf16.gmra.mrb[60].mxu0 %v2443_v6 }
  0x9c   :  { %1455 = vmatmul.mubr.bf16.gmra.mrb[60].mxu1 %v2444_v7  ;;  %2246 = vmatprep.mubr.bf16.mxu0 %v2446_v8 }
  0x9d   :  { %2254 = vmatprep.mubr.bf16.mxu1 %v2447_v9 }
  0xa3   :  { %2247 = vmatmul.mubr.bf16.vlgmr.msra.gmra.mrb[64].mxu0 %v2448_v10 }
  0xa4   :  { %2255 = vmatmul.mubr.bf16.vlgmr.msra.gmra.mrb[64].mxu1 %v2449_v11  ;;  %2250 = vmatprep.mubr.bf16.mxu0 %v2450_v12 }
  0xa5   :  { %2258 = vmatprep.mubr.bf16.mxu1 %v2451_v13 }
  0xab   :  { %2251 = vmatmul.mubr.bf16.gmra.mrb[68].mxu0 %v2452_v14 }
  0xac   :  { %2259 = vmatmul.mubr.bf16.gmra.mrb[68].mxu1 %v2453_v15 }
  0xf6   :  { %v1974_v16 = vpop.f32.mrb[0].mxu0 }
  0xf7   :  { %v2038_v17 = vpop.f32.mrb[0].mxu1  ;;  %v1975_v18 = vpop.f32.mrb[1].mxu0 }
  0xf8   :  { %v1976_v19 = vadd.f32 %v1975_v18, %v1974_v16  ;;  %v2039_v20 = vpop.f32.mrb[1].mxu1  ;;  %v1977_v21 = vpop.f32.mrb[2].mxu0 }
  0xf9   :  { %v2040_v22 = vadd.f32 %v2039_v20, %v2038_v17  ;;  %v2041_v23 = vpop.f32.mrb[2].mxu1  ;;  %v1978_v24 = vpop.f32.mrb[3].mxu0 }
  0xfa   :  { %v1979_v25 = vadd.f32 %v1978_v24, %v1977_v21  ;;  %v2042_v26 = vpop.f32.mrb[3].mxu1 }
  0xfb   :  { %v2906_v27 = vadd.f32 %v2040_v22, %v1976_v19  ;;  %v2043_v28 = vadd.f32 %v2042_v26, %v2041_v23 }
  0xfd   :  { %v2908_v29 = vadd.f32 %v2043_v28, %v1979_v25 }
  0xfe   :  { %v1980_v30 = vpop.f32.mrb[4].mxu0 }
  0xff   :  { %v2044_v31 = vpop.f32.mrb[4].mxu1  ;;  %v1981_v32 = vpop.f32.mrb[5].mxu0 }
 0x100   :  { %v1982_v33 = vadd.f32 %v1981_v32, %v1980_v30  ;;  %v2045_v34 = vpop.f32.mrb[5].mxu1  ;;  %v1983_v35 = vpop.f32.mrb[6].mxu0 }
 0x101   :  { %v2046_v36 = vadd.f32 %v2045_v34, %v2044_v31  ;;  %v2047_v37 = vpop.f32.mrb[6].mxu1  ;;  %v1984_v38 = vpop.f32.mrb[7].mxu0 }
 0x102   :  { %v1985_v39 = vadd.f32 %v1984_v38, %v1983_v35  ;;  %v2048_v40 = vpop.f32.mrb[7].mxu1 }
 0x103   :  { %v2910_v41 = vadd.f32 %v2046_v36, %v1982_v33  ;;  %v2049_v42 = vadd.f32 %v2048_v40, %v2047_v37 }
 0x105   :  { %v2912_v43 = vadd.f32 %v2049_v42, %v1985_v39 }
 0x106   :  { %v1986_v44 = vpop.f32.mrb[8].mxu0 }
 0x107   :  { %v2050_v45 = vpop.f32.mrb[8].mxu1  ;;  %v1987_v46 = vpop.f32.mrb[9].mxu0 }
 0x108   :  { %v1988_v47 = vadd.f32 %v1987_v46, %v1986_v44  ;;  %v2051_v48 = vpop.f32.mrb[9].mxu1  ;;  %v1989_v49 = vpop.f32.mrb[10].mxu0 }
 0x109   :  { %v2052_v50 = vadd.f32 %v2051_v48, %v2050_v45  ;;  %v2053_v51 = vpop.f32.mrb[10].mxu1  ;;  %v1990_v52 = vpop.f32.mrb[11].mxu0 }
 0x10a   :  { %v1991_v53 = vadd.f32 %v1990_v52, %v1989_v49  ;;  %v2054_v54 = vpop.f32.mrb[11].mxu1 }
 0x10b   :  { %v2914_v55 = vadd.f32 %v2052_v50, %v1988_v47  ;;  %v2055_v56 = vadd.f32 %v2054_v54, %v2053_v51 }
 0x10d   :  { %v2916_v57 = vadd.f32 %v2055_v56, %v1991_v53 }
 0x10e   :  { %v1992_v58 = vpop.f32.mrb[12].mxu0 }
 0x10f   :  { %v2056_v59 = vpop.f32.mrb[12].mxu1  ;;  %v1993_v60 = vpop.f32.mrb[13].mxu0 }
 0x110   :  { %v1994_v61 = vadd.f32 %v1993_v60, %v1992_v58  ;;  %v2057_v62 = vpop.f32.mrb[13].mxu1  ;;  %v1995_v63 = vpop.f32.mrb[14].mxu0 }
 0x111   :  { %v2058_v0 = vadd.f32 %v2057_v62, %v2056_v59  ;;  %v2059_v1 = vpop.f32.mrb[14].mxu1  ;;  %v1996_v2 = vpop.f32.mrb[15].mxu0 }
 0x112   :  { %v1997_v3 = vadd.f32 %v1996_v2, %v1995_v63  ;;  %v2060_v4 = vpop.f32.mrb[15].mxu1 }
 0x113   :  { %v2918_v5 = vadd.f32 %v2058_v0, %v1994_v61  ;;  %v2061_v6 = vadd.f32 %v2060_v4, %v2059_v1 }
 0x115   :  { %v2920_v7 = vadd.f32 %v2061_v6, %v1997_v3 }
 0x116   :  { %v1998_v8 = vpop.f32.mrb[16].mxu0 }
 0x117   :  { %v2062_v9 = vpop.f32.mrb[16].mxu1  ;;  %v1999_v10 = vpop.f32.mrb[17].mxu0 }
 0x118   :  { %v2000_v11 = vadd.f32 %v1999_v10, %v1998_v8  ;;  %v2063_v12 = vpop.f32.mrb[17].mxu1  ;;  %v2001_v13 = vpop.f32.mrb[18].mxu0 }
 0x119   :  { %v2064_v14 = vadd.f32 %v2063_v12, %v2062_v9  ;;  %v2065_v15 = vpop.f32.mrb[18].mxu1  ;;  %v2002_v16 = vpop.f32.mrb[19].mxu0 }
 0x11a   :  { %v2003_v17 = vadd.f32 %v2002_v16, %v2001_v13  ;;  %v2066_v18 = vpop.f32.mrb[19].mxu1 }
 0x11b   :  { %v2922_v19 = vadd.f32 %v2064_v14, %v2000_v11  ;;  %v2067_v20 = vadd.f32 %v2066_v18, %v2065_v15 }
 0x11d   :  { %v2924_v21 = vadd.f32 %v2067_v20, %v2003_v17 }
 0x11e   :  { %v2004_v22 = vpop.f32.mrb[20].mxu0 }
 0x11f   :  { %v2068_v23 = vpop.f32.mrb[20].mxu1  ;;  %v2005_v24 = vpop.f32.mrb[21].mxu0 }
 0x120   :  { %v2006_v25 = vadd.f32 %v2005_v24, %v2004_v22  ;;  %v2069_v26 = vpop.f32.mrb[21].mxu1  ;;  %v2007_v28 = vpop.f32.mrb[22].mxu0 }
 0x121   :  { %v2070_v30 = vadd.f32 %v2069_v26, %v2068_v23  ;;  %v2071_v31 = vpop.f32.mrb[22].mxu1  ;;  %v2008_v32 = vpop.f32.mrb[23].mxu0 }
 0x122   :  { %v2009_v33 = vadd.f32 %v2008_v32, %v2007_v28  ;;  %v2072_v34 = vpop.f32.mrb[23].mxu1 }
 0x123   :  { %v2926_v35 = vadd.f32 %v2070_v30, %v2006_v25  ;;  %v2073_v36 = vadd.f32 %v2072_v34, %v2071_v31 }
 0x125   :  { %v2928_v37 = vadd.f32 %v2073_v36, %v2009_v33 }
 0x126   :  { %v2010_v38 = vpop.f32.mrb[24].mxu0 }
 0x127   :  { %v2074_v39 = vpop.f32.mrb[24].mxu1  ;;  %v2011_v40 = vpop.f32.mrb[25].mxu0 }
 0x128   :  { %v2012_v42 = vadd.f32 %v2011_v40, %v2010_v38  ;;  %v2075_v44 = vpop.f32.mrb[25].mxu1  ;;  %v2013_v45 = vpop.f32.mrb[26].mxu0 }
 0x129   :  { %v2076_v46 = vadd.f32 %v2075_v44, %v2074_v39  ;;  %v2077_v47 = vpop.f32.mrb[26].mxu1  ;;  %v2014_v48 = vpop.f32.mrb[27].mxu0 }
 0x12a   :  { %v2015_v49 = vadd.f32 %v2014_v48, %v2013_v45  ;;  %v2078_v50 = vpop.f32.mrb[27].mxu1 }
 0x12b   :  { %v2930_v51 = vadd.f32 %v2076_v46, %v2012_v42  ;;  %v2079_v52 = vadd.f32 %v2078_v50, %v2077_v47 }
 0x12d   :  { %v2932_v53 = vadd.f32 %v2079_v52, %v2015_v49 }
 0x12e   :  { %v2016_v54 = vpop.f32.mrb[28].mxu0 }
 0x12f   :  { %v2080_v56 = vpop.f32.mrb[28].mxu1  ;;  %v2017_v58 = vpop.f32.mrb[29].mxu0 }
 0x130   :  { %v2018_v59 = vadd.f32 %v2017_v58, %v2016_v54  ;;  %v2081_v60 = vpop.f32.mrb[29].mxu1  ;;  %v2019_v61 = vpop.f32.mrb[30].mxu0 }
 0x131   :  { %v2082_v62 = vadd.f32 %v2081_v60, %v2080_v56  ;;  %v2083_v63 = vpop.f32.mrb[30].mxu1  ;;  %v2020_v0 = vpop.f32.mrb[31].mxu0 }
 0x132   :  { %v2021_v1 = vadd.f32 %v2020_v0, %v2019_v61  ;;  %v2084_v2 = vpop.f32.mrb[31].mxu1 }
 0x133   :  { %v2934_v3 = vadd.f32 %v2082_v62, %v2018_v59  ;;  %v2085_v4 = vadd.f32 %v2084_v2, %v2083_v63 }
 0x135   :  { %v2936_v6 = vadd.f32 %v2085_v4, %v2021_v1 }
 0x136   :  { %v2102_v8 = vpop.f32.mrb[32].mxu0 }
 0x137   :  { %v2166_v9 = vpop.f32.mrb[32].mxu1  ;;  %v2103_v10 = vpop.f32.mrb[33].mxu0 }
 0x138   :  { %v2104_v11 = vadd.f32 %v2103_v10, %v2102_v8  ;;  %v2167_v12 = vpop.f32.mrb[33].mxu1  ;;  %v2105_v13 = vpop.f32.mrb[34].mxu0 }
 0x139   :  { %v2168_v14 = vadd.f32 %v2167_v12, %v2166_v9  ;;  %v2169_v15 = vpop.f32.mrb[34].mxu1  ;;  %v2106_v16 = vpop.f32.mrb[35].mxu0 }
 0x13a   :  { %v1304_v17 = vadd.f32 %v2104_v11, %v2906_v27  ;;  %v2107_v18 = vadd.f32 %v2106_v16, %v2105_v13  ;;  %v2170_v20 = vpop.f32.mrb[35].mxu1 }
 0x13b   :  { %v2171_v22 = vadd.f32 %v2170_v20, %v2169_v15 }
 0x13c   :  { %v1307_v23 = vadd.f32 %v2107_v18, %v2908_v29  ;;  %v2940_v24 = vadd.f32 %v2168_v14, %v1304_v17 }
 0x13e   :  { %v2108_v25 = vpop.f32.mrb[36].mxu0  ;;  %v2942_v26 = vadd.f32 %v2171_v22, %v1307_v23 }
 0x13f   :  { %v2172_v28 = vpop.f32.mrb[36].mxu1  ;;  %v2109_v30 = vpop.f32.mrb[37].mxu0 }
 0x140   :  { %v2110_v31 = vadd.f32 %v2109_v30, %v2108_v25  ;;  %v2173_v32 = vpop.f32.mrb[37].mxu1  ;;  %v2111_v33 = vpop.f32.mrb[38].mxu0 }
 0x141   :  { %v2174_v34 = vadd.f32 %v2173_v32, %v2172_v28  ;;  %v2175_v36 = vpop.f32.mrb[38].mxu1  ;;  %v2112_v38 = vpop.f32.mrb[39].mxu0 }
 0x142   :  { %v1312_v27 = vadd.f32 %v2110_v31, %v2910_v41  ;;  %v2113_v39 = vadd.f32 %v2112_v38, %v2111_v33  ;;  %v2176_v40 = vpop.f32.mrb[39].mxu1 }
 0x143   :  { %v2177_v42 = vadd.f32 %v2176_v40, %v2175_v36 }
 0x144   :  { %v1315_v29 = vadd.f32 %v2113_v39, %v2912_v43  ;;  %v2946_v44 = vadd.f32 %v2174_v34, %v1312_v27 }
 0x146   :  { %v2114_v45 = vpop.f32.mrb[40].mxu0  ;;  %v2948_v46 = vadd.f32 %v2177_v42, %v1315_v29 }
 0x147   :  { %v2178_v47 = vpop.f32.mrb[40].mxu1  ;;  %v2115_v48 = vpop.f32.mrb[41].mxu0 }
 0x148   :  { %v2116_v49 = vadd.f32 %v2115_v48, %v2114_v45  ;;  %v2179_v50 = vpop.f32.mrb[41].mxu1  ;;  %v2117_v52 = vpop.f32.mrb[42].mxu0 }
 0x149   :  { %v2180_v54 = vadd.f32 %v2179_v50, %v2178_v47  ;;  %v2181_v56 = vpop.f32.mrb[42].mxu1  ;;  %v2118_v58 = vpop.f32.mrb[43].mxu0 }
 0x14a   :  { %v1320_v41 = vadd.f32 %v2116_v49, %v2914_v55  ;;  %v2119_v59 = vadd.f32 %v2118_v58, %v2117_v52  ;;  %v2182_v60 = vpop.f32.mrb[43].mxu1 }
 0x14b   :  { %v2183_v61 = vadd.f32 %v2182_v60, %v2181_v56 }
 0x14c   :  { %v1323_v43 = vadd.f32 %v2119_v59, %v2916_v57  ;;  %v2952_v62 = vadd.f32 %v2180_v54, %v1320_v41 }
 0x14e   :  { %v2120_v63 = vpop.f32.mrb[44].mxu0  ;;  %v2954_v0 = vadd.f32 %v2183_v61, %v1323_v43 }
 0x14f   :  { %v2184_v1 = vpop.f32.mrb[44].mxu1  ;;  %v2121_v2 = vpop.f32.mrb[45].mxu0 }
 0x150   :  { %v2122_v4 = vadd.f32 %v2121_v2, %v2120_v63  ;;  %v2185_v8 = vpop.f32.mrb[45].mxu1  ;;  %v2123_v9 = vpop.f32.mrb[46].mxu0 }
 0x151   :  { %v2186_v10 = vadd.f32 %v2185_v8, %v2184_v1  ;;  %v2187_v11 = vpop.f32.mrb[46].mxu1  ;;  %v2124_v12 = vpop.f32.mrb[47].mxu0 }
 0x152   :  { %v1328_v55 = vadd.f32 %v2122_v4, %v2918_v5  ;;  %v2125_v13 = vadd.f32 %v2124_v12, %v2123_v9  ;;  %v2188_v14 = vpop.f32.mrb[47].mxu1 }
 0x153   :  { %v2189_v15 = vadd.f32 %v2188_v14, %v2187_v11 }
 0x154   :  { %v1331_v57 = vadd.f32 %v2125_v13, %v2920_v7  ;;  %v2958_v16 = vadd.f32 %v2186_v10, %v1328_v55 }
 0x156   :  { %v2126_v17 = vpop.f32.mrb[48].mxu0  ;;  %v2960_v18 = vadd.f32 %v2189_v15, %v1331_v57 }
 0x157   :  { %v2190_v20 = vpop.f32.mrb[48].mxu1  ;;  %v2127_v22 = vpop.f32.mrb[49].mxu0 }
 0x158   :  { %v2128_v23 = vadd.f32 %v2127_v22, %v2126_v17  ;;  %v2191_v25 = vpop.f32.mrb[49].mxu1  ;;  %v2129_v28 = vpop.f32.mrb[50].mxu0 }
 0x159   :  { %v2192_v30 = vadd.f32 %v2191_v25, %v2190_v20  ;;  %v2193_v31 = vpop.f32.mrb[50].mxu1  ;;  %v2130_v32 = vpop.f32.mrb[51].mxu0 }
 0x15a   :  { %v1336_v5 = vadd.f32 %v2128_v23, %v2922_v19  ;;  %v2131_v33 = vadd.f32 %v2130_v32, %v2129_v28  ;;  %v2194_v34 = vpop.f32.mrb[51].mxu1 }
 0x15b   :  { %v2195_v36 = vadd.f32 %v2194_v34, %v2193_v31 }
 0x15c   :  { %v1339_v7 = vadd.f32 %v2131_v33, %v2924_v21  ;;  %v1433_v38 = vadd.f32 %v2192_v30, %v1336_v5  ;;  %v2979_v33 = vld [vmem:[%s3034_s2] ss:$0 sm:$0xff] }
 0x15e   :  { %v2132_v27 = vpop.f32.mrb[52].mxu0  ;;  %v2964_v39 = vadd.f32 %v2195_v36, %v1339_v7 }
 0x15f   :  { %v2196_v40 = vpop.f32.mrb[52].mxu1  ;;  %v2133_v42 = vpop.f32.mrb[53].mxu0 }
 0x160   :  { %v2134_v29 = vadd.f32 %v2133_v42, %v2132_v27  ;;  %v2197_v45 = vpop.f32.mrb[53].mxu1  ;;  %v2135_v47 = vpop.f32.mrb[54].mxu0 }
 0x161   :  { %v2198_v48 = vadd.f32 %v2197_v45, %v2196_v40  ;;  %v2199_v49 = vpop.f32.mrb[54].mxu1  ;;  %v2136_v50 = vpop.f32.mrb[55].mxu0 }
 0x162   :  { %v1344_v52 = vadd.f32 %v2134_v29, %v2926_v35  ;;  %v2137_v19 = vadd.f32 %v2136_v50, %v2135_v47  ;;  %v2200_v54 = vpop.f32.mrb[55].mxu1 }
 0x163   :  { %v2201_v56 = vadd.f32 %v2200_v54, %v2199_v49 }
 0x164   :  { %v1347_v58 = vadd.f32 %v2137_v19, %v2928_v37  ;;  %v1441_v21 = vadd.f32 %v2198_v48, %v1344_v52 }
 0x166   :  { %v2138_v41 = vpop.f32.mrb[56].mxu0  ;;  %v1444_v59 = vadd.f32 %v2201_v56, %v1347_v58 }
 0x167   :  { %v2202_v60 = vpop.f32.mrb[56].mxu1  ;;  %v2139_v61 = vpop.f32.mrb[57].mxu0 }
 0x168   :  { %v2140_v43 = vadd.f32 %v2139_v61, %v2138_v41  ;;  %v2203_v63 = vpop.f32.mrb[57].mxu1  ;;  %v2141_v1 = vpop.f32.mrb[58].mxu0 }
 0x169   :  { %v2204_v2 = vadd.f32 %v2203_v63, %v2202_v60  ;;  %v2205_v4 = vpop.f32.mrb[58].mxu1  ;;  %v2142_v8 = vpop.f32.mrb[59].mxu0 }
 0x16a   :  { %v1352_v9 = vadd.f32 %v2140_v43, %v2930_v51  ;;  %v2143_v10 = vadd.f32 %v2142_v8, %v2141_v1  ;;  %v2206_v35 = vpop.f32.mrb[59].mxu1 }
 0x16b   :  { %v2207_v11 = vadd.f32 %v2206_v35, %v2205_v4 }
 0x16c   :  { %v1355_v12 = vadd.f32 %v2143_v10, %v2932_v53  ;;  %v2970_v55 = vadd.f32 %v2204_v2, %v1352_v9 }
 0x16e   :  { %v2144_v37 = vpop.f32.mrb[60].mxu0  ;;  %v2972_v13 = vadd.f32 %v2207_v11, %v1355_v12 }
 0x16f   :  { %v2208_v14 = vpop.f32.mrb[60].mxu1  ;;  %v2145_v15 = vpop.f32.mrb[61].mxu0 }
 0x170   :  { %v2146_v57 = vadd.f32 %v2145_v15, %v2144_v37  ;;  %v2209_v17 = vpop.f32.mrb[61].mxu1  ;;  %v2147_v20 = vpop.f32.mrb[62].mxu0 }
 0x171   :  { %v2210_v22 = vadd.f32 %v2209_v17, %v2208_v14  ;;  %v2211_v23 = vpop.f32.mrb[62].mxu1  ;;  %v2148_v25 = vpop.f32.mrb[63].mxu0 }
 0x172   :  { %v1360_v51 = vadd.f32 %v2146_v57, %v2934_v3  ;;  %v2149_v28 = vadd.f32 %v2148_v25, %v2147_v20  ;;  %v2212_v30 = vpop.f32.mrb[63].mxu1 }
 0x173   :  { %v2213_v31 = vadd.f32 %v2212_v30, %v2211_v23 }
 0x174   :  { %v1363_v53 = vadd.f32 %v2149_v28, %v2936_v6  ;;  %v1457_v32 = vadd.f32 %v2210_v22, %v1360_v51 }
 0x176   :  { %v2248_v5 = vpop.f32.mrb[64].mxu0  ;;  %v1460_v34 = vadd.f32 %v2213_v31, %v1363_v53 }
 0x177   :  { %v1506_v36 = vadd.f32 %v2248_v5, %v2946_v44  ;;  %v2256_v7 = vpop.f32.mrb[64].mxu1  ;;  %v1497_v27 = vpop.f32.mrb[65].mxu0 }
 0x178   :  { %v1538_v40 = vadd.f32 %v2256_v7, %v1441_v21  ;;  %v1498_v3 = vadd.f32 %v1497_v27, %v2940_v24  ;;  %v1529_v42 = vpop.f32.mrb[65].mxu1  ;;  %v2249_v29 = vpop.f32.mrb[66].mxu0 }
 0x179   :  { %v1620_v45 = vadd.f32 %v2979_v33, %v1506_v36  ;;  %v1530_v6 = vadd.f32 %v1529_v42, %v1433_v38  ;;  %v1509_v47 = vadd.f32 %v2249_v29, %v2948_v46  ;;  %v2257_v48 = vpop.f32.mrb[66].mxu1  ;;  %v1500_v49 = vpop.f32.mrb[67].mxu0 }
 0x17a   :  { %v1628_v50 = vadd.f32 %v2979_v33, %v1538_v40  ;;  %v1618_v52 = vadd.f32 %v2979_v33, %v1498_v3  ;;  %v1541_v19 = vadd.f32 %v2257_v48, %v1444_v59  ;;  %v1501_v44 = vadd.f32 %v1500_v49, %v2942_v26  ;;  %v1532_v54 = vpop.f32.mrb[67].mxu1 }
 0x17b   :  { %v1626_v56 = vadd.f32 %v2979_v33, %v1530_v6  ;;  %v1621_v24 = vadd.f32 %v2979_v33, %v1509_v47  ;;  %v1533_v58 = vadd.f32 %v1532_v54, %v2964_v39  ;;  %v1636_v21 = vmax.f32 %v1620_v45, 0.0 }
 0x17c   :  { %v1629_v38 = vadd.f32 %v2979_v33, %v1541_v19  ;;  %v1619_v46 = vadd.f32 %v2979_v33, %v1501_v44  ;;  %v1644_v61 = vmax.f32 %v1628_v50, 0.0  ;;  %v1634_v43 = vmax.f32 %v1618_v52, 0.0 }
 0x17d   :  { %v1637_v41 = vmax.f32 %v1621_v24, 0.0  ;;  %v1627_v60 = vadd.f32 %v2979_v33, %v1533_v58  ;;  %v1642_v1 = vmax.f32 %v1626_v56, 0.0 }
 0x17e   :  { %v1645_v59 = vmax.f32 %v1629_v38, 0.0  ;;  %v1635_v63 = vmax.f32 %v1619_v46, 0.0  ;;  %v2252_v26 = vpop.f32.mrb[68].mxu0 }
 0x17f   :  { %v1919_v2 = vpack.c.bf16 %v1637_v41, %v1636_v21  ;;  %v1643_v4 = vmax.f32 %v1627_v60, 0.0  ;;  %v1522_v8 = vadd.f32 %v2252_v26, %v2958_v16  ;;  %v2260_v9 = vpop.f32.mrb[68].mxu1  ;;  %v1513_v39 = vpop.f32.mrb[69].mxu0 }
 0x180   :  { %v1939_v10 = vpack.c.bf16 %v1645_v59, %v1644_v61  ;;  %v1914_v35 = vpack.c.bf16 %v1635_v63, %v1634_v43  ;;  %v1554_v11 = vadd.f32 %v2260_v9, %v1457_v32  ;;  %v1514_v12 = vadd.f32 %v1513_v39, %v2952_v62  ;;  %v1545_v37 = vpop.f32.mrb[69].mxu1  ;;  %v2253_v14 = vpop.f32.mrb[70].mxu0 }
 0x181   :  { %1951 = vst [vmem:[%s3035_s3 + $0x8] sm:$0xff] %v1919_v2   ;;  %v1934_v15 = vpack.c.bf16 %v1643_v4, %v1642_v1  ;;  %v1624_v57 = vadd.f32 %v2979_v33, %v1522_v8  ;;  %v1546_v17 = vadd.f32 %v1545_v37, %v2970_v55  ;;  %v1525_v16 = vadd.f32 %v2253_v14, %v2960_v18  ;;  %v2261_v20 = vpop.f32.mrb[70].mxu1  ;;  %v1516_v22 = vpop.f32.mrb[71].mxu0 }
 0x182   :  { %1955 = vst [vmem:[%s3035_s3 + $0x28] sm:$0xff] %v1939_v10   ;;  %1915 = vst [vmem:[%s3035_s3] sm:$0xff] %v1914_v35   ;;  %v1632_v62 = vadd.f32 %v2979_v33, %v1554_v11  ;;  %v1622_v23 = vadd.f32 %v2979_v33, %v1514_v12  ;;  %v1557_v25 = vadd.f32 %v2261_v20, %v1460_v34  ;;  %v1548_v55 = vpop.f32.mrb[71].mxu1 }
 0x183   :  { %v1517_v51 = vadd.f32 %v1516_v22, %v2954_v0  ;;  %1954 = vst [vmem:[%s3035_s3 + $0x20] sm:$0xff] %v1934_v15   ;;  %v1630_v18 = vadd.f32 %v2979_v33, %v1546_v17  ;;  %v1625_v28 = vadd.f32 %v2979_v33, %v1525_v16  ;;  %v1549_v30 = vadd.f32 %v1548_v55, %v2972_v13 }
 0x184   :  { %v1633_v31 = vadd.f32 %v2979_v33, %v1557_v25  ;;  %v1640_v32 = vmax.f32 %v1624_v57, 0.0  ;;  %v1648_v0 = vmax.f32 %v1632_v62, 0.0  ;;  %v1638_v36 = vmax.f32 %v1622_v23, 0.0 }
 0x185   :  { %v1623_v53 = vadd.f32 %v2979_v33, %v1517_v51  ;;  %v1641_v5 = vmax.f32 %v1625_v28, 0.0  ;;  %v1631_v34 = vadd.f32 %v2979_v33, %v1549_v30  ;;  %v1646_v40 = vmax.f32 %v1630_v18, 0.0 }
 0x186   :  { %v1649_v7 = vmax.f32 %v1633_v31, 0.0 }
 0x187   :  { %v1639_v27 = vmax.f32 %v1623_v53, 0.0  ;;  %v1929_v3 = vpack.c.bf16 %v1641_v5, %v1640_v32  ;;  %v1647_v42 = vmax.f32 %v1631_v34, 0.0 }
 0x188   :  { %v1949_v29 = vpack.c.bf16 %v1649_v7, %v1648_v0 }
 0x189   :  { %v1924_v45 = vpack.c.bf16 %v1639_v27, %v1638_v36  ;;  %1953 = vst [vmem:[%s3035_s3 + $0x18] sm:$0xff] %v1929_v3   ;;  %v1944_v13 = vpack.c.bf16 %v1647_v42, %v1646_v40 }
 0x18a   :  { %1957 = vst [vmem:[%s3035_s3 + $0x38] sm:$0xff] %v1949_v29  }
 0x18b   :  { %1952 = vst [vmem:[%s3035_s3 + $0x10] sm:$0xff] %v1924_v45   ;;  %1956 = vst [vmem:[%s3035_s3 + $0x30] sm:$0xff] %v1944_v13  }

// kernel: patch_autoencoder.13
= control target key start
LH: loop header
LB: loop body
LE: loop exit
PB: predicated region body
PF: predicated region fallthrough
CT: control target
= control target key end

     0   :  { %v4076_v0 = vmov 0   ;;  %vm1427_vm0 = vcmask 523264   ;;  %s5349_s1 = inlined_call_operand.vmem [shape: bf16[576,128], index: 1, kind: input, shape index: {}]   ;;  %s5350_s0 = inlined_call_operand.vmem [shape: bf16[512,576], index: 0, kind: input, shape index: {}]   ;;  %s5351_s2 = inlined_call_operand.vmem [shape: f32[1,128], index: 2, kind: input, shape index: {}]   ;;  %s5352_s3 = inlined_call_operand.vmem [shape: f32[512,128], index: 3, kind: output, shape index: {}]  }
   0x1   :  { %1524 = vmatprep.subr.bf16.mxu0 %v4076_v0  ;;  %3446 = vmatprep.subr.bf16.mxu1 %v4076_v0  ;;  %v3559_v1 = vld [vmem:[%s5349_s1] sm:$0xff]   ;;  %v3560_v2 = vld [vmem:[%s5349_s1 + $0x8] sm:$0xff]   ;;  %v3561_v3 = vld [vmem:[%s5349_s1 + $0x10] sm:$0xff]  }
   0x2   :  { %1525 = vmatpush1.bf16.msra.mxu0 %v3559_v1  ;;  %3462 = vmatpush1.bf16.msra.mxu1 %v3559_v1  ;;  %v3562_v4 = vld [vmem:[%s5349_s1 + $0x18] sm:$0xff]   ;;  %v3563_v5 = vld [vmem:[%s5349_s1 + $0x20] sm:$0xff]   ;;  %v3564_v7 = vld [vmem:[%s5349_s1 + $0x28] sm:$0xff]  }
   0x3   :  { %1526 = vmatprep.subr.bf16.mxu0 %v4076_v0  ;;  %3447 = vmatprep.subr.bf16.mxu1 %v4076_v0  ;;  %v3577_v6 = vld [vmem:[%s5350_s0 + $0x4] ss:$20 sps:$4 sm:$0xff]   ;;  %v3565_v9 = vld [vmem:[%s5349_s1 + $0x30] sm:$0xff]   ;;  %v3568_v12 = vld [vmem:[%s5349_s1 + $0x48] sm:$0xff]  }
   0x4   :  { %v3580_v8 = vld [vmem:[%s5350_s0 + $0x144] ss:$20 sps:$4 sm:$0xff]   ;;  %1556 = vmatprep.mubr.bf16.mxu0 %v3577_v6  ;;  %v3569_v13 = vld [vmem:[%s5349_s1 + $0x50] sm:$0xff]   ;;  %v3572_v16 = vld [vmem:[%s5349_s1 + $0x68] sm:$0xff]  }
   0x5   :  { %1620 = vmatprep.mubr.bf16.mxu1 %v3580_v8  ;;  %v3566_v10 = vld [vmem:[%s5349_s1 + $0x38] sm:$0xff]   ;;  %v3567_v11 = vld [vmem:[%s5349_s1 + $0x40] sm:$0xff]   ;;  %v3573_v17 = vld [vmem:[%s5349_s1 + $0x70] sm:$0xff]  }
   0x6   :  { %1527 = vmatpush1.bf16.msra.mxu0 %v3560_v2  ;;  %3463 = vmatpush1.bf16.msra.mxu1 %v3560_v2  ;;  %v3570_v14 = vld [vmem:[%s5349_s1 + $0x58] sm:$0xff]   ;;  %v3571_v15 = vld [vmem:[%s5349_s1 + $0x60] sm:$0xff]   ;;  %v3631_v25 = vld [vmem:[%s5349_s1 + $0x108] sm:$0xff]  }
   0x7   :  { %1528 = vmatprep.subr.bf16.mxu0 %v4076_v0  ;;  %3448 = vmatprep.subr.bf16.mxu1 %v4076_v0  ;;  %v3574_v18 = vld [vmem:[%s5349_s1 + $0x78] sm:$0xff]   ;;  %v3582_v19 = vld [vmem:[%s5349_s1 + $0x100] sm:$0xff]   ;;  %v3583_v26 = vld [vmem:[%s5349_s1 + $0x88] sm:$0xff]  }
   0x8   :  { %v3575_v20 = vld [vmem:[%s5350_s0] ss:$20 sps:$4 sm:$0xff]   ;;  %v3588_v27 = vld [vmem:[%s5350_s0 + $0x28] ss:$20 sps:$4 sm:$0xff]   ;;  %v3596_v34 = vld [vmem:[%s5350_s0 + $0x50] ss:$20 sps:$4 sm:$0xff]  }
   0x9   :  { %v3578_v21 = vld [vmem:[%s5350_s0 + $0x140] ss:$20 sps:$4 sm:$0xff]   ;;  %v3589_v28 = vld [vmem:[%s5350_s0 + $0x168] ss:$20 sps:$4 sm:$0xff]   ;;  %v3597_v35 = vld [vmem:[%s5350_s0 + $0x190] ss:$20 sps:$4 sm:$0xff]  }
   0xa   :  { %1529 = vmatpush1.bf16.msra.mxu0 %v3561_v3  ;;  %3464 = vmatpush1.bf16.msra.mxu1 %v3561_v3  ;;  %v3581_v22 = vld [vmem:[%s5349_s1 + $0x80] sm:$0xff]   ;;  %v3590_v29 = vld [vmem:[%s5349_s1 + $0x90] sm:$0xff]   ;;  %v3591_v33 = vld [vmem:[%s5349_s1 + $0x98] sm:$0xff]  }
   0xb   :  { %1530 = vmatprep.subr.bf16.mxu0 %v4076_v0  ;;  %3449 = vmatprep.subr.bf16.mxu1 %v4076_v0  ;;  %v3584_v23 = vld [vmem:[%s5350_s0 + $0x2c] ss:$20 sps:$4 sm:$0xff]   ;;  %v3671_v30 = vld [vmem:[%s5349_s1 + $0x110] sm:$0xff]   ;;  %v3608_v43 = vld [vmem:[%s5350_s0 + $0xa4] ss:$20 sps:$4 sm:$0xff]  }
   0xc   :  { %v3586_v24 = vld [vmem:[%s5350_s0 + $0x16c] ss:$20 sps:$4 sm:$0xff]   ;;  %v3592_v31 = vld [vmem:[%s5350_s0 + $0x54] ss:$20 sps:$4 sm:$0xff]   ;;  %v3600_v37 = vld [vmem:[%s5350_s0 + $0x7c] ss:$20 sps:$4 sm:$0xff]  }
   0xd   :  { %v3594_v32 = vld [vmem:[%s5350_s0 + $0x194] ss:$20 sps:$4 sm:$0xff]   ;;  %v3598_v36 = vld [vmem:[%s5349_s1 + $0xa0] sm:$0xff]   ;;  %v3602_v38 = vld [vmem:[%s5350_s0 + $0x1bc] ss:$20 sps:$4 sm:$0xff]  }
   0xe   :  { %1531 = vmatpush1.bf16.msra.mxu0 %v3562_v4  ;;  %3465 = vmatpush1.bf16.msra.mxu1 %v3562_v4  ;;  %v3599_v39 = vld [vmem:[%s5349_s1 + $0xa8] sm:$0xff]   ;;  %v3606_v42 = vld [vmem:[%s5349_s1 + $0xb0] sm:$0xff]   ;;  %v3708_v44 = vld [vmem:[%s5349_s1 + $0x118] sm:$0xff]  }
   0xf   :  { %1532 = vmatprep.subr.bf16.mxu0 %v4076_v0  ;;  %3450 = vmatprep.subr.bf16.mxu1 %v4076_v0  ;;  %v3604_v40 = vld [vmem:[%s5350_s0 + $0x78] ss:$20 sps:$4 sm:$0xff]   ;;  %v3612_v47 = vld [vmem:[%s5350_s0 + $0xa0] ss:$20 sps:$4 sm:$0xff]   ;;  %v3620_v53 = vld [vmem:[%s5350_s0 + $0xc8] ss:$20 sps:$4 sm:$0xff]  }
  0x10   :  { %v3605_v41 = vld [vmem:[%s5350_s0 + $0x1b8] ss:$20 sps:$4 sm:$0xff]   ;;  %v3613_v48 = vld [vmem:[%s5350_s0 + $0x1e0] ss:$20 sps:$4 sm:$0xff]   ;;  %v3621_v54 = vld [vmem:[%s5350_s0 + $0x208] ss:$20 sps:$4 sm:$0xff]  }
  0x11   :  { %v3610_v45 = vld [vmem:[%s5350_s0 + $0x1e4] ss:$20 sps:$4 sm:$0xff]   ;;  %v3616_v50 = vld [vmem:[%s5350_s0 + $0xcc] ss:$20 sps:$4 sm:$0xff]   ;;  %v3622_v55 = vld [vmem:[%s5349_s1 + $0xd0] sm:$0xff]  }
  0x12   :  { %1533 = vmatpush1.bf16.msra.mxu0 %v3563_v5  ;;  %3466 = vmatpush1.bf16.msra.mxu1 %v3563_v5  ;;  %v3607_v46 = vld [vmem:[%s5349_s1 + $0xb8] sm:$0xff]   ;;  %v3614_v49 = vld [vmem:[%s5349_s1 + $0xc0] sm:$0xff]   ;;  %v3615_v52 = vld [vmem:[%s5349_s1 + $0xc8] sm:$0xff]  }
  0x13   :  { %1534 = vmatprep.subr.bf16.mxu0 %v4076_v0  ;;  %3451 = vmatprep.subr.bf16.mxu1 %v4076_v0  ;;  %v3618_v51 = vld [vmem:[%s5350_s0 + $0x20c] ss:$20 sps:$4 sm:$0xff]   ;;  %v3624_v56 = vld [vmem:[%s5350_s0 + $0xf4] ss:$20 sps:$4 sm:$0xff]   ;;  %v3623_v58 = vld [vmem:[%s5349_s1 + $0xd8] sm:$0xff]  }
  0x14   :  { %v3626_v57 = vld [vmem:[%s5350_s0 + $0x234] ss:$20 sps:$4 sm:$0xff]   ;;  %v3628_v59 = vld [vmem:[%s5350_s0 + $0xf0] ss:$20 sps:$4 sm:$0xff]   ;;  %v3637_v2 = vld [vmem:[%s5350_s0 + $0x118] ss:$20 sps:$4 sm:$0xff]  }
  0x15   :  { %v3629_v60 = vld [vmem:[%s5350_s0 + $0x230] ss:$20 sps:$4 sm:$0xff]   ;;  %v3632_v1 = vld [vmem:[%s5349_s1 + $0xe8] sm:$0xff]  }
  0x16   :  { %1535 = vmatpush1.bf16.msra.mxu0 %v3564_v7  ;;  %3467 = vmatpush1.bf16.msra.mxu1 %v3564_v7  ;;  %v3630_v61 = vld [vmem:[%s5349_s1 + $0xe0] sm:$0xff]   ;;  %v3633_v62 = vld [vmem:[%s5350_s0 + $0x11c] ss:$20 sps:$4 sm:$0xff]   ;;  %v3638_v3 = vld [vmem:[%s5350_s0 + $0x258] ss:$20 sps:$4 sm:$0xff]  }
  0x17   :  { %1536 = vmatprep.subr.bf16.mxu0 %v4076_v0  ;;  %3452 = vmatprep.subr.bf16.mxu1 %v4076_v0  ;;  %v3635_v63 = vld [vmem:[%s5350_s0 + $0x25c] ss:$20 sps:$4 sm:$0xff]   ;;  %v3641_v5 = vld [vmem:[%s5350_s0 + $0x284] ss:$20 sps:$4 sm:$0xff]   ;;  %v3645_v6 = vld [vmem:[%s5350_s0 + $0xc] ss:$20 sps:$4 sm:$0xff]  }
  0x18   :  { %v3639_v4 = vld [vmem:[%s5349_s1 + $0xf0] sm:$0xff]   ;;  %v3640_v7 = vld [vmem:[%s5349_s1 + $0xf8] sm:$0xff]  }
  0x19   :  { %v3643_v8 = vld [vmem:[%s5350_s0 + $0x8] ss:$20 sps:$4 sm:$0xff]  }
  0x1a   :  { %1537 = vmatpush1.bf16.msra.mxu0 %v3565_v9  ;;  %3468 = vmatpush1.bf16.msra.mxu1 %v3565_v9  ;;  %v3646_v9 = vld [vmem:[%s5350_s0 + $0x280] ss:$20 sps:$4 sm:$0xff]  }
  0x1b   :  { %1538 = vmatprep.subr.bf16.mxu0 %v4076_v0  ;;  %3453 = vmatprep.subr.bf16.mxu1 %v4076_v0 }
  0x1e   :  { %1539 = vmatpush1.bf16.msra.mxu0 %v3566_v10  ;;  %3469 = vmatpush1.bf16.msra.mxu1 %v3566_v10  ;;  %v3647_v10 = vld [vmem:[%s5350_s0 + $0x2ac] ss:$20 sps:$4 sm:$0xff]  }
  0x1f   :  { %1540 = vmatprep.subr.bf16.mxu0 %v4076_v0  ;;  %3454 = vmatprep.subr.bf16.mxu1 %v4076_v0 }
  0x22   :  { %1541 = vmatpush1.bf16.msra.mxu0 %v3567_v11  ;;  %3470 = vmatpush1.bf16.msra.mxu1 %v3567_v11  ;;  %v3649_v11 = vld [vmem:[%s5350_s0 + $0x34] ss:$20 sps:$4 sm:$0xff]  }
  0x23   :  { %1542 = vmatprep.subr.bf16.mxu0 %v4076_v0  ;;  %3455 = vmatprep.subr.bf16.mxu1 %v4076_v0 }
  0x26   :  { %1543 = vmatpush1.bf16.msra.mxu0 %v3568_v12  ;;  %3471 = vmatpush1.bf16.msra.mxu1 %v3568_v12  ;;  %v3652_v12 = vld [vmem:[%s5350_s0 + $0x30] ss:$20 sps:$4 sm:$0xff]  }
  0x27   :  { %1544 = vmatprep.subr.bf16.mxu0 %v4076_v0  ;;  %3456 = vmatprep.subr.bf16.mxu1 %v4076_v0 }
  0x2a   :  { %1545 = vmatpush1.bf16.msra.mxu0 %v3569_v13  ;;  %3472 = vmatpush1.bf16.msra.mxu1 %v3569_v13  ;;  %v3653_v13 = vld [vmem:[%s5350_s0 + $0x2d4] ss:$20 sps:$4 sm:$0xff]  }
  0x2b   :  { %1546 = vmatprep.subr.bf16.mxu0 %v4076_v0  ;;  %3457 = vmatprep.subr.bf16.mxu1 %v4076_v0 }
  0x2e   :  { %1547 = vmatpush1.bf16.msra.mxu0 %v3570_v14  ;;  %3473 = vmatpush1.bf16.msra.mxu1 %v3570_v14  ;;  %v3655_v14 = vld [vmem:[%s5350_s0 + $0x5c] ss:$20 sps:$4 sm:$0xff]  }
  0x2f   :  { %1548 = vmatprep.subr.bf16.mxu0 %v4076_v0  ;;  %3458 = vmatprep.subr.bf16.mxu1 %v4076_v0 }
  0x32   :  { %1549 = vmatpush1.bf16.msra.mxu0 %v3571_v15  ;;  %3474 = vmatpush1.bf16.msra.mxu1 %v3571_v15  ;;  %v3657_v15 = vld [vmem:[%s5350_s0 + $0x2d0] ss:$20 sps:$4 sm:$0xff]  }
  0x33   :  { %1550 = vmatprep.subr.bf16.mxu0 %v4076_v0  ;;  %3459 = vmatprep.subr.bf16.mxu1 %v4076_v0 }
  0x36   :  { %1551 = vmatpush1.bf16.msra.mxu0 %v3572_v16  ;;  %3475 = vmatpush1.bf16.msra.mxu1 %v3572_v16  ;;  %v3658_v16 = vld [vmem:[%s5350_s0 + $0x58] ss:$20 sps:$4 sm:$0xff]  }
  0x37   :  { %1552 = vmatprep.subr.bf16.mxu0 %v4076_v0  ;;  %3460 = vmatprep.subr.bf16.mxu1 %v4076_v0 }
  0x3a   :  { %1553 = vmatpush1.bf16.msra.mxu0 %v3573_v17  ;;  %3476 = vmatpush1.bf16.msra.mxu1 %v3573_v17  ;;  %v3659_v17 = vld [vmem:[%s5350_s0 + $0x2fc] ss:$20 sps:$4 sm:$0xff]  }
  0x3b   :  { %1554 = vmatprep.subr.bf16.mxu0 %v4076_v0  ;;  %3461 = vmatprep.subr.bf16.mxu1 %v4076_v0 }
  0x3e   :  { %1555 = vmatpush1.bf16.msra.mxu0 %v3574_v18  ;;  %3477 = vmatpush1.bf16.msra.mxu1 %v3574_v18  ;;  %v3661_v18 = vld [vmem:[%s5350_s0 + $0x84] ss:$20 sps:$4 sm:$0xff]  }
  0x3f   :  { %1813 = vmatprep.subr.bf16.mxu0 %v4076_v0  ;;  %3374 = vmatprep.subr.bf16.mxu1 %v3582_v19 }
  0x41   :  { %1557 = vmatmul.mubr.bf16.vlgmr.msra.gmra.mrb[0].mxu0 %v3575_v20  ;;  %1621 = vmatmul.mubr.bf16.vlgmr.msra.gmra.mrb[0].mxu1 %v3578_v21  ;;  %v3664_v20 = vld [vmem:[%s5350_s0 + $0x80] ss:$20 sps:$4 sm:$0xff]   ;;  %v3665_v21 = vld [vmem:[%s5350_s0 + $0x324] ss:$20 sps:$4 sm:$0xff]  }
  0x42   :  { %1814 = vmatpush1.bf16.msra.mxu0 %v3581_v22  ;;  %3375 = vmatpush3.bf16.msra.mxu1 %v3582_v19  ;;  %v3663_v19 = vld [vmem:[%s5350_s0 + $0x2f8] ss:$20 sps:$4 sm:$0xff]  }
  0x43   :  { %1815 = vmatprep.subr.bf16.mxu0 %v4076_v0  ;;  %1564 = vmatprep.mubr.bf16.mxu0 %v3584_v23  ;;  %v3667_v22 = vld [vmem:[%s5350_s0 + $0xac] ss:$20 sps:$4 sm:$0xff]  }
  0x44   :  { %1628 = vmatprep.mubr.bf16.mxu1 %v3586_v24  ;;  %3376 = vmatprep.subr.bf16.mxu1 %v3631_v25  ;;  %v3669_v23 = vld [vmem:[%s5350_s0 + $0x320] ss:$20 sps:$4 sm:$0xff]   ;;  %v3670_v24 = vld [vmem:[%s5350_s0 + $0xa8] ss:$20 sps:$4 sm:$0xff]  }
  0x46   :  { %1816 = vmatpush1.bf16.msra.mxu0 %v3583_v26  ;;  %3377 = vmatpush3.bf16.msra.mxu1 %v3631_v25  ;;  %v3672_v25 = vld [vmem:[%s5350_s0 + $0x34c] ss:$20 sps:$4 sm:$0xff]   ;;  %v3674_v26 = vld [vmem:[%s5350_s0 + $0xd4] ss:$20 sps:$4 sm:$0xff]  }
  0x47   :  { %1817 = vmatprep.subr.bf16.mxu0 %v4076_v0  ;;  %3378 = vmatprep.subr.bf16.mxu1 %v3671_v30 }
  0x49   :  { %1565 = vmatmul.mubr.bf16.gmra.mrb[4].mxu0 %v3588_v27  ;;  %1629 = vmatmul.mubr.bf16.gmra.mrb[4].mxu1 %v3589_v28  ;;  %v3676_v27 = vld [vmem:[%s5350_s0 + $0x348] ss:$20 sps:$4 sm:$0xff]   ;;  %v3677_v28 = vld [vmem:[%s5350_s0 + $0xd0] ss:$20 sps:$4 sm:$0xff]  }
  0x4a   :  { %1818 = vmatpush1.bf16.msra.mxu0 %v3590_v29  ;;  %1572 = vmatprep.mubr.bf16.mxu0 %v3592_v31  ;;  %v3678_v29 = vld [vmem:[%s5350_s0 + $0x374] ss:$20 sps:$4 sm:$0xff]   ;;  %v3682_v31 = vld [vmem:[%s5350_s0 + $0x370] ss:$20 sps:$4 sm:$0xff]  }
  0x4b   :  { %1819 = vmatprep.subr.bf16.mxu0 %v4076_v0  ;;  %1636 = vmatprep.mubr.bf16.mxu1 %v3594_v32  ;;  %v3683_v32 = vld [vmem:[%s5350_s0 + $0xf8] ss:$20 sps:$4 sm:$0xff]  }
  0x4c   :  { %3379 = vmatpush3.bf16.msra.mxu1 %v3671_v30  ;;  %v3680_v30 = vld [vmem:[%s5350_s0 + $0xfc] ss:$20 sps:$4 sm:$0xff]  }
  0x4d   :  { %3380 = vmatprep.subr.bf16.mxu1 %v3708_v44 }
  0x4e   :  { %1820 = vmatpush1.bf16.msra.mxu0 %v3591_v33  ;;  %v3684_v33 = vld [vmem:[%s5350_s0 + $0x39c] ss:$20 sps:$4 sm:$0xff]  }
  0x4f   :  { %1821 = vmatprep.subr.bf16.mxu0 %v4076_v0 }
  0x50   :  { %3381 = vmatpush3.bf16.msra.mxu1 %v3708_v44  ;;  %v3701_v44 = vld [vmem:[%s5350_s0 + $0x170] ss:$20 sps:$4 sm:$0xff]  }
  0x51   :  { %1573 = vmatmul.mubr.bf16.gmra.mrb[8].mxu0 %v3596_v34  ;;  %1637 = vmatmul.mubr.bf16.gmra.mrb[8].mxu1 %v3597_v35  ;;  %v3686_v34 = vld [vmem:[%s5350_s0 + $0x124] ss:$20 sps:$4 sm:$0xff]  }
  0x52   :  { %1822 = vmatpush1.bf16.msra.mxu0 %v3598_v36  ;;  %1580 = vmatprep.mubr.bf16.mxu0 %v3600_v37  ;;  %v3688_v35 = vld [vmem:[%s5350_s0 + $0x398] ss:$20 sps:$4 sm:$0xff]   ;;  %v3689_v36 = vld [vmem:[%s5350_s0 + $0x120] ss:$20 sps:$4 sm:$0xff]  }
  0x53   :  { %1823 = vmatprep.subr.bf16.mxu0 %v4076_v0  ;;  %1644 = vmatprep.mubr.bf16.mxu1 %v3602_v38  ;;  %v3690_v37 = vld [vmem:[%s5350_s0 + $0x3c4] ss:$20 sps:$4 sm:$0xff]   ;;  %v3692_v38 = vld [vmem:[%s5350_s0 + $0x14c] ss:$20 sps:$4 sm:$0xff]  }
  0x56   :  { %1824 = vmatpush1.bf16.msra.mxu0 %v3599_v39  ;;  %v3694_v39 = vld [vmem:[%s5350_s0 + $0x3c0] ss:$20 sps:$4 sm:$0xff]  }
  0x57   :  { %1825 = vmatprep.subr.bf16.mxu0 %v4076_v0 }
  0x59   :  { %1581 = vmatmul.mubr.bf16.gmra.mrb[12].mxu0 %v3604_v40  ;;  %1645 = vmatmul.mubr.bf16.gmra.mrb[12].mxu1 %v3605_v41  ;;  %v3695_v40 = vld [vmem:[%s5350_s0 + $0x148] ss:$20 sps:$4 sm:$0xff]   ;;  %v3696_v41 = vld [vmem:[%s5350_s0 + $0x3ec] ss:$20 sps:$4 sm:$0xff]  }
  0x5a   :  { %1826 = vmatpush1.bf16.msra.mxu0 %v3606_v42  ;;  %1588 = vmatprep.mubr.bf16.mxu0 %v3608_v43  ;;  %v3698_v42 = vld [vmem:[%s5350_s0 + $0x174] ss:$20 sps:$4 sm:$0xff]  }
  0x5b   :  { %1827 = vmatprep.subr.bf16.mxu0 %v4076_v0  ;;  %1652 = vmatprep.mubr.bf16.mxu1 %v3610_v45  ;;  %v3700_v43 = vld [vmem:[%s5350_s0 + $0x3e8] ss:$20 sps:$4 sm:$0xff]  }
  0x5c   :  { %v3702_v45 = vld [vmem:[%s5350_s0 + $0x414] ss:$20 sps:$4 sm:$0xff]  }
  0x5e   :  { %1828 = vmatpush1.bf16.msra.mxu0 %v3607_v46  ;;  %v3704_v46 = vld [vmem:[%s5350_s0 + $0x19c] ss:$20 sps:$4 sm:$0xff]  }
  0x5f   :  { %1829 = vmatprep.subr.bf16.mxu0 %v4076_v0 }
  0x61   :  { %1589 = vmatmul.mubr.bf16.gmra.mrb[16].mxu0 %v3612_v47  ;;  %1653 = vmatmul.mubr.bf16.gmra.mrb[16].mxu1 %v3613_v48  ;;  %v3706_v47 = vld [vmem:[%s5350_s0 + $0x410] ss:$20 sps:$4 sm:$0xff]   ;;  %v3707_v48 = vld [vmem:[%s5350_s0 + $0x198] ss:$20 sps:$4 sm:$0xff]  }
  0x62   :  { %1830 = vmatpush1.bf16.msra.mxu0 %v3614_v49  ;;  %1596 = vmatprep.mubr.bf16.mxu0 %v3616_v50  ;;  %v3709_v49 = vld [vmem:[%s5350_s0 + $0x43c] ss:$20 sps:$4 sm:$0xff]   ;;  %v3711_v50 = vld [vmem:[%s5350_s0 + $0x1c4] ss:$20 sps:$4 sm:$0xff]  }
  0x63   :  { %1831 = vmatprep.subr.bf16.mxu0 %v4076_v0  ;;  %1660 = vmatprep.mubr.bf16.mxu1 %v3618_v51  ;;  %v3713_v51 = vld [vmem:[%s5350_s0 + $0x438] ss:$20 sps:$4 sm:$0xff]  }
  0x66   :  { %1832 = vmatpush1.bf16.msra.mxu0 %v3615_v52  ;;  %v3714_v52 = vld [vmem:[%s5350_s0 + $0x1c0] ss:$20 sps:$4 sm:$0xff]  }
  0x67   :  { %1833 = vmatprep.subr.bf16.mxu0 %v4076_v0 }
  0x69   :  { %1597 = vmatmul.mubr.bf16.gmra.mrb[20].mxu0 %v3620_v53  ;;  %1661 = vmatmul.mubr.bf16.gmra.mrb[20].mxu1 %v3621_v54  ;;  %v3715_v53 = vld [vmem:[%s5350_s0 + $0x464] ss:$20 sps:$4 sm:$0xff]   ;;  %v3717_v54 = vld [vmem:[%s5350_s0 + $0x1ec] ss:$20 sps:$4 sm:$0xff]  }
  0x6a   :  { %1834 = vmatpush1.bf16.msra.mxu0 %v3622_v55  ;;  %1604 = vmatprep.mubr.bf16.mxu0 %v3624_v56  ;;  %v3719_v55 = vld [vmem:[%s5350_s0 + $0x460] ss:$20 sps:$4 sm:$0xff]   ;;  %v3720_v56 = vld [vmem:[%s5350_s0 + $0x1e8] ss:$20 sps:$4 sm:$0xff]  }
  0x6b   :  { %1835 = vmatprep.subr.bf16.mxu0 %v4076_v0  ;;  %1668 = vmatprep.mubr.bf16.mxu1 %v3626_v57  ;;  %v3721_v57 = vld [vmem:[%s5350_s0 + $0x48c] ss:$20 sps:$4 sm:$0xff]  }
  0x6e   :  { %1836 = vmatpush1.bf16.msra.mxu0 %v3623_v58  ;;  %v3723_v58 = vld [vmem:[%s5350_s0 + $0x214] ss:$20 sps:$4 sm:$0xff]  }
  0x6f   :  { %1837 = vmatprep.subr.bf16.mxu0 %v4076_v0 }
  0x71   :  { %1605 = vmatmul.mubr.bf16.gmra.mrb[24].mxu0 %v3628_v59  ;;  %1669 = vmatmul.mubr.bf16.gmra.mrb[24].mxu1 %v3629_v60  ;;  %v3725_v59 = vld [vmem:[%s5350_s0 + $0x488] ss:$20 sps:$4 sm:$0xff]   ;;  %v3726_v60 = vld [vmem:[%s5350_s0 + $0x210] ss:$20 sps:$4 sm:$0xff]  }
  0x72   :  { %1838 = vmatpush1.bf16.msra.mxu0 %v3630_v61  ;;  %1612 = vmatprep.mubr.bf16.mxu0 %v3633_v62  ;;  %v3727_v61 = vld [vmem:[%s5350_s0 + $0x4b4] ss:$20 sps:$4 sm:$0xff]   ;;  %v3729_v62 = vld [vmem:[%s5350_s0 + $0x23c] ss:$20 sps:$4 sm:$0xff]  }
  0x73   :  { %1839 = vmatprep.subr.bf16.mxu0 %v4076_v0  ;;  %1676 = vmatprep.mubr.bf16.mxu1 %v3635_v63  ;;  %v3731_v63 = vld [vmem:[%s5350_s0 + $0x4b0] ss:$20 sps:$4 sm:$0xff]  }
  0x76   :  { %1840 = vmatpush1.bf16.msra.mxu0 %v3632_v1  ;;  %v3732_v1 = vld [vmem:[%s5350_s0 + $0x238] ss:$20 sps:$4 sm:$0xff]  }
  0x77   :  { %1841 = vmatprep.subr.bf16.mxu0 %v4076_v0 }
  0x79   :  { %1613 = vmatmul.mubr.bf16.gmra.mrb[28].mxu0 %v3637_v2  ;;  %1677 = vmatmul.mubr.bf16.gmra.mrb[28].mxu1 %v3638_v3  ;;  %v3733_v2 = vld [vmem:[%s5350_s0 + $0x4dc] ss:$20 sps:$4 sm:$0xff]   ;;  %v3735_v3 = vld [vmem:[%s5350_s0 + $0x264] ss:$20 sps:$4 sm:$0xff]  }
  0x7a   :  { %1842 = vmatpush1.bf16.msra.mxu0 %v3639_v4  ;;  %1684 = vmatprep.mubr.bf16.mxu1 %v3641_v5  ;;  %v3737_v4 = vld [vmem:[%s5350_s0 + $0x4d8] ss:$20 sps:$4 sm:$0xff]   ;;  %v3738_v5 = vld [vmem:[%s5350_s0 + $0x260] ss:$20 sps:$4 sm:$0xff]  }
  0x7b   :  { %1843 = vmatprep.subr.bf16.mxu0 %v4076_v0  ;;  %1845 = vmatprep.mubr.bf16.mxu0 %v3645_v6  ;;  %v3651_v0 = vld [vmem:[%s5350_s0 + $0x2a8] ss:$20 sps:$4 sm:$0xff]   ;;  %v3739_v6 = vld [vmem:[%s5350_s0 + $0x28c] ss:$20 sps:$4 sm:$0xff]  }
  0x7e   :  { %1844 = vmatpush1.bf16.msra.mxu0 %v3640_v7  ;;  %v3741_v7 = vld [vmem:[%s5350_s0 + $0x10] ss:$20 sps:$4 sm:$0xff]  }
  0x81   :  { %1685 = vmatmul.mubr.bf16.gmra.mrb[32].mxu1 %v3646_v9  ;;  %1846 = vmatmul.mubr.bf16.vlgmr.msra.gmra.mrb[0].mxu0 %v3643_v8  ;;  %v3742_v8 = vld [vmem:[%s5350_s0 + $0x288] ss:$20 sps:$4 sm:$0xff]   ;;  %v3743_v9 = vld [vmem:[%s5350_s0 + $0x38] ss:$20 sps:$4 sm:$0xff]  }
  0x82   :  { %1692 = vmatprep.mubr.bf16.mxu1 %v3647_v10  ;;  %1853 = vmatprep.mubr.bf16.mxu0 %v3649_v11  ;;  %v3744_v10 = vld [vmem:[%s5350_s0 + $0x2b4] ss:$20 sps:$4 sm:$0xff]  }
  0x83   :  { %v3746_v11 = vld [vmem:[%s5350_s0 + $0x60] ss:$20 sps:$4 sm:$0xff]  }
  0x89   :  { %1693 = vmatmul.mubr.bf16.gmra.mrb[36].mxu1 %v3651_v0  ;;  %1854 = vmatmul.mubr.bf16.gmra.mrb[4].mxu0 %v3652_v12  ;;  %v3747_v0 = vld [vmem:[%s5350_s0 + $0x2b0] ss:$20 sps:$4 sm:$0xff]   ;;  %v3748_v12 = vld [vmem:[%s5350_s0 + $0x88] ss:$20 sps:$4 sm:$0xff]  }
  0x8a   :  { %1700 = vmatprep.mubr.bf16.mxu1 %v3653_v13  ;;  %1861 = vmatprep.mubr.bf16.mxu0 %v3655_v14  ;;  %v3749_v13 = vld [vmem:[%s5350_s0 + $0x2dc] ss:$20 sps:$4 sm:$0xff]  }
  0x8b   :  { %v3751_v14 = vld [vmem:[%s5350_s0 + $0xb0] ss:$20 sps:$4 sm:$0xff]  }
  0x91   :  { %1701 = vmatmul.mubr.bf16.gmra.mrb[40].mxu1 %v3657_v15  ;;  %1862 = vmatmul.mubr.bf16.gmra.mrb[8].mxu0 %v3658_v16  ;;  %v3752_v15 = vld [vmem:[%s5350_s0 + $0x2d8] ss:$20 sps:$4 sm:$0xff]  }
  0x92   :  { %1708 = vmatprep.mubr.bf16.mxu1 %v3659_v17  ;;  %1869 = vmatprep.mubr.bf16.mxu0 %v3661_v18  ;;  %v3753_v16 = vld [vmem:[%s5350_s0 + $0xd8] ss:$20 sps:$4 sm:$0xff]   ;;  %v3756_v18 = vld [vmem:[%s5350_s0 + $0x100] ss:$20 sps:$4 sm:$0xff]  }
  0x93   :  { %v3754_v17 = vld [vmem:[%s5350_s0 + $0x304] ss:$20 sps:$4 sm:$0xff]  }
  0x99   :  { %1709 = vmatmul.mubr.bf16.gmra.mrb[44].mxu1 %v3663_v19  ;;  %1870 = vmatmul.mubr.bf16.gmra.mrb[12].mxu0 %v3664_v20 }
  0x9a   :  { %1716 = vmatprep.mubr.bf16.mxu1 %v3665_v21  ;;  %1877 = vmatprep.mubr.bf16.mxu0 %v3667_v22  ;;  %v3757_v21 = vld [vmem:[%s5350_s0 + $0x300] ss:$20 sps:$4 sm:$0xff]   ;;  %v3758_v22 = vld [vmem:[%s5350_s0 + $0x128] ss:$20 sps:$4 sm:$0xff]  }
  0xa1   :  { %1717 = vmatmul.mubr.bf16.gmra.mrb[48].mxu1 %v3669_v23  ;;  %1878 = vmatmul.mubr.bf16.gmra.mrb[16].mxu0 %v3670_v24  ;;  %v3759_v24 = vld [vmem:[%s5350_s0 + $0x32c] ss:$20 sps:$4 sm:$0xff]  }
  0xa2   :  { %1724 = vmatprep.mubr.bf16.mxu1 %v3672_v25  ;;  %1885 = vmatprep.mubr.bf16.mxu0 %v3674_v26  ;;  %v3761_v25 = vld [vmem:[%s5350_s0 + $0x150] ss:$20 sps:$4 sm:$0xff]  }
  0xa9   :  { %1725 = vmatmul.mubr.bf16.gmra.mrb[52].mxu1 %v3676_v27  ;;  %1886 = vmatmul.mubr.bf16.gmra.mrb[20].mxu0 %v3677_v28 }
  0xaa   :  { %1732 = vmatprep.mubr.bf16.mxu1 %v3678_v29  ;;  %1893 = vmatprep.mubr.bf16.mxu0 %v3680_v30  ;;  %v3762_v29 = vld [vmem:[%s5350_s0 + $0x328] ss:$20 sps:$4 sm:$0xff]   ;;  %v3763_v30 = vld [vmem:[%s5350_s0 + $0x178] ss:$20 sps:$4 sm:$0xff]  }
  0xb1   :  { %1733 = vmatmul.mubr.bf16.gmra.mrb[56].mxu1 %v3682_v31  ;;  %1894 = vmatmul.mubr.bf16.gmra.mrb[24].mxu0 %v3683_v32  ;;  %v3764_v32 = vld [vmem:[%s5350_s0 + $0x354] ss:$20 sps:$4 sm:$0xff]  }
  0xb2   :  { %1740 = vmatprep.mubr.bf16.mxu1 %v3684_v33  ;;  %1901 = vmatprep.mubr.bf16.mxu0 %v3686_v34  ;;  %v3766_v33 = vld [vmem:[%s5350_s0 + $0x1a0] ss:$20 sps:$4 sm:$0xff]  }
  0xb9   :  { %1741 = vmatmul.mubr.bf16.gmra.mrb[60].mxu1 %v3688_v35  ;;  %1902 = vmatmul.mubr.bf16.gmra.mrb[28].mxu0 %v3689_v36 }
  0xba   :  { %1748 = vmatprep.mubr.bf16.mxu1 %v3690_v37  ;;  %1909 = vmatprep.mubr.bf16.mxu0 %v3692_v38  ;;  %v3767_v37 = vld [vmem:[%s5350_s0 + $0x350] ss:$20 sps:$4 sm:$0xff]   ;;  %v3768_v38 = vld [vmem:[%s5350_s0 + $0x1c8] ss:$20 sps:$4 sm:$0xff]  }
  0xc1   :  { %1749 = vmatmul.mubr.bf16.gmra.mrb[64].mxu1 %v3694_v39  ;;  %1910 = vmatmul.mubr.bf16.gmra.mrb[32].mxu0 %v3695_v40  ;;  %v3769_v40 = vld [vmem:[%s5350_s0 + $0x37c] ss:$20 sps:$4 sm:$0xff]  }
  0xc2   :  { %1756 = vmatprep.mubr.bf16.mxu1 %v3696_v41  ;;  %1917 = vmatprep.mubr.bf16.mxu0 %v3698_v42  ;;  %v3771_v41 = vld [vmem:[%s5350_s0 + $0x1f0] ss:$20 sps:$4 sm:$0xff]  }
  0xc9   :  { %1757 = vmatmul.mubr.bf16.gmra.mrb[68].mxu1 %v3700_v43  ;;  %1918 = vmatmul.mubr.bf16.gmra.mrb[36].mxu0 %v3701_v44 }
  0xca   :  { %1764 = vmatprep.mubr.bf16.mxu1 %v3702_v45  ;;  %1925 = vmatprep.mubr.bf16.mxu0 %v3704_v46  ;;  %v3772_v45 = vld [vmem:[%s5350_s0 + $0x378] ss:$20 sps:$4 sm:$0xff]  }
  0xcb   :  { %v3773_v46 = vld [vmem:[%s5350_s0 + $0x218] ss:$20 sps:$4 sm:$0xff]  }
  0xd1   :  { %1765 = vmatmul.mubr.bf16.gmra.mrb[72].mxu1 %v3706_v47  ;;  %1926 = vmatmul.mubr.bf16.gmra.mrb[40].mxu0 %v3707_v48  ;;  %v3774_v48 = vld [vmem:[%s5350_s0 + $0x3a4] ss:$20 sps:$4 sm:$0xff]  }
  0xd2   :  { %1772 = vmatprep.mubr.bf16.mxu1 %v3709_v49  ;;  %1933 = vmatprep.mubr.bf16.mxu0 %v3711_v50  ;;  %v3776_v49 = vld [vmem:[%s5350_s0 + $0x240] ss:$20 sps:$4 sm:$0xff]  }
  0xd9   :  { %1773 = vmatmul.mubr.bf16.gmra.mrb[76].mxu1 %v3713_v51  ;;  %1934 = vmatmul.mubr.bf16.gmra.mrb[44].mxu0 %v3714_v52 }
  0xda   :  { %1780 = vmatprep.mubr.bf16.mxu1 %v3715_v53  ;;  %1941 = vmatprep.mubr.bf16.mxu0 %v3717_v54  ;;  %v3777_v53 = vld [vmem:[%s5350_s0 + $0x3a0] ss:$20 sps:$4 sm:$0xff]   ;;  %v3778_v54 = vld [vmem:[%s5350_s0 + $0x268] ss:$20 sps:$4 sm:$0xff]  }
  0xe1   :  { %1781 = vmatmul.mubr.bf16.gmra.mrb[80].mxu1 %v3719_v55  ;;  %1942 = vmatmul.mubr.bf16.gmra.mrb[48].mxu0 %v3720_v56  ;;  %v3779_v56 = vld [vmem:[%s5350_s0 + $0x3cc] ss:$20 sps:$4 sm:$0xff]  }
  0xe2   :  { %1788 = vmatprep.mubr.bf16.mxu1 %v3721_v57  ;;  %1949 = vmatprep.mubr.bf16.mxu0 %v3723_v58  ;;  %v3781_v57 = vld [vmem:[%s5350_s0 + $0x290] ss:$20 sps:$4 sm:$0xff]  }
  0xe9   :  { %1789 = vmatmul.mubr.bf16.gmra.mrb[84].mxu1 %v3725_v59  ;;  %1950 = vmatmul.mubr.bf16.gmra.mrb[52].mxu0 %v3726_v60 }
  0xea   :  { %1796 = vmatprep.mubr.bf16.mxu1 %v3727_v61  ;;  %1957 = vmatprep.mubr.bf16.mxu0 %v3729_v62  ;;  %v3782_v61 = vld [vmem:[%s5350_s0 + $0x3c8] ss:$20 sps:$4 sm:$0xff]   ;;  %v3783_v62 = vld [vmem:[%s5350_s0 + $0x2b8] ss:$20 sps:$4 sm:$0xff]  }
  0xf1   :  { %1797 = vmatmul.mubr.bf16.gmra.mrb[88].mxu1 %v3731_v63  ;;  %1958 = vmatmul.mubr.bf16.gmra.mrb[56].mxu0 %v3732_v1  ;;  %v3784_v1 = vld [vmem:[%s5350_s0 + $0x3f4] ss:$20 sps:$4 sm:$0xff]  }
  0xf2   :  { %1804 = vmatprep.mubr.bf16.mxu1 %v3733_v2  ;;  %1965 = vmatprep.mubr.bf16.mxu0 %v3735_v3  ;;  %v3786_v2 = vld [vmem:[%s5350_s0 + $0x2e0] ss:$20 sps:$4 sm:$0xff]  }
  0xf9   :  { %1805 = vmatmul.mubr.bf16.gmra.mrb[92].mxu1 %v3737_v4  ;;  %1966 = vmatmul.mubr.bf16.gmra.mrb[60].mxu0 %v3738_v5 }
  0xfa   :  { %1973 = vmatprep.mubr.bf16.mxu0 %v3739_v6  ;;  %3382 = vmatprep.mubr.msk.bf16.mxu1 %vm1427_vm0, %v3741_v7  ;;  %v3787_v6 = vld [vmem:[%s5350_s0 + $0x3f0] ss:$20 sps:$4 sm:$0xff]   ;;  %v3788_v7 = vld [vmem:[%s5350_s0 + $0x308] ss:$20 sps:$4 sm:$0xff]  }
 0x101   :  { %1974 = vmatmul.mubr.bf16.gmra.mrb[64].mxu0 %v3742_v8  ;;  %3383 = vmatmul.mubr.msk.bf16.vlgmr.msra.gmra.mrb[96].mxu1 %vm1427_vm0, %v3743_v9  ;;  %v3789_v9 = vld [vmem:[%s5350_s0 + $0x41c] ss:$20 sps:$4 sm:$0xff]  }
 0x102   :  { %1981 = vmatprep.mubr.bf16.mxu0 %v3744_v10  ;;  %3386 = vmatprep.mubr.msk.bf16.mxu1 %vm1427_vm0, %v3746_v11  ;;  %v3791_v10 = vld [vmem:[%s5350_s0 + $0x330] ss:$20 sps:$4 sm:$0xff]  }
 0x109   :  { %1982 = vmatmul.mubr.bf16.gmra.mrb[68].mxu0 %v3747_v0  ;;  %3387 = vmatmul.mubr.msk.bf16.gmra.mrb[100].mxu1 %vm1427_vm0, %v3748_v12 }
 0x10a   :  { %1989 = vmatprep.mubr.bf16.mxu0 %v3749_v13  ;;  %3390 = vmatprep.mubr.msk.bf16.mxu1 %vm1427_vm0, %v3751_v14  ;;  %v3792_v13 = vld [vmem:[%s5350_s0 + $0x418] ss:$20 sps:$4 sm:$0xff]  }
 0x10b   :  { %v3793_v14 = vld [vmem:[%s5350_s0 + $0x358] ss:$20 sps:$4 sm:$0xff]  }
 0x111   :  { %1990 = vmatmul.mubr.bf16.gmra.mrb[72].mxu0 %v3752_v15  ;;  %3391 = vmatmul.mubr.msk.bf16.gmra.mrb[104].mxu1 %vm1427_vm0, %v3753_v16  ;;  %v3794_v16 = vld [vmem:[%s5350_s0 + $0x444] ss:$20 sps:$4 sm:$0xff]  }
 0x112   :  { %1997 = vmatprep.mubr.bf16.mxu0 %v3754_v17  ;;  %3394 = vmatprep.mubr.msk.bf16.mxu1 %vm1427_vm0, %v3756_v18  ;;  %v3796_v17 = vld [vmem:[%s5350_s0 + $0x380] ss:$20 sps:$4 sm:$0xff]  }
 0x114   :  { %v4590_v19 = vpop.f32.mrb[0].mxu1 }
 0x115   :  { %v1624_v20 = vpop.f32.mrb[1].mxu1 }
 0x116   :  { %v4598_v23 = vpop.f32.mrb[2].mxu1 }
 0x117   :  { %v1627_v26 = vpop.f32.mrb[3].mxu1 }
 0x118   :  { %v3798_v26 = vld [vmem:[%s5350_s0 + $0x3a8] ss:$20 sps:$4 sm:$0xff]  }
 0x119   :  { %1998 = vmatmul.mubr.bf16.gmra.mrb[76].mxu0 %v3757_v21  ;;  %3395 = vmatmul.mubr.msk.bf16.gmra.mrb[108].mxu1 %vm1427_vm0, %v3758_v22 }
 0x11a   :  { %2005 = vmatprep.mubr.bf16.mxu0 %v3759_v24  ;;  %3398 = vmatprep.mubr.msk.bf16.mxu1 %vm1427_vm0, %v3761_v25  ;;  %v3797_v25 = vld [vmem:[%s5350_s0 + $0x440] ss:$20 sps:$4 sm:$0xff]  }
 0x11c   :  { %v4608_v27 = vpop.f32.mrb[4].mxu1 }
 0x11d   :  { %v1632_v28 = vpop.f32.mrb[5].mxu1 }
 0x11e   :  { %v4616_v31 = vpop.f32.mrb[6].mxu1 }
 0x11f   :  { %v1635_v34 = vpop.f32.mrb[7].mxu1 }
 0x121   :  { %2006 = vmatmul.mubr.bf16.gmra.mrb[80].mxu0 %v3762_v29  ;;  %3399 = vmatmul.mubr.msk.bf16.gmra.mrb[112].mxu1 %vm1427_vm0, %v3763_v30  ;;  %v3799_v30 = vld [vmem:[%s5350_s0 + $0x46c] ss:$20 sps:$4 sm:$0xff]  }
 0x122   :  { %2013 = vmatprep.mubr.bf16.mxu0 %v3764_v32  ;;  %3402 = vmatprep.mubr.msk.bf16.mxu1 %vm1427_vm0, %v3766_v33  ;;  %v3801_v32 = vld [vmem:[%s5350_s0 + $0x3d0] ss:$20 sps:$4 sm:$0xff]  }
 0x124   :  { %v4626_v35 = vpop.f32.mrb[8].mxu1 }
 0x125   :  { %v1640_v36 = vpop.f32.mrb[9].mxu1 }
 0x126   :  { %v4634_v39 = vpop.f32.mrb[10].mxu1 }
 0x127   :  { %v1643_v42 = vpop.f32.mrb[11].mxu1 }
 0x128   :  { %v3803_v42 = vld [vmem:[%s5350_s0 + $0x3f8] ss:$20 sps:$4 sm:$0xff]  }
 0x129   :  { %2014 = vmatmul.mubr.bf16.gmra.mrb[84].mxu0 %v3767_v37  ;;  %3403 = vmatmul.mubr.msk.bf16.gmra.mrb[116].mxu1 %vm1427_vm0, %v3768_v38 }
 0x12a   :  { %2021 = vmatprep.mubr.bf16.mxu0 %v3769_v40  ;;  %3406 = vmatprep.mubr.msk.bf16.mxu1 %vm1427_vm0, %v3771_v41  ;;  %v3802_v41 = vld [vmem:[%s5350_s0 + $0x468] ss:$20 sps:$4 sm:$0xff]  }
 0x12c   :  { %v4644_v43 = vpop.f32.mrb[12].mxu1 }
 0x12d   :  { %v1648_v44 = vpop.f32.mrb[13].mxu1 }
 0x12e   :  { %v4652_v47 = vpop.f32.mrb[14].mxu1 }
 0x12f   :  { %v1651_v50 = vpop.f32.mrb[15].mxu1 }
 0x131   :  { %2022 = vmatmul.mubr.bf16.gmra.mrb[88].mxu0 %v3772_v45  ;;  %3407 = vmatmul.mubr.msk.bf16.gmra.mrb[120].mxu1 %vm1427_vm0, %v3773_v46  ;;  %v3804_v46 = vld [vmem:[%s5350_s0 + $0x494] ss:$20 sps:$4 sm:$0xff]  }
 0x132   :  { %2029 = vmatprep.mubr.bf16.mxu0 %v3774_v48  ;;  %3410 = vmatprep.mubr.msk.bf16.mxu1 %vm1427_vm0, %v3776_v49  ;;  %v3806_v48 = vld [vmem:[%s5350_s0 + $0x420] ss:$20 sps:$4 sm:$0xff]  }
 0x134   :  { %v4662_v51 = vpop.f32.mrb[16].mxu1 }
 0x135   :  { %v1656_v52 = vpop.f32.mrb[17].mxu1 }
 0x136   :  { %v4670_v55 = vpop.f32.mrb[18].mxu1 }
 0x137   :  { %v1659_v58 = vpop.f32.mrb[19].mxu1 }
 0x138   :  { %v3808_v58 = vld [vmem:[%s5350_s0 + $0x448] ss:$20 sps:$4 sm:$0xff]  }
 0x139   :  { %2030 = vmatmul.mubr.bf16.gmra.mrb[92].mxu0 %v3777_v53  ;;  %3411 = vmatmul.mubr.msk.bf16.gmra.mrb[124].mxu1 %vm1427_vm0, %v3778_v54 }
 0x13a   :  { %2037 = vmatprep.mubr.bf16.mxu0 %v3779_v56  ;;  %3414 = vmatprep.mubr.msk.bf16.mxu1 %vm1427_vm0, %v3781_v57  ;;  %v3807_v57 = vld [vmem:[%s5350_s0 + $0x490] ss:$20 sps:$4 sm:$0xff]  }
 0x13c   :  { %v4680_v59 = vpop.f32.mrb[20].mxu1 }
 0x13d   :  { %v1664_v60 = vpop.f32.mrb[21].mxu1 }
 0x13e   :  { %v4688_v63 = vpop.f32.mrb[22].mxu1 }
 0x13f   :  { %v1667_v3 = vpop.f32.mrb[23].mxu1 }
 0x141   :  { %2038 = vmatmul.mubr.bf16.gmra.mrb[96].mxu0 %v3782_v61  ;;  %3415 = vmatmul.mubr.msk.bf16.gmra.mrb[128].mxu1 %vm1427_vm0, %v3783_v62  ;;  %v3809_v62 = vld [vmem:[%s5350_s0 + $0x4bc] ss:$20 sps:$4 sm:$0xff]  }
 0x142   :  { %2045 = vmatprep.mubr.bf16.mxu0 %v3784_v1  ;;  %3418 = vmatprep.mubr.msk.bf16.mxu1 %vm1427_vm0, %v3786_v2  ;;  %v3811_v1 = vld [vmem:[%s5350_s0 + $0x470] ss:$20 sps:$4 sm:$0xff]  }
 0x144   :  { %v4698_v4 = vpop.f32.mrb[24].mxu1 }
 0x145   :  { %v1672_v5 = vpop.f32.mrb[25].mxu1 }
 0x146   :  { %v4706_v8 = vpop.f32.mrb[26].mxu1 }
 0x147   :  { %v1675_v11 = vpop.f32.mrb[27].mxu1 }
 0x148   :  { %v3813_v11 = vld [vmem:[%s5350_s0 + $0x498] ss:$20 sps:$4 sm:$0xff]  }
 0x149   :  { %2046 = vmatmul.mubr.bf16.gmra.mrb[100].mxu0 %v3787_v6  ;;  %3419 = vmatmul.mubr.msk.bf16.gmra.mrb[132].mxu1 %vm1427_vm0, %v3788_v7 }
 0x14a   :  { %2053 = vmatprep.mubr.bf16.mxu0 %v3789_v9  ;;  %3422 = vmatprep.mubr.msk.bf16.mxu1 %vm1427_vm0, %v3791_v10  ;;  %v3812_v10 = vld [vmem:[%s5350_s0 + $0x4b8] ss:$20 sps:$4 sm:$0xff]  }
 0x14c   :  { %v4716_v0 = vpop.f32.mrb[28].mxu1 }
 0x14d   :  { %v1680_v12 = vpop.f32.mrb[29].mxu1 }
 0x14e   :  { %v4724_v15 = vpop.f32.mrb[30].mxu1 }
 0x14f   :  { %v1683_v18 = vpop.f32.mrb[31].mxu1 }
 0x151   :  { %2054 = vmatmul.mubr.bf16.gmra.mrb[104].mxu0 %v3792_v13  ;;  %3423 = vmatmul.mubr.msk.bf16.gmra.mrb[136].mxu1 %vm1427_vm0, %v3793_v14  ;;  %v3814_v14 = vld [vmem:[%s5350_s0 + $0x4e4] ss:$20 sps:$4 sm:$0xff]  }
 0x152   :  { %2061 = vmatprep.mubr.bf16.mxu0 %v3794_v16  ;;  %3426 = vmatprep.mubr.msk.bf16.mxu1 %vm1427_vm0, %v3796_v17  ;;  %v3816_v16 = vld [vmem:[%s5350_s0 + $0x4c0] ss:$20 sps:$4 sm:$0xff]  }
 0x154   :  { %v4734_v20 = vpop.f32.mrb[32].mxu1  ;;  %v4736_v21 = vpop.f32.mrb[0].mxu0 }
 0x155   :  { %v1688_v22 = vpop.f32.mrb[33].mxu1  ;;  %v1849_v24 = vpop.f32.mrb[1].mxu0 }
 0x156   :  { %v4744_v28 = vpop.f32.mrb[34].mxu1  ;;  %v4746_v29 = vpop.f32.mrb[2].mxu0 }
 0x157   :  { %v1691_v33 = vpop.f32.mrb[35].mxu1  ;;  %v1852_v34 = vpop.f32.mrb[3].mxu0 }
 0x159   :  { %2062 = vmatmul.mubr.bf16.gmra.mrb[108].mxu0 %v3797_v25  ;;  %3427 = vmatmul.mubr.msk.bf16.gmra.mrb[140].mxu1 %vm1427_vm0, %v3798_v26 }
 0x15a   :  { %2069 = vmatprep.mubr.bf16.mxu0 %v3799_v30  ;;  %3430 = vmatprep.mubr.msk.bf16.mxu1 %vm1427_vm0, %v3801_v32  ;;  %v3817_v30 = vld [vmem:[%s5350_s0 + $0x4e0] ss:$20 sps:$4 sm:$0xff]   ;;  %v3818_v32 = vld [vmem:[%s5350_s0 + $0x4e8] ss:$20 sps:$4 sm:$0xff]  }
 0x15c   :  { %v4756_v36 = vpop.f32.mrb[36].mxu1  ;;  %v4758_v37 = vpop.f32.mrb[4].mxu0 }
 0x15d   :  { %v1696_v38 = vpop.f32.mrb[37].mxu1  ;;  %v1857_v40 = vpop.f32.mrb[5].mxu0 }
 0x15e   :  { %v4766_v44 = vpop.f32.mrb[38].mxu1  ;;  %v4768_v45 = vpop.f32.mrb[6].mxu0 }
 0x15f   :  { %v1699_v49 = vpop.f32.mrb[39].mxu1  ;;  %v1860_v50 = vpop.f32.mrb[7].mxu0 }
 0x161   :  { %2070 = vmatmul.mubr.bf16.gmra.mrb[112].mxu0 %v3802_v41  ;;  %3431 = vmatmul.mubr.msk.bf16.gmra.mrb[144].mxu1 %vm1427_vm0, %v3803_v42 }
 0x162   :  { %2077 = vmatprep.mubr.bf16.mxu0 %v3804_v46  ;;  %3434 = vmatprep.mubr.msk.bf16.mxu1 %vm1427_vm0, %v3806_v48 }
 0x164   :  { %v4778_v52 = vpop.f32.mrb[40].mxu1  ;;  %v4780_v53 = vpop.f32.mrb[8].mxu0 }
 0x165   :  { %v1704_v54 = vpop.f32.mrb[41].mxu1  ;;  %v1865_v56 = vpop.f32.mrb[9].mxu0 }
 0x166   :  { %v4788_v60 = vpop.f32.mrb[42].mxu1  ;;  %v4790_v61 = vpop.f32.mrb[10].mxu0 }
 0x167   :  { %v1707_v2 = vpop.f32.mrb[43].mxu1  ;;  %v1868_v3 = vpop.f32.mrb[11].mxu0 }
 0x169   :  { %2078 = vmatmul.mubr.bf16.gmra.mrb[116].mxu0 %v3807_v57  ;;  %3435 = vmatmul.mubr.msk.bf16.gmra.mrb[148].mxu1 %vm1427_vm0, %v3808_v58 }
 0x16a   :  { %2085 = vmatprep.mubr.bf16.mxu0 %v3809_v62  ;;  %3438 = vmatprep.mubr.msk.bf16.mxu1 %vm1427_vm0, %v3811_v1 }
 0x16c   :  { %v4800_v5 = vpop.f32.mrb[44].mxu1  ;;  %v4802_v6 = vpop.f32.mrb[12].mxu0 }
 0x16d   :  { %v1712_v7 = vpop.f32.mrb[45].mxu1  ;;  %v1873_v9 = vpop.f32.mrb[13].mxu0 }
 0x16e   :  { %v4810_v12 = vpop.f32.mrb[46].mxu1  ;;  %v4812_v13 = vpop.f32.mrb[14].mxu0 }
 0x16f   :  { %v1715_v17 = vpop.f32.mrb[47].mxu1  ;;  %v1876_v18 = vpop.f32.mrb[15].mxu0 }
 0x171   :  { %2086 = vmatmul.mubr.bf16.gmra.mrb[120].mxu0 %v3812_v10  ;;  %3439 = vmatmul.mubr.msk.bf16.gmra.mrb[152].mxu1 %vm1427_vm0, %v3813_v11 }
 0x172   :  { %2093 = vmatprep.mubr.bf16.mxu0 %v3814_v14  ;;  %3442 = vmatprep.mubr.msk.bf16.mxu1 %vm1427_vm0, %v3816_v16 }
 0x174   :  { %v4822_v22 = vpop.f32.mrb[48].mxu1  ;;  %v4824_v24 = vpop.f32.mrb[16].mxu0 }
 0x175   :  { %v1720_v25 = vpop.f32.mrb[49].mxu1  ;;  %v1881_v26 = vpop.f32.mrb[17].mxu0 }
 0x176   :  { %v4832_v33 = vpop.f32.mrb[50].mxu1  ;;  %v4834_v34 = vpop.f32.mrb[18].mxu0 }
 0x177   :  { %v1723_v38 = vpop.f32.mrb[51].mxu1  ;;  %v1884_v40 = vpop.f32.mrb[19].mxu0 }
 0x179   :  { %2094 = vmatmul.mubr.bf16.gmra.mrb[124].mxu0 %v3817_v30  ;;  %3443 = vmatmul.mubr.msk.bf16.gmra.mrb[156].mxu1 %vm1427_vm0, %v3818_v32 }
 0x17c   :  { %v4837_v41 = vpop.f32.mrb[52].mxu1  ;;  %v4839_v42 = vpop.f32.mrb[20].mxu0 }
 0x17d   :  { %v1728_v46 = vpop.f32.mrb[53].mxu1  ;;  %v1889_v48 = vpop.f32.mrb[21].mxu0 }
 0x17e   :  { %v4841_v49 = vpop.f32.mrb[54].mxu1  ;;  %v4843_v50 = vpop.f32.mrb[22].mxu0 }
 0x17f   :  { %v1731_v54 = vpop.f32.mrb[55].mxu1  ;;  %v1892_v56 = vpop.f32.mrb[23].mxu0 }
 0x184   :  { %v4845_v57 = vpop.f32.mrb[56].mxu1  ;;  %v4847_v58 = vpop.f32.mrb[24].mxu0 }
 0x185   :  { %v1736_v62 = vpop.f32.mrb[57].mxu1  ;;  %v1897_v1 = vpop.f32.mrb[25].mxu0 }
 0x186   :  { %v4849_v2 = vpop.f32.mrb[58].mxu1  ;;  %v4851_v3 = vpop.f32.mrb[26].mxu0 }
 0x187   :  { %v1739_v7 = vpop.f32.mrb[59].mxu1  ;;  %v1900_v9 = vpop.f32.mrb[27].mxu0 }
 0x18c   :  { %v4853_v10 = vpop.f32.mrb[60].mxu1  ;;  %v4855_v11 = vpop.f32.mrb[28].mxu0 }
 0x18d   :  { %v1744_v14 = vpop.f32.mrb[61].mxu1  ;;  %v1905_v16 = vpop.f32.mrb[29].mxu0 }
 0x18e   :  { %v4857_v17 = vpop.f32.mrb[62].mxu1  ;;  %v4859_v18 = vpop.f32.mrb[30].mxu0 }
 0x18f   :  { %v1747_v25 = vpop.f32.mrb[63].mxu1  ;;  %v1908_v26 = vpop.f32.mrb[31].mxu0 }
 0x194   :  { %v4861_v30 = vpop.f32.mrb[64].mxu1  ;;  %v1911_v32 = vpop.f32.mrb[32].mxu0 }
 0x195   :  { %5353 = vst [vmem:[#allocation3_spill] sm:$0xff] %v4861_v30  ;;  %v4864_v38 = vadd.f32 %v1911_v32, %v4590_v19  ;;  %v1752_v40 = vpop.f32.mrb[65].mxu1  ;;  %v1913_v46 = vpop.f32.mrb[33].mxu0 }
 0x196   :  { %v4866_v48 = vpop.f32.mrb[66].mxu1  ;;  %v1914_v54 = vpop.f32.mrb[34].mxu0 }
 0x197   :  { %5354 = vst [vmem:[#allocation4_spill] sm:$0xff] %v4866_v48  ;;  %v4869_v56 = vadd.f32 %v1914_v54, %v4598_v23  ;;  %v1755_v62 = vpop.f32.mrb[67].mxu1  ;;  %v1916_v1 = vpop.f32.mrb[35].mxu0 }
 0x19c   :  { %v4871_v7 = vpop.f32.mrb[68].mxu1  ;;  %v1919_v9 = vpop.f32.mrb[36].mxu0 }
 0x19d   :  { %5355 = vst [vmem:[#allocation5_spill] sm:$0xff] %v4871_v7  ;;  %v4874_v14 = vadd.f32 %v1919_v9, %v4608_v27  ;;  %v1760_v16 = vpop.f32.mrb[69].mxu1  ;;  %v1921_v25 = vpop.f32.mrb[37].mxu0 }
 0x19e   :  { %v4876_v19 = vpop.f32.mrb[70].mxu1  ;;  %v1922_v26 = vpop.f32.mrb[38].mxu0 }
 0x19f   :  { %5356 = vst [vmem:[#allocation6_spill] sm:$0xff] %v4876_v19  ;;  %v4879_v32 = vadd.f32 %v1922_v26, %v4616_v31  ;;  %v1763_v40 = vpop.f32.mrb[71].mxu1  ;;  %v1924_v46 = vpop.f32.mrb[39].mxu0 }
 0x1a4   :  { %v4881_v23 = vpop.f32.mrb[72].mxu1  ;;  %v1927_v54 = vpop.f32.mrb[40].mxu0 }
 0x1a5   :  { %5357 = vst [vmem:[#allocation7_spill] sm:$0xff] %v4881_v23  ;;  %v4884_v62 = vadd.f32 %v1927_v54, %v4626_v35  ;;  %v1768_v1 = vpop.f32.mrb[73].mxu1  ;;  %v1929_v7 = vpop.f32.mrb[41].mxu0 }
 0x1a6   :  { %v4886_v27 = vpop.f32.mrb[74].mxu1  ;;  %v1930_v9 = vpop.f32.mrb[42].mxu0 }
 0x1a7   :  { %5358 = vst [vmem:[#allocation8_spill] sm:$0xff] %v4886_v27  ;;  %v4889_v16 = vadd.f32 %v1930_v9, %v4634_v39  ;;  %v1771_v25 = vpop.f32.mrb[75].mxu1  ;;  %v1932_v19 = vpop.f32.mrb[43].mxu0 }
 0x1ac   :  { %v4891_v31 = vpop.f32.mrb[76].mxu1  ;;  %v1935_v26 = vpop.f32.mrb[44].mxu0 }
 0x1ad   :  { %5359 = vst [vmem:[#allocation9_spill] sm:$0xff] %v4891_v31  ;;  %v4894_v40 = vadd.f32 %v1935_v26, %v4644_v43  ;;  %v1776_v46 = vpop.f32.mrb[77].mxu1  ;;  %v1937_v23 = vpop.f32.mrb[45].mxu0 }
 0x1ae   :  { %v4896_v35 = vpop.f32.mrb[78].mxu1  ;;  %v1938_v54 = vpop.f32.mrb[46].mxu0 }
 0x1af   :  { %5360 = vst [vmem:[#allocation10_spill] sm:$0xff] %v4896_v35  ;;  %v4899_v7 = vadd.f32 %v1938_v54, %v4652_v47  ;;  %v1779_v1 = vpop.f32.mrb[79].mxu1  ;;  %v1940_v27 = vpop.f32.mrb[47].mxu0 }
 0x1b4   :  { %v4901_v39 = vpop.f32.mrb[80].mxu1  ;;  %v1943_v9 = vpop.f32.mrb[48].mxu0 }
 0x1b5   :  { %5361 = vst [vmem:[#allocation11_spill] sm:$0xff] %v4901_v39  ;;  %v4904_v19 = vadd.f32 %v1943_v9, %v4662_v51  ;;  %v1784_v25 = vpop.f32.mrb[81].mxu1  ;;  %v1945_v31 = vpop.f32.mrb[49].mxu0 }
 0x1b6   :  { %v4906_v43 = vpop.f32.mrb[82].mxu1  ;;  %v1946_v26 = vpop.f32.mrb[50].mxu0 }
 0x1b7   :  { %5362 = vst [vmem:[#allocation12_spill] sm:$0xff] %v4906_v43  ;;  %v4909_v23 = vadd.f32 %v1946_v26, %v4670_v55  ;;  %v1787_v46 = vpop.f32.mrb[83].mxu1  ;;  %v1948_v35 = vpop.f32.mrb[51].mxu0 }
 0x1bc   :  { %v4911_v47 = vpop.f32.mrb[84].mxu1  ;;  %v1951_v54 = vpop.f32.mrb[52].mxu0 }
 0x1bd   :  { %5363 = vst [vmem:[#allocation13_spill] sm:$0xff] %v4911_v47  ;;  %v4914_v27 = vadd.f32 %v1951_v54, %v4680_v59  ;;  %v1792_v1 = vpop.f32.mrb[85].mxu1  ;;  %v1953_v39 = vpop.f32.mrb[53].mxu0 }
 0x1be   :  { %v4916_v51 = vpop.f32.mrb[86].mxu1  ;;  %v1954_v9 = vpop.f32.mrb[54].mxu0 }
 0x1bf   :  { %5364 = vst [vmem:[#allocation14_spill] sm:$0xff] %v4916_v51  ;;  %v4919_v31 = vadd.f32 %v1954_v9, %v4688_v63  ;;  %v1795_v25 = vpop.f32.mrb[87].mxu1  ;;  %v1956_v43 = vpop.f32.mrb[55].mxu0 }
 0x1c4   :  { %v4921_v55 = vpop.f32.mrb[88].mxu1  ;;  %v1959_v26 = vpop.f32.mrb[56].mxu0 }
 0x1c5   :  { %5365 = vst [vmem:[#allocation15_spill] sm:$0xff] %v4921_v55  ;;  %v4924_v35 = vadd.f32 %v1959_v26, %v4698_v4  ;;  %v1800_v46 = vpop.f32.mrb[89].mxu1  ;;  %v1961_v47 = vpop.f32.mrb[57].mxu0 }
 0x1c6   :  { %v4926_v59 = vpop.f32.mrb[90].mxu1  ;;  %v1962_v54 = vpop.f32.mrb[58].mxu0 }
 0x1c7   :  { %5366 = vst [vmem:[#allocation16_spill] sm:$0xff] %v4926_v59  ;;  %v4929_v39 = vadd.f32 %v1962_v54, %v4706_v8  ;;  %v1803_v1 = vpop.f32.mrb[91].mxu1  ;;  %v1964_v51 = vpop.f32.mrb[59].mxu0 }
 0x1c8   :  { %v4944_v51 = vld [vmem:[%s5351_s2] ss:$0 sm:$0xff] }
 0x1cc   :  { %v4931_v63 = vpop.f32.mrb[92].mxu1  ;;  %v1967_v9 = vpop.f32.mrb[60].mxu0 }
 0x1cd   :  { %5367 = vst [vmem:[#allocation17_spill] sm:$0xff] %v4931_v63  ;;  %v4934_v43 = vadd.f32 %v1967_v9, %v4716_v0  ;;  %v1808_v25 = vpop.f32.mrb[93].mxu1  ;;  %v1969_v55 = vpop.f32.mrb[61].mxu0 }
 0x1ce   :  { %v4936_v4 = vpop.f32.mrb[94].mxu1  ;;  %v1970_v26 = vpop.f32.mrb[62].mxu0 }
 0x1cf   :  { %5368 = vst [vmem:[#allocation18_spill] sm:$0xff] %v4936_v4  ;;  %v4939_v47 = vadd.f32 %v1970_v26, %v4724_v15  ;;  %v1811_v46 = vpop.f32.mrb[95].mxu1  ;;  %v1972_v59 = vpop.f32.mrb[63].mxu0 }
 0x1d4   :  { %v1975_v8 = vpop.f32.mrb[64].mxu0  ;;  %v3384_v54 = vpop.f32.mrb[96].mxu1 }
 0x1d5   :  { %v4947_v0 = vadd.f32 %v1975_v8, %v4734_v20  ;;  %v2145_v55 = vadd.f32 %v3384_v54, %v4758_v37  ;;  %v1977_v1 = vpop.f32.mrb[65].mxu0  ;;  %v2136_v9 = vpop.f32.mrb[97].mxu1 }
 0x1d6   :  { %v2137_v25 = vadd.f32 %v2136_v9, %v4736_v21  ;;  %v1978_v15 = vpop.f32.mrb[66].mxu0  ;;  %v3385_v26 = vpop.f32.mrb[98].mxu1 }
 0x1d7   :  { %5369 = vst [vmem:[#allocation19_spill] sm:$0xff] %v4947_v0  ;;  %v2595_v59 = vadd.f32 %v4944_v51, %v2145_v55  ;;  %v4953_v46 = vadd.f32 %v1978_v15, %v4744_v28  ;;  %v2148_v4 = vadd.f32 %v3385_v26, %v4768_v45  ;;  %v1980_v63 = vpop.f32.mrb[67].mxu0  ;;  %v2139_v48 = vpop.f32.mrb[99].mxu1 }
 0x1d8   :  { %v2593_v20 = vadd.f32 %v4944_v51, %v2137_v25  ;;  %v2140_v8 = vadd.f32 %v2139_v48, %v4746_v29 }
 0x1d9   :  { %v2659_v37 = vsub.f32 0.0, %v2595_v59  ;;  %v2596_v54 = vadd.f32 %v4944_v51, %v2148_v4 }
 0x1da   :  { %v2657_v1 = vsub.f32 0.0, %v2593_v20  ;;  %v2594_v21 = vadd.f32 %v4944_v51, %v2140_v8 }
 0x1db   :  { %v2725_v9 = vmul.f32 1.442695, %v2659_v37  ;;  %v2660_v0 = vsub.f32 0.0, %v2596_v54 }
 0x1dc   :  { %v2721_v55 = vmul.f32 1.442695, %v2657_v1  ;;  %v2658_v30 = vsub.f32 0.0, %v2594_v21  ;;  %v1983_v28 = vpop.f32.mrb[68].mxu0  ;;  %v3388_v15 = vpop.f32.mrb[100].mxu1 }
 0x1dd   :  { %3819 = vpow2.f32 %v2725_v9  ;;  %v2727_v45 = vmul.f32 1.442695, %v2660_v0  ;;  %v4961_v63 = vadd.f32 %v1983_v28, %v4756_v36  ;;  %v2161_v25 = vadd.f32 %v3388_v15, %v4802_v6  ;;  %v1985_v29 = vpop.f32.mrb[69].mxu0  ;;  %v2152_v48 = vpop.f32.mrb[101].mxu1 }
 0x1de   :  { %3821 = vpow2.f32 %v2721_v55  ;;  %v2723_v4 = vmul.f32 1.442695, %v2658_v30  ;;  %v2153_v26 = vadd.f32 %v2152_v48, %v4780_v53  ;;  %v1986_v59 = vpop.f32.mrb[70].mxu0  ;;  %v3389_v20 = vpop.f32.mrb[102].mxu1 }
 0x1df   :  { %3823 = vpow2.f32 %v2727_v45  ;;  %v2599_v8 = vadd.f32 %v4944_v51, %v2161_v25  ;;  %v4967_v37 = vadd.f32 %v1986_v59, %v4766_v44  ;;  %v2164_v0 = vadd.f32 %v3389_v20, %v4812_v13  ;;  %v1988_v36 = vpop.f32.mrb[71].mxu0  ;;  %v2155_v54 = vpop.f32.mrb[103].mxu1 }
 0x1e0   :  { %3825 = vpow2.f32 %v2723_v4  ;;  %v2597_v6 = vadd.f32 %v4944_v51, %v2153_v26  ;;  %v2156_v1 = vadd.f32 %v2155_v54, %v4790_v61 }
 0x1e1   :  { %v2663_v30 = vsub.f32 0.0, %v2599_v8  ;;  %v2600_v53 = vadd.f32 %v4944_v51, %v2164_v0 }
 0x1e2   :  { %v2661_v21 = vsub.f32 0.0, %v2597_v6  ;;  %v2598_v9 = vadd.f32 %v4944_v51, %v2156_v1 }
 0x1e3   :  { %v2733_v55 = vmul.f32 1.442695, %v2663_v30  ;;  %v2664_v28 = vsub.f32 0.0, %v2600_v53 }
 0x1e4   :  { %v2729_v15 = vmul.f32 1.442695, %v2661_v21  ;;  %v2662_v44 = vsub.f32 0.0, %v2598_v9  ;;  %v1991_v45 = vpop.f32.mrb[72].mxu0  ;;  %v3392_v25 = vpop.f32.mrb[104].mxu1 }
 0x1e5   :  { %3827 = vpow2.f32 %v2733_v55  ;;  %v2735_v13 = vmul.f32 1.442695, %v2664_v28  ;;  %v4975_v29 = vadd.f32 %v1991_v45, %v4778_v52  ;;  %v2177_v48 = vadd.f32 %v3392_v25, %v4839_v42  ;;  %v1993_v61 = vpop.f32.mrb[73].mxu0  ;;  %v2168_v4 = vpop.f32.mrb[105].mxu1 }
 0x1e6   :  { %3829 = vpow2.f32 %v2729_v15  ;;  %v2731_v26 = vmul.f32 1.442695, %v2662_v44  ;;  %v2169_v59 = vadd.f32 %v2168_v4, %v4824_v24  ;;  %v1994_v20 = vpop.f32.mrb[74].mxu0  ;;  %v3393_v8 = vpop.f32.mrb[106].mxu1 }
 0x1e7   :  { %v3820_v0 = vpop.eup %3819  ;;  %3831 = vpow2.f32 %v2735_v13  ;;  %v2603_v36 = vadd.f32 %v4944_v51, %v2177_v48  ;;  %v4981_v54 = vadd.f32 %v1994_v20, %v4788_v60  ;;  %v2180_v52 = vadd.f32 %v3393_v8, %v4843_v50  ;;  %v1996_v6 = vpop.f32.mrb[75].mxu0 }
 0x1e8   :  { %v2171_v1 = vpop.f32.mrb[107].mxu1  ;;  %v3822_v42 = vpop.eup %3821  ;;  %v2851_v30 = vadd.f32 1.0, %v3820_v0  ;;  %3833 = vpow2.f32 %v2731_v26  ;;  %v2601_v53 = vadd.f32 %v4944_v51, %v2169_v59 }
 0x1e9   :  { %v2172_v24 = vadd.f32 %v2171_v1, %v4834_v34  ;;  %v3824_v21 = vpop.eup %3823  ;;  %v2849_v9 = vadd.f32 1.0, %v3822_v42  ;;  %v2667_v55 = vsub.f32 0.0, %v2603_v36  ;;  %v2604_v28 = vadd.f32 %v4944_v51, %v2180_v52 }
 0x1ea   :  { %v3826_v15 = vpop.eup %3825  ;;  %3835 = vrcp.f32 %v2851_v30  ;;  %v2852_v60 = vadd.f32 1.0, %v3824_v21  ;;  %v2665_v44 = vsub.f32 0.0, %v2601_v53 }
 0x1eb   :  { %v2602_v50 = vadd.f32 %v4944_v51, %v2172_v24  ;;  %3837 = vrcp.f32 %v2849_v9  ;;  %v2850_v45 = vadd.f32 1.0, %v3826_v15  ;;  %v2741_v25 = vmul.f32 1.442695, %v2667_v55 }
 0x1ec   :  { %v2668_v13 = vsub.f32 0.0, %v2604_v28  ;;  %3839 = vrcp.f32 %v2852_v60  ;;  %v2737_v48 = vmul.f32 1.442695, %v2665_v44  ;;  %v1999_v4 = vpop.f32.mrb[76].mxu0  ;;  %v3396_v34 = vpop.f32.mrb[108].mxu1 }
 0x1ed   :  { %v2666_v61 = vsub.f32 0.0, %v2602_v50  ;;  %3841 = vrcp.f32 %v2850_v45  ;;  %v4989_v59 = vadd.f32 %v1999_v4, %v4800_v5  ;;  %v2193_v20 = vadd.f32 %v3396_v34, %v4855_v11  ;;  %v2001_v8 = vpop.f32.mrb[77].mxu0  ;;  %v2184_v0 = vpop.f32.mrb[109].mxu1 }
 0x1ee   :  { %v2743_v26 = vmul.f32 1.442695, %v2668_v13  ;;  %3843 = vpow2.f32 %v2741_v25  ;;  %v2185_v52 = vadd.f32 %v2184_v0, %v4847_v58  ;;  %v2002_v6 = vpop.f32.mrb[78].mxu0  ;;  %v3397_v1 = vpop.f32.mrb[110].mxu1 }
 0x1ef   :  { %v2739_v36 = vmul.f32 1.442695, %v2666_v61  ;;  %v3828_v42 = vpop.eup %3827  ;;  %3845 = vpow2.f32 %v2737_v48  ;;  %v2607_v30 = vadd.f32 %v4944_v51, %v2193_v20  ;;  %v4995_v53 = vadd.f32 %v2002_v6, %v4810_v12  ;;  %v2004_v24 = vpop.f32.mrb[79].mxu0 }
 0x1f0   :  { %v2196_v5 = vadd.f32 %v3397_v1, %v4859_v18  ;;  %v2187_v21 = vpop.f32.mrb[111].mxu1  ;;  %v3830_v11 = vpop.eup %3829  ;;  %v2855_v9 = vadd.f32 1.0, %v3828_v42  ;;  %3847 = vpow2.f32 %v2743_v26  ;;  %v2605_v55 = vadd.f32 %v4944_v51, %v2185_v52 }
 0x1f1   :  { %v2188_v58 = vadd.f32 %v2187_v21, %v4851_v3  ;;  %v3832_v28 = vpop.eup %3831  ;;  %v2853_v15 = vadd.f32 1.0, %v3830_v11  ;;  %3849 = vpow2.f32 %v2739_v36  ;;  %v2671_v60 = vsub.f32 0.0, %v2607_v30 }
 0x1f2   :  { %v2608_v44 = vadd.f32 %v4944_v51, %v2196_v5  ;;  %v3834_v50 = vpop.eup %3833  ;;  %3851 = vrcp.f32 %v2855_v9  ;;  %v2856_v12 = vadd.f32 1.0, %v3832_v28  ;;  %v2669_v45 = vsub.f32 0.0, %v2605_v55 }
 0x1f3   :  { %v2606_v18 = vadd.f32 %v4944_v51, %v2188_v58  ;;  %3853 = vrcp.f32 %v2853_v15  ;;  %v2854_v25 = vadd.f32 1.0, %v3834_v50  ;;  %v2749_v13 = vmul.f32 1.442695, %v2671_v60 }
 0x1f4   :  { %v2672_v48 = vsub.f32 0.0, %v2608_v44  ;;  %v3836_v61 = vpop.eup %3835  ;;  %3855 = vrcp.f32 %v2856_v12  ;;  %v2745_v4 = vmul.f32 1.442695, %v2669_v45  ;;  %v2007_v34 = vpop.f32.mrb[80].mxu0 }
 0x1f5   :  { %v2670_v3 = vsub.f32 0.0, %v2606_v18  ;;  %v3400_v26 = vpop.f32.mrb[112].mxu1  ;;  %v3838_v20 = vpop.eup %3837  ;;  %3043 = vst [vmem:[%s5352_s3 + $0x10] sm:$0xff] %v3836_v61  ;;  %3857 = vrcp.f32 %v2854_v25  ;;  %v5006_v0 = vadd.f32 %v2007_v34, %v4822_v22 }
 0x1f6   :  { %v2751_v8 = vmul.f32 1.442695, %v2672_v48  ;;  %v2209_v36 = vadd.f32 %v3400_v26, %v4874_v14  ;;  %v2009_v52 = vpop.f32.mrb[81].mxu0  ;;  %v2200_v6 = vpop.f32.mrb[113].mxu1  ;;  %3041 = vst [vmem:[%s5352_s3] sm:$0xff] %v3838_v20  ;;  %3859 = vpow2.f32 %v2749_v13 }
 0x1f7   :  { %v3840_v1 = vpop.eup %3839  ;;  %v2747_v42 = vmul.f32 1.442695, %v2670_v3  ;;  %v2201_v30 = vadd.f32 %v2200_v6, %v4864_v38  ;;  %v2010_v5 = vpop.f32.mrb[82].mxu0  ;;  %3861 = vpow2.f32 %v2745_v4 }
 0x1f8   :  { %v3401_v24 = vpop.f32.mrb[114].mxu1  ;;  %v3842_v21 = vpop.eup %3841  ;;  %3044 = vst [vmem:[%s5352_s3 + $0x18] sm:$0xff] %v3840_v1  ;;  %v2611_v22 = vadd.f32 %v4944_v51, %v2209_v36  ;;  %v5018_v14 = vadd.f32 %v2010_v5, %v4832_v33  ;;  %3863 = vpow2.f32 %v2751_v8 }
 0x1f9   :  { %v2212_v11 = vadd.f32 %v3401_v24, %v4879_v32  ;;  %v2012_v9 = vpop.f32.mrb[83].mxu0  ;;  %v2203_v55 = vpop.f32.mrb[115].mxu1  ;;  %3042 = vst [vmem:[%s5352_s3 + $0x8] sm:$0xff] %v3842_v21  ;;  %v2609_v38 = vadd.f32 %v4944_v51, %v2201_v30  ;;  %3865 = vpow2.f32 %v2747_v42 }
 0x1fa   :  { %v3844_v58 = vpop.eup %3843  ;;  %v2204_v28 = vadd.f32 %v2203_v55, %v4869_v56  ;;  %v2675_v44 = vsub.f32 0.0, %v2611_v22 }
 0x1fb   :  { %v3846_v15 = vpop.eup %3845  ;;  %v2859_v60 = vadd.f32 1.0, %v3844_v58  ;;  %v2612_v33 = vadd.f32 %v4944_v51, %v2212_v11  ;;  %v2673_v12 = vsub.f32 0.0, %v2609_v38 }
 0x1fc   :  { %v3848_v50 = vpop.eup %3847  ;;  %v2857_v32 = vadd.f32 1.0, %v3846_v15  ;;  %v2610_v45 = vadd.f32 %v4944_v51, %v2204_v28  ;;  %v2757_v13 = vmul.f32 1.442695, %v2675_v44  ;;  %v2015_v34 = vpop.f32.mrb[84].mxu0 }
 0x1fd   :  { %v3850_v18 = vpop.eup %3849  ;;  %3867 = vrcp.f32 %v2859_v60  ;;  %v2860_v25 = vadd.f32 1.0, %v3848_v50  ;;  %v2676_v48 = vsub.f32 0.0, %v2612_v33  ;;  %v2753_v56 = vmul.f32 1.442695, %v2673_v12  ;;  %v3404_v26 = vpop.f32.mrb[116].mxu1 }
 0x1fe   :  { %v3852_v61 = vpop.eup %3851  ;;  %3869 = vrcp.f32 %v2857_v32  ;;  %v2858_v4 = vadd.f32 1.0, %v3850_v18  ;;  %v2674_v3 = vsub.f32 0.0, %v2610_v45  ;;  %v5032_v36 = vadd.f32 %v2015_v34, %v4837_v41  ;;  %v2017_v6 = vpop.f32.mrb[85].mxu0 }
 0x1ff   :  { %v3854_v20 = vpop.eup %3853  ;;  %3047 = vst [vmem:[%s5352_s3 + $0x30] sm:$0xff] %v3852_v61  ;;  %3871 = vrcp.f32 %v2860_v25  ;;  %v2759_v8 = vmul.f32 1.442695, %v2676_v48  ;;  %v2225_v52 = vadd.f32 %v3404_v26, %v4894_v40  ;;  %v2216_v1 = vpop.f32.mrb[117].mxu1 }
 0x200   :  { %v3856_v42 = vpop.eup %3855  ;;  %3045 = vst [vmem:[%s5352_s3 + $0x20] sm:$0xff] %v3854_v20  ;;  %3873 = vrcp.f32 %v2858_v4  ;;  %v2755_v30 = vmul.f32 1.442695, %v2674_v3  ;;  %v2217_v5 = vadd.f32 %v2216_v1, %v4884_v62  ;;  %v2018_v24 = vpop.f32.mrb[86].mxu0 }
 0x201   :  { %v3405_v21 = vpop.f32.mrb[118].mxu1  ;;  %v3858_v22 = vpop.eup %3857  ;;  %3048 = vst [vmem:[%s5352_s3 + $0x38] sm:$0xff] %v3856_v42  ;;  %3875 = vpow2.f32 %v2757_v13  ;;  %v2615_v41 = vadd.f32 %v4944_v51, %v2225_v52  ;;  %v5044_v40 = vadd.f32 %v2018_v24, %v4841_v49 }
 0x202   :  { %v2228_v11 = vadd.f32 %v3405_v21, %v4899_v7  ;;  %v2020_v9 = vpop.f32.mrb[87].mxu0  ;;  %v2219_v55 = vpop.f32.mrb[119].mxu1  ;;  %3046 = vst [vmem:[%s5352_s3 + $0x28] sm:$0xff] %v3858_v22  ;;  %3877 = vpow2.f32 %v2753_v56  ;;  %v2613_v62 = vadd.f32 %v4944_v51, %v2217_v5 }
 0x203   :  { %v3860_v58 = vpop.eup %3859  ;;  %v2220_v38 = vadd.f32 %v2219_v55, %v4889_v16  ;;  %3879 = vpow2.f32 %v2759_v8  ;;  %v2679_v60 = vsub.f32 0.0, %v2615_v41 }
 0x204   :  { %v3862_v28 = vpop.eup %3861  ;;  %v2863_v15 = vadd.f32 1.0, %v3860_v58  ;;  %v2616_v49 = vadd.f32 %v4944_v51, %v2228_v11  ;;  %3881 = vpow2.f32 %v2755_v30  ;;  %v2677_v33 = vsub.f32 0.0, %v2613_v62  ;;  %v2023_v48 = vpop.f32.mrb[88].mxu0 }
 0x205   :  { %v3864_v44 = vpop.eup %3863  ;;  %v2861_v7 = vadd.f32 1.0, %v3862_v28  ;;  %v2614_v50 = vadd.f32 %v4944_v51, %v2220_v38  ;;  %v2765_v45 = vmul.f32 1.442695, %v2679_v60  ;;  %v3408_v61 = vpop.f32.mrb[120].mxu1  ;;  %v5055_v3 = vadd.f32 %v2023_v48, %v4845_v57 }
 0x206   :  { %v3866_v32 = vpop.eup %3865  ;;  %3883 = vrcp.f32 %v2863_v15  ;;  %v2864_v12 = vadd.f32 1.0, %v3864_v44  ;;  %v2680_v18 = vsub.f32 0.0, %v2616_v49  ;;  %v2761_v16 = vmul.f32 1.442695, %v2677_v33  ;;  %v2025_v26 = vpop.f32.mrb[89].mxu0 }
 0x207   :  { %3885 = vrcp.f32 %v2861_v7  ;;  %v2862_v25 = vadd.f32 1.0, %v3866_v32  ;;  %v2678_v13 = vsub.f32 0.0, %v2614_v50  ;;  %v3868_v4 = vpop.eup %3867  ;;  %v2241_v34 = vadd.f32 %v3408_v61, %v4914_v27  ;;  %v2232_v20 = vpop.f32.mrb[121].mxu1 }
 0x208   :  { %3887 = vrcp.f32 %v2864_v12  ;;  %v2767_v56 = vmul.f32 1.442695, %v2680_v18  ;;  %v3870_v8 = vpop.eup %3869  ;;  %3051 = vst [vmem:[%s5352_s3 + $0x50] sm:$0xff] %v3868_v4  ;;  %v2233_v6 = vadd.f32 %v2232_v20, %v4904_v19  ;;  %v2026_v1 = vpop.f32.mrb[90].mxu0 }
 0x209   :  { %3889 = vrcp.f32 %v2862_v25  ;;  %v2763_v52 = vmul.f32 1.442695, %v2678_v13  ;;  %v3409_v42 = vpop.f32.mrb[122].mxu1  ;;  %v3872_v30 = vpop.eup %3871  ;;  %3049 = vst [vmem:[%s5352_s3 + $0x40] sm:$0xff] %v3870_v8  ;;  %v2619_v57 = vadd.f32 %v4944_v51, %v2241_v34  ;;  %v5067_v27 = vadd.f32 %v2026_v1, %v4849_v2 }
 0x20a   :  { %3891 = vpow2.f32 %v2765_v45  ;;  %v2244_v5 = vadd.f32 %v3409_v42, %v4919_v31  ;;  %v2028_v24 = vpop.f32.mrb[91].mxu0  ;;  %v2235_v21 = vpop.f32.mrb[123].mxu1  ;;  %3052 = vst [vmem:[%s5352_s3 + $0x58] sm:$0xff] %v3872_v30  ;;  %v2617_v19 = vadd.f32 %v4944_v51, %v2233_v6 }
 0x20b   :  { %v3874_v22 = vpop.eup %3873  ;;  %3893 = vpow2.f32 %v2761_v16  ;;  %v2236_v41 = vadd.f32 %v2235_v21, %v4909_v23  ;;  %v2683_v2 = vsub.f32 0.0, %v2619_v57 }
 0x20c   :  { %v3876_v11 = vpop.eup %3875  ;;  %3050 = vst [vmem:[%s5352_s3 + $0x48] sm:$0xff] %v3874_v22  ;;  %3895 = vpow2.f32 %v2767_v56  ;;  %v2620_v31 = vadd.f32 %v4944_v51, %v2244_v5  ;;  %v2681_v58 = vsub.f32 0.0, %v2617_v19  ;;  %v2031_v7 = vpop.f32.mrb[92].mxu0 }
 0x20d   :  { %v3878_v9 = vpop.eup %3877  ;;  %v2867_v55 = vadd.f32 1.0, %v3876_v11  ;;  %3897 = vpow2.f32 %v2763_v52  ;;  %v2618_v62 = vadd.f32 %v4944_v51, %v2236_v41  ;;  %v2773_v49 = vmul.f32 1.442695, %v2683_v2  ;;  %v3412_v33 = vpop.f32.mrb[124].mxu1 }
 0x20e   :  { %v3880_v38 = vpop.eup %3879  ;;  %v2865_v28 = vadd.f32 1.0, %v3878_v9  ;;  %v2684_v15 = vsub.f32 0.0, %v2620_v31  ;;  %v2769_v12 = vmul.f32 1.442695, %v2681_v58  ;;  %v5081_v45 = vadd.f32 %v2031_v7, %v4853_v10  ;;  %v2033_v18 = vpop.f32.mrb[93].mxu0 }
 0x20f   :  { %v3882_v60 = vpop.eup %3881  ;;  %3899 = vrcp.f32 %v2867_v55  ;;  %v2868_v23 = vadd.f32 1.0, %v3880_v38  ;;  %v2682_v44 = vsub.f32 0.0, %v2618_v62  ;;  %v2248_v25 = vpop.f32.mrb[125].mxu1  ;;  %v2257_v48 = vadd.f32 %v3412_v33, %v4934_v43 }
 0x210   :  { %v3884_v50 = vpop.eup %3883  ;;  %3901 = vrcp.f32 %v2865_v28  ;;  %v2866_v32 = vadd.f32 1.0, %v3882_v60  ;;  %v2775_v13 = vmul.f32 1.442695, %v2684_v15  ;;  %v2249_v61 = vadd.f32 %v2248_v25, %v4924_v35  ;;  %v2034_v4 = vpop.f32.mrb[94].mxu0  ;;  %v5370_v15 = vld [vmem:[#allocation3_spill] sm:$0xff] }
 0x211   :  { %v3886_v16 = vpop.eup %3885  ;;  %3055 = vst [vmem:[%s5352_s3 + $0x70] sm:$0xff] %v3884_v50  ;;  %3903 = vrcp.f32 %v2868_v23  ;;  %v3413_v56 = vpop.f32.mrb[126].mxu1  ;;  %v2771_v10 = vmul.f32 1.442695, %v2682_v44  ;;  %v5092_v26 = vadd.f32 %v2034_v4, %v4857_v17  ;;  %v2623_v35 = vadd.f32 %v4944_v51, %v2257_v48  ;;  %v5371_v50 = vld [vmem:[#allocation19_spill] sm:$0xff] }
 0x212   :  { %v3888_v34 = vpop.eup %3887  ;;  %3053 = vst [vmem:[%s5352_s3 + $0x60] sm:$0xff] %v3886_v16  ;;  %3905 = vrcp.f32 %v2866_v32  ;;  %v2260_v20 = vadd.f32 %v3413_v56, %v4939_v47  ;;  %v2036_v8 = vpop.f32.mrb[95].mxu0  ;;  %v2621_v43 = vadd.f32 %v4944_v51, %v2249_v61 }
 0x213   :  { %v2251_v52 = vpop.f32.mrb[127].mxu1  ;;  %v3890_v6 = vpop.eup %3889  ;;  %3056 = vst [vmem:[%s5352_s3 + $0x78] sm:$0xff] %v3888_v34  ;;  %3907 = vpow2.f32 %v2773_v49  ;;  %v2687_v57 = vsub.f32 0.0, %v2623_v35 }
 0x214   :  { %v2252_v1 = vadd.f32 %v2251_v52, %v4929_v39  ;;  %v3892_v42 = vpop.eup %3891  ;;  %3054 = vst [vmem:[%s5352_s3 + $0x68] sm:$0xff] %v3890_v6  ;;  %3909 = vpow2.f32 %v2769_v12  ;;  %v2624_v17 = vadd.f32 %v4944_v51, %v2260_v20  ;;  %v2685_v5 = vsub.f32 0.0, %v2621_v43  ;;  %v2039_v2 = vpop.f32.mrb[96].mxu0  ;;  %v5372_v12 = vld [vmem:[#allocation4_spill] sm:$0xff] }
 0x215   :  { %v3894_v47 = vpop.eup %3893  ;;  %v2871_v30 = vadd.f32 1.0, %v3892_v42  ;;  %3911 = vpow2.f32 %v2775_v13  ;;  %v2781_v11 = vmul.f32 1.442695, %v2687_v57  ;;  %v3416_v58 = vpop.f32.mrb[128].mxu1  ;;  %v5107_v60 = vadd.f32 %v2039_v2, %v5370_v15 }
 0x216   :  { %v3896_v24 = vpop.eup %3895  ;;  %v2869_v21 = vadd.f32 1.0, %v3894_v47  ;;  %3913 = vpow2.f32 %v2771_v10  ;;  %v2688_v22 = vsub.f32 0.0, %v2624_v17  ;;  %v2622_v19 = vadd.f32 %v4944_v51, %v2252_v1  ;;  %v2041_v62 = vpop.f32.mrb[97].mxu0 }
 0x217   :  { %v3898_v39 = vpop.eup %3897  ;;  %3915 = vrcp.f32 %v2871_v30  ;;  %v2872_v41 = vadd.f32 1.0, %v3896_v24  ;;  %v2777_v9 = vmul.f32 1.442695, %v2685_v5  ;;  %v2273_v23 = vadd.f32 %v3416_v58, %v4961_v63  ;;  %v2264_v49 = vpop.f32.mrb[129].mxu1 }
 0x218   :  { %3917 = vrcp.f32 %v2869_v21  ;;  %v2870_v31 = vadd.f32 1.0, %v3898_v39  ;;  %v2686_v55 = vsub.f32 0.0, %v2622_v19  ;;  %v2783_v28 = vmul.f32 1.442695, %v2688_v22  ;;  %v2042_v44 = vpop.f32.mrb[98].mxu0  ;;  %v3417_v25 = vpop.f32.mrb[130].mxu1 }
 0x219   :  { %v3900_v38 = vpop.eup %3899  ;;  %3919 = vrcp.f32 %v2872_v41  ;;  %v2265_v32 = vadd.f32 %v2264_v49, %v5371_v50  ;;  %v5115_v18 = vadd.f32 %v2042_v44, %v5372_v12  ;;  %v2044_v16 = vpop.f32.mrb[99].mxu0  ;;  %v2627_v63 = vadd.f32 %v4944_v51, %v2273_v23  ;;  %v5374_v49 = vld [vmem:[#allocation6_spill] sm:$0xff] }
 0x21a   :  { %v3902_v7 = vpop.eup %3901  ;;  %3059 = vst [vmem:[%s5352_s3 + $0x90] sm:$0xff] %v3900_v38  ;;  %3921 = vrcp.f32 %v2870_v31  ;;  %v2779_v33 = vmul.f32 1.442695, %v2686_v55  ;;  %v2276_v48 = vadd.f32 %v3417_v25, %v4967_v37  ;;  %v2267_v61 = vpop.f32.mrb[131].mxu1 }
 0x21b   :  { %v3904_v13 = vpop.eup %3903  ;;  %3057 = vst [vmem:[%s5352_s3 + $0x80] sm:$0xff] %v3902_v7  ;;  %3923 = vpow2.f32 %v2781_v11  ;;  %v2625_v56 = vadd.f32 %v4944_v51, %v2265_v32  ;;  %v2268_v34 = vadd.f32 %v2267_v61, %v4953_v46  ;;  %v2691_v20 = vsub.f32 0.0, %v2627_v63  ;;  %v5373_v11 = vld [vmem:[#allocation5_spill] sm:$0xff] }
 0x21c   :  { %v3906_v4 = vpop.eup %3905  ;;  %3060 = vst [vmem:[%s5352_s3 + $0x98] sm:$0xff] %v3904_v13  ;;  %3925 = vpow2.f32 %v2777_v9  ;;  %v2628_v37 = vadd.f32 %v4944_v51, %v2276_v48  ;;  %v2047_v46 = vpop.f32.mrb[100].mxu0 }
 0x21d   :  { %v3908_v10 = vpop.eup %3907  ;;  %3058 = vst [vmem:[%s5352_s3 + $0x88] sm:$0xff] %v3906_v4  ;;  %3927 = vpow2.f32 %v2783_v28  ;;  %v2689_v6 = vsub.f32 0.0, %v2625_v56  ;;  %v2626_v35 = vadd.f32 %v4944_v51, %v2268_v34  ;;  %v2789_v42 = vmul.f32 1.442695, %v2691_v20  ;;  %v3420_v47 = vpop.f32.mrb[132].mxu1 }
 0x21e   :  { %v3910_v8 = vpop.eup %3909  ;;  %v2875_v52 = vadd.f32 1.0, %v3908_v10  ;;  %3929 = vpow2.f32 %v2779_v33  ;;  %v2692_v17 = vsub.f32 0.0, %v2628_v37  ;;  %v2049_v21 = vpop.f32.mrb[101].mxu0  ;;  %v5133_v2 = vadd.f32 %v2047_v46, %v5373_v11 }
 0x21f   :  { %v3912_v43 = vpop.eup %3911  ;;  %v2873_v1 = vadd.f32 1.0, %v3910_v8  ;;  %v2785_v5 = vmul.f32 1.442695, %v2689_v6  ;;  %v2690_v24 = vsub.f32 0.0, %v2626_v35  ;;  %v2280_v22 = vpop.f32.mrb[133].mxu1  ;;  %v2289_v62 = vadd.f32 %v3420_v47, %v4989_v59  ;;  %v5376_v21 = vld [vmem:[#allocation8_spill] sm:$0xff] }
 0x220   :  { %v3914_v30 = vpop.eup %3913  ;;  %3931 = vrcp.f32 %v2875_v52  ;;  %v2876_v57 = vadd.f32 1.0, %v3912_v43  ;;  %v2791_v41 = vmul.f32 1.442695, %v2692_v17  ;;  %v2050_v31 = vpop.f32.mrb[102].mxu0  ;;  %v2281_v38 = vadd.f32 %v2280_v22, %v4975_v29 }
 0x221   :  { %v3916_v19 = vpop.eup %3915  ;;  %3933 = vrcp.f32 %v2873_v1  ;;  %v2874_v39 = vadd.f32 1.0, %v3914_v30  ;;  %v3421_v9 = vpop.f32.mrb[134].mxu1  ;;  %v2787_v58 = vmul.f32 1.442695, %v2690_v24  ;;  %v5144_v44 = vadd.f32 %v2050_v31, %v5374_v49 }
 0x222   :  { %v3918_v55 = vpop.eup %3917  ;;  %3063 = vst [vmem:[%s5352_s3 + $0xb0] sm:$0xff] %v3916_v19  ;;  %3935 = vrcp.f32 %v2876_v57  ;;  %v2052_v28 = vpop.f32.mrb[103].mxu0  ;;  %v2292_v7 = vadd.f32 %v3421_v9, %v4995_v53  ;;  %v2631_v29 = vadd.f32 %v4944_v51, %v2289_v62  ;;  %v2629_v59 = vadd.f32 %v4944_v51, %v2281_v38 }
 0x223   :  { %v2283_v15 = vpop.f32.mrb[135].mxu1  ;;  %v3920_v23 = vpop.eup %3919  ;;  %3061 = vst [vmem:[%s5352_s3 + $0xa0] sm:$0xff] %v3918_v55  ;;  %3937 = vrcp.f32 %v2874_v39 }
 0x224   :  { %v2284_v33 = vadd.f32 %v2283_v15, %v4981_v54  ;;  %v3922_v50 = vpop.eup %3921  ;;  %3064 = vst [vmem:[%s5352_s3 + $0xb8] sm:$0xff] %v3920_v23  ;;  %3939 = vpow2.f32 %v2789_v42  ;;  %v2632_v53 = vadd.f32 %v4944_v51, %v2292_v7  ;;  %v2695_v16 = vsub.f32 0.0, %v2631_v29  ;;  %v2055_v56 = vpop.f32.mrb[104].mxu0  ;;  %v5375_v42 = vld [vmem:[#allocation7_spill] sm:$0xff] }
 0x225   :  { %v3924_v32 = vpop.eup %3923  ;;  %3062 = vst [vmem:[%s5352_s3 + $0xa8] sm:$0xff] %v3922_v50  ;;  %3941 = vpow2.f32 %v2785_v5  ;;  %v2693_v13 = vsub.f32 0.0, %v2629_v59  ;;  %v3424_v34 = vpop.f32.mrb[136].mxu1  ;;  %v5159_v17 = vadd.f32 %v2055_v56, %v5375_v42 }
 0x226   :  { %v2630_v54 = vadd.f32 %v4944_v51, %v2284_v33  ;;  %v3926_v12 = vpop.eup %3925  ;;  %v2879_v25 = vadd.f32 1.0, %v3924_v32  ;;  %3943 = vpow2.f32 %v2791_v41  ;;  %v2696_v61 = vsub.f32 0.0, %v2632_v53  ;;  %v2057_v8 = vpop.f32.mrb[105].mxu0 }
 0x227   :  { %v3928_v63 = vpop.eup %3927  ;;  %v2877_v48 = vadd.f32 1.0, %v3926_v12  ;;  %3945 = vpow2.f32 %v2787_v58  ;;  %v2797_v37 = vmul.f32 1.442695, %v2695_v16  ;;  %v2793_v6 = vmul.f32 1.442695, %v2693_v13  ;;  %v2296_v43 = vpop.f32.mrb[137].mxu1 }
 0x228   :  { %v2694_v4 = vsub.f32 0.0, %v2630_v54  ;;  %v3930_v10 = vpop.eup %3929  ;;  %3947 = vrcp.f32 %v2879_v25  ;;  %v2880_v20 = vadd.f32 1.0, %v3928_v63  ;;  %v2799_v35 = vmul.f32 1.442695, %v2696_v61  ;;  %v2058_v30 = vpop.f32.mrb[106].mxu0  ;;  %v5377_v54 = vld [vmem:[#allocation9_spill] sm:$0xff] }
 0x229   :  { %3949 = vrcp.f32 %v2877_v48  ;;  %v2878_v52 = vadd.f32 1.0, %v3930_v10  ;;  %v2305_v46 = vadd.f32 %v3424_v34, %v5032_v36  ;;  %v2297_v47 = vadd.f32 %v2296_v43, %v5006_v0  ;;  %v3425_v57 = vpop.f32.mrb[138].mxu1  ;;  %v2060_v39 = vpop.f32.mrb[107].mxu0 }
 0x22a   :  { %v3932_v1 = vpop.eup %3931  ;;  %3951 = vrcp.f32 %v2880_v20  ;;  %v2795_v24 = vmul.f32 1.442695, %v2694_v4  ;;  %v5167_v22 = vadd.f32 %v2058_v30, %v5376_v21  ;;  %v2308_v19 = vadd.f32 %v3425_v57, %v5044_v40  ;;  %v2299_v41 = vpop.f32.mrb[139].mxu1  ;;  %v5378_v20 = vld [vmem:[#allocation10_spill] sm:$0xff] }
 0x22b   :  { %v3934_v5 = vpop.eup %3933  ;;  %3067 = vst [vmem:[%s5352_s3 + $0xd0] sm:$0xff] %v3932_v1  ;;  %3953 = vrcp.f32 %v2878_v52  ;;  %v2635_v0 = vadd.f32 %v4944_v51, %v2305_v46  ;;  %v2633_v36 = vadd.f32 %v4944_v51, %v2297_v47  ;;  %v2300_v31 = vadd.f32 %v2299_v41, %v5018_v14 }
 0x22c   :  { %v3936_v11 = vpop.eup %3935  ;;  %3065 = vst [vmem:[%s5352_s3 + $0xc0] sm:$0xff] %v3934_v5  ;;  %3955 = vpow2.f32 %v2797_v37  ;;  %v2636_v40 = vadd.f32 %v4944_v51, %v2308_v19  ;;  %v2063_v23 = vpop.f32.mrb[108].mxu0 }
 0x22d   :  { %v3938_v9 = vpop.eup %3937  ;;  %3068 = vst [vmem:[%s5352_s3 + $0xd8] sm:$0xff] %v3936_v11  ;;  %3957 = vpow2.f32 %v2793_v6  ;;  %v2699_v58 = vsub.f32 0.0, %v2635_v0  ;;  %v2697_v62 = vsub.f32 0.0, %v2633_v36  ;;  %v2634_v38 = vadd.f32 %v4944_v51, %v2300_v31  ;;  %v3428_v49 = vpop.f32.mrb[140].mxu1 }
 0x22e   :  { %v3940_v55 = vpop.eup %3939  ;;  %3066 = vst [vmem:[%s5352_s3 + $0xc8] sm:$0xff] %v3938_v9  ;;  %3959 = vpow2.f32 %v2799_v35  ;;  %v2700_v15 = vsub.f32 0.0, %v2636_v40  ;;  %v5185_v12 = vadd.f32 %v2063_v23, %v5377_v54  ;;  %v2065_v25 = vpop.f32.mrb[109].mxu0  ;;  %v2321_v61 = vadd.f32 %v3428_v49, %v5081_v45 }
 0x22f   :  { %v3942_v28 = vpop.eup %3941  ;;  %v2883_v14 = vadd.f32 1.0, %v3940_v55  ;;  %3961 = vpow2.f32 %v2795_v24  ;;  %v2805_v50 = vmul.f32 1.442695, %v2699_v58  ;;  %v2698_v29 = vsub.f32 0.0, %v2634_v38  ;;  %v2312_v16 = vpop.f32.mrb[141].mxu1 }
 0x230   :  { %v3944_v7 = vpop.eup %3943  ;;  %v2881_v33 = vadd.f32 1.0, %v3942_v28  ;;  %v2801_v53 = vmul.f32 1.442695, %v2697_v62  ;;  %v2807_v48 = vmul.f32 1.442695, %v2700_v15  ;;  %v2066_v4 = vpop.f32.mrb[110].mxu0  ;;  %v2313_v10 = vadd.f32 %v2312_v16, %v5055_v3 }
 0x231   :  { %v3946_v59 = vpop.eup %3945  ;;  %3963 = vrcp.f32 %v2883_v14  ;;  %v2884_v32 = vadd.f32 1.0, %v3944_v7  ;;  %v3429_v56 = vpop.f32.mrb[142].mxu1  ;;  %v5193_v37 = vadd.f32 %v2066_v4, %v5378_v20  ;;  %v2803_v45 = vmul.f32 1.442695, %v2698_v29  ;;  %v5207_v3 = vld [vmem:[%s5351_s2] ss:$0 sm:$0xff] }
 0x232   :  { %v3948_v13 = vpop.eup %3947  ;;  %3965 = vrcp.f32 %v2881_v33  ;;  %v2882_v63 = vadd.f32 1.0, %v3946_v59  ;;  %v2324_v8 = vadd.f32 %v3429_v56, %v5092_v26  ;;  %v2068_v52 = vpop.f32.mrb[111].mxu0  ;;  %v2639_v43 = vadd.f32 %v4944_v51, %v2321_v61  ;;  %v5379_v28 = vld [vmem:[#allocation11_spill] sm:$0xff] }
 0x233   :  { %v3950_v34 = vpop.eup %3949  ;;  %3071 = vst [vmem:[%s5352_s3 + $0xf0] sm:$0xff] %v3948_v13  ;;  %3967 = vrcp.f32 %v2884_v32  ;;  %v2315_v6 = vpop.f32.mrb[143].mxu1  ;;  %v2637_v26 = vadd.f32 %v5207_v3, %v2313_v10 }
 0x234   :  { %v3952_v35 = vpop.eup %3951  ;;  %3069 = vst [vmem:[%s5352_s3 + $0xe0] sm:$0xff] %v3950_v34  ;;  %3969 = vrcp.f32 %v2882_v63  ;;  %v2316_v1 = vadd.f32 %v2315_v6, %v5067_v27  ;;  %v2640_v46 = vadd.f32 %v5207_v3, %v2324_v8  ;;  %v2703_v51 = vsub.f32 0.0, %v2639_v43  ;;  %v2071_v21 = vpop.f32.mrb[112].mxu0 }
 0x235   :  { %v3954_v42 = vpop.eup %3953  ;;  %3072 = vst [vmem:[%s5352_s3 + $0xf8] sm:$0xff] %v3952_v35  ;;  %3971 = vpow2.f32 %v2805_v50  ;;  %v2701_v5 = vsub.f32 0.0, %v2637_v26  ;;  %v3432_v19 = vpop.f32.mrb[144].mxu1  ;;  %v5216_v14 = vadd.f32 %v2071_v21, %v5379_v28  ;;  %v5380_v50 = vld [vmem:[#allocation12_spill] sm:$0xff] }
 0x236   :  { %v3956_v47 = vpop.eup %3955  ;;  %3070 = vst [vmem:[%s5352_s3 + $0xe8] sm:$0xff] %v3954_v42  ;;  %3973 = vpow2.f32 %v2801_v53  ;;  %v2638_v27 = vadd.f32 %v5207_v3, %v2316_v1  ;;  %v2704_v24 = vsub.f32 0.0, %v2640_v46  ;;  %v2073_v0 = vpop.f32.mrb[113].mxu0  ;;  %v2813_v40 = vmul.f32 1.442695, %v2703_v51  ;;  %v5381_v1 = vld [vmem:[#allocation13_spill] sm:$0xff] }
 0x237   :  { %v3958_v30 = vpop.eup %3957  ;;  %v2887_v57 = vadd.f32 1.0, %v3956_v47  ;;  %3975 = vpow2.f32 %v2807_v48  ;;  %v2328_v36 = vpop.f32.mrb[145].mxu1  ;;  %v2809_v55 = vmul.f32 1.442695, %v2701_v5  ;;  %v2337_v7 = vadd.f32 %v3432_v19, %v5133_v2 }
 0x238   :  { %v3960_v39 = vpop.eup %3959  ;;  %v2885_v41 = vadd.f32 1.0, %v3958_v30  ;;  %3977 = vpow2.f32 %v2803_v45  ;;  %v2702_v11 = vsub.f32 0.0, %v2638_v27  ;;  %v2074_v58 = vpop.f32.mrb[114].mxu0  ;;  %v2815_v38 = vmul.f32 1.442695, %v2704_v24 }
 0x239   :  { %v3962_v31 = vpop.eup %3961  ;;  %3979 = vrcp.f32 %v2887_v57  ;;  %v2888_v9 = vadd.f32 1.0, %v3960_v39  ;;  %v3433_v15 = vpop.f32.mrb[146].mxu1  ;;  %v2329_v33 = vadd.f32 %v2328_v36, %v5107_v60  ;;  %v5221_v29 = vadd.f32 %v2074_v58, %v5380_v50 }
 0x23a   :  { %3981 = vrcp.f32 %v2885_v41  ;;  %v2886_v62 = vadd.f32 1.0, %v3962_v31  ;;  %v2076_v23 = vpop.f32.mrb[115].mxu0  ;;  %v2331_v59 = vpop.f32.mrb[147].mxu1  ;;  %v2811_v53 = vmul.f32 1.442695, %v2702_v11  ;;  %v2340_v54 = vadd.f32 %v3433_v15, %v5144_v44  ;;  %v5382_v11 = vld [vmem:[#allocation14_spill] sm:$0xff] }
 0x23b   :  { %v3964_v49 = vpop.eup %3963  ;;  %3983 = vrcp.f32 %v2888_v9  ;;  %v2332_v25 = vadd.f32 %v2331_v59, %v5115_v18  ;;  %v2643_v60 = vadd.f32 %v5207_v3, %v2337_v7  ;;  %v2641_v2 = vadd.f32 %v5207_v3, %v2329_v33 }
 0x23c   :  { %v3966_v32 = vpop.eup %3965  ;;  %3075 = vst [vmem:[%s5352_s3 + $0x110] sm:$0xff] %v3964_v49  ;;  %3985 = vrcp.f32 %v2886_v62  ;;  %v2644_v44 = vadd.f32 %v5207_v3, %v2340_v54  ;;  %v2079_v4 = vpop.f32.mrb[116].mxu0 }
 0x23d   :  { %v3968_v16 = vpop.eup %3967  ;;  %3073 = vst [vmem:[%s5352_s3 + $0x100] sm:$0xff] %v3966_v32  ;;  %3987 = vpow2.f32 %v2813_v40  ;;  %v2642_v18 = vadd.f32 %v5207_v3, %v2332_v25  ;;  %v2707_v48 = vsub.f32 0.0, %v2643_v60  ;;  %v2705_v61 = vsub.f32 0.0, %v2641_v2  ;;  %v3436_v56 = vpop.f32.mrb[148].mxu1 }
 0x23e   :  { %v3970_v13 = vpop.eup %3969  ;;  %3076 = vst [vmem:[%s5352_s3 + $0x118] sm:$0xff] %v3968_v16  ;;  %3989 = vpow2.f32 %v2809_v55  ;;  %v2708_v20 = vsub.f32 0.0, %v2644_v44  ;;  %v2081_v8 = vpop.f32.mrb[117].mxu0  ;;  %v2080_v42 = vadd.f32 %v2079_v4, %v5381_v1  ;;  %v2353_v24 = vadd.f32 %v3436_v56, %v5185_v12 }
 0x23f   :  { %v3972_v63 = vpop.eup %3971  ;;  %3074 = vst [vmem:[%s5352_s3 + $0x108] sm:$0xff] %v3970_v13  ;;  %3991 = vpow2.f32 %v2815_v38  ;;  %v2344_v52 = vpop.f32.mrb[149].mxu1  ;;  %v2821_v45 = vmul.f32 1.442695, %v2707_v48  ;;  %v2706_v43 = vsub.f32 0.0, %v2642_v18 }
 0x240   :  { %v3974_v34 = vpop.eup %3973  ;;  %v2891_v10 = vadd.f32 1.0, %v3972_v63  ;;  %3993 = vpow2.f32 %v2811_v53  ;;  %v2082_v26 = vpop.f32.mrb[118].mxu0  ;;  %v2817_v51 = vmul.f32 1.442695, %v2705_v61  ;;  %v2823_v27 = vmul.f32 1.442695, %v2708_v20 }
 0x241   :  { %v3976_v6 = vpop.eup %3975  ;;  %v2889_v35 = vadd.f32 1.0, %v3974_v34  ;;  %v3437_v30 = vpop.f32.mrb[150].mxu1  ;;  %v2345_v21 = vadd.f32 %v2344_v52, %v5159_v17  ;;  %v2083_v0 = vadd.f32 %v2082_v26, %v5382_v11  ;;  %v2819_v17 = vmul.f32 1.442695, %v2706_v43  ;;  %v5383_v63 = vld [vmem:[#allocation15_spill] sm:$0xff]  ;;  %v5384_v20 = vld [vmem:[#allocation16_spill] sm:$0xff] }
 0x242   :  { %v3978_v46 = vpop.eup %3977  ;;  %3995 = vrcp.f32 %v2891_v10  ;;  %v2892_v47 = vadd.f32 1.0, %v3976_v6  ;;  %v2084_v19 = vpop.f32.mrb[119].mxu0  ;;  %v2356_v36 = vadd.f32 %v3437_v30, %v5193_v37  ;;  %v2647_v12 = vadd.f32 %v5207_v3, %v2353_v24 }
 0x243   :  { %v3980_v57 = vpop.eup %3979  ;;  %3997 = vrcp.f32 %v2889_v35  ;;  %v2890_v5 = vadd.f32 1.0, %v3978_v46  ;;  %v2347_v39 = vpop.f32.mrb[151].mxu1  ;;  %v2645_v40 = vadd.f32 %v5207_v3, %v2345_v21 }
 0x244   :  { %v3982_v41 = vpop.eup %3981  ;;  %3079 = vst [vmem:[%s5352_s3 + $0x130] sm:$0xff] %v3980_v57  ;;  %3999 = vrcp.f32 %v2892_v47  ;;  %v2348_v31 = vadd.f32 %v2347_v39, %v5167_v22  ;;  %v2648_v37 = vadd.f32 %v5207_v3, %v2356_v36  ;;  %v2711_v62 = vsub.f32 0.0, %v2647_v12  ;;  %v2087_v28 = vpop.f32.mrb[120].mxu0  ;;  %v5385_v57 = vld [vmem:[#allocation17_spill] sm:$0xff] }
 0x245   :  { %v3984_v9 = vpop.eup %3983  ;;  %3077 = vst [vmem:[%s5352_s3 + $0x120] sm:$0xff] %v3982_v41  ;;  %4001 = vrcp.f32 %v2890_v5  ;;  %v2709_v38 = vsub.f32 0.0, %v2645_v40  ;;  %v3440_v15 = vpop.f32.mrb[152].mxu1  ;;  %v2088_v48 = vadd.f32 %v2087_v28, %v5383_v63 }
 0x246   :  { %v3986_v55 = vpop.eup %3985  ;;  %3080 = vst [vmem:[%s5352_s3 + $0x138] sm:$0xff] %v3984_v9  ;;  %4003 = vpow2.f32 %v2821_v45  ;;  %v2646_v22 = vadd.f32 %v5207_v3, %v2348_v31  ;;  %v2712_v7 = vsub.f32 0.0, %v2648_v37  ;;  %v2089_v33 = vpop.f32.mrb[121].mxu0  ;;  %v2829_v53 = vmul.f32 1.442695, %v2711_v62 }
 0x247   :  { %v3988_v58 = vpop.eup %3987  ;;  %3078 = vst [vmem:[%s5352_s3 + $0x128] sm:$0xff] %v3986_v55  ;;  %4005 = vpow2.f32 %v2817_v51  ;;  %v2360_v50 = vpop.f32.mrb[153].mxu1  ;;  %v2825_v2 = vmul.f32 1.442695, %v2709_v38  ;;  %v2369_v61 = vadd.f32 %v3440_v15, %v2080_v42 }
 0x248   :  { %v3990_v23 = vpop.eup %3989  ;;  %v2895_v49 = vadd.f32 1.0, %v3988_v58  ;;  %4007 = vpow2.f32 %v2823_v27  ;;  %v2710_v54 = vsub.f32 0.0, %v2646_v22  ;;  %v2090_v25 = vpop.f32.mrb[122].mxu0  ;;  %v2831_v13 = vmul.f32 1.442695, %v2712_v7 }
 0x249   :  { %v3992_v59 = vpop.eup %3991  ;;  %v2893_v32 = vadd.f32 1.0, %v3990_v23  ;;  %4009 = vpow2.f32 %v2819_v17  ;;  %v3441_v44 = vpop.f32.mrb[154].mxu1  ;;  %v2361_v10 = vadd.f32 %v2360_v50, %v5216_v14  ;;  %v2091_v8 = vadd.f32 %v2090_v25, %v5384_v20  ;;  %v5386_v23 = vld [vmem:[#allocation18_spill] sm:$0xff] }
 0x24a   :  { %v3994_v16 = vpop.eup %3993  ;;  %4011 = vrcp.f32 %v2895_v49  ;;  %v2896_v60 = vadd.f32 1.0, %v3992_v59  ;;  %v2092_v4 = vpop.f32.mrb[123].mxu0  ;;  %v2372_v52 = vadd.f32 %v3441_v44, %v2083_v0  ;;  %v2827_v35 = vmul.f32 1.442695, %v2710_v54 }
 0x24b   :  { %4013 = vrcp.f32 %v2893_v32  ;;  %v2894_v18 = vadd.f32 1.0, %v3994_v16  ;;  %v2363_v56 = vpop.f32.mrb[155].mxu1  ;;  %v2651_v45 = vadd.f32 %v5207_v3, %v2369_v61  ;;  %v2649_v14 = vadd.f32 %v5207_v3, %v2361_v10 }
 0x24c   :  { %v3996_v34 = vpop.eup %3995  ;;  %4015 = vrcp.f32 %v2896_v60  ;;  %v2364_v43 = vadd.f32 %v2363_v56, %v5221_v29  ;;  %v2652_v42 = vadd.f32 %v5207_v3, %v2372_v52  ;;  %v2095_v29 = vpop.f32.mrb[124].mxu0 }
 0x24d   :  { %v3998_v6 = vpop.eup %3997  ;;  %3083 = vst [vmem:[%s5352_s3 + $0x150] sm:$0xff] %v3996_v34  ;;  %4017 = vrcp.f32 %v2894_v18  ;;  %v2715_v46 = vsub.f32 0.0, %v2651_v45  ;;  %v3444_v51 = vpop.f32.mrb[156].mxu1  ;;  %v2713_v30 = vsub.f32 0.0, %v2649_v14  ;;  %v2096_v5 = vadd.f32 %v2095_v29, %v5385_v57 }
 0x24e   :  { %v4000_v1 = vpop.eup %3999  ;;  %3081 = vst [vmem:[%s5352_s3 + $0x140] sm:$0xff] %v3998_v6  ;;  %4019 = vpow2.f32 %v2829_v53  ;;  %v2650_v47 = vadd.f32 %v5207_v3, %v2364_v43  ;;  %v2097_v24 = vpop.f32.mrb[125].mxu0  ;;  %v2716_v41 = vsub.f32 0.0, %v2652_v42 }
 0x24f   :  { %v4002_v26 = vpop.eup %4001  ;;  %3084 = vst [vmem:[%s5352_s3 + $0x158] sm:$0xff] %v4000_v1  ;;  %4021 = vpow2.f32 %v2825_v2  ;;  %v2376_v21 = vpop.f32.mrb[157].mxu1  ;;  %v2837_v9 = vmul.f32 1.442695, %v2715_v46  ;;  %v2385_v12 = vadd.f32 %v3444_v51, %v2096_v5  ;;  %v2833_v22 = vmul.f32 1.442695, %v2713_v30 }
 0x250   :  { %v4004_v27 = vpop.eup %4003  ;;  %3082 = vst [vmem:[%s5352_s3 + $0x148] sm:$0xff] %v4002_v26  ;;  %4023 = vpow2.f32 %v2831_v13  ;;  %v2098_v11 = vpop.f32.mrb[126].mxu0  ;;  %v2714_v17 = vsub.f32 0.0, %v2650_v47  ;;  %v2377_v58 = vadd.f32 %v2376_v21, %v2088_v48  ;;  %v2839_v33 = vmul.f32 1.442695, %v2716_v41 }
 0x251   :  { %v4006_v19 = vpop.eup %4005  ;;  %v2899_v39 = vadd.f32 1.0, %v4004_v27  ;;  %4025 = vpow2.f32 %v2827_v35  ;;  %v3445_v0 = vpop.f32.mrb[158].mxu1  ;;  %v2655_v15 = vadd.f32 %v5207_v3, %v2385_v12  ;;  %v2099_v49 = vadd.f32 %v2098_v11, %v5386_v23 }
 0x252   :  { %v4008_v36 = vpop.eup %4007  ;;  %v2897_v31 = vadd.f32 1.0, %v4006_v19  ;;  %v2100_v40 = vpop.f32.mrb[127].mxu0  ;;  %v2653_v50 = vadd.f32 %v5207_v3, %v2377_v58  ;;  %v2835_v53 = vmul.f32 1.442695, %v2714_v17 }
 0x253   :  { %v4010_v55 = vpop.eup %4009  ;;  %4027 = vrcp.f32 %v2899_v39  ;;  %v2900_v37 = vadd.f32 1.0, %v4008_v36  ;;  %v2379_v62 = vpop.f32.mrb[159].mxu1  ;;  %v2388_v54 = vadd.f32 %v3445_v0, %v2099_v49  ;;  %v2719_v16 = vsub.f32 0.0, %v2655_v15 }
 0x254   :  { %v4012_v38 = vpop.eup %4011  ;;  %4029 = vrcp.f32 %v2897_v31  ;;  %v2898_v28 = vadd.f32 1.0, %v4010_v55  ;;  %v2380_v59 = vadd.f32 %v2379_v62, %v2091_v8  ;;  %v2717_v13 = vsub.f32 0.0, %v2653_v50 }
 0x255   :  { %v4014_v7 = vpop.eup %4013  ;;  %3087 = vst [vmem:[%s5352_s3 + $0x170] sm:$0xff] %v4012_v38  ;;  %4031 = vrcp.f32 %v2900_v37  ;;  %v2656_v44 = vadd.f32 %v5207_v3, %v2388_v54  ;;  %v2845_v20 = vmul.f32 1.442695, %v2719_v16 }
 0x256   :  { %v4016_v32 = vpop.eup %4015  ;;  %3085 = vst [vmem:[%s5352_s3 + $0x160] sm:$0xff] %v4014_v7  ;;  %4033 = vrcp.f32 %v2898_v28  ;;  %v2654_v60 = vadd.f32 %v5207_v3, %v2380_v59  ;;  %v2841_v52 = vmul.f32 1.442695, %v2717_v13 }
 0x257   :  { %v4018_v25 = vpop.eup %4017  ;;  %3088 = vst [vmem:[%s5352_s3 + $0x178] sm:$0xff] %v4016_v32  ;;  %4035 = vpow2.f32 %v2837_v9  ;;  %v2720_v4 = vsub.f32 0.0, %v2656_v44 }
 0x258   :  { %v4020_v2 = vpop.eup %4019  ;;  %3086 = vst [vmem:[%s5352_s3 + $0x168] sm:$0xff] %v4018_v25  ;;  %4037 = vpow2.f32 %v2833_v22  ;;  %v2718_v56 = vsub.f32 0.0, %v2654_v60 }
 0x259   :  { %v4022_v18 = vpop.eup %4021  ;;  %v2903_v63 = vadd.f32 1.0, %v4020_v2  ;;  %4039 = vpow2.f32 %v2839_v33  ;;  %v2847_v35 = vmul.f32 1.442695, %v2720_v4 }
 0x25a   :  { %v4024_v48 = vpop.eup %4023  ;;  %v2901_v61 = vadd.f32 1.0, %v4022_v18  ;;  %4041 = vpow2.f32 %v2835_v53  ;;  %v2843_v3 = vmul.f32 1.442695, %v2718_v56 }
 0x25b   :  { %v4026_v34 = vpop.eup %4025  ;;  %4043 = vrcp.f32 %v2903_v63  ;;  %v2904_v10 = vadd.f32 1.0, %v4024_v48 }
 0x25c   :  { %4045 = vrcp.f32 %v2901_v61  ;;  %v2902_v8 = vadd.f32 1.0, %v4026_v34 }
 0x25d   :  { %v4028_v6 = vpop.eup %4027  ;;  %4047 = vrcp.f32 %v2904_v10 }
 0x25e   :  { %v4030_v45 = vpop.eup %4029  ;;  %3091 = vst [vmem:[%s5352_s3 + $0x190] sm:$0xff] %v4028_v6  ;;  %4049 = vrcp.f32 %v2902_v8 }
 0x25f   :  { %v4032_v43 = vpop.eup %4031  ;;  %3089 = vst [vmem:[%s5352_s3 + $0x180] sm:$0xff] %v4030_v45  ;;  %4051 = vpow2.f32 %v2845_v20 }
 0x260   :  { %v4034_v1 = vpop.eup %4033  ;;  %3092 = vst [vmem:[%s5352_s3 + $0x198] sm:$0xff] %v4032_v43  ;;  %4053 = vpow2.f32 %v2841_v52 }
 0x261   :  { %v4036_v14 = vpop.eup %4035  ;;  %3090 = vst [vmem:[%s5352_s3 + $0x188] sm:$0xff] %v4034_v1  ;;  %4055 = vpow2.f32 %v2847_v35 }
 0x262   :  { %v4038_v42 = vpop.eup %4037  ;;  %v2907_v26 = vadd.f32 1.0, %v4036_v14  ;;  %4057 = vpow2.f32 %v2843_v3 }
 0x263   :  { %v4040_v46 = vpop.eup %4039  ;;  %v2905_v47 = vadd.f32 1.0, %v4038_v42 }
 0x264   :  { %v4042_v29 = vpop.eup %4041  ;;  %4059 = vrcp.f32 %v2907_v26  ;;  %v2908_v51 = vadd.f32 1.0, %v4040_v46 }
 0x265   :  { %v4044_v27 = vpop.eup %4043  ;;  %4061 = vrcp.f32 %v2905_v47  ;;  %v2906_v30 = vadd.f32 1.0, %v4042_v29 }
 0x266   :  { %v4046_v57 = vpop.eup %4045  ;;  %3095 = vst [vmem:[%s5352_s3 + $0x1b0] sm:$0xff] %v4044_v27  ;;  %4063 = vrcp.f32 %v2908_v51 }
 0x267   :  { %v4048_v5 = vpop.eup %4047  ;;  %3093 = vst [vmem:[%s5352_s3 + $0x1a0] sm:$0xff] %v4046_v57  ;;  %4065 = vrcp.f32 %v2906_v30 }
 0x268   :  { %v4050_v24 = vpop.eup %4049  ;;  %3096 = vst [vmem:[%s5352_s3 + $0x1b8] sm:$0xff] %v4048_v5 }
 0x269   :  { %v4052_v21 = vpop.eup %4051  ;;  %3094 = vst [vmem:[%s5352_s3 + $0x1a8] sm:$0xff] %v4050_v24 }
 0x26a   :  { %v4054_v19 = vpop.eup %4053  ;;  %v2911_v39 = vadd.f32 1.0, %v4052_v21 }
 0x26b   :  { %v4056_v41 = vpop.eup %4055  ;;  %v2909_v11 = vadd.f32 1.0, %v4054_v19 }
 0x26c   :  { %v4058_v0 = vpop.eup %4057  ;;  %4067 = vrcp.f32 %v2911_v39  ;;  %v2912_v36 = vadd.f32 1.0, %v4056_v41 }
 0x26d   :  { %4069 = vrcp.f32 %v2909_v11  ;;  %v2910_v31 = vadd.f32 1.0, %v4058_v0 }
 0x26e   :  { %v4060_v9 = vpop.eup %4059  ;;  %4071 = vrcp.f32 %v2912_v36 }
 0x26f   :  { %v4062_v17 = vpop.eup %4061  ;;  %3099 = vst [vmem:[%s5352_s3 + $0x1d0] sm:$0xff] %v4060_v9  ;;  %4073 = vrcp.f32 %v2910_v31 }
 0x270   :  { %v4064_v12 = vpop.eup %4063  ;;  %3097 = vst [vmem:[%s5352_s3 + $0x1c0] sm:$0xff] %v4062_v17 }
 0x271   :  { %v4066_v40 = vpop.eup %4065  ;;  %3100 = vst [vmem:[%s5352_s3 + $0x1d8] sm:$0xff] %v4064_v12 }
 0x272   :  { %3098 = vst [vmem:[%s5352_s3 + $0x1c8] sm:$0xff] %v4066_v40 }
 0x276   :  { %v4068_v55 = vpop.eup %4067 }
 0x277   :  { %v4070_v37 = vpop.eup %4069  ;;  %3103 = vst [vmem:[%s5352_s3 + $0x1f0] sm:$0xff] %v4068_v55 }
 0x278   :  { %v4072_v22 = vpop.eup %4071  ;;  %3101 = vst [vmem:[%s5352_s3 + $0x1e0] sm:$0xff] %v4070_v37 }
 0x279   :  { %v4074_v58 = vpop.eup %4073  ;;  %3104 = vst [vmem:[%s5352_s3 + $0x1f8] sm:$0xff] %v4072_v22 }
 0x27a   :  { %3102 = vst [vmem:[%s5352_s3 + $0x1e8] sm:$0xff] %v4074_v58 }

</bundles_post_ra>
